<compile_context>
chip_gen: v7x
topology: tpu7x:2x2x1
jax: 0.10.0
libtpu: 0.0.40
codegen_flags: <defaults>
</compile_context>

<pallas_src>
import functools

import jax
import jax.numpy as jnp
import numpy as np
from jax import lax
from jax.experimental import pallas as pl
from jax.experimental.pallas import tpu as pltpu

IMG = 28                      # input spatial size (fixed: fc1 expects F*13*13)
POOL = 13                     # pooled spatial size
CONV_LEN = 25 * IMG + 26      # 726: flattened conv positions we need (r<=25, c<=25)
PMC_LEN = CONV_LEN - 1        # 725: after horizontal pair-max
PM_LEN = PMC_LEN - IMG        # 697: after vertical pair-max (full 2x2 window max)
SLOT = 768                    # 128-aligned per-filter lane slot in the fc1 scratch


def _vpu_supports_bf16():
    """bf16 VALU path exists on v6e/v7x; not on v5e/v5p/v4 and older."""
    try:
        kind = jax.devices()[0].device_kind.lower()
    except Exception:
        return False
    if "tpu" not in kind:
        return False
    return not any(s in kind for s in ("v2", "v3", "v4", "v5"))


# -----------------------------------------------------------------------------
# Fused kernel: (TB, 784) image rows -> (TB, 10) softmax probabilities
# -----------------------------------------------------------------------------
def _mnist_fused_kernel(x_ref, wc_ref, bc_ref, w1e_ref, b1_ref, w2_ref, b2_ref,
                        o_ref, s_ref, *, n_filters, compute_dtype):
    # x_ref:   (TB, 784) VMEM f32 | wc_ref: (F*9,) SMEM f32 | bc_ref: (F,) SMEM f32
    # w1e_ref: (F*768, H) VMEM dt | b1_ref: (1, H) VMEM f32
    # w2_ref:  (H, 10) VMEM f32   | b2_ref: (1, 10) VMEM f32 | o_ref: (TB, 10) f32
    # s_ref:   (TB, F*768) VMEM dt scratch (fc1 input slab)
    dt = compute_dtype
    tb = x_ref.shape[0]
    x = x_ref[...].astype(dt)                                  # (TB, 784)

    # 3x3 valid cross-correlation (torch Conv2d convention), flattened:
    # acc_f[b, r*28+c] = conv[b, f, r, c] for r,c <= 25 (other lanes are finite
    # "don't care" values that hit zero rows of w1e below).
    # Tap-outermost loop: one shifted slab live at a time + F accumulators.
    accs = [None] * n_filters
    for t in range(9):
        ki, kj = divmod(t, 3)
        off = ki * IMG + kj
        sh = x[:, off:off + CONV_LEN]                          # (TB, 726)
        for f in range(n_filters):
            w_s = wc_ref[f * 9 + t].astype(dt)                 # scalar cast (SMEM f32)
            term = w_s * sh
            accs[f] = term if accs[f] is None else accs[f] + term

    # Bias + ReLU + 2x2 max-pool (pure VPU, contiguous-slice maxes), then pack
    # each filter's pooled slab into a 128-aligned slot of the fc1 scratch.
    tail0 = jnp.zeros((tb, SLOT - PM_LEN), dt)
    for f in range(n_filters):
        a = jnp.maximum(accs[f] + bc_ref[f].astype(dt), 0.0)             # (TB, 726)
        pmc = jnp.maximum(a[:, 0:PMC_LEN], a[:, 1:PMC_LEN + 1])          # (TB, 725)
        pm = jnp.maximum(pmc[:, 0:PM_LEN], pmc[:, IMG:IMG + PM_LEN])     # (TB, 697)
        # pm[b, 56*i + 2*j] == pooled[b, f, i, j]; even-index selection is
        # folded into w1e (zero rows elsewhere).
        s_ref[:, f * SLOT:f * SLOT + PM_LEN] = pm
        # Zero the 71 unused tail lanes so uninitialized VMEM can't leak NaN
        # through the 0 * garbage rows of w1e (cheap: 71 lanes per filter).
        s_ref[:, f * SLOT + PM_LEN:(f + 1) * SLOT] = tail0

    # fc1: a single MXU dot over all filters (K = F*768), f32 accumulation.
    h = jnp.dot(s_ref[...], w1e_ref[...], preferred_element_type=jnp.float32)
    h = jnp.maximum(h + b1_ref[...], 0.0)                      # fc1 bias + ReLU

    # fc2 + softmax(dim=1); divide replaced by EUP approx reciprocal.
    logits = jnp.dot(h, w2_ref[...],
                     preferred_element_type=jnp.float32) + b2_ref[...]
    m = jnp.max(logits, axis=1, keepdims=True)
    e = jnp.exp(logits - m)
    denom = jnp.sum(e, axis=1, keepdims=True)
    o_ref[...] = e * pl.reciprocal(denom, approx=True)


# -----------------------------------------------------------------------------
# Wrapper: layout plumbing (flatten images, expand fc1 weights) + pallas_call
# -----------------------------------------------------------------------------
def mnist_net_forward(x, params, *, tb=256, use_bf16=None):
    conv_w, conv_b, w1, b1, w2, b2 = params
    B = x.shape[0]
    F_ = conv_w.shape[0]
    H = w1.shape[1]

    if use_bf16 is None:
        use_bf16 = _vpu_supports_bf16()
    dt = jnp.bfloat16 if use_bf16 else jnp.float32

    # Effective batch tile: multiple of 16, no bigger than the padded batch.
    tb = max(16, (tb // 16) * 16)
    b_round = ((B + 15) // 16) * 16
    tb_eff = min(tb, b_round)
    b_pad = ((B + tb_eff - 1) // tb_eff) * tb_eff

    # Lane-dense input: flatten each 28x28 image into one 784-lane row.
    x_flat = x.reshape(B, IMG * IMG).astype(jnp.float32)
    if b_pad != B:
        x_flat = jnp.pad(x_flat, ((0, b_pad - B), (0, 0)))

    # Flat 1-D conv weights for SMEM (index f*9 + ki*3 + kj).
    wc = conv_w.reshape(F_ * 9).astype(jnp.float32)
    bc = conv_b.astype(jnp.float32)

    # Expanded fc1 weights: pooled (f, i, j) lives at lane f*768 + 56*i + 2*j of
    # the scratch slab; all other rows are zero (they absorb the "don't care"
    # lanes of the padded conv/pool slab and the zeroed slot tails).
    idx = (56 * jnp.arange(POOL)[:, None] + 2 * jnp.arange(POOL)[None, :]).reshape(-1)
    w1e = jnp.zeros((F_, SLOT, H), jnp.float32)
    w1e = w1e.at[:, idx, :].set(w1.reshape(F_, POOL * POOL, H).astype(jnp.float32))
    w1e = w1e.reshape(F_ * SLOT, H).astype(dt)

    # Raise the scoped VMEM limit only for real (large-tile) workloads; the
    # default limit is plenty for small tiles and safe on every chip.
    vmem_limit = 48 * 1024 * 1024 if tb_eff >= 128 else None

    kernel = functools.partial(_mnist_fused_kernel, n_filters=F_, compute_dtype=dt)
    out = pl.pallas_call(
        kernel,
        out_shape=jax.ShapeDtypeStruct((b_pad, 10), jnp.float32),
        grid=(b_pad // tb_eff,),
        in_specs=[
            pl.BlockSpec((tb_eff, IMG * IMG), lambda b: (b, 0)),
            pl.BlockSpec((F_ * 9,), lambda b: (0,),
                         memory_space=pltpu.MemorySpace.SMEM),
            pl.BlockSpec((F_,), lambda b: (0,),
                         memory_space=pltpu.MemorySpace.SMEM),
            pl.BlockSpec((F_ * SLOT, H), lambda b: (0, 0)),
            pl.BlockSpec((1, H), lambda b: (0, 0)),
            pl.BlockSpec((H, 10), lambda b: (0, 0)),
            pl.BlockSpec((1, 10), lambda b: (0, 0)),
        ],
        out_specs=pl.BlockSpec((tb_eff, 10), lambda b: (b, 0)),
        scratch_shapes=[pltpu.VMEM((tb_eff, F_ * SLOT), dt)],
        compiler_params=pltpu.CompilerParams(
            dimension_semantics=("parallel",),   # batch tiles -> both TCs on v7x
            vmem_limit_bytes=vmem_limit),
    )(x_flat, wc, bc, w1e, b1.astype(jnp.float32), w2.astype(jnp.float32),
      b2.astype(jnp.float32))
    return out[:B]


if __name__ == "__main__":
    B, F_, H = 2, 4, 32   # batch=2, n_filters=4, n_units_hidden=32
    key = jax.random.PRNGKey(0)
    keys = jax.random.split(key, 7)

    # Input spatial size is fixed at 28x28 by the architecture (fc1 expects F*13*13).
    x = jax.random.normal(keys[0], (B, 1, 28, 28), jnp.float32)

    # Deterministic synthetic parameters (torch shapes: conv (F,1,3,3); fc weights
    # generated directly in transposed (in_features, out_features) layout).
    conv_w = 0.10 * jax.random.normal(keys[1], (F_, 1, 3, 3), jnp.float32)
    conv_b = 0.10 * jax.random.normal(keys[2], (F_,), jnp.float32)
    w1 = 0.05 * jax.random.normal(keys[3], (F_ * 13 * 13, H), jnp.float32)
    b1 = 0.05 * jax.random.normal(keys[4], (1, H), jnp.float32)
    w2 = 0.05 * jax.random.normal(keys[5], (H, 10), jnp.float32)
    b2 = 0.05 * jax.random.normal(keys[6], (1, 10), jnp.float32)

    out = mnist_net_forward(x, (conv_w, conv_b, w1, b1, w2, b2))
    out = jax.block_until_ready(out)

    # Pure-JAX high-precision reference for correctness.
    y = lax.conv_general_dilated(x, conv_w, (1, 1), "VALID",
                                 dimension_numbers=("NCHW", "OIHW", "NCHW"),
                                 precision=lax.Precision.HIGHEST)
    y = jnp.maximum(y + conv_b[None, :, None, None], 0.0)
    y = lax.reduce_window(y, -jnp.inf, lax.max, (1, 1, 2, 2), (1, 1, 2, 2), "VALID")
    h_ref = jnp.maximum(
        jnp.dot(y.reshape(B, -1), w1, precision=lax.Precision.HIGHEST) + b1, 0.0)
    ref = jax.nn.softmax(
        jnp.dot(h_ref, w2, precision=lax.Precision.HIGHEST) + b2, axis=1)

    # Tolerance: f32 mode pays default MXU precision + approx reciprocal;
    # bf16 conv/pool mode (v6e/v7x) adds bf16 elementwise rounding.
    tol = 1e-2 if _vpu_supports_bf16() else 3e-3
    np.testing.assert_allclose(np.asarray(out), np.asarray(ref), atol=tol, rtol=tol)
    assert out.shape == (B, 10) and out.dtype == jnp.float32
    print("KERNEL_OK")
</pallas_src>

<mosaic_0001>
module attributes {stable_mosaic.version = 11 : i64} {
  func.func @_mnist_fused_kernel(%arg0: i32, %arg1: memref<16x784xf32, #tpu.memory_space<vmem>>, %arg2: memref<36xf32, #tpu.memory_space<smem>>, %arg3: memref<4xf32, #tpu.memory_space<smem>>, %arg4: memref<3072x32xf32, #tpu.memory_space<vmem>>, %arg5: memref<1x32xf32, #tpu.memory_space<vmem>>, %arg6: memref<32x10xf32, #tpu.memory_space<vmem>>, %arg7: memref<1x10xf32, #tpu.memory_space<vmem>>, %arg8: memref<16x10xf32, #tpu.memory_space<vmem>>, %arg9: memref<16x3072xf32, #tpu.memory_space<vmem>>) attributes {dimension_semantics = [#tpu.dimension_semantics<parallel>], iteration_bounds = array<i64: 1>, scalar_prefetch = 0 : i64, scratch_operands = 1 : i64, tpu.core_type = #tpu.core_type<tc>, window_params = [{transform_indices = @transform_0, window_bounds = array<i64: 16, 784>}, {transform_indices = @transform_1, window_bounds = array<i64: 36>}, {transform_indices = @transform_2, window_bounds = array<i64: 4>}, {pipeline_mode = #tpu.pipeline_mode<synchronous>, transform_indices = @transform_3, window_bounds = array<i64: 3072, 32>}, {pipeline_mode = #tpu.pipeline_mode<synchronous>, transform_indices = @transform_4, window_bounds = array<i64: 1, 32>}, {pipeline_mode = #tpu.pipeline_mode<synchronous>, transform_indices = @transform_5, window_bounds = array<i64: 32, 10>}, {pipeline_mode = #tpu.pipeline_mode<synchronous>, transform_indices = @transform_6, window_bounds = array<i64: 1, 10>}, {transform_indices = @transform_7, window_bounds = array<i64: 16, 10>}]} {
    %c0 = arith.constant 0 : index
    %c0_0 = arith.constant 0 : index
    %0 = vector.load %arg1[%c0, %c0_0] : memref<16x784xf32, #tpu.memory_space<vmem>>, vector<16x784xf32>
    %1 = vector.extract_strided_slice %0 {offsets = [0, 0], sizes = [16, 726], strides = [1, 1]} : vector<16x784xf32> to vector<16x726xf32>
    %c0_1 = arith.constant 0 : index
    %2 = memref.load %arg2[%c0_1] : memref<36xf32, #tpu.memory_space<smem>>
    %3 = vector.broadcast %2 : f32 to vector<16x726xf32>
    %4 = arith.mulf %3, %1 : vector<16x726xf32>
    %c9 = arith.constant 9 : index
    %5 = memref.load %arg2[%c9] : memref<36xf32, #tpu.memory_space<smem>>
    %6 = vector.broadcast %5 : f32 to vector<16x726xf32>
    %7 = arith.mulf %6, %1 : vector<16x726xf32>
    %c18 = arith.constant 18 : index
    %8 = memref.load %arg2[%c18] : memref<36xf32, #tpu.memory_space<smem>>
    %9 = vector.broadcast %8 : f32 to vector<16x726xf32>
    %10 = arith.mulf %9, %1 : vector<16x726xf32>
    %c27 = arith.constant 27 : index
    %11 = memref.load %arg2[%c27] : memref<36xf32, #tpu.memory_space<smem>>
    %12 = vector.broadcast %11 : f32 to vector<16x726xf32>
    %13 = arith.mulf %12, %1 : vector<16x726xf32>
    %14 = vector.extract_strided_slice %0 {offsets = [0, 1], sizes = [16, 726], strides = [1, 1]} : vector<16x784xf32> to vector<16x726xf32>
    %c1 = arith.constant 1 : index
    %15 = memref.load %arg2[%c1] : memref<36xf32, #tpu.memory_space<smem>>
    %16 = vector.broadcast %15 : f32 to vector<16x726xf32>
    %17 = arith.mulf %16, %14 : vector<16x726xf32>
    %18 = arith.addf %4, %17 : vector<16x726xf32>
    %c10 = arith.constant 10 : index
    %19 = memref.load %arg2[%c10] : memref<36xf32, #tpu.memory_space<smem>>
    %20 = vector.broadcast %19 : f32 to vector<16x726xf32>
    %21 = arith.mulf %20, %14 : vector<16x726xf32>
    %22 = arith.addf %7, %21 : vector<16x726xf32>
    %c19 = arith.constant 19 : index
    %23 = memref.load %arg2[%c19] : memref<36xf32, #tpu.memory_space<smem>>
    %24 = vector.broadcast %23 : f32 to vector<16x726xf32>
    %25 = arith.mulf %24, %14 : vector<16x726xf32>
    %26 = arith.addf %10, %25 : vector<16x726xf32>
    %c28 = arith.constant 28 : index
    %27 = memref.load %arg2[%c28] : memref<36xf32, #tpu.memory_space<smem>>
    %28 = vector.broadcast %27 : f32 to vector<16x726xf32>
    %29 = arith.mulf %28, %14 : vector<16x726xf32>
    %30 = arith.addf %13, %29 : vector<16x726xf32>
    %31 = vector.extract_strided_slice %0 {offsets = [0, 2], sizes = [16, 726], strides = [1, 1]} : vector<16x784xf32> to vector<16x726xf32>
    %c2 = arith.constant 2 : index
    %32 = memref.load %arg2[%c2] : memref<36xf32, #tpu.memory_space<smem>>
    %33 = vector.broadcast %32 : f32 to vector<16x726xf32>
    %34 = arith.mulf %33, %31 : vector<16x726xf32>
    %35 = arith.addf %18, %34 : vector<16x726xf32>
    %c11 = arith.constant 11 : index
    %36 = memref.load %arg2[%c11] : memref<36xf32, #tpu.memory_space<smem>>
    %37 = vector.broadcast %36 : f32 to vector<16x726xf32>
    %38 = arith.mulf %37, %31 : vector<16x726xf32>
    %39 = arith.addf %22, %38 : vector<16x726xf32>
    %c20 = arith.constant 20 : index
    %40 = memref.load %arg2[%c20] : memref<36xf32, #tpu.memory_space<smem>>
    %41 = vector.broadcast %40 : f32 to vector<16x726xf32>
    %42 = arith.mulf %41, %31 : vector<16x726xf32>
    %43 = arith.addf %26, %42 : vector<16x726xf32>
    %c29 = arith.constant 29 : index
    %44 = memref.load %arg2[%c29] : memref<36xf32, #tpu.memory_space<smem>>
    %45 = vector.broadcast %44 : f32 to vector<16x726xf32>
    %46 = arith.mulf %45, %31 : vector<16x726xf32>
    %47 = arith.addf %30, %46 : vector<16x726xf32>
    %48 = vector.extract_strided_slice %0 {offsets = [0, 28], sizes = [16, 726], strides = [1, 1]} : vector<16x784xf32> to vector<16x726xf32>
    %c3 = arith.constant 3 : index
    %49 = memref.load %arg2[%c3] : memref<36xf32, #tpu.memory_space<smem>>
    %50 = vector.broadcast %49 : f32 to vector<16x726xf32>
    %51 = arith.mulf %50, %48 : vector<16x726xf32>
    %52 = arith.addf %35, %51 : vector<16x726xf32>
    %c12 = arith.constant 12 : index
    %53 = memref.load %arg2[%c12] : memref<36xf32, #tpu.memory_space<smem>>
    %54 = vector.broadcast %53 : f32 to vector<16x726xf32>
    %55 = arith.mulf %54, %48 : vector<16x726xf32>
    %56 = arith.addf %39, %55 : vector<16x726xf32>
    %c21 = arith.constant 21 : index
    %57 = memref.load %arg2[%c21] : memref<36xf32, #tpu.memory_space<smem>>
    %58 = vector.broadcast %57 : f32 to vector<16x726xf32>
    %59 = arith.mulf %58, %48 : vector<16x726xf32>
    %60 = arith.addf %43, %59 : vector<16x726xf32>
    %c30 = arith.constant 30 : index
    %61 = memref.load %arg2[%c30] : memref<36xf32, #tpu.memory_space<smem>>
    %62 = vector.broadcast %61 : f32 to vector<16x726xf32>
    %63 = arith.mulf %62, %48 : vector<16x726xf32>
    %64 = arith.addf %47, %63 : vector<16x726xf32>
    %65 = vector.extract_strided_slice %0 {offsets = [0, 29], sizes = [16, 726], strides = [1, 1]} : vector<16x784xf32> to vector<16x726xf32>
    %c4 = arith.constant 4 : index
    %66 = memref.load %arg2[%c4] : memref<36xf32, #tpu.memory_space<smem>>
    %67 = vector.broadcast %66 : f32 to vector<16x726xf32>
    %68 = arith.mulf %67, %65 : vector<16x726xf32>
    %69 = arith.addf %52, %68 : vector<16x726xf32>
    %c13 = arith.constant 13 : index
    %70 = memref.load %arg2[%c13] : memref<36xf32, #tpu.memory_space<smem>>
    %71 = vector.broadcast %70 : f32 to vector<16x726xf32>
    %72 = arith.mulf %71, %65 : vector<16x726xf32>
    %73 = arith.addf %56, %72 : vector<16x726xf32>
    %c22 = arith.constant 22 : index
    %74 = memref.load %arg2[%c22] : memref<36xf32, #tpu.memory_space<smem>>
    %75 = vector.broadcast %74 : f32 to vector<16x726xf32>
    %76 = arith.mulf %75, %65 : vector<16x726xf32>
    %77 = arith.addf %60, %76 : vector<16x726xf32>
    %c31 = arith.constant 31 : index
    %78 = memref.load %arg2[%c31] : memref<36xf32, #tpu.memory_space<smem>>
    %79 = vector.broadcast %78 : f32 to vector<16x726xf32>
    %80 = arith.mulf %79, %65 : vector<16x726xf32>
    %81 = arith.addf %64, %80 : vector<16x726xf32>
    %82 = vector.extract_strided_slice %0 {offsets = [0, 30], sizes = [16, 726], strides = [1, 1]} : vector<16x784xf32> to vector<16x726xf32>
    %c5 = arith.constant 5 : index
    %83 = memref.load %arg2[%c5] : memref<36xf32, #tpu.memory_space<smem>>
    %84 = vector.broadcast %83 : f32 to vector<16x726xf32>
    %85 = arith.mulf %84, %82 : vector<16x726xf32>
    %86 = arith.addf %69, %85 : vector<16x726xf32>
    %c14 = arith.constant 14 : index
    %87 = memref.load %arg2[%c14] : memref<36xf32, #tpu.memory_space<smem>>
    %88 = vector.broadcast %87 : f32 to vector<16x726xf32>
    %89 = arith.mulf %88, %82 : vector<16x726xf32>
    %90 = arith.addf %73, %89 : vector<16x726xf32>
    %c23 = arith.constant 23 : index
    %91 = memref.load %arg2[%c23] : memref<36xf32, #tpu.memory_space<smem>>
    %92 = vector.broadcast %91 : f32 to vector<16x726xf32>
    %93 = arith.mulf %92, %82 : vector<16x726xf32>
    %94 = arith.addf %77, %93 : vector<16x726xf32>
    %c32 = arith.constant 32 : index
    %95 = memref.load %arg2[%c32] : memref<36xf32, #tpu.memory_space<smem>>
    %96 = vector.broadcast %95 : f32 to vector<16x726xf32>
    %97 = arith.mulf %96, %82 : vector<16x726xf32>
    %98 = arith.addf %81, %97 : vector<16x726xf32>
    %99 = vector.extract_strided_slice %0 {offsets = [0, 56], sizes = [16, 726], strides = [1, 1]} : vector<16x784xf32> to vector<16x726xf32>
    %c6 = arith.constant 6 : index
    %100 = memref.load %arg2[%c6] : memref<36xf32, #tpu.memory_space<smem>>
    %101 = vector.broadcast %100 : f32 to vector<16x726xf32>
    %102 = arith.mulf %101, %99 : vector<16x726xf32>
    %103 = arith.addf %86, %102 : vector<16x726xf32>
    %c15 = arith.constant 15 : index
    %104 = memref.load %arg2[%c15] : memref<36xf32, #tpu.memory_space<smem>>
    %105 = vector.broadcast %104 : f32 to vector<16x726xf32>
    %106 = arith.mulf %105, %99 : vector<16x726xf32>
    %107 = arith.addf %90, %106 : vector<16x726xf32>
    %c24 = arith.constant 24 : index
    %108 = memref.load %arg2[%c24] : memref<36xf32, #tpu.memory_space<smem>>
    %109 = vector.broadcast %108 : f32 to vector<16x726xf32>
    %110 = arith.mulf %109, %99 : vector<16x726xf32>
    %111 = arith.addf %94, %110 : vector<16x726xf32>
    %c33 = arith.constant 33 : index
    %112 = memref.load %arg2[%c33] : memref<36xf32, #tpu.memory_space<smem>>
    %113 = vector.broadcast %112 : f32 to vector<16x726xf32>
    %114 = arith.mulf %113, %99 : vector<16x726xf32>
    %115 = arith.addf %98, %114 : vector<16x726xf32>
    %116 = vector.extract_strided_slice %0 {offsets = [0, 57], sizes = [16, 726], strides = [1, 1]} : vector<16x784xf32> to vector<16x726xf32>
    %c7 = arith.constant 7 : index
    %117 = memref.load %arg2[%c7] : memref<36xf32, #tpu.memory_space<smem>>
    %118 = vector.broadcast %117 : f32 to vector<16x726xf32>
    %119 = arith.mulf %118, %116 : vector<16x726xf32>
    %120 = arith.addf %103, %119 : vector<16x726xf32>
    %c16 = arith.constant 16 : index
    %121 = memref.load %arg2[%c16] : memref<36xf32, #tpu.memory_space<smem>>
    %122 = vector.broadcast %121 : f32 to vector<16x726xf32>
    %123 = arith.mulf %122, %116 : vector<16x726xf32>
    %124 = arith.addf %107, %123 : vector<16x726xf32>
    %c25 = arith.constant 25 : index
    %125 = memref.load %arg2[%c25] : memref<36xf32, #tpu.memory_space<smem>>
    %126 = vector.broadcast %125 : f32 to vector<16x726xf32>
    %127 = arith.mulf %126, %116 : vector<16x726xf32>
    %128 = arith.addf %111, %127 : vector<16x726xf32>
    %c34 = arith.constant 34 : index
    %129 = memref.load %arg2[%c34] : memref<36xf32, #tpu.memory_space<smem>>
    %130 = vector.broadcast %129 : f32 to vector<16x726xf32>
    %131 = arith.mulf %130, %116 : vector<16x726xf32>
    %132 = arith.addf %115, %131 : vector<16x726xf32>
    %133 = vector.extract_strided_slice %0 {offsets = [0, 58], sizes = [16, 726], strides = [1, 1]} : vector<16x784xf32> to vector<16x726xf32>
    %c8 = arith.constant 8 : index
    %134 = memref.load %arg2[%c8] : memref<36xf32, #tpu.memory_space<smem>>
    %135 = vector.broadcast %134 : f32 to vector<16x726xf32>
    %136 = arith.mulf %135, %133 : vector<16x726xf32>
    %137 = arith.addf %120, %136 : vector<16x726xf32>
    %c17 = arith.constant 17 : index
    %138 = memref.load %arg2[%c17] : memref<36xf32, #tpu.memory_space<smem>>
    %139 = vector.broadcast %138 : f32 to vector<16x726xf32>
    %140 = arith.mulf %139, %133 : vector<16x726xf32>
    %141 = arith.addf %124, %140 : vector<16x726xf32>
    %c26 = arith.constant 26 : index
    %142 = memref.load %arg2[%c26] : memref<36xf32, #tpu.memory_space<smem>>
    %143 = vector.broadcast %142 : f32 to vector<16x726xf32>
    %144 = arith.mulf %143, %133 : vector<16x726xf32>
    %145 = arith.addf %128, %144 : vector<16x726xf32>
    %c35 = arith.constant 35 : index
    %146 = memref.load %arg2[%c35] : memref<36xf32, #tpu.memory_space<smem>>
    %147 = vector.broadcast %146 : f32 to vector<16x726xf32>
    %148 = arith.mulf %147, %133 : vector<16x726xf32>
    %149 = arith.addf %132, %148 : vector<16x726xf32>
    %cst = arith.constant 0.000000e+00 : f32
    %150 = vector.broadcast %cst : f32 to vector<16x71xf32>
    %c0_2 = arith.constant 0 : index
    %151 = memref.load %arg3[%c0_2] : memref<4xf32, #tpu.memory_space<smem>>
    %152 = vector.broadcast %151 : f32 to vector<16x726xf32>
    %153 = arith.addf %137, %152 : vector<16x726xf32>
    %cst_3 = arith.constant 0.000000e+00 : f32
    %154 = vector.broadcast %cst_3 : f32 to vector<16x726xf32>
    %155 = arith.maximumf %153, %154 : vector<16x726xf32>
    %156 = vector.extract_strided_slice %155 {offsets = [0, 0], sizes = [16, 725], strides = [1, 1]} : vector<16x726xf32> to vector<16x725xf32>
    %157 = vector.extract_strided_slice %155 {offsets = [0, 1], sizes = [16, 725], strides = [1, 1]} : vector<16x726xf32> to vector<16x725xf32>
    %158 = arith.maximumf %156, %157 : vector<16x725xf32>
    %159 = vector.extract_strided_slice %158 {offsets = [0, 0], sizes = [16, 697], strides = [1, 1]} : vector<16x725xf32> to vector<16x697xf32>
    %160 = vector.extract_strided_slice %158 {offsets = [0, 28], sizes = [16, 697], strides = [1, 1]} : vector<16x725xf32> to vector<16x697xf32>
    %161 = arith.maximumf %159, %160 : vector<16x697xf32>
    %c0_4 = arith.constant 0 : index
    %c0_5 = arith.constant 0 : index
    %162 = vector.load %arg9[%c0_4, %c0_5] : memref<16x3072xf32, #tpu.memory_space<vmem>>, vector<16x697xf32>
    tpu.vector_store %arg9[%c0_4, %c0_5], %161 {strides = array<i32>} : memref<16x3072xf32, #tpu.memory_space<vmem>>, vector<16x697xf32>,
    %c0_6 = arith.constant 0 : index
    %c697 = arith.constant 697 : index
    %163 = vector.load %arg9[%c0_6, %c697] : memref<16x3072xf32, #tpu.memory_space<vmem>>, vector<16x71xf32>
    tpu.vector_store %arg9[%c0_6, %c697], %150 {strides = array<i32>} : memref<16x3072xf32, #tpu.memory_space<vmem>>, vector<16x71xf32>,
    %c1_7 = arith.constant 1 : index
    %164 = memref.load %arg3[%c1_7] : memref<4xf32, #tpu.memory_space<smem>>
    %165 = vector.broadcast %164 : f32 to vector<16x726xf32>
    %166 = arith.addf %141, %165 : vector<16x726xf32>
    %cst_8 = arith.constant 0.000000e+00 : f32
    %167 = vector.broadcast %cst_8 : f32 to vector<16x726xf32>
    %168 = arith.maximumf %166, %167 : vector<16x726xf32>
    %169 = vector.extract_strided_slice %168 {offsets = [0, 0], sizes = [16, 725], strides = [1, 1]} : vector<16x726xf32> to vector<16x725xf32>
    %170 = vector.extract_strided_slice %168 {offsets = [0, 1], sizes = [16, 725], strides = [1, 1]} : vector<16x726xf32> to vector<16x725xf32>
    %171 = arith.maximumf %169, %170 : vector<16x725xf32>
    %172 = vector.extract_strided_slice %171 {offsets = [0, 0], sizes = [16, 697], strides = [1, 1]} : vector<16x725xf32> to vector<16x697xf32>
    %173 = vector.extract_strided_slice %171 {offsets = [0, 28], sizes = [16, 697], strides = [1, 1]} : vector<16x725xf32> to vector<16x697xf32>
    %174 = arith.maximumf %172, %173 : vector<16x697xf32>
    %c0_9 = arith.constant 0 : index
    %c768 = arith.constant 768 : index
    %175 = vector.load %arg9[%c0_9, %c768] : memref<16x3072xf32, #tpu.memory_space<vmem>>, vector<16x697xf32>
    tpu.vector_store %arg9[%c0_9, %c768], %174 {strides = array<i32>} : memref<16x3072xf32, #tpu.memory_space<vmem>>, vector<16x697xf32>,
    %c0_10 = arith.constant 0 : index
    %c1465 = arith.constant 1465 : index
    %176 = vector.load %arg9[%c0_10, %c1465] : memref<16x3072xf32, #tpu.memory_space<vmem>>, vector<16x71xf32>
    tpu.vector_store %arg9[%c0_10, %c1465], %150 {strides = array<i32>} : memref<16x3072xf32, #tpu.memory_space<vmem>>, vector<16x71xf32>,
    %c2_11 = arith.constant 2 : index
    %177 = memref.load %arg3[%c2_11] : memref<4xf32, #tpu.memory_space<smem>>
    %178 = vector.broadcast %177 : f32 to vector<16x726xf32>
    %179 = arith.addf %145, %178 : vector<16x726xf32>
    %cst_12 = arith.constant 0.000000e+00 : f32
    %180 = vector.broadcast %cst_12 : f32 to vector<16x726xf32>
    %181 = arith.maximumf %179, %180 : vector<16x726xf32>
    %182 = vector.extract_strided_slice %181 {offsets = [0, 0], sizes = [16, 725], strides = [1, 1]} : vector<16x726xf32> to vector<16x725xf32>
    %183 = vector.extract_strided_slice %181 {offsets = [0, 1], sizes = [16, 725], strides = [1, 1]} : vector<16x726xf32> to vector<16x725xf32>
    %184 = arith.maximumf %182, %183 : vector<16x725xf32>
    %185 = vector.extract_strided_slice %184 {offsets = [0, 0], sizes = [16, 697], strides = [1, 1]} : vector<16x725xf32> to vector<16x697xf32>
    %186 = vector.extract_strided_slice %184 {offsets = [0, 28], sizes = [16, 697], strides = [1, 1]} : vector<16x725xf32> to vector<16x697xf32>
    %187 = arith.maximumf %185, %186 : vector<16x697xf32>
    %c0_13 = arith.constant 0 : index
    %c1536 = arith.constant 1536 : index
    %188 = vector.load %arg9[%c0_13, %c1536] : memref<16x3072xf32, #tpu.memory_space<vmem>>, vector<16x697xf32>
    tpu.vector_store %arg9[%c0_13, %c1536], %187 {strides = array<i32>} : memref<16x3072xf32, #tpu.memory_space<vmem>>, vector<16x697xf32>,
    %c0_14 = arith.constant 0 : index
    %c2233 = arith.constant 2233 : index
    %189 = vector.load %arg9[%c0_14, %c2233] : memref<16x3072xf32, #tpu.memory_space<vmem>>, vector<16x71xf32>
    tpu.vector_store %arg9[%c0_14, %c2233], %150 {strides = array<i32>} : memref<16x3072xf32, #tpu.memory_space<vmem>>, vector<16x71xf32>,
    %c3_15 = arith.constant 3 : index
    %190 = memref.load %arg3[%c3_15] : memref<4xf32, #tpu.memory_space<smem>>
    %191 = vector.broadcast %190 : f32 to vector<16x726xf32>
    %192 = arith.addf %149, %191 : vector<16x726xf32>
    %cst_16 = arith.constant 0.000000e+00 : f32
    %193 = vector.broadcast %cst_16 : f32 to vector<16x726xf32>
    %194 = arith.maximumf %192, %193 : vector<16x726xf32>
    %195 = vector.extract_strided_slice %194 {offsets = [0, 0], sizes = [16, 725], strides = [1, 1]} : vector<16x726xf32> to vector<16x725xf32>
    %196 = vector.extract_strided_slice %194 {offsets = [0, 1], sizes = [16, 725], strides = [1, 1]} : vector<16x726xf32> to vector<16x725xf32>
    %197 = arith.maximumf %195, %196 : vector<16x725xf32>
    %198 = vector.extract_strided_slice %197 {offsets = [0, 0], sizes = [16, 697], strides = [1, 1]} : vector<16x725xf32> to vector<16x697xf32>
    %199 = vector.extract_strided_slice %197 {offsets = [0, 28], sizes = [16, 697], strides = [1, 1]} : vector<16x725xf32> to vector<16x697xf32>
    %200 = arith.maximumf %198, %199 : vector<16x697xf32>
    %c0_17 = arith.constant 0 : index
    %c2304 = arith.constant 2304 : index
    %201 = vector.load %arg9[%c0_17, %c2304] : memref<16x3072xf32, #tpu.memory_space<vmem>>, vector<16x697xf32>
    tpu.vector_store %arg9[%c0_17, %c2304], %200 {strides = array<i32>} : memref<16x3072xf32, #tpu.memory_space<vmem>>, vector<16x697xf32>,
    %c0_18 = arith.constant 0 : index
    %c3001 = arith.constant 3001 : index
    %202 = vector.load %arg9[%c0_18, %c3001] : memref<16x3072xf32, #tpu.memory_space<vmem>>, vector<16x71xf32>
    tpu.vector_store %arg9[%c0_18, %c3001], %150 {strides = array<i32>} : memref<16x3072xf32, #tpu.memory_space<vmem>>, vector<16x71xf32>,
    %c0_19 = arith.constant 0 : index
    %c0_20 = arith.constant 0 : index
    %203 = vector.load %arg9[%c0_19, %c0_20] : memref<16x3072xf32, #tpu.memory_space<vmem>>, vector<16x3072xf32>
    %c0_21 = arith.constant 0 : index
    %c0_22 = arith.constant 0 : index
    %204 = vector.load %arg4[%c0_21, %c0_22] : memref<3072x32xf32, #tpu.memory_space<vmem>>, vector<3072x32xf32>
    %cst_23 = arith.constant dense<0.000000e+00> : vector<16x32xf32>
    %205 = tpu.matmul %203, %204, %cst_23 {dimension_numbers = #tpu.dot_dimension_numbers<[1], [0], [0], [1], [0, 0, 1, 1], [], []>} : vector<16x3072xf32>, vector<3072x32xf32>, vector<16x32xf32> -> vector<16x32xf32>
    %c0_24 = arith.constant 0 : index
    %c0_25 = arith.constant 0 : index
    %206 = vector.load %arg5[%c0_24, %c0_25] : memref<1x32xf32, #tpu.memory_space<vmem>>, vector<1x32xf32>
    %207 = vector.broadcast %206 : vector<1x32xf32> to vector<16x32xf32>
    %208 = arith.addf %205, %207 : vector<16x32xf32>
    %cst_26 = arith.constant 0.000000e+00 : f32
    %209 = vector.broadcast %cst_26 : f32 to vector<16x32xf32>
    %210 = arith.maximumf %208, %209 : vector<16x32xf32>
    %c0_27 = arith.constant 0 : index
    %c0_28 = arith.constant 0 : index
    %211 = vector.load %arg6[%c0_27, %c0_28] : memref<32x10xf32, #tpu.memory_space<vmem>>, vector<32x10xf32>
    %cst_29 = arith.constant dense<0.000000e+00> : vector<16x10xf32>
    %212 = tpu.matmul %210, %211, %cst_29 {dimension_numbers = #tpu.dot_dimension_numbers<[1], [0], [0], [1], [0, 0, 1, 1], [], []>} : vector<16x32xf32>, vector<32x10xf32>, vector<16x10xf32> -> vector<16x10xf32>
    %c0_30 = arith.constant 0 : index
    %c0_31 = arith.constant 0 : index
    %213 = vector.load %arg7[%c0_30, %c0_31] : memref<1x10xf32, #tpu.memory_space<vmem>>, vector<1x10xf32>
    %214 = vector.broadcast %213 : vector<1x10xf32> to vector<16x10xf32>
    %215 = arith.addf %212, %214 : vector<16x10xf32>
    %cst_32 = arith.constant dense<0xFF800000> : vector<16xf32>
    %216 = vector.multi_reduction <maximumf>, %215, %cst_32 [1] : vector<16x10xf32> to vector<16xf32>
    %217 = vector.shape_cast %216 : vector<16xf32> to vector<16x1xf32>
    %218 = vector.broadcast %217 : vector<16x1xf32> to vector<16x10xf32>
    %219 = arith.subf %215, %218 : vector<16x10xf32>
    %220 = math.exp %219 : vector<16x10xf32>
    %cst_33 = arith.constant dense<0.000000e+00> : vector<16xf32>
    %221 = vector.multi_reduction <add>, %220, %cst_33 [1] : vector<16x10xf32> to vector<16xf32>
    %222 = vector.shape_cast %221 : vector<16xf32> to vector<16x1xf32>
    %223 = tpu.reciprocal %222 {approx = true} : vector<16x1xf32> -> vector<16x1xf32>
    %224 = vector.broadcast %223 : vector<16x1xf32> to vector<16x10xf32>
    %225 = arith.mulf %220, %224 : vector<16x10xf32>
    %c0_34 = arith.constant 0 : index
    %c0_35 = arith.constant 0 : index
    %226 = vector.load %arg8[%c0_34, %c0_35] : memref<16x10xf32, #tpu.memory_space<vmem>>, vector<16x10xf32>
    tpu.vector_store %arg8[%c0_34, %c0_35], %225 {strides = array<i32>} : memref<16x10xf32, #tpu.memory_space<vmem>>, vector<16x10xf32>,
    return
  }
  func.func @transform_0(%arg0: i32) -> (i32, i32) {
    %c0_i32 = arith.constant 0 : i32
    %c0_i32_0 = arith.constant 0 : i32
    return %arg0, %c0_i32 : i32, i32
  }
  func.func @transform_1(%arg0: i32) -> i32 {
    %c0_i32 = arith.constant 0 : i32
    %c0_i32_0 = arith.constant 0 : i32
    return %c0_i32 : i32
  }
  func.func @transform_2(%arg0: i32) -> i32 {
    %c0_i32 = arith.constant 0 : i32
    %c0_i32_0 = arith.constant 0 : i32
    return %c0_i32 : i32
  }
  func.func @transform_3(%arg0: i32) -> (i32, i32) {
    %c0_i32 = arith.constant 0 : i32
    %c0_i32_0 = arith.constant 0 : i32
    %c0_i32_1 = arith.constant 0 : i32
    return %c0_i32, %c0_i32_0 : i32, i32
  }
  func.func @transform_4(%arg0: i32) -> (i32, i32) {
    %c0_i32 = arith.constant 0 : i32
    %c0_i32_0 = arith.constant 0 : i32
    %c0_i32_1 = arith.constant 0 : i32
    return %c0_i32, %c0_i32_0 : i32, i32
  }
  func.func @transform_5(%arg0: i32) -> (i32, i32) {
    %c0_i32 = arith.constant 0 : i32
    %c0_i32_0 = arith.constant 0 : i32
    %c0_i32_1 = arith.constant 0 : i32
    return %c0_i32, %c0_i32_0 : i32, i32
  }
  func.func @transform_6(%arg0: i32) -> (i32, i32) {
    %c0_i32 = arith.constant 0 : i32
    %c0_i32_0 = arith.constant 0 : i32
    %c0_i32_1 = arith.constant 0 : i32
    return %c0_i32, %c0_i32_0 : i32, i32
  }
  func.func @transform_7(%arg0: i32) -> (i32, i32) {
    %c0_i32 = arith.constant 0 : i32
    %c0_i32_0 = arith.constant 0 : i32
    return %arg0, %c0_i32 : i32, i32
  }
}

</mosaic_0001>

<bundles_post_ra>
// kernel: tpu_custom_call.1
= control target key start
LH: loop header
LB: loop body
LE: loop exit
PB: predicated region body
PF: predicated region fallthrough
CT: control target
= control target key end

     0   :  { %12 = vsyncpa [#allocation5], 0  ;;  %s12215_s0 = inlined_call_operand.vmem [shape: f32[16,784], index: 0, kind: input, shape index: {}]   ;;  %s12216_s1 = inlined_call_operand.vmem [shape: f32[36], index: 1, kind: input, shape index: {}]   ;;  %s12217_s2 = inlined_call_operand.vmem [shape: f32[4], index: 2, kind: input, shape index: {}]   ;;  %s12218_s3 = inlined_call_operand.vmem [shape: f32[3072,32], index: 3, kind: input, shape index: {}]   ;;  %s12219_s4 = inlined_call_operand.vmem [shape: f32[1,32], index: 4, kind: input, shape index: {}]   ;;  %s12220_s5 = inlined_call_operand.vmem [shape: f32[32,10], index: 5, kind: input, shape index: {}]   ;;  %s12221_s6 = inlined_call_operand.vmem [shape: f32[1,10], index: 6, kind: input, shape index: {}]   ;;  %s12222_s7 = inlined_call_operand.hbm [shape: f32[16,10], index: 7, kind: output, shape index: {}]  }
   0x1   :  { %13 = vsyncpa [#allocation7], 0 }
   0x2   :  { %14 = vsyncpa [#allocation4], 0  ;;  %s23_s26 = sshll.u32 %s12216_s1, 4  ;;  %s33_s29 = sshll.u32 %s12217_s2, 4  ;;  %s24_s26 = int_to_ptr.vmem [resolvable:$true] %s23_s26  ;;  %s34_s29 = int_to_ptr.vmem [resolvable:$true] %s33_s29 }
   0x3   :  { %s6117_s30 = scalar_lea.vmem %s24_s26, 16  ;;  %p6122_p1 = scmp.lt.s32.totalorder %s24_s26, %s24_s26 }
   0x4   :  { %p6118_p0 = scmp.ne.s32.totalorder %s24_s26, %s6117_s30  ;;  %p6123_p2 = scmp.lt.s32.totalorder %s6117_s30, %s6117_s30 }
   0x6   :  { %p6124_p3 = por %p6123_p2, %p6122_p1 }
   0x8   :  { %p6125_p4 = pnand %p6124_p3, %p6118_p0 }
   0xa   :  { %6128 = shalt.err (!%p6125_p4)
}
   0xb   :  { %s6169_s8 = smov [#allocation3]   ;;  %s6129_s9 = scalar_lea.vmem %s34_s29, 16 }
   0xc   :  { %26 = dma.vmem_to_smem %s24_s26, 16, %s6169_s8, [#allocation5]  }
   0xd   :  { %p6130_p5 = scmp.ne.s32.totalorder %s34_s29, %s6129_s9  ;;  %p6134_p6 = scmp.lt.s32.totalorder %s34_s29, %s34_s29 }
   0xe   :  { %p6135_p7 = scmp.lt.s32.totalorder %s6129_s9, %s6129_s9 }
  0x10   :  { %p6136_p8 = por %p6135_p7, %p6134_p6 }
  0x12   :  { %p6137_p9 = pnand %p6136_p8, %p6130_p5 }
  0x14   :  { %6140 = shalt.err (!%p6137_p9)
}
  0x15   :  { %s6170_s1 = smov [#allocation6]  }
  0x16   :  { %36 = dma.vmem_to_smem %s34_s29, 16, %s6170_s1, [#allocation7]  }
  0x17   :  { %6163 = dma.done.wait [#allocation5], 16  }
  0x18   :  { %6164 = vsyncadd [#allocation5], 4294967280 }
  0x19   :  { %6165 = dma.done.wait [#allocation7], 16  }
  0x1a   :  { %6166 = vsyncadd [#allocation7], 4294967280 }
  0x1b   :  { %51 = sfence }
  0x1c   :  { %s5140_s2 = sld [smem:[#allocation3 + $0x1]]  ;;  %v6232_v0 = vld [vmem:[%s12215_s0 + $0x10] sm:$0xff]  ;;  %v6237_v1 = vld [vmem:[%s12215_s0] sm:$0xff]  ;;  %v6242_v3 = vld [vmem:[%s12215_s0 + $0x18] sm:$0xff]  ;;  %s6171_s18 = smov 127   ;;  %vm172_vm0 = vcmask 1039360  }
  0x1d   :  { %v6247_v4 = vld [vmem:[%s12215_s0 + $0x8] sm:$0xff]  ;;  %v6263_v10 = vld [vmem:[%s12215_s0 + $0x20] sm:$0xff]  ;;  %v6277_v14 = vld [vmem:[%s12215_s0 + $0x38] sm:$0xff]  ;;  %s5141_s8 = sld [smem:[#allocation3 + $0xa]]  ;;  %s5148_s12 = sld [smem:[#allocation3 + $0x3]]  ;;  %vm509_vm1 = vcmask 1031168  }
  0x1e   :  { %v6258_v9 = vld [vmem:[%s12215_s0 + $0x28] sm:$0xff]  ;;  %v6272_v13 = vld [vmem:[%s12215_s0 + $0x40] sm:$0xff]  ;;  %v6286_v17 = vld [vmem:[%s12215_s0 + $0x50] sm:$0xff]  ;;  %s5144_s11 = sld [smem:[#allocation3 + $0x2]]  ;;  %s6172_s13 = smov 126   ;;  %vm846_vm2 = vcmask 818176  }
  0x1f   :  { %v6291_v18 = vld [vmem:[%s12215_s0 + $0x48] sm:$0xff]  ;;  %v6300_v21 = vld [vmem:[%s12215_s0 + $0x60] sm:$0xff]  ;;  %v6305_v22 = vld [vmem:[%s12215_s0 + $0x58] sm:$0xff]  ;;  %s5152_s14 = sld [smem:[#allocation3 + $0x4]]  ;;  %s6173_s15 = smov 100   ;;  %vm1183_vm3 = vcmask 809984  }
  0x20   :  { %s5156_s16 = sld [smem:[#allocation3 + $0x5]]  ;;  %s6174_s17 = smov 99   ;;  %vm1520_vm4 = vcmask 801792   ;;  %vm1865_vm5 = vcmask 588800   ;;  %vm2242_vm6 = vcmask 580608   ;;  %vm2619_vm7 = vcmask 572416  }
  0x21   :  { %s5160_s19 = sld [smem:[#allocation3 + $0x6]]  ;;  %s6175_s20 = smov 98   ;;  %vm3109_vm8 = vcmask 465920   ;;  %vm3117_vm9 = vcmask 1048008   ;;  %vm5012_vm10 = vcmask 261120   ;;  %vm5094_vm11 = vcmask 80896  }
  0x22   :  { %v123_v2 = vstv %s5140_s2  ;;  %s5164_s21 = sld [smem:[#allocation3 + $0x7]]  ;;  %s6176_s22 = smov 72  }
  0x23   :  { %v126_v5 = vmul.f32 %v123_v2, %v6232_v0  ;;  %v124_v6 = vmul.f32 %v123_v2, %v6237_v1  ;;  %v127_v7 = vmul.f32 %v123_v2, %v6242_v3  ;;  %v125_v8 = vmul.f32 %v123_v2, %v6247_v4  ;;  %s6177_s25 = smov 71   ;;  %s5168_s26 = sld [smem:[#allocation3 + $0x8]] }
  0x24   :  { %v129_v11 = vmul.f32 %v123_v2, %v6258_v9  ;;  %v128_v12 = vmul.f32 %v123_v2, %v6263_v10  ;;  %v131_v15 = vmul.f32 %v123_v2, %v6272_v13  ;;  %v130_v16 = vmul.f32 %v123_v2, %v6277_v14  ;;  %s6178_s27 = smov 70   ;;  %s5145_s28 = sld [smem:[#allocation3 + $0xb]] }
  0x25   :  { %152 = vrot.lane.b32.xlu1 %v126_v5, %s6171_s18  ;;  %148 = vrot.lane.b32.xlu0 %v124_v6, %s6171_s18  ;;  %v133_v19 = vmul.f32 %v123_v2, %v6286_v17  ;;  %v132_v20 = vmul.f32 %v123_v2, %v6291_v18  ;;  %v135_v23 = vmul.f32 %v123_v2, %v6300_v21  ;;  %v208_v25 = vstv %s5141_s8  ;;  %s5149_s29 = sld [smem:[#allocation3 + $0xc]]  ;;  %s5153_s30 = sld [smem:[#allocation3 + $0xd]] }
  0x26   :  { %v134_v24 = vmul.f32 %v123_v2, %v6305_v22  ;;  %v210_v26 = vmul.f32 %v208_v25, %v6247_v4  ;;  %v209_v27 = vmul.f32 %v208_v25, %v6237_v1  ;;  %v212_v28 = vmul.f32 %v208_v25, %v6242_v3  ;;  %s5157_s1 = sld [smem:[#allocation3 + $0xe]]  ;;  %s5161_s2 = sld [smem:[#allocation3 + $0xf]] }
  0x27   :  { %v211_v29 = vmul.f32 %v208_v25, %v6232_v0  ;;  %v214_v30 = vmul.f32 %v208_v25, %v6258_v9  ;;  %v213_v31 = vmul.f32 %v208_v25, %v6263_v10  ;;  %v216_v32 = vmul.f32 %v208_v25, %v6272_v13  ;;  %s5165_s10 = sld [smem:[#allocation3 + $0x10]]  ;;  %s5146_s9 = sld [smem:[#allocation3 + $0x14]] }
  0x28   :  { %v215_v33 = vmul.f32 %v208_v25, %v6277_v14  ;;  %v218_v34 = vmul.f32 %v208_v25, %v6286_v17  ;;  %v217_v35 = vmul.f32 %v208_v25, %v6291_v18  ;;  %v220_v36 = vmul.f32 %v208_v25, %v6300_v21  ;;  %s7250_s24 = sld [smem:[#allocation6]]  ;;  %s7987_s23 = sld [smem:[#allocation6 + $0x1]] }
  0x29   :  { %154 = vrot.lane.b32.xlu1 %v127_v7, %s6171_s18  ;;  %150 = vrot.lane.b32.xlu0 %v125_v8, %s6171_s18  ;;  %v219_v37 = vmul.f32 %v208_v25, %v6305_v22  ;;  %v6335_v38 = vstv %s5144_s11  ;;  %v6355_v45 = vstv %s5148_s12  ;;  %s5169_s11 = sld [smem:[#allocation3 + $0x11]]  ;;  %s66_s12 = sld [smem:[#allocation3]] }
  0x2a   :  { %v463_v39 = vmul.f32 %v6335_v38, %v6232_v0  ;;  %v462_v40 = vmul.f32 %v6335_v38, %v6247_v4  ;;  %v465_v41 = vmul.f32 %v6335_v38, %v6263_v10  ;;  %v464_v42 = vmul.f32 %v6335_v38, %v6242_v3  ;;  %s5143_s8 = sld [smem:[#allocation3 + $0x1c]] }
  0x2b   :  { %v466_v43 = vmul.f32 %v6335_v38, %v6258_v9  ;;  %v461_v44 = vmul.f32 %v6335_v38, %v6237_v1  ;;  %v800_v46 = vmul.f32 %v6355_v45, %v6232_v0  ;;  %v799_v47 = vmul.f32 %v6355_v45, %v6247_v4 }
  0x2c   :  { %v802_v48 = vmul.f32 %v6355_v45, %v6263_v10  ;;  %v801_v49 = vmul.f32 %v6355_v45, %v6242_v3  ;;  %v803_v50 = vmul.f32 %v6355_v45, %v6258_v9  ;;  %v798_v51 = vmul.f32 %v6355_v45, %v6237_v1 }
  0x2d   :  { %158 = vrot.lane.b32.xlu1 %v129_v11, %s6171_s18  ;;  %156 = vrot.lane.b32.xlu0 %v128_v12, %s6171_s18  ;;  %v6375_v52 = vstv %s5152_s14  ;;  %v6395_v59 = vstv %s5156_s16  ;;  %s7774_s16 = sld [smem:[#allocation3 + $0x19]] }
  0x2e   :  { %v1137_v53 = vmul.f32 %v6375_v52, %v6232_v0  ;;  %v1136_v54 = vmul.f32 %v6375_v52, %v6247_v4  ;;  %v1139_v55 = vmul.f32 %v6375_v52, %v6263_v10  ;;  %v1138_v56 = vmul.f32 %v6375_v52, %v6242_v3 }
  0x2f   :  { %v1140_v57 = vmul.f32 %v6375_v52, %v6258_v9  ;;  %v1135_v58 = vmul.f32 %v6375_v52, %v6237_v1  ;;  %v1474_v60 = vmul.f32 %v6395_v59, %v6232_v0  ;;  %v1473_v61 = vmul.f32 %v6395_v59, %v6247_v4 }
  0x30   :  { %v1476_v62 = vmul.f32 %v6395_v59, %v6263_v10  ;;  %v1475_v63 = vmul.f32 %v6395_v59, %v6242_v3  ;;  %v1477_v2 = vmul.f32 %v6395_v59, %v6258_v9  ;;  %v1472_v5 = vmul.f32 %v6395_v59, %v6237_v1 }
  0x31   :  { %162 = vrot.lane.b32.xlu1 %v131_v15, %s6171_s18  ;;  %160 = vrot.lane.b32.xlu0 %v130_v16, %s6171_s18  ;;  %v6415_v6 = vstv %s5160_s19  ;;  %s7818_s19 = sld [smem:[#allocation3 + $0x9]] }
  0x32   :  { %v1811_v7 = vmul.f32 %v6415_v6, %v6232_v0  ;;  %v1810_v8 = vmul.f32 %v6415_v6, %v6247_v4  ;;  %v1813_v11 = vmul.f32 %v6415_v6, %v6263_v10  ;;  %v1812_v12 = vmul.f32 %v6415_v6, %v6242_v3 }
  0x33   :  { %v1814_v15 = vmul.f32 %v6415_v6, %v6258_v9  ;;  %v1809_v16 = vmul.f32 %v6415_v6, %v6237_v1 }
  0x35   :  { %166 = vrot.lane.b32.xlu1 %v133_v19, %s6171_s18  ;;  %164 = vrot.lane.b32.xlu0 %v132_v20, %s6171_s18  ;;  %v6435_v19 = vstv %s5164_s21  ;;  %v6440_v20 = vld [vmem:[%s12215_s0 + $0x30] sm:$0xff]  ;;  %s7921_s21 = sld [smem:[#allocation3 + $0x1a]] }
  0x36   :  { %v2189_v25 = vmul.f32 %v6435_v19, %v6242_v3 }
  0x39   :  { %170 = vrot.lane.b32.xlu1 %v135_v23, %s6171_s18  ;;  %168 = vrot.lane.b32.xlu0 %v134_v24, %s6171_s18  ;;  %v2187_v23 = vmul.f32 %v6435_v19, %v6247_v4  ;;  %v1815_v24 = vmul.f32 %v6415_v6, %v6440_v20 }
  0x3d   :  { %235 = vrot.lane.b32.xlu1 %v210_v26, %s6171_s18  ;;  %233 = vrot.lane.b32.xlu0 %v209_v27, %s6171_s18  ;;  %v2188_v26 = vmul.f32 %v6435_v19, %v6232_v0  ;;  %v2186_v27 = vmul.f32 %v6435_v19, %v6237_v1 }
  0x41   :  { %239 = vrot.lane.b32.xlu1 %v212_v28, %s6171_s18  ;;  %237 = vrot.lane.b32.xlu0 %v211_v29, %s6171_s18  ;;  %v2190_v28 = vmul.f32 %v6435_v19, %v6263_v10 }
  0x45   :  { %243 = vrot.lane.b32.xlu1 %v214_v30, %s6171_s18  ;;  %241 = vrot.lane.b32.xlu0 %v213_v31, %s6171_s18  ;;  %v2192_v31 = vmul.f32 %v6435_v19, %v6440_v20 }
  0x49   :  { %247 = vrot.lane.b32.xlu1 %v216_v32, %s6171_s18  ;;  %245 = vrot.lane.b32.xlu0 %v215_v33, %s6171_s18  ;;  %v2191_v32 = vmul.f32 %v6435_v19, %v6258_v9  ;;  %v6470_v33 = vstv %s5168_s26 }
  0x4d   :  { %251 = vrot.lane.b32.xlu1 %v218_v34, %s6171_s18  ;;  %249 = vrot.lane.b32.xlu0 %v217_v35, %s6171_s18 }
  0x51   :  { %255 = vrot.lane.b32.xlu1 %v220_v36, %s6171_s18  ;;  %253 = vrot.lane.b32.xlu0 %v219_v37, %s6171_s18  ;;  %v2565_v36 = vmul.f32 %v6470_v33, %v6232_v0  ;;  %v2564_v37 = vmul.f32 %v6470_v33, %v6247_v4 }
  0x55   :  { %489 = vrot.lane.b32.xlu1 %v463_v39, %s6172_s13  ;;  %487 = vrot.lane.b32.xlu0 %v462_v40, %s6172_s13 }
  0x59   :  { %493 = vrot.lane.b32.xlu1 %v465_v41, %s6172_s13  ;;  %491 = vrot.lane.b32.xlu0 %v464_v42, %s6172_s13  ;;  %v2567_v41 = vmul.f32 %v6470_v33, %v6263_v10  ;;  %v2566_v42 = vmul.f32 %v6470_v33, %v6242_v3 }
  0x5d   :  { %495 = vrot.lane.b32.xlu1 %v466_v43, %s6172_s13  ;;  %485 = vrot.lane.b32.xlu0 %v461_v44, %s6172_s13 }
  0x61   :  { %826 = vrot.lane.b32.xlu1 %v800_v46, %s6173_s15  ;;  %824 = vrot.lane.b32.xlu0 %v799_v47, %s6173_s15  ;;  %v2568_v46 = vmul.f32 %v6470_v33, %v6258_v9  ;;  %v2563_v47 = vmul.f32 %v6470_v33, %v6237_v1 }
  0x65   :  { %830 = vrot.lane.b32.xlu1 %v802_v48, %s6173_s15  ;;  %828 = vrot.lane.b32.xlu0 %v801_v49, %s6173_s15 }
  0x69   :  { %832 = vrot.lane.b32.xlu1 %v803_v50, %s6173_s15  ;;  %822 = vrot.lane.b32.xlu0 %v798_v51, %s6173_s15  ;;  %v468_v50 = vmul.f32 %v6335_v38, %v6272_v13  ;;  %v2569_v51 = vmul.f32 %v6470_v33, %v6440_v20 }
  0x6d   :  { %1163 = vrot.lane.b32.xlu1 %v1137_v53, %s6174_s17  ;;  %1161 = vrot.lane.b32.xlu0 %v1136_v54, %s6174_s17 }
  0x71   :  { %1167 = vrot.lane.b32.xlu1 %v1139_v55, %s6174_s17  ;;  %1165 = vrot.lane.b32.xlu0 %v1138_v56, %s6174_s17  ;;  %v470_v55 = vmul.f32 %v6335_v38, %v6286_v17  ;;  %v469_v56 = vmul.f32 %v6335_v38, %v6291_v18 }
  0x75   :  { %1169 = vrot.lane.b32.xlu1 %v1140_v57, %s6174_s17  ;;  %1159 = vrot.lane.b32.xlu0 %v1135_v58, %s6174_s17 }
  0x79   :  { %1500 = vrot.lane.b32.xlu1 %v1474_v60, %s6175_s20  ;;  %1498 = vrot.lane.b32.xlu0 %v1473_v61, %s6175_s20  ;;  %v467_v60 = vmul.f32 %v6335_v38, %v6277_v14  ;;  %v471_v61 = vmul.f32 %v6335_v38, %v6305_v22 }
  0x7d   :  { %1504 = vrot.lane.b32.xlu1 %v1476_v62, %s6175_s20  ;;  %1502 = vrot.lane.b32.xlu0 %v1475_v63, %s6175_s20 }
  0x81   :  { %1506 = vrot.lane.b32.xlu1 %v1477_v2, %s6175_s20  ;;  %1496 = vrot.lane.b32.xlu0 %v1472_v5, %s6175_s20  ;;  %v805_v2 = vmul.f32 %v6355_v45, %v6272_v13  ;;  %v472_v5 = vmul.f32 %v6335_v38, %v6300_v21  ;;  %v804_v38 = vmul.f32 %v6355_v45, %v6277_v14 }
  0x85   :  { %1841 = vrot.lane.b32.xlu1 %v1811_v7, %s6176_s22  ;;  %1839 = vrot.lane.b32.xlu0 %v1810_v8, %s6176_s22 }
  0x89   :  { %1845 = vrot.lane.b32.xlu1 %v1813_v11, %s6176_s22  ;;  %1843 = vrot.lane.b32.xlu0 %v1812_v12, %s6176_s22  ;;  %v807_v11 = vmul.f32 %v6355_v45, %v6286_v17  ;;  %v806_v12 = vmul.f32 %v6355_v45, %v6291_v18 }
  0x8d   :  { %1847 = vrot.lane.b32.xlu1 %v1814_v15, %s6176_s22  ;;  %1837 = vrot.lane.b32.xlu0 %v1809_v16, %s6176_s22 }
  0x91   :  { %2216 = vrot.lane.b32.xlu1 %v2187_v23, %s6177_s25  ;;  %1849 = vrot.lane.b32.xlu0 %v1815_v24, %s6176_s22  ;;  %v808_v23 = vmul.f32 %v6355_v45, %v6305_v22 }
  0x95   :  { %2220 = vrot.lane.b32.xlu1 %v2189_v25, %s6177_s25  ;;  %2218 = vrot.lane.b32.xlu0 %v2188_v26, %s6177_s25  ;;  %v1142_v26 = vmul.f32 %v6375_v52, %v6272_v13 }
  0x97   :  { %v6460_v29 = vpop.permute.xlu1 %152  ;;  %v6462_v30 = vpop.permute.xlu0 %148 }
  0x99   :  { %2214 = vrot.lane.b32.xlu1 %v2186_v27, %s6177_s25  ;;  %2222 = vrot.lane.b32.xlu0 %v2190_v28, %s6177_s25  ;;  %v809_v27 = vmul.f32 %v6355_v45, %v6300_v21  ;;  %v1141_v45 = vmul.f32 %v6375_v52, %v6277_v14 }
  0x9b   :  { %v6472_v34 = vpop.permute.xlu1 %154  ;;  %v6474_v35 = vpop.permute.xlu0 %150 }
  0x9d   :  { %2226 = vrot.lane.b32.xlu1 %v2192_v31, %s6177_s25  ;;  %2224 = vrot.lane.b32.xlu0 %v2191_v32, %s6177_s25  ;;  %v1144_v32 = vmul.f32 %v6375_v52, %v6286_v17 }
  0x9f   :  { %v6482_v39 = vpop.permute.xlu1 %158  ;;  %v6484_v40 = vpop.permute.xlu0 %156 }
  0xa1   :  { %2595 = vrot.lane.b32.xlu1 %v2565_v36, %s6178_s27  ;;  %2593 = vrot.lane.b32.xlu0 %v2564_v37, %s6178_s27  ;;  %v1143_v36 = vmul.f32 %v6375_v52, %v6291_v18 }
  0xa3   :  { %v6492_v43 = vpop.permute.xlu1 %162  ;;  %v6494_v44 = vpop.permute.xlu0 %160 }
  0xa4   :  { %12610 = vst [vmem:[#allocation12_spill] sm:$0xff] %v6492_v43  ;;  %12611 = vst [vmem:[#allocation13_spill] sm:$0xff] %v6494_v44  ;;  %v2195_v43 = vmul.f32 %v6435_v19, %v6291_v18 }
  0xa5   :  { %2599 = vrot.lane.b32.xlu1 %v2567_v41, %s6178_s27  ;;  %2597 = vrot.lane.b32.xlu0 %v2566_v42, %s6178_s27  ;;  %v1145_v42 = vmul.f32 %v6375_v52, %v6305_v22 }
  0xa7   :  { %v6502_v48 = vpop.permute.xlu1 %166  ;;  %v6504_v49 = vpop.permute.xlu0 %164 }
  0xa8   :  { %12612 = vst [vmem:[#allocation14_spill] sm:$0xff] %v6502_v48  ;;  %12613 = vst [vmem:[#allocation15_spill] sm:$0xff] %v6504_v49 }
  0xa9   :  { %2601 = vrot.lane.b32.xlu1 %v2568_v46, %s6178_s27  ;;  %2591 = vrot.lane.b32.xlu0 %v2563_v47, %s6178_s27  ;;  %v6592_v46 = vstv %s5145_s28  ;;  %s8559_s28 = sld [smem:[#allocation3 + $0x21]] }
  0xab   :  { %v6512_v53 = vpop.permute.xlu1 %170  ;;  %v6514_v54 = vpop.permute.xlu0 %168 }
  0xac   :  { %12614 = vst [vmem:[#allocation16_spill] sm:$0xff] %v6512_v53  ;;  %12615 = vst [vmem:[#allocation17_spill] sm:$0xff] %v6514_v54 }
  0xad   :  { %499 = vrot.lane.b32.xlu1 %v468_v50, %s6172_s13  ;;  %2603 = vrot.lane.b32.xlu0 %v2569_v51, %s6178_s27  ;;  %v548_v51 = vmul.f32 %v6592_v46, %v6232_v0 }
  0xaf   :  { %v6522_v57 = vpop.permute.xlu1 %235  ;;  %v6524_v58 = vpop.permute.xlu0 %233 }
  0xb0   :  { %12616 = vst [vmem:[#allocation18_spill] sm:$0xff] %v6522_v57  ;;  %12617 = vst [vmem:[#allocation19_spill] sm:$0xff] %v6524_v58 }
  0xb1   :  { %503 = vrot.lane.b32.xlu1 %v470_v55, %s6172_s13  ;;  %501 = vrot.lane.b32.xlu0 %v469_v56, %s6172_s13  ;;  %v547_v55 = vmul.f32 %v6592_v46, %v6247_v4 }
  0xb3   :  { %v6532_v62 = vpop.permute.xlu1 %239  ;;  %v6534_v63 = vpop.permute.xlu0 %237 }
  0xb4   :  { %12618 = vst [vmem:[#allocation20_spill] sm:$0xff] %v6532_v62  ;;  %12619 = vst [vmem:[#allocation21_spill] sm:$0xff] %v6534_v63 }
  0xb5   :  { %497 = vrot.lane.b32.xlu1 %v467_v60, %s6172_s13  ;;  %505 = vrot.lane.b32.xlu0 %v471_v61, %s6172_s13  ;;  %v550_v61 = vmul.f32 %v6592_v46, %v6263_v10 }
  0xb7   :  { %v6542_v7 = vpop.permute.xlu1 %243  ;;  %v6544_v8 = vpop.permute.xlu0 %241 }
  0xb8   :  { %12620 = vst [vmem:[#allocation22_spill] sm:$0xff] %v6542_v7  ;;  %12621 = vst [vmem:[#allocation23_spill] sm:$0xff] %v6544_v8  ;;  %v1483_v7 = vmul.f32 %v6395_v59, %v6300_v21 }
  0xb9   :  { %836 = vrot.lane.b32.xlu1 %v805_v2, %s6173_s15  ;;  %507 = vrot.lane.b32.xlu0 %v472_v5, %s6172_s13  ;;  %v549_v2 = vmul.f32 %v6592_v46, %v6242_v3 }
  0xbb   :  { %v6552_v15 = vpop.permute.xlu1 %247  ;;  %v6554_v16 = vpop.permute.xlu0 %245 }
  0xbc   :  { %12622 = vst [vmem:[#allocation24_spill] sm:$0xff] %v6552_v15  ;;  %12623 = vst [vmem:[#allocation25_spill] sm:$0xff] %v6554_v16 }
  0xbd   :  { %840 = vrot.lane.b32.xlu1 %v807_v11, %s6173_s15  ;;  %838 = vrot.lane.b32.xlu0 %v806_v12, %s6173_s15  ;;  %v1479_v12 = vmul.f32 %v6395_v59, %v6272_v13 }
  0xbf   :  { %v6562_v24 = vpop.permute.xlu1 %251  ;;  %v6564_v25 = vpop.permute.xlu0 %249 }
  0xc0   :  { %12624 = vst [vmem:[#allocation26_spill] sm:$0xff] %v6562_v24  ;;  %12625 = vst [vmem:[#allocation27_spill] sm:$0xff] %v6564_v25  ;;  %v1816_v25 = vmul.f32 %v6415_v6, %v6277_v14 }
  0xc1   :  { %834 = vrot.lane.b32.xlu1 %v804_v38, %s6173_s15  ;;  %842 = vrot.lane.b32.xlu0 %v808_v23, %s6173_s15  ;;  %v1146_v38 = vmul.f32 %v6375_v52, %v6300_v21  ;;  %v546_v52 = vmul.f32 %v6592_v46, %v6237_v1 }
  0xc3   :  { %v6572_v28 = vpop.permute.xlu1 %255  ;;  %v6574_v31 = vpop.permute.xlu0 %253 }
  0xc4   :  { %12626 = vst [vmem:[#allocation28_spill] sm:$0xff] %v6572_v28  ;;  %12627 = vst [vmem:[#allocation29_spill] sm:$0xff] %v6574_v31  ;;  %v1818_v31 = vmul.f32 %v6415_v6, %v6291_v18 }
  0xc5   :  { %1173 = vrot.lane.b32.xlu1 %v1142_v26, %s6174_s17  ;;  %844 = vrot.lane.b32.xlu0 %v809_v27, %s6173_s15  ;;  %v1481_v27 = vmul.f32 %v6395_v59, %v6286_v17 }
  0xc7   :  { %v6582_v37 = vpop.permute.xlu1 %489  ;;  %v6584_v41 = vpop.permute.xlu0 %487 }
  0xc9   :  { %1177 = vrot.lane.b32.xlu1 %v1144_v32, %s6174_s17  ;;  %1175 = vrot.lane.b32.xlu0 %v1143_v36, %s6174_s17  ;;  %v1480_v32 = vmul.f32 %v6395_v59, %v6291_v18 }
  0xcb   :  { %v6594_v47 = vpop.permute.xlu1 %493  ;;  %v6596_v50 = vpop.permute.xlu0 %491 }
  0xcd   :  { %1171 = vrot.lane.b32.xlu1 %v1141_v45, %s6174_s17  ;;  %1179 = vrot.lane.b32.xlu0 %v1145_v42, %s6174_s17  ;;  %v1482_v42 = vmul.f32 %v6395_v59, %v6305_v22 }
  0xcf   :  { %v6604_v56 = vpop.permute.xlu1 %495  ;;  %v6606_v60 = vpop.permute.xlu0 %485 }
  0xd1   :  { %574 = vrot.lane.b32.xlu1 %v548_v51, %s6172_s13  ;;  %572 = vrot.lane.b32.xlu0 %v547_v55, %s6172_s13  ;;  %v6644_v51 = vstv %s5149_s29  ;;  %s5142_s29 = sld [smem:[#allocation3 + $0x13]] }
  0xd3   :  { %v6614_v5 = vpop.permute.xlu1 %826  ;;  %v6616_v11 = vpop.permute.xlu0 %824 }
  0xd5   :  { %578 = vrot.lane.b32.xlu1 %v550_v61, %s6172_s13  ;;  %576 = vrot.lane.b32.xlu0 %v549_v2, %s6172_s13  ;;  %v884_v2 = vmul.f32 %v6644_v51, %v6247_v4 }
  0xd7   :  { %v6624_v23 = vpop.permute.xlu1 %830  ;;  %v6626_v26 = vpop.permute.xlu0 %828 }
  0xd9   :  { %1510 = vrot.lane.b32.xlu1 %v1479_v12, %s6175_s20  ;;  %1181 = vrot.lane.b32.xlu0 %v1146_v38, %s6174_s17  ;;  %v1478_v12 = vmul.f32 %v6395_v59, %v6277_v14 }
  0xdb   :  { %v6634_v36 = vpop.permute.xlu1 %832  ;;  %v6636_v45 = vpop.permute.xlu0 %822 }
  0xdd   :  { %1514 = vrot.lane.b32.xlu1 %v1481_v27, %s6175_s20  ;;  %1512 = vrot.lane.b32.xlu0 %v1480_v32, %s6175_s20  ;;  %v886_v32 = vmul.f32 %v6644_v51, %v6242_v3 }
  0xdf   :  { %v6646_v55 = vpop.permute.xlu1 %1163  ;;  %v6648_v61 = vpop.permute.xlu0 %1161 }
  0xe1   :  { %570 = vrot.lane.b32.xlu1 %v546_v52, %s6172_s13  ;;  %1516 = vrot.lane.b32.xlu0 %v1482_v42, %s6175_s20  ;;  %v885_v52 = vmul.f32 %v6644_v51, %v6232_v0 }
  0xe3   :  { %v6656_v38 = vpop.permute.xlu1 %1167  ;;  %v6658_v27 = vpop.permute.xlu0 %1165 }
  0xe5   :  { %909 = vrot.lane.b32.xlu1 %v884_v2, %s6173_s15  ;;  %1508 = vrot.lane.b32.xlu0 %v1478_v12, %s6175_s20  ;;  %v887_v2 = vmul.f32 %v6644_v51, %v6263_v10 }
  0xe7   :  { %v6666_v42 = vpop.permute.xlu1 %1169  ;;  %v6668_v28 = vpop.permute.xlu0 %1159 }
  0xe9   :  { %913 = vrot.lane.b32.xlu1 %v886_v32, %s6173_s15  ;;  %911 = vrot.lane.b32.xlu0 %v885_v52, %s6173_s15  ;;  %v1817_v32 = vmul.f32 %v6415_v6, %v6272_v13 }
  0xeb   :  { %v6676_v12 = vpop.permute.xlu1 %1500  ;;  %v6678_v16 = vpop.permute.xlu0 %1498 }
  0xed   :  { %1518 = vrot.lane.b32.xlu1 %v1483_v7, %s6175_s20  ;;  %915 = vrot.lane.b32.xlu0 %v887_v2, %s6173_s15  ;;  %v1820_v7 = vmul.f32 %v6415_v6, %v6305_v22  ;;  %v1819_v2 = vmul.f32 %v6415_v6, %v6286_v17 }
  0xef   :  { %v6686_v52 = vpop.permute.xlu1 %1504  ;;  %v6688_v59 = vpop.permute.xlu0 %1502 }
  0xf1   :  { %1855 = vrot.lane.b32.xlu1 %v1818_v31, %s6176_s22  ;;  %1853 = vrot.lane.b32.xlu0 %v1817_v32, %s6176_s22  ;;  %v883_v31 = vmul.f32 %v6644_v51, %v6237_v1  ;;  %v6706_v32 = vstv %s5153_s30 }
  0xf2   :  { %12629 = vst [vmem:[#allocation31_spill] sm:$0xff] %v6706_v32  ;;  %v1224_v63 = vmul.f32 %v6706_v32, %v6263_v10 }
  0xf3   :  { %v6696_v24 = vpop.permute.xlu1 %1506  ;;  %v6698_v15 = vpop.permute.xlu0 %1496 }
  0xf4   :  { %12628 = vst [vmem:[#allocation30_spill] sm:$0xff] %v6696_v24 }
  0xf5   :  { %1859 = vrot.lane.b32.xlu1 %v1820_v7, %s6176_s22  ;;  %1857 = vrot.lane.b32.xlu0 %v1819_v2, %s6176_s22  ;;  %v1222_v7 = vmul.f32 %v6706_v32, %v6232_v0  ;;  %v1221_v2 = vmul.f32 %v6706_v32, %v6247_v4 }
  0xf7   :  { %v6708_v8 = vpop.permute.xlu1 %1841  ;;  %v6710_v62 = vpop.permute.xlu0 %1839 }
  0xf9   :  { %1851 = vrot.lane.b32.xlu1 %v1816_v25, %s6176_s22  ;;  %907 = vrot.lane.b32.xlu0 %v883_v31, %s6173_s15  ;;  %v1223_v25 = vmul.f32 %v6706_v32, %v6242_v3  ;;  %v6731_v31 = vld [vmem:[%s12215_s0 + $0x68] sm:$0xff] }
  0xfa   :  { %12631 = vst [vmem:[#allocation33_spill] sm:$0xff] %v6731_v31 }
  0xfb   :  { %v6718_v58 = vpop.permute.xlu1 %1845  ;;  %v6720_v57 = vpop.permute.xlu0 %1843 }
  0xfc   :  { %12630 = vst [vmem:[#allocation32_spill] sm:$0xff] %v6718_v58 }
  0xfd   :  { %1248 = vrot.lane.b32.xlu1 %v1222_v7, %s6174_s17  ;;  %1246 = vrot.lane.b32.xlu0 %v1221_v2, %s6174_s17  ;;  %v1822_v7 = vmul.f32 %v6415_v6, %v6731_v31  ;;  %v1821_v2 = vmul.f32 %v6415_v6, %v6300_v21  ;;  %v2197_v6 = vmul.f32 %v6435_v19, %v6305_v22 }
  0xff   :  { %v6733_v53 = vpop.permute.xlu1 %1847  ;;  %v6735_v44 = vpop.permute.xlu0 %1837 }
 0x100   :  { %12632 = vst [vmem:[#allocation34_spill] sm:$0xff] %v6733_v53  ;;  %12633 = vst [vmem:[#allocation35_spill] sm:$0xff] %v6735_v44  ;;  %v2193_v53 = vmul.f32 %v6435_v19, %v6277_v14 }
 0x101   :  { %1252 = vrot.lane.b32.xlu1 %v1224_v63, %s6174_s17  ;;  %1250 = vrot.lane.b32.xlu0 %v1223_v25, %s6174_s17  ;;  %v2194_v63 = vmul.f32 %v6435_v19, %v6272_v13 }
 0x103   :  { %v6743_v54 = vpop.permute.xlu1 %2216  ;;  %v6745_v48 = vpop.permute.xlu0 %1849 }
 0x104   :  { %12634 = vst [vmem:[#allocation36_spill] sm:$0xff] %v6745_v48 }
 0x105   :  { %1863 = vrot.lane.b32.xlu1 %v1822_v7, %s6176_s22  ;;  %1861 = vrot.lane.b32.xlu0 %v1821_v2, %s6176_s22  ;;  %v2196_v7 = vmul.f32 %v6435_v19, %v6286_v17 }
 0x107   :  { %v6753_v25 = vpop.permute.xlu1 %2220  ;;  %v6755_v49 = vpop.permute.xlu0 %2218 }
 0x109   :  { %2232 = vrot.lane.b32.xlu1 %v2195_v43, %s6177_s25  ;;  %2230 = vrot.lane.b32.xlu0 %v2194_v63, %s6177_s25  ;;  %v1220_v43 = vmul.f32 %v6706_v32, %v6237_v1  ;;  %v6773_v63 = vstv %s5157_s1  ;;  %s5150_s1 = sld [smem:[#allocation3 + $0x15]] }
 0x10a   :  { %12637 = vst [vmem:[#allocation39_spill] sm:$0xff] %v6773_v63 }
 0x10b   :  { %v6763_v2 = vpop.permute.xlu1 %2214  ;;  %v6765_v48 = vpop.permute.xlu0 %2222 }
 0x10c   :  { %12635 = vst [vmem:[#allocation37_spill] sm:$0xff] %v6763_v2  ;;  %12636 = vst [vmem:[#allocation38_spill] sm:$0xff] %v6765_v48 }
 0x10d   :  { %2236 = vrot.lane.b32.xlu1 %v2197_v6, %s6177_s25  ;;  %2234 = vrot.lane.b32.xlu0 %v2196_v7, %s6177_s25  ;;  %v1559_v6 = vmul.f32 %v6773_v63, %v6232_v0  ;;  %v1558_v7 = vmul.f32 %v6773_v63, %v6247_v4 }
 0x10f   :  { %v6775_v44 = vpop.permute.xlu1 %2226  ;;  %v6777_v58 = vpop.permute.xlu0 %2224 }
 0x110   :  { %12638 = vst [vmem:[#allocation40_spill] sm:$0xff] %v6775_v44  ;;  %12639 = vst [vmem:[#allocation41_spill] sm:$0xff] %v6777_v58  ;;  %v1561_v44 = vmul.f32 %v6773_v63, %v6263_v10 }
 0x111   :  { %2228 = vrot.lane.b32.xlu1 %v2193_v53, %s6177_s25  ;;  %1244 = vrot.lane.b32.xlu0 %v1220_v43, %s6174_s17  ;;  %v1560_v53 = vmul.f32 %v6773_v63, %v6242_v3 }
 0x113   :  { %v6785_v2 = vpop.permute.xlu1 %2595  ;;  %v6787_v48 = vpop.permute.xlu0 %2593 }
 0x114   :  { %12640 = vst [vmem:[#allocation42_spill] sm:$0xff] %v6785_v2  ;;  %12641 = vst [vmem:[#allocation43_spill] sm:$0xff] %v6787_v48  ;;  %v2199_v48 = vmul.f32 %v6435_v19, %v6731_v31 }
 0x115   :  { %1585 = vrot.lane.b32.xlu1 %v1559_v6, %s6175_s20  ;;  %1583 = vrot.lane.b32.xlu0 %v1558_v7, %s6175_s20  ;;  %v2198_v6 = vmul.f32 %v6435_v19, %v6300_v21  ;;  %v2574_v19 = vmul.f32 %v6470_v33, %v6305_v22 }
 0x117   :  { %v6795_v43 = vpop.permute.xlu1 %2599  ;;  %v6797_v58 = vpop.permute.xlu0 %2597 }
 0x118   :  { %12642 = vst [vmem:[#allocation44_spill] sm:$0xff] %v6795_v43  ;;  %12643 = vst [vmem:[#allocation45_spill] sm:$0xff] %v6797_v58  ;;  %v2572_v43 = vmul.f32 %v6470_v33, %v6291_v18 }
 0x119   :  { %1589 = vrot.lane.b32.xlu1 %v1561_v44, %s6175_s20  ;;  %1587 = vrot.lane.b32.xlu0 %v1560_v53, %s6175_s20  ;;  %v2571_v44 = vmul.f32 %v6470_v33, %v6272_v13 }
 0x11b   :  { %v6805_v7 = vpop.permute.xlu1 %2601  ;;  %v6807_v2 = vpop.permute.xlu0 %2591 }
 0x11c   :  { %12644 = vst [vmem:[#allocation46_spill] sm:$0xff] %v6805_v7  ;;  %12645 = vst [vmem:[#allocation47_spill] sm:$0xff] %v6807_v2 }
 0x11d   :  { %2240 = vrot.lane.b32.xlu1 %v2199_v48, %s6177_s25  ;;  %2238 = vrot.lane.b32.xlu0 %v2198_v6, %s6177_s25  ;;  %v2573_v48 = vmul.f32 %v6470_v33, %v6286_v17 }
 0x11f   :  { %v6815_v53 = vpop.permute.xlu1 %499  ;;  %v6817_v58 = vpop.permute.xlu0 %2603 }
 0x120   :  { %12646 = vst [vmem:[#allocation48_spill] sm:$0xff] %v6815_v53  ;;  %12647 = vst [vmem:[#allocation49_spill] sm:$0xff] %v6817_v58  ;;  %v2570_v53 = vmul.f32 %v6470_v33, %v6277_v14 }
 0x121   :  { %2609 = vrot.lane.b32.xlu1 %v2572_v43, %s6178_s27  ;;  %2607 = vrot.lane.b32.xlu0 %v2571_v44, %s6178_s27  ;;  %v1557_v43 = vmul.f32 %v6773_v63, %v6237_v1  ;;  %v6835_v44 = vstv %s5161_s2  ;;  %s5154_s2 = sld [smem:[#allocation3 + $0x16]] }
 0x122   :  { %12650 = vst [vmem:[#allocation52_spill] sm:$0xff] %v6835_v44 }
 0x123   :  { %v6825_v6 = vpop.permute.xlu1 %503  ;;  %v6827_v7 = vpop.permute.xlu0 %501 }
 0x124   :  { %12648 = vst [vmem:[#allocation50_spill] sm:$0xff] %v6825_v6  ;;  %12649 = vst [vmem:[#allocation51_spill] sm:$0xff] %v6827_v7 }
 0x125   :  { %2613 = vrot.lane.b32.xlu1 %v2574_v19, %s6178_s27  ;;  %2611 = vrot.lane.b32.xlu0 %v2573_v48, %s6178_s27  ;;  %v1906_v19 = vmul.f32 %v6835_v44, %v6232_v0  ;;  %v1905_v48 = vmul.f32 %v6835_v44, %v6247_v4 }
 0x127   :  { %v6837_v58 = vpop.permute.xlu1 %497  ;;  %v6839_v2 = vpop.permute.xlu0 %505 }
 0x128   :  { %12651 = vst [vmem:[#allocation53_spill] sm:$0xff] %v6837_v58  ;;  %12652 = vst [vmem:[#allocation54_spill] sm:$0xff] %v6839_v2 }
 0x129   :  { %2605 = vrot.lane.b32.xlu1 %v2570_v53, %s6178_s27  ;;  %1581 = vrot.lane.b32.xlu0 %v1557_v43, %s6175_s20  ;;  %v1908_v53 = vmul.f32 %v6835_v44, %v6263_v10  ;;  %v1907_v43 = vmul.f32 %v6835_v44, %v6242_v3 }
 0x12b   :  { %v6847_v6 = vpop.permute.xlu1 %836  ;;  %v6849_v7 = vpop.permute.xlu0 %507 }
 0x12c   :  { %12653 = vst [vmem:[#allocation55_spill] sm:$0xff] %v6847_v6  ;;  %12654 = vst [vmem:[#allocation56_spill] sm:$0xff] %v6849_v7  ;;  %v2576_v7 = vmul.f32 %v6470_v33, %v6731_v31  ;;  %v513_v31 = vsel %vm509_vm1, %v6596_v50, %v6594_v47 }
 0x12d   :  { %1936 = vrot.lane.b32.xlu1 %v1906_v19, %s6176_s22  ;;  %1934 = vrot.lane.b32.xlu0 %v1905_v48, %s6176_s22  ;;  %v2575_v19 = vmul.f32 %v6470_v33, %v6300_v21  ;;  %v6867_v48 = vstv %s5165_s10  ;;  %s5158_s10 = sld [smem:[#allocation3 + $0x17]] }
 0x12e   :  { %v2284_v33 = vmul.f32 %v6867_v48, %v6242_v3 }
 0x12f   :  { %v6857_v58 = vpop.permute.xlu1 %840  ;;  %v6859_v2 = vpop.permute.xlu0 %838 }
 0x130   :  { %12655 = vst [vmem:[#allocation57_spill] sm:$0xff] %v6857_v58  ;;  %12656 = vst [vmem:[#allocation58_spill] sm:$0xff] %v6859_v2 }
 0x131   :  { %1940 = vrot.lane.b32.xlu1 %v1908_v53, %s6176_s22  ;;  %1938 = vrot.lane.b32.xlu0 %v1907_v43, %s6176_s22  ;;  %v2282_v53 = vmul.f32 %v6867_v48, %v6247_v4  ;;  %v1904_v43 = vmul.f32 %v6835_v44, %v6237_v1 }
 0x133   :  { %v6869_v6 = vpop.permute.xlu1 %834  ;;  %v6871_v24 = vpop.permute.xlu0 %842 }
 0x134   :  { %12657 = vst [vmem:[#allocation59_spill] sm:$0xff] %v6869_v6  ;;  %12658 = vst [vmem:[#allocation60_spill] sm:$0xff] %v6871_v24 }
 0x135   :  { %2617 = vrot.lane.b32.xlu1 %v2576_v7, %s6178_s27  ;;  %2615 = vrot.lane.b32.xlu0 %v2575_v19, %s6178_s27  ;;  %v2283_v7 = vmul.f32 %v6867_v48, %v6232_v0 }
 0x137   :  { %v6879_v58 = vpop.permute.xlu1 %1173  ;;  %v6881_v21 = vpop.permute.xlu0 %844 }
 0x138   :  { %12659 = vst [vmem:[#allocation61_spill] sm:$0xff] %v6879_v58  ;;  %12660 = vst [vmem:[#allocation62_spill] sm:$0xff] %v6881_v21  ;;  %v2281_v21 = vmul.f32 %v6867_v48, %v6237_v1 }
 0x139   :  { %2311 = vrot.lane.b32.xlu1 %v2282_v53, %s6177_s25  ;;  %1932 = vrot.lane.b32.xlu0 %v1904_v43, %s6176_s22  ;;  %v2285_v53 = vmul.f32 %v6867_v48, %v6263_v10  ;;  %v6899_v43 = vstv %s5169_s11  ;;  %s7615_s11 = sld [smem:[#allocation3 + $0x18]] }
 0x13b   :  { %v6889_v19 = vpop.permute.xlu1 %1177  ;;  %v6891_v6 = vpop.permute.xlu0 %1175 }
 0x13c   :  { %12661 = vst [vmem:[#allocation63_spill] sm:$0xff] %v6889_v19  ;;  %12662 = vst [vmem:[#allocation64_spill] sm:$0xff] %v6891_v6 }
 0x13d   :  { %2315 = vrot.lane.b32.xlu1 %v2284_v33, %s6177_s25  ;;  %2313 = vrot.lane.b32.xlu0 %v2283_v7, %s6177_s25  ;;  %v2660_v33 = vmul.f32 %v6899_v43, %v6232_v0  ;;  %v2659_v7 = vmul.f32 %v6899_v43, %v6247_v4  ;;  %v553_v4 = vmul.f32 %v6592_v46, %v6272_v13 }
 0x13f   :  { %v6901_v24 = vpop.permute.xlu1 %1171  ;;  %v6903_v58 = vpop.permute.xlu0 %1179 }
 0x140   :  { %12663 = vst [vmem:[#allocation65_spill] sm:$0xff] %v6901_v24  ;;  %12664 = vst [vmem:[#allocation66_spill] sm:$0xff] %v6903_v58  ;;  %v2662_v24 = vmul.f32 %v6899_v43, %v6263_v10  ;;  %v173_v58 = vsel %vm172_vm0, %v6462_v30, %v6474_v35 }
 0x141   :  { %2309 = vrot.lane.b32.xlu1 %v2281_v21, %s6177_s25  ;;  %2317 = vrot.lane.b32.xlu0 %v2285_v53, %s6177_s25  ;;  %v2661_v21 = vmul.f32 %v6899_v43, %v6242_v3  ;;  %v555_v3 = vmul.f32 %v6592_v46, %v6286_v17 }
 0x143   :  { %v6911_v19 = vpop.permute.xlu1 %574  ;;  %v6913_v6 = vpop.permute.xlu0 %572 }
 0x144   :  { %12665 = vst [vmem:[#allocation67_spill] sm:$0xff] %v6911_v19  ;;  %12666 = vst [vmem:[#allocation68_spill] sm:$0xff] %v6913_v6  ;;  %v890_v6 = vmul.f32 %v6644_v51, %v6272_v13 }
 0x145   :  { %2690 = vrot.lane.b32.xlu1 %v2660_v33, %s6178_s27  ;;  %2688 = vrot.lane.b32.xlu0 %v2659_v7, %s6178_s27  ;;  %v2658_v33 = vmul.f32 %v6899_v43, %v6237_v1  ;;  %v552_v1 = vmul.f32 %v6592_v46, %v6277_v14 }
 0x147   :  { %v6921_v53 = vpop.permute.xlu1 %578  ;;  %v6923_v0 = vpop.permute.xlu0 %576 }
 0x148   :  { %12667 = vst [vmem:[#allocation69_spill] sm:$0xff] %v6921_v53  ;;  %12668 = vst [vmem:[#allocation70_spill] sm:$0xff] %v6923_v0 }
 0x149   :  { %2694 = vrot.lane.b32.xlu1 %v2662_v24, %s6178_s27  ;;  %2692 = vrot.lane.b32.xlu0 %v2661_v21, %s6178_s27  ;;  %v554_v24 = vmul.f32 %v6592_v46, %v6291_v18 }
 0x14b   :  { %v6931_v7 = vpop.permute.xlu1 %1510  ;;  %v6933_v10 = vpop.permute.xlu0 %1181 }
 0x14c   :  { %12669 = vst [vmem:[#allocation71_spill] sm:$0xff] %v6931_v7  ;;  %12670 = vst [vmem:[#allocation72_spill] sm:$0xff] %v6933_v10  ;;  %v174_v7 = vsel %vm172_vm0, %v6474_v35, %v6460_v29  ;;  %v7153_v35 = vld [vmem:[%s12215_s0 + $0x40] sm:$0xff] }
 0x14d   :  { %584 = vrot.lane.b32.xlu1 %v553_v4, %s6172_s13  ;;  %2686 = vrot.lane.b32.xlu0 %v2658_v33, %s6178_s27  ;;  %v556_v4 = vmul.f32 %v6592_v46, %v6305_v22 }
 0x14f   :  { %v6941_v21 = vpop.permute.xlu1 %1514  ;;  %v6943_v53 = vpop.permute.xlu0 %1512 }
 0x150   :  { %12671 = vst [vmem:[#allocation73_spill] sm:$0xff] %v6941_v21  ;;  %12672 = vst [vmem:[#allocation74_spill] sm:$0xff] %v6943_v53  ;;  %v7134_v53 = vld [vmem:[%s12215_s0 + $0x20] sm:$0xff] }
 0x151   :  { %588 = vrot.lane.b32.xlu1 %v555_v3, %s6172_s13  ;;  %586 = vrot.lane.b32.xlu0 %v554_v24, %s6172_s13  ;;  %v551_v3 = vmul.f32 %v6592_v46, %v6258_v9 }
 0x153   :  { %v6951_v33 = vpop.permute.xlu1 %570  ;;  %v6953_v0 = vpop.permute.xlu0 %1516 }
 0x154   :  { %12673 = vst [vmem:[#allocation75_spill] sm:$0xff] %v6951_v33  ;;  %12674 = vst [vmem:[#allocation76_spill] sm:$0xff] %v6953_v0  ;;  %v892_v33 = vmul.f32 %v6644_v51, %v6286_v17  ;;  %v1226_v0 = vmul.f32 %v6706_v32, %v6277_v14 }
 0x155   :  { %582 = vrot.lane.b32.xlu1 %v552_v1, %s6172_s13  ;;  %590 = vrot.lane.b32.xlu0 %v556_v4, %s6172_s13  ;;  %v891_v1 = vmul.f32 %v6644_v51, %v6291_v18 }
 0x157   :  { %v6961_v24 = vpop.permute.xlu1 %909  ;;  %v6963_v19 = vpop.permute.xlu0 %1508 }
 0x158   :  { %12675 = vst [vmem:[#allocation77_spill] sm:$0xff] %v6961_v24  ;;  %12676 = vst [vmem:[#allocation78_spill] sm:$0xff] %v6963_v19  ;;  %v889_v24 = vmul.f32 %v6644_v51, %v6277_v14 }
 0x159   :  { %921 = vrot.lane.b32.xlu1 %v890_v6, %s6173_s15  ;;  %580 = vrot.lane.b32.xlu0 %v551_v3, %s6172_s13  ;;  %v893_v6 = vmul.f32 %v6644_v51, %v6305_v22 }
 0x15b   :  { %v6971_v4 = vpop.permute.xlu1 %913  ;;  %v6973_v10 = vpop.permute.xlu0 %911 }
 0x15c   :  { %12677 = vst [vmem:[#allocation79_spill] sm:$0xff] %v6971_v4  ;;  %12678 = vst [vmem:[#allocation80_spill] sm:$0xff] %v6973_v10  ;;  %v1227_v4 = vmul.f32 %v6706_v32, %v6272_v13 }
 0x15d   :  { %925 = vrot.lane.b32.xlu1 %v892_v33, %s6173_s15  ;;  %923 = vrot.lane.b32.xlu0 %v891_v1, %s6173_s15  ;;  %v888_v33 = vmul.f32 %v6644_v51, %v6258_v9 }
 0x15f   :  { %v6981_v3 = vpop.permute.xlu1 %1518  ;;  %v6983_v19 = vpop.permute.xlu0 %915 }
 0x160   :  { %12679 = vst [vmem:[#allocation81_spill] sm:$0xff] %v6981_v3  ;;  %12680 = vst [vmem:[#allocation82_spill] sm:$0xff] %v6983_v19  ;;  %v1229_v19 = vmul.f32 %v6706_v32, %v6286_v17 }
 0x161   :  { %919 = vrot.lane.b32.xlu1 %v889_v24, %s6173_s15  ;;  %927 = vrot.lane.b32.xlu0 %v893_v6, %s6173_s15  ;;  %v1228_v24 = vmul.f32 %v6706_v32, %v6291_v18 }
 0x163   :  { %v6991_v1 = vpop.permute.xlu1 %1855  ;;  %v6993_v10 = vpop.permute.xlu0 %1853 }
 0x164   :  { %12681 = vst [vmem:[#allocation83_spill] sm:$0xff] %v6991_v1  ;;  %12682 = vst [vmem:[#allocation84_spill] sm:$0xff] %v6993_v10 }
 0x165   :  { %1258 = vrot.lane.b32.xlu1 %v1227_v4, %s6174_s17  ;;  %917 = vrot.lane.b32.xlu0 %v888_v33, %s6173_s15  ;;  %v1230_v4 = vmul.f32 %v6706_v32, %v6305_v22 }
 0x167   :  { %v7001_v6 = vpop.permute.xlu1 %1859  ;;  %v7003_v3 = vpop.permute.xlu0 %1857 }
 0x168   :  { %12683 = vst [vmem:[#allocation85_spill] sm:$0xff] %v7001_v6  ;;  %12684 = vst [vmem:[#allocation86_spill] sm:$0xff] %v7003_v3  ;;  %v1564_v6 = vmul.f32 %v6773_v63, %v6272_v13 }
 0x169   :  { %1262 = vrot.lane.b32.xlu1 %v1229_v19, %s6174_s17  ;;  %1260 = vrot.lane.b32.xlu0 %v1228_v24, %s6174_s17  ;;  %v1225_v19 = vmul.f32 %v6706_v32, %v6258_v9 }
 0x16b   :  { %v7011_v33 = vpop.permute.xlu1 %1851  ;;  %v7013_v21 = vpop.permute.xlu0 %907 }
 0x16c   :  { %12685 = vst [vmem:[#allocation87_spill] sm:$0xff] %v7011_v33  ;;  %12686 = vst [vmem:[#allocation88_spill] sm:$0xff] %v7013_v21  ;;  %v1566_v21 = vmul.f32 %v6773_v63, %v6286_v17 }
 0x16d   :  { %1256 = vrot.lane.b32.xlu1 %v1226_v0, %s6174_s17  ;;  %1264 = vrot.lane.b32.xlu0 %v1230_v4, %s6174_s17  ;;  %v1565_v0 = vmul.f32 %v6773_v63, %v6291_v18 }
 0x16f   :  { %v7021_v24 = vpop.permute.xlu1 %1248  ;;  %v7023_v3 = vpop.permute.xlu0 %1246 }
 0x170   :  { %12687 = vst [vmem:[#allocation89_spill] sm:$0xff] %v7021_v24  ;;  %12688 = vst [vmem:[#allocation90_spill] sm:$0xff] %v7023_v3  ;;  %v1563_v3 = vmul.f32 %v6773_v63, %v6277_v14 }
 0x171   :  { %1595 = vrot.lane.b32.xlu1 %v1564_v6, %s6175_s20  ;;  %1254 = vrot.lane.b32.xlu0 %v1225_v19, %s6174_s17  ;;  %v1567_v6 = vmul.f32 %v6773_v63, %v6305_v22 }
 0x173   :  { %v7031_v4 = vpop.permute.xlu1 %1252  ;;  %v7033_v33 = vpop.permute.xlu0 %1250 }
 0x174   :  { %12689 = vst [vmem:[#allocation91_spill] sm:$0xff] %v7031_v4  ;;  %12690 = vst [vmem:[#allocation92_spill] sm:$0xff] %v7033_v33  ;;  %v1912_v4 = vmul.f32 %v6835_v44, %v6272_v13 }
 0x175   :  { %1599 = vrot.lane.b32.xlu1 %v1566_v21, %s6175_s20  ;;  %1597 = vrot.lane.b32.xlu0 %v1565_v0, %s6175_s20  ;;  %v1562_v21 = vmul.f32 %v6773_v63, %v6258_v9  ;;  %v1911_v9 = vmul.f32 %v6835_v44, %v6277_v14  ;;  %v7084_v14 = vld [vmem:[%s12215_s0 + $0x28] sm:$0xff] }
 0x177   :  { %v7041_v19 = vpop.permute.xlu1 %1863  ;;  %v7043_v24 = vpop.permute.xlu0 %1861 }
 0x178   :  { %12691 = vst [vmem:[#allocation93_spill] sm:$0xff] %v7041_v19  ;;  %12692 = vst [vmem:[#allocation94_spill] sm:$0xff] %v7043_v24 }
 0x179   :  { %1593 = vrot.lane.b32.xlu1 %v1563_v3, %s6175_s20  ;;  %1601 = vrot.lane.b32.xlu0 %v1567_v6, %s6175_s20  ;;  %v1914_v3 = vmul.f32 %v6835_v44, %v6286_v17  ;;  %v1913_v6 = vmul.f32 %v6835_v44, %v6291_v18  ;;  %v1910_v18 = vmul.f32 %v6835_v44, %v6440_v20 }
 0x17b   :  { %v7051_v0 = vpop.permute.xlu1 %2232  ;;  %v7053_v33 = vpop.permute.xlu0 %2230 }
 0x17c   :  { %12693 = vst [vmem:[#allocation95_spill] sm:$0xff] %v7051_v0  ;;  %12694 = vst [vmem:[#allocation96_spill] sm:$0xff] %v7053_v33  ;;  %v7117_v33 = vld [vmem:[%s12215_s0 + $0x18] sm:$0xff] }
 0x17d   :  { %1948 = vrot.lane.b32.xlu1 %v1912_v4, %s6176_s22  ;;  %1591 = vrot.lane.b32.xlu0 %v1562_v21, %s6175_s20  ;;  %v1915_v4 = vmul.f32 %v6835_v44, %v6305_v22  ;;  %v7071_v21 = vstv %s66_s12  ;;  %v1909_v22 = vmul.f32 %v7084_v14, %v6835_v44  ;;  %s5159_s12 = sld [smem:[#allocation3 + $0x20]] }
 0x17e   :  { %12697 = vst [vmem:[#allocation99_spill] sm:$0xff] %v7071_v21  ;;  %v71_v0 = vmul.f32 %v7117_v33, %v7071_v21  ;;  %v72_v2 = vmul.f32 %v7134_v53, %v7071_v21 }
 0x17f   :  { %v7061_v19 = vpop.permute.xlu1 %2236  ;;  %v7063_v13 = vpop.permute.xlu0 %2234 }
 0x180   :  { %12695 = vst [vmem:[#allocation97_spill] sm:$0xff] %v7061_v19  ;;  %12696 = vst [vmem:[#allocation98_spill] sm:$0xff] %v7063_v13  ;;  %v73_v13 = vmul.f32 %v7084_v14, %v7071_v21 }
 0x181   :  { %1952 = vrot.lane.b32.xlu1 %v1914_v3, %s6176_s22  ;;  %1950 = vrot.lane.b32.xlu0 %v1913_v6, %s6176_s22  ;;  %v7091_v3 = vld [vmem:[%s12215_s0 + $0x10] sm:$0xff] }
 0x182   :  { %v70_v6 = vmul.f32 %v7091_v3, %v7071_v21 }
 0x183   :  { %v7073_v17 = vpop.permute.xlu1 %2228  ;;  %v7075_v24 = vpop.permute.xlu0 %1244 }
 0x184   :  { %12698 = vst [vmem:[#allocation100_spill] sm:$0xff] %v7073_v17  ;;  %12699 = vst [vmem:[#allocation101_spill] sm:$0xff] %v7075_v24  ;;  %v175_v24 = vsel %vm172_vm0, %v6460_v29, %v6472_v34  ;;  %v7108_v17 = vld [vmem:[%s12215_s0] sm:$0xff]  ;;  %v7146_v29 = vld [vmem:[%s12215_s0 + $0x48] sm:$0xff] }
 0x185   :  { %1946 = vrot.lane.b32.xlu1 %v1911_v9, %s6176_s22  ;;  %1954 = vrot.lane.b32.xlu0 %v1915_v4, %s6176_s22  ;;  %v7098_v9 = vld [vmem:[%s12215_s0 + $0x8] sm:$0xff]  ;;  %12700 = vst [vmem:[#allocation102_spill] sm:$0xff] %v7108_v17  ;;  %v68_v19 = vmul.f32 %v7108_v17, %v7071_v21  ;;  %v2290_v30 = vmul.f32 %v7146_v29, %v6867_v48 }
 0x186   :  { %v69_v4 = vmul.f32 %v7098_v9, %v7071_v21  ;;  %v512_v21 = vsel %vm509_vm1, %v6582_v37, %v6596_v50  ;;  %v514_v17 = vsel %vm509_vm1, %v6594_v47, %v6604_v56 }
 0x187   :  { %v7121_v10 = vpop.permute.xlu1 %1585  ;;  %v7123_v1 = vpop.permute.xlu0 %1583  ;;  %v195_v44 = vadd.f32 %v173_v58, %v68_v19 }
 0x188   :  { %12701 = vst [vmem:[#allocation103_spill] sm:$0xff] %v7121_v10  ;;  %12702 = vst [vmem:[#allocation104_spill] sm:$0xff] %v7123_v1  ;;  %v176_v1 = vsel %vm172_vm0, %v6472_v34, %v6484_v40  ;;  %v2289_v34 = vmul.f32 %v7153_v35, %v6867_v48  ;;  %v197_v10 = vadd.f32 %v175_v24, %v70_v6 }
 0x189   :  { %1944 = vrot.lane.b32.xlu1 %v1910_v18, %s6176_s22  ;;  %1942 = vrot.lane.b32.xlu0 %v1909_v22, %s6176_s22  ;;  %v177_v18 = vsel %vm172_vm0, %v6484_v40, %v6482_v39  ;;  %v511_v22 = vsel %vm509_vm1, %v6584_v41, %v6582_v37  ;;  %v196_v63 = vadd.f32 %v174_v7, %v69_v4  ;;  %v7182_v37 = vld [vmem:[%s12215_s0 + $0x58] sm:$0xff] }
 0x18a   :  { %v200_v40 = vadd.f32 %v6482_v39, %v73_v13  ;;  %v198_v32 = vadd.f32 %v176_v1, %v71_v0  ;;  %v2292_v58 = vmul.f32 %v7182_v37, %v6867_v48  ;;  %v7189_v39 = vld [vmem:[%s12215_s0 + $0x50] sm:$0xff]  ;;  %v199_v50 = vadd.f32 %v177_v18, %v72_v2 }
 0x18b   :  { %v7169_v24 = vpop.permute.xlu1 %1589  ;;  %v7171_v6 = vpop.permute.xlu0 %1587  ;;  %v2291_v47 = vmul.f32 %v7189_v39, %v6867_v48  ;;  %v533_v7 = vadd.f32 %v511_v22, %v196_v63  ;;  %v534_v1 = vadd.f32 %v512_v21, %v197_v10  ;;  %v510_v0 = vsel %vm509_vm1, %v6606_v60, %v6584_v41 }
 0x18c   :  { %v535_v19 = vadd.f32 %v513_v31, %v198_v32  ;;  %v848_v13 = vsel %vm846_vm2, %v6616_v11, %v6614_v5  ;;  %v849_v4 = vsel %vm846_vm2, %v6614_v5, %v6626_v26  ;;  %v536_v32 = vadd.f32 %v514_v17, %v199_v50 }
 0x18d   :  { %2327 = vrot.lane.b32.xlu1 %v2290_v30, %s6177_s25  ;;  %2325 = vrot.lane.b32.xlu0 %v2289_v34, %s6177_s25  ;;  %v850_v30 = vsel %vm846_vm2, %v6626_v26, %v6624_v23  ;;  %v537_v31 = vadd.f32 %v6604_v56, %v200_v40  ;;  %v851_v41 = vsel %vm846_vm2, %v6624_v23, %v6634_v36  ;;  %v7226_v23 = vld [vmem:[%s12215_s0 + $0x38] sm:$0xff] }
 0x18e   :  { %v847_v60 = vsel %vm846_vm2, %v6636_v45, %v6616_v11  ;;  %v1185_v5 = vsel %vm1183_vm3, %v6648_v61, %v6646_v55  ;;  %v2286_v56 = vmul.f32 %v7084_v14, %v6867_v48  ;;  %v2288_v11 = vmul.f32 %v7226_v23, %v6867_v48 }
 0x18f   :  { %v7205_v2 = vpop.permute.xlu1 %2240  ;;  %v7207_v63 = vpop.permute.xlu0 %2238  ;;  %v532_v26 = vadd.f32 %v510_v0, %v195_v44  ;;  %v870_v45 = vadd.f32 %v848_v13, %v533_v7  ;;  %v871_v10 = vadd.f32 %v849_v4, %v534_v1  ;;  %v872_v21 = vadd.f32 %v850_v30, %v535_v19 }
 0x190   :  { %v873_v17 = vadd.f32 %v851_v41, %v536_v32  ;;  %v874_v34 = vadd.f32 %v6634_v36, %v537_v31  ;;  %v1186_v18 = vsel %vm1183_vm3, %v6646_v55, %v6658_v27  ;;  %v1187_v22 = vsel %vm1183_vm3, %v6658_v27, %v6656_v38 }
 0x191   :  { %2331 = vrot.lane.b32.xlu1 %v2292_v58, %s6177_s25  ;;  %2329 = vrot.lane.b32.xlu0 %v2291_v47, %s6177_s25  ;;  %v869_v47 = vadd.f32 %v847_v60, %v532_v26  ;;  %v1207_v44 = vadd.f32 %v1185_v5, %v870_v45  ;;  %v1184_v50 = vsel %vm1183_vm3, %v6668_v28, %v6648_v61  ;;  %v12704_v26 = vld [vmem:[#allocation32_spill] sm:$0xff] }
 0x192   :  { %v1522_v36 = vsel %vm1520_vm4, %v6678_v16, %v6676_v12  ;;  %v1523_v55 = vsel %vm1520_vm4, %v6676_v12, %v6688_v59  ;;  %v2666_v27 = vmul.f32 %v7153_v35, %v6899_v43  ;;  %v2287_v28 = vmul.f32 %v6867_v48, %v6440_v20 }
 0x193   :  { %v7237_v40 = vpop.permute.xlu1 %2609  ;;  %v7239_v58 = vpop.permute.xlu0 %2607  ;;  %v1208_v61 = vadd.f32 %v1186_v18, %v871_v10  ;;  %v1209_v7 = vadd.f32 %v1187_v22, %v872_v21  ;;  %v1188_v1 = vsel %vm1183_vm3, %v6656_v38, %v6666_v42  ;;  %v1211_v12 = vadd.f32 %v6666_v42, %v874_v34  ;;  %v12705_v10 = vld [vmem:[#allocation42_spill] sm:$0xff]  ;;  %v12706_v21 = vld [vmem:[#allocation43_spill] sm:$0xff] }
 0x194   :  { %v1206_v19 = vadd.f32 %v1184_v50, %v869_v47  ;;  %v1524_v0 = vsel %vm1520_vm4, %v6688_v59, %v6686_v52  ;;  %v1867_v13 = vsel %vm1865_vm5, %v6710_v62, %v6708_v8  ;;  %v1868_v20 = vsel %vm1865_vm5, %v6708_v8, %v6720_v57 }
 0x195   :  { %2319 = vrot.lane.b32.xlu1 %v2286_v56, %s6177_s25  ;;  %2323 = vrot.lane.b32.xlu0 %v2288_v11, %s6177_s25  ;;  %v1544_v38 = vadd.f32 %v1522_v36, %v1207_v44  ;;  %v1545_v32 = vadd.f32 %v1523_v55, %v1208_v61  ;;  %v1521_v42 = vsel %vm1520_vm4, %v6698_v15, %v6678_v16  ;;  %v12703_v56 = vld [vmem:[#allocation30_spill] sm:$0xff] }
 0x196   :  { %v2244_v59 = vsel %vm2242_vm6, %v6743_v54, %v6755_v49  ;;  %v2245_v31 = vsel %vm2242_vm6, %v6755_v49, %v6753_v25  ;;  %v2668_v8 = vmul.f32 %v7189_v39, %v6899_v43  ;;  %v2667_v41 = vmul.f32 %v7146_v29, %v6899_v43  ;;  %v12710_v55 = vld [vmem:[#allocation38_spill] sm:$0xff] }
 0x197   :  { %v7271_v4 = vpop.permute.xlu1 %2613  ;;  %v7273_v30 = vpop.permute.xlu0 %2611  ;;  %v1210_v15 = vadd.f32 %v1188_v1, %v873_v17  ;;  %v1546_v16 = vadd.f32 %v1524_v0, %v1209_v7  ;;  %v1891_v60 = vadd.f32 %v1867_v13, %v1544_v38  ;;  %v1892_v5 = vadd.f32 %v1868_v20, %v1545_v32  ;;  %v12708_v17 = vld [vmem:[#allocation35_spill] sm:$0xff]  ;;  %v12711_v1 = vld [vmem:[#allocation37_spill] sm:$0xff]  ;;  %v12712_v20 = vld [vmem:[#allocation44_spill] sm:$0xff] }
 0x198   :  { %v1525_v11 = vsel %vm1520_vm4, %v6686_v52, %v12703_v56  ;;  %v1543_v49 = vadd.f32 %v1521_v42, %v1206_v19  ;;  %v1869_v45 = vsel %vm1865_vm5, %v6720_v57, %v12704_v26  ;;  %v2621_v34 = vsel %vm2619_vm7, %v12706_v21, %v12705_v10  ;;  %v12709_v52 = vld [vmem:[#allocation45_spill] sm:$0xff] }
 0x199   :  { %2702 = vrot.lane.b32.xlu1 %v2666_v27, %s6178_s27  ;;  %2321 = vrot.lane.b32.xlu0 %v2287_v28, %s6177_s25  ;;  %v1866_v47 = vsel %vm1865_vm5, %v12708_v17, %v6710_v62  ;;  %v2268_v44 = vadd.f32 %v2244_v59, %v1891_v60  ;;  %v2269_v50 = vadd.f32 %v2245_v31, %v1892_v5  ;;  %v7313_v27 = vstv %s7250_s24  ;;  %v12713_v31 = vld [vmem:[#allocation34_spill] sm:$0xff]  ;;  %v7346_v5 = vld [vmem:[%s12215_s0 + $0x30] sm:$0xff] }
 0x19a   :  { %v2622_v36 = vsel %vm2619_vm7, %v12705_v10, %v12709_v52  ;;  %v2246_v57 = vsel %vm2242_vm6, %v6753_v25, %v12710_v55  ;;  %v2665_v28 = vmul.f32 %v7226_v23, %v6899_v43  ;;  %v2669_v62 = vmul.f32 %v7182_v37, %v6899_v43 }
 0x19b   :  { %v7299_v18 = vpop.permute.xlu1 %2605  ;;  %v7301_v22 = vpop.permute.xlu0 %1581  ;;  %v1548_v61 = vadd.f32 %v12703_v56, %v1211_v12  ;;  %v1893_v7 = vadd.f32 %v1869_v45, %v1546_v16  ;;  %v2243_v19 = vsel %vm2242_vm6, %v12711_v1, %v6743_v54  ;;  %v2645_v25 = vadd.f32 %v2621_v34, %v2268_v44  ;;  %v12717_v45 = vld [vmem:[#allocation40_spill] sm:$0xff] }
 0x19c   :  { %12707 = vst [vmem:[#allocation30_spill] sm:$0xff] %v7301_v22  ;;  %v1547_v0 = vadd.f32 %v1525_v11, %v1210_v15  ;;  %v1890_v13 = vadd.f32 %v1866_v47, %v1543_v49  ;;  %v2623_v38 = vsel %vm2619_vm7, %v12709_v52, %v12712_v20  ;;  %v2646_v32 = vadd.f32 %v2622_v36, %v2269_v50  ;;  %v12715_v15 = vld [vmem:[#allocation47_spill] sm:$0xff]  ;;  %v12716_v49 = vld [vmem:[#allocation41_spill] sm:$0xff] }
 0x19d   :  { %2706 = vrot.lane.b32.xlu1 %v2668_v8, %s6178_s27  ;;  %2704 = vrot.lane.b32.xlu0 %v2667_v41, %s6178_s27  ;;  %v1870_v12 = vsel %vm1865_vm5, %v12704_v26, %v12713_v31  ;;  %v12714_v8 = vld [vmem:[#allocation36_spill] sm:$0xff]  ;;  %v2270_v41 = vadd.f32 %v2246_v57, %v1893_v7  ;;  %v2620_v16 = vsel %vm2619_vm7, %v12715_v15, %v12706_v21  ;;  %v12722_v57 = vld [vmem:[#allocation46_spill] sm:$0xff]  ;;  %v12800_v22 = vld [vmem:[#allocation73_spill] sm:$0xff] }
 0x19e   :  { %v1871_v54 = vsel %vm1865_vm5, %v12713_v31, %v12714_v8  ;;  %v2267_v60 = vadd.f32 %v2243_v19, %v1890_v13  ;;  %v2664_v56 = vmul.f32 %v7346_v5, %v6899_v43  ;;  %v2663_v11 = vmul.f32 %v7084_v14, %v6899_v43 }
 0x19f   :  { %v7328_v42 = vpop.permute.xlu1 %1936  ;;  %v7330_v59 = vpop.permute.xlu0 %1934  ;;  %v2247_v26 = vsel %vm2242_vm6, %v12710_v55, %v12716_v49  ;;  %v2248_v10 = vsel %vm2242_vm6, %v12716_v49, %v12717_v45  ;;  %v7359_v21 = vadd.f32 %v7313_v27, %v2645_v25  ;;  %v2647_v34 = vadd.f32 %v2623_v38, %v2270_v41 }
 0x1a0   :  { %v1894_v17 = vadd.f32 %v1870_v12, %v1547_v0  ;;  %v1895_v47 = vadd.f32 %v1871_v54, %v1548_v61  ;;  %v7362_v44 = vadd.f32 %v7313_v27, %v2646_v32  ;;  %v2644_v50 = vadd.f32 %v2620_v16, %v2267_v60 }
 0x1a1   :  { %2700 = vrot.lane.b32.xlu1 %v2665_v28, %s6178_s27  ;;  %2708 = vrot.lane.b32.xlu0 %v2669_v62, %s6178_s27  ;;  %12718 = vst [vmem:[#allocation32_spill] sm:$0xff] %v7359_v21  ;;  %v2624_v55 = vsel %vm2619_vm7, %v12712_v20, %v12722_v57  ;;  %v12723_v28 = vld [vmem:[#allocation49_spill] sm:$0xff]  ;;  %v12305_v61 = vmax.f32 %v7359_v21, 0.0  ;;  %v7378_v19 = vadd.f32 %v7313_v27, %v2647_v34  ;;  %v7412_v16 = vstv %s5142_s29 }
 0x1a2   :  { %12719 = vst [vmem:[#allocation42_spill] sm:$0xff] %v7362_v44  ;;  %v2625_v62 = vsel %vm2619_vm7, %v12722_v57, %v12723_v28  ;;  %v2271_v7 = vadd.f32 %v2247_v26, %v1894_v17  ;;  %v2272_v1 = vadd.f32 %v2248_v10, %v1895_v47  ;;  %v12304_v25 = vmax.f32 %v7362_v44, 0.0  ;;  %12730 = vst [vmem:[#allocation47_spill] sm:$0xff] %v7412_v16  ;;  %v7429_v26 = vld [vmem:[%s12215_s0 + $0x60] sm:$0xff] }
 0x1a3   :  { %v7364_v52 = vpop.permute.xlu1 %1940  ;;  %v7366_v36 = vpop.permute.xlu0 %1938  ;;  %12724 = vst [vmem:[#allocation45_spill] sm:$0xff] %v7378_v19  ;;  %v7382_v13 = vadd.f32 %v7313_v27, %v2644_v50  ;;  %v12302_v31 = vmax.f32 %v7378_v19, 0.0  ;;  %v557_v45 = vmul.f32 %v7429_v26, %v6592_v46  ;;  %v294_v10 = vmul.f32 %v7098_v9, %v7412_v16 }
 0x1a4   :  { %12720 = vst [vmem:[#allocation43_spill] sm:$0xff] %v7364_v52  ;;  %12721 = vst [vmem:[#allocation35_spill] sm:$0xff] %v7366_v36  ;;  %v2648_v0 = vadd.f32 %v2624_v55, %v2271_v7  ;;  %v2649_v20 = vadd.f32 %v2625_v62, %v2272_v1  ;;  %v295_v47 = vmul.f32 %v7091_v3, %v7412_v16  ;;  %v12738_v1 = vld [vmem:[#allocation102_spill] sm:$0xff]  ;;  %v12806_v36 = vld [vmem:[#allocation85_spill] sm:$0xff] }
 0x1a5   :  { %2698 = vrot.lane.b32.xlu1 %v2664_v56, %s6178_s27  ;;  %2696 = vrot.lane.b32.xlu0 %v2663_v11, %s6178_s27  ;;  %12725 = vst [vmem:[#allocation38_spill] sm:$0xff] %v7382_v13  ;;  %v12303_v8 = vmax.f32 %v7382_v13, 0.0  ;;  %v296_v50 = vmul.f32 %v7117_v33, %v7412_v16  ;;  %v297_v55 = vmul.f32 %v7134_v53, %v7412_v16  ;;  %v12754_v13 = vld [vmem:[#allocation39_spill] sm:$0xff] }
 0x1a6   :  { %v7396_v12 = vadd.f32 %v7313_v27, %v2648_v0  ;;  %v7400_v54 = vadd.f32 %v7313_v27, %v2649_v20  ;;  %v894_v28 = vmul.f32 %v7429_v26, %v6644_v51  ;;  %v293_v0 = vmul.f32 %v12738_v1, %v7412_v16 }
 0x1a7   :  { %v7384_v38 = vpop.permute.xlu1 %2617  ;;  %v7386_v32 = vpop.permute.xlu0 %2615  ;;  %v298_v20 = vmul.f32 %v7084_v14, %v7412_v16 }
 0x1a8   :  { %12726 = vst [vmem:[#allocation37_spill] sm:$0xff] %v7396_v12  ;;  %12727 = vst [vmem:[#allocation44_spill] sm:$0xff] %v7400_v54  ;;  %v12301_v60 = vmax.f32 %v7396_v12, 0.0  ;;  %v12300_v56 = vmax.f32 %v7400_v54, 0.0 }
 0x1a9   :  { %2980 = vrot.lane.b32.xlu1 %v12304_v25, %s6171_s18  ;;  %2978 = vrot.lane.b32.xlu0 %v12305_v61, %s6171_s18 }
 0x1ab   :  { %v7402_v41 = vpop.permute.xlu1 %2311  ;;  %v7404_v15 = vpop.permute.xlu0 %1932 }
 0x1ac   :  { %12728 = vst [vmem:[#allocation34_spill] sm:$0xff] %v7402_v41  ;;  %12729 = vst [vmem:[#allocation36_spill] sm:$0xff] %v7404_v15 }
 0x1ad   :  { %2982 = vrot.lane.b32.xlu0 %v12302_v31, %s6171_s18  ;;  %2976 = vrot.lane.b32.xlu1 %v12303_v8, %s6171_s18  ;;  %v12746_v31 = vld [vmem:[#allocation31_spill] sm:$0xff] }
 0x1ae   :  { %v1231_v8 = vmul.f32 %v7429_v26, %v12746_v31 }
 0x1af   :  { %v7416_v11 = vpop.permute.xlu1 %2315  ;;  %v7418_v49 = vpop.permute.xlu0 %2313 }
 0x1b0   :  { %12731 = vst [vmem:[#allocation41_spill] sm:$0xff] %v7416_v11 }
 0x1b1   :  { %2984 = vrot.lane.b32.xlu0 %v12301_v60, %s6171_s18  ;;  %2986 = vrot.lane.b32.xlu1 %v12300_v56, %s6171_s18 }
 0x1b3   :  { %v7435_v34 = vpop.permute.xlu1 %2309  ;;  %v7437_v17 = vpop.permute.xlu0 %2317 }
 0x1b4   :  { %12732 = vst [vmem:[#allocation40_spill] sm:$0xff] %v7435_v34  ;;  %12733 = vst [vmem:[#allocation46_spill] sm:$0xff] %v7437_v17 }
 0x1b5   :  { %592 = vrot.lane.b32.xlu0 %v557_v45, %s6172_s13  ;;  %319 = vrot.lane.b32.xlu1 %v294_v10, %s6171_s18  ;;  %v7465_v45 = vstv %s5146_s9  ;;  %s5147_s9 = sld [smem:[#allocation3 + $0x1d]] }
 0x1b6   :  { %12739 = vst [vmem:[#allocation102_spill] sm:$0xff] %v7465_v45  ;;  %v631_v51 = vmul.f32 %v7098_v9, %v7465_v45 }
 0x1b7   :  { %v7445_v57 = vpop.permute.xlu1 %2690  ;;  %v7447_v46 = vpop.permute.xlu0 %2688 }
 0x1b8   :  { %12734 = vst [vmem:[#allocation49_spill] sm:$0xff] %v7445_v57  ;;  %12735 = vst [vmem:[#allocation105_spill] sm:$0xff] %v7447_v46  ;;  %v12791_v46 = vld [vmem:[#allocation60_spill] sm:$0xff] }
 0x1b9   :  { %321 = vrot.lane.b32.xlu0 %v295_v47, %s6171_s18  ;;  %323 = vrot.lane.b32.xlu1 %v296_v50, %s6171_s18  ;;  %v632_v50 = vmul.f32 %v7091_v3, %v7465_v45 }
 0x1bb   :  { %v7455_v62 = vpop.permute.xlu1 %2694  ;;  %v7457_v7 = vpop.permute.xlu0 %2692 }
 0x1bc   :  { %12736 = vst [vmem:[#allocation106_spill] sm:$0xff] %v7455_v62  ;;  %12737 = vst [vmem:[#allocation107_spill] sm:$0xff] %v7457_v7 }
 0x1bd   :  { %325 = vrot.lane.b32.xlu0 %v297_v55, %s6171_s18  ;;  %929 = vrot.lane.b32.xlu1 %v894_v28, %s6173_s15 }
 0x1bf   :  { %v7467_v10 = vpop.permute.xlu1 %584  ;;  %v7469_v47 = vpop.permute.xlu0 %2686 }
 0x1c0   :  { %12740 = vst [vmem:[#allocation108_spill] sm:$0xff] %v7467_v10  ;;  %12741 = vst [vmem:[#allocation109_spill] sm:$0xff] %v7469_v47  ;;  %v12784_v47 = vld [vmem:[#allocation58_spill] sm:$0xff] }
 0x1c1   :  { %317 = vrot.lane.b32.xlu0 %v293_v0, %s6171_s18  ;;  %327 = vrot.lane.b32.xlu1 %v298_v20, %s6171_s18  ;;  %v633_v0 = vmul.f32 %v7117_v33, %v7465_v45  ;;  %v634_v20 = vmul.f32 %v7134_v53, %v7465_v45 }
 0x1c3   :  { %v7477_v55 = vpop.permute.xlu1 %588  ;;  %v7479_v28 = vpop.permute.xlu0 %586 }
 0x1c4   :  { %12742 = vst [vmem:[#allocation110_spill] sm:$0xff] %v7477_v55  ;;  %12743 = vst [vmem:[#allocation111_spill] sm:$0xff] %v7479_v28  ;;  %v12779_v55 = vld [vmem:[#allocation48_spill] sm:$0xff] }
 0x1c5   :  { %656 = vrot.lane.b32.xlu0 %v631_v51, %s6172_s13  ;;  %658 = vrot.lane.b32.xlu1 %v632_v50, %s6172_s13  ;;  %v630_v51 = vmul.f32 %v12738_v1, %v7465_v45  ;;  %v7497_v50 = vstv %s5150_s1  ;;  %s5151_s1 = sld [smem:[#allocation3 + $0x1e]] }
 0x1c6   :  { %12747 = vst [vmem:[#allocation31_spill] sm:$0xff] %v7497_v50  ;;  %v969_v12 = vmul.f32 %v7091_v3, %v7497_v50 }
 0x1c7   :  { %v7487_v56 = vpop.permute.xlu1 %582  ;;  %v7489_v60 = vpop.permute.xlu0 %590 }
 0x1c8   :  { %12744 = vst [vmem:[#allocation112_spill] sm:$0xff] %v7487_v56  ;;  %12745 = vst [vmem:[#allocation113_spill] sm:$0xff] %v7489_v60 }
 0x1c9   :  { %660 = vrot.lane.b32.xlu0 %v633_v0, %s6172_s13  ;;  %662 = vrot.lane.b32.xlu1 %v634_v20, %s6172_s13  ;;  %v635_v0 = vmul.f32 %v7084_v14, %v7465_v45  ;;  %v968_v20 = vmul.f32 %v7098_v9, %v7497_v50  ;;  %v12783_v45 = vld [vmem:[#allocation54_spill] sm:$0xff] }
 0x1cb   :  { %v7499_v25 = vpop.permute.xlu1 %921  ;;  %v7501_v61 = vpop.permute.xlu0 %580 }
 0x1cc   :  { %12748 = vst [vmem:[#allocation114_spill] sm:$0xff] %v7499_v25  ;;  %12749 = vst [vmem:[#allocation115_spill] sm:$0xff] %v7501_v61  ;;  %v12776_v25 = vld [vmem:[#allocation14_spill] sm:$0xff] }
 0x1cd   :  { %1266 = vrot.lane.b32.xlu0 %v1231_v8, %s6174_s17  ;;  %654 = vrot.lane.b32.xlu1 %v630_v51, %s6172_s13  ;;  %v970_v8 = vmul.f32 %v7117_v33, %v7497_v50 }
 0x1cf   :  { %v7509_v31 = vpop.permute.xlu1 %925  ;;  %v7511_v54 = vpop.permute.xlu0 %923 }
 0x1d0   :  { %12750 = vst [vmem:[#allocation116_spill] sm:$0xff] %v7509_v31  ;;  %12751 = vst [vmem:[#allocation117_spill] sm:$0xff] %v7511_v54 }
 0x1d1   :  { %664 = vrot.lane.b32.xlu0 %v635_v0, %s6172_s13  ;;  %993 = vrot.lane.b32.xlu1 %v968_v20, %s6173_s15  ;;  %v971_v0 = vmul.f32 %v7134_v53, %v7497_v50  ;;  %v1568_v20 = vmul.f32 %v7429_v26, %v12754_v13 }
 0x1d3   :  { %v7519_v51 = vpop.permute.xlu1 %919  ;;  %v7521_v19 = vpop.permute.xlu0 %927 }
 0x1d4   :  { %12752 = vst [vmem:[#allocation118_spill] sm:$0xff] %v7519_v51  ;;  %12753 = vst [vmem:[#allocation119_spill] sm:$0xff] %v7521_v19  ;;  %v967_v51 = vmul.f32 %v12738_v1, %v7497_v50 }
 0x1d5   :  { %995 = vrot.lane.b32.xlu0 %v969_v12, %s6173_s15  ;;  %997 = vrot.lane.b32.xlu1 %v970_v8, %s6173_s15  ;;  %v972_v12 = vmul.f32 %v7084_v14, %v7497_v50  ;;  %v7539_v8 = vstv %s5154_s2  ;;  %v12782_v50 = vld [vmem:[#allocation50_spill] sm:$0xff] }
 0x1d6   :  { %12757 = vst [vmem:[#allocation121_spill] sm:$0xff] %v7539_v8  ;;  %v1305_v13 = vmul.f32 %v7098_v9, %v7539_v8  ;;  %v518_v16 = vsel %vm509_vm1, %v12782_v50, %v12783_v45 }
 0x1d7   :  { %v7529_v61 = vpop.permute.xlu1 %1258  ;;  %v7531_v44 = vpop.permute.xlu0 %917 }
 0x1d8   :  { %12755 = vst [vmem:[#allocation39_spill] sm:$0xff] %v7529_v61  ;;  %12756 = vst [vmem:[#allocation120_spill] sm:$0xff] %v7531_v44 }
 0x1d9   :  { %999 = vrot.lane.b32.xlu0 %v971_v0, %s6173_s15  ;;  %1603 = vrot.lane.b32.xlu1 %v1568_v20, %s6175_s20  ;;  %v1306_v0 = vmul.f32 %v7091_v3, %v7539_v8 }
 0x1db   :  { %v7541_v56 = vpop.permute.xlu1 %1262  ;;  %v7543_v21 = vpop.permute.xlu0 %1260 }
 0x1dc   :  { %12758 = vst [vmem:[#allocation122_spill] sm:$0xff] %v7541_v56  ;;  %12759 = vst [vmem:[#allocation123_spill] sm:$0xff] %v7543_v21  ;;  %v1307_v56 = vmul.f32 %v7117_v33, %v7539_v8 }
 0x1dd   :  { %991 = vrot.lane.b32.xlu0 %v967_v51, %s6173_s15  ;;  %1001 = vrot.lane.b32.xlu1 %v972_v12, %s6173_s15  ;;  %v1308_v51 = vmul.f32 %v7134_v53, %v7539_v8 }
 0x1df   :  { %v7551_v20 = vpop.permute.xlu1 %1256  ;;  %v7553_v44 = vpop.permute.xlu0 %1264 }
 0x1e0   :  { %12760 = vst [vmem:[#allocation124_spill] sm:$0xff] %v7551_v20  ;;  %12761 = vst [vmem:[#allocation125_spill] sm:$0xff] %v7553_v44  ;;  %v12764_v20 = vld [vmem:[#allocation52_spill] sm:$0xff]  ;;  %v12765_v44 = vld [vmem:[#allocation33_spill] sm:$0xff] }
 0x1e1   :  { %1330 = vrot.lane.b32.xlu0 %v1305_v13, %s6174_s17  ;;  %1332 = vrot.lane.b32.xlu1 %v1306_v0, %s6174_s17  ;;  %v1916_v13 = vmul.f32 %v7429_v26, %v12764_v20  ;;  %v1917_v0 = vmul.f32 %v12764_v20, %v12765_v44 }
 0x1e3   :  { %v7561_v12 = vpop.permute.xlu1 %1595  ;;  %v7563_v61 = vpop.permute.xlu0 %1254 }
 0x1e4   :  { %12762 = vst [vmem:[#allocation126_spill] sm:$0xff] %v7561_v12  ;;  %12763 = vst [vmem:[#allocation127_spill] sm:$0xff] %v7563_v61  ;;  %v1304_v61 = vmul.f32 %v12738_v1, %v7539_v8 }
 0x1e5   :  { %1334 = vrot.lane.b32.xlu0 %v1307_v56, %s6174_s17  ;;  %1336 = vrot.lane.b32.xlu1 %v1308_v51, %s6174_s17  ;;  %v1309_v56 = vmul.f32 %v7084_v14, %v7539_v8  ;;  %v7581_v51 = vstv %s5158_s10 }
 0x1e6   :  { %12768 = vst [vmem:[#allocation128_spill] sm:$0xff] %v7581_v51  ;;  %v1642_v44 = vmul.f32 %v7098_v9, %v7581_v51  ;;  %v1643_v20 = vmul.f32 %v7091_v3, %v7581_v51 }
 0x1e7   :  { %v7571_v21 = vpop.permute.xlu1 %1599  ;;  %v7573_v19 = vpop.permute.xlu0 %1597 }
 0x1e8   :  { %12766 = vst [vmem:[#allocation52_spill] sm:$0xff] %v7571_v21  ;;  %12767 = vst [vmem:[#allocation33_spill] sm:$0xff] %v7573_v19  ;;  %v12773_v21 = vld [vmem:[#allocation99_spill] sm:$0xff] }
 0x1e9   :  { %1956 = vrot.lane.b32.xlu0 %v1916_v13, %s6176_s22  ;;  %1958 = vrot.lane.b32.xlu1 %v1917_v0, %s6176_s22  ;;  %v75_v19 = vmul.f32 %v7153_v35, %v12773_v21  ;;  %v1645_v35 = vmul.f32 %v7134_v53, %v7581_v51 }
 0x1eb   :  { %v7583_v12 = vpop.permute.xlu1 %1593  ;;  %v7585_v31 = vpop.permute.xlu0 %1601 }
 0x1ec   :  { %12769 = vst [vmem:[#allocation129_spill] sm:$0xff] %v7583_v12  ;;  %12770 = vst [vmem:[#allocation130_spill] sm:$0xff] %v7585_v31  ;;  %v76_v12 = vmul.f32 %v7146_v29, %v12773_v21  ;;  %v12774_v31 = vld [vmem:[#allocation15_spill] sm:$0xff]  ;;  %v77_v29 = vmul.f32 %v7189_v39, %v12773_v21 }
 0x1ed   :  { %1328 = vrot.lane.b32.xlu0 %v1304_v61, %s6174_s17  ;;  %1338 = vrot.lane.b32.xlu1 %v1309_v56, %s6174_s17  ;;  %v12775_v61 = vld [vmem:[#allocation12_spill] sm:$0xff]  ;;  %v180_v54 = vsel %vm172_vm0, %v12774_v31, %v12776_v25 }
 0x1ee   :  { %v179_v56 = vsel %vm172_vm0, %v12775_v61, %v12774_v31  ;;  %v12778_v31 = vld [vmem:[#allocation51_spill] sm:$0xff]  ;;  %v203_v8 = vadd.f32 %v180_v54, %v76_v12 }
 0x1ef   :  { %v7593_v13 = vpop.permute.xlu1 %1948  ;;  %v7595_v0 = vpop.permute.xlu0 %1591  ;;  %v202_v28 = vadd.f32 %v179_v56, %v75_v19  ;;  %v517_v39 = vsel %vm509_vm1, %v12778_v31, %v12782_v50  ;;  %v2293_v19 = vmul.f32 %v7429_v26, %v6867_v48  ;;  %v7643_v54 = vld [vmem:[%s12215_s0 + $0x68] sm:$0xff] }
 0x1f0   :  { %12771 = vst [vmem:[#allocation131_spill] sm:$0xff] %v7593_v13  ;;  %12772 = vst [vmem:[#allocation132_spill] sm:$0xff] %v7595_v0  ;;  %v1644_v0 = vmul.f32 %v7117_v33, %v7581_v51  ;;  %v12777_v13 = vld [vmem:[#allocation17_spill] sm:$0xff]  ;;  %v2294_v12 = vmul.f32 %v7643_v54, %v6867_v48 }
 0x1f1   :  { %1667 = vrot.lane.b32.xlu0 %v1642_v44, %s6175_s20  ;;  %1669 = vrot.lane.b32.xlu1 %v1643_v20, %s6175_s20  ;;  %v181_v60 = vsel %vm172_vm0, %v12776_v25, %v12777_v13  ;;  %v516_v44 = vsel %vm509_vm1, %v12779_v55, %v12778_v31  ;;  %v12785_v25 = vld [vmem:[#allocation55_spill] sm:$0xff]  ;;  %v540_v31 = vadd.f32 %v517_v39, %v203_v8  ;;  %v12793_v8 = vld [vmem:[#allocation74_spill] sm:$0xff]  ;;  %v7673_v39 = vstv %s7615_s11  ;;  %s5155_s11 = sld [smem:[#allocation3 + $0x1f]] }
 0x1f2   :  { %v853_v34 = vsel %vm846_vm2, %v12785_v25, %v12784_v47  ;;  %v204_v50 = vadd.f32 %v181_v60, %v77_v29  ;;  %v539_v56 = vadd.f32 %v516_v44, %v202_v28  ;;  %v12792_v60 = vld [vmem:[#allocation63_spill] sm:$0xff] }
 0x1f3   :  { %v7623_v20 = vpop.permute.xlu1 %1952  ;;  %v7625_v10 = vpop.permute.xlu0 %1950 }
 0x1f4   :  { %12780 = vst [vmem:[#allocation99_spill] sm:$0xff] %v7623_v20  ;;  %12781 = vst [vmem:[#allocation15_spill] sm:$0xff] %v7625_v10  ;;  %v12786_v20 = vld [vmem:[#allocation57_spill] sm:$0xff]  ;;  %v541_v17 = vadd.f32 %v518_v16, %v204_v50  ;;  %v876_v11 = vadd.f32 %v853_v34, %v539_v56  ;;  %v1641_v16 = vmul.f32 %v12738_v1, %v7581_v51  ;;  %v12795_v56 = vld [vmem:[#allocation66_spill] sm:$0xff] }
 0x1f5   :  { %1671 = vrot.lane.b32.xlu0 %v1644_v0, %s6175_s20  ;;  %1673 = vrot.lane.b32.xlu1 %v1645_v35, %s6175_s20  ;;  %v854_v0 = vsel %vm846_vm2, %v12784_v47, %v12786_v20  ;;  %v12787_v35 = vld [vmem:[#allocation64_spill] sm:$0xff]  ;;  %v12788_v10 = vld [vmem:[#allocation61_spill] sm:$0xff]  ;;  %v855_v48 = vsel %vm846_vm2, %v12786_v20, %v12791_v46  ;;  %v12794_v47 = vld [vmem:[#allocation71_spill] sm:$0xff]  ;;  %v1646_v34 = vmul.f32 %v7084_v14, %v7581_v51 }
 0x1f6   :  { %v1190_v62 = vsel %vm1183_vm3, %v12788_v10, %v12787_v35  ;;  %v1191_v28 = vsel %vm1183_vm3, %v12787_v35, %v12792_v60  ;;  %v1527_v29 = vsel %vm1520_vm4, %v12794_v47, %v12793_v8  ;;  %v877_v44 = vadd.f32 %v854_v0, %v540_v31  ;;  %v12801_v31 = vld [vmem:[#allocation76_spill] sm:$0xff]  ;;  %v12802_v0 = vld [vmem:[#allocation95_spill] sm:$0xff] }
 0x1f7   :  { %v7653_v7 = vpop.permute.xlu1 %1946  ;;  %v7655_v15 = vpop.permute.xlu0 %1954  ;;  %v1213_v20 = vadd.f32 %v1190_v62, %v876_v11  ;;  %v878_v50 = vadd.f32 %v855_v48, %v541_v17  ;;  %v1192_v35 = vsel %vm1183_vm3, %v12792_v60, %v12795_v56  ;;  %v1528_v11 = vsel %vm1520_vm4, %v12793_v8, %v12800_v22  ;;  %v12803_v48 = vld [vmem:[#allocation96_spill] sm:$0xff] }
 0x1f8   :  { %12789 = vst [vmem:[#allocation12_spill] sm:$0xff] %v7653_v7  ;;  %12790 = vst [vmem:[#allocation14_spill] sm:$0xff] %v7655_v15  ;;  %v12796_v7 = vld [vmem:[#allocation83_spill] sm:$0xff]  ;;  %v12797_v15 = vld [vmem:[#allocation84_spill] sm:$0xff]  ;;  %v1214_v52 = vadd.f32 %v1191_v28, %v877_v44  ;;  %v1529_v17 = vsel %vm1520_vm4, %v12800_v22, %v12801_v31  ;;  %v2250_v60 = vsel %vm2242_vm6, %v12803_v48, %v12802_v0 }
 0x1f9   :  { %2333 = vrot.lane.b32.xlu0 %v2293_v19, %s6177_s25  ;;  %2335 = vrot.lane.b32.xlu1 %v2294_v12, %s6177_s25  ;;  %v1873_v19 = vsel %vm1865_vm5, %v12797_v15, %v12796_v7  ;;  %v1550_v62 = vadd.f32 %v1527_v29, %v1213_v20  ;;  %v1999_v28 = vmul.f32 %v7098_v9, %v7673_v39 }
 0x1fa   :  { %v2000_v44 = vmul.f32 %v7091_v3, %v7673_v39  ;;  %v1215_v8 = vadd.f32 %v1192_v35, %v878_v50  ;;  %v1551_v20 = vadd.f32 %v1528_v11, %v1214_v52  ;;  %v2627_v50 = vsel %vm2619_vm7, %v7239_v58, %v7237_v40  ;;  %v12807_v35 = vld [vmem:[#allocation98_spill] sm:$0xff]  ;;  %v12808_v11 = vld [vmem:[#allocation97_spill] sm:$0xff] }
 0x1fb   :  { %v7681_v12 = vpop.permute.xlu1 %1944  ;;  %v7683_v57 = vpop.permute.xlu0 %1942  ;;  %v1897_v29 = vadd.f32 %v1873_v19, %v1550_v62  ;;  %v2251_v52 = vsel %vm2242_vm6, %v12802_v0, %v12807_v35  ;;  %v2002_v19 = vmul.f32 %v7134_v53, %v7673_v39  ;;  %v2252_v62 = vsel %vm2242_vm6, %v12807_v35, %v12808_v11 }
 0x1fc   :  { %12798 = vst [vmem:[#allocation17_spill] sm:$0xff] %v7681_v12  ;;  %12799 = vst [vmem:[#allocation51_spill] sm:$0xff] %v7683_v57  ;;  %v12804_v12 = vld [vmem:[#allocation86_spill] sm:$0xff] }
 0x1fd   :  { %1665 = vrot.lane.b32.xlu0 %v1641_v16, %s6175_s20  ;;  %1675 = vrot.lane.b32.xlu1 %v1646_v34, %s6175_s20  ;;  %v1874_v22 = vsel %vm1865_vm5, %v12796_v7, %v12804_v12  ;;  %v1552_v16 = vadd.f32 %v1529_v17, %v1215_v8  ;;  %v1875_v34 = vsel %vm1865_vm5, %v12804_v12, %v12806_v36 }
 0x1fe   :  { %v2274_v41 = vadd.f32 %v2250_v60, %v1897_v29  ;;  %v2001_v7 = vmul.f32 %v7117_v33, %v7673_v39  ;;  %v1898_v12 = vadd.f32 %v1874_v22, %v1551_v20  ;;  %v74_v17 = vmul.f32 %v7226_v23, %v12773_v21 }
 0x1ff   :  { %v7703_v57 = vpop.permute.xlu1 %2327  ;;  %v7705_v51 = vpop.permute.xlu0 %2325  ;;  %v1899_v60 = vadd.f32 %v1875_v34, %v1552_v16  ;;  %v2628_v20 = vsel %vm2619_vm7, %v7237_v40, %v7273_v30  ;;  %v2629_v22 = vsel %vm2619_vm7, %v7273_v30, %v7271_v4  ;;  %v79_v16 = vmul.f32 %v7429_v26, %v12773_v21  ;;  %v12810_v40 = vld [vmem:[#allocation53_spill] sm:$0xff] }
 0x200   :  { %12805 = vst [vmem:[#allocation48_spill] sm:$0xff] %v7705_v51  ;;  %v2651_v0 = vadd.f32 %v2627_v50, %v2274_v41  ;;  %v2275_v51 = vadd.f32 %v2251_v52, %v1898_v12  ;;  %v2670_v41 = vmul.f32 %v7429_v26, %v6899_v43  ;;  %v515_v34 = vsel %vm509_vm1, %v12810_v40, %v12779_v55  ;;  %v12812_v12 = vld [vmem:[#allocation16_spill] sm:$0xff]  ;;  %v12819_v40 = vld [vmem:[#allocation78_spill] sm:$0xff] }
 0x201   :  { %2028 = vrot.lane.b32.xlu0 %v1999_v28, %s6176_s22  ;;  %2030 = vrot.lane.b32.xlu1 %v2000_v44, %s6176_s22  ;;  %v12809_v44 = vld [vmem:[#allocation13_spill] sm:$0xff]  ;;  %v2276_v23 = vadd.f32 %v2252_v62, %v1899_v60  ;;  %v182_v62 = vsel %vm172_vm0, %v12777_v13, %v12812_v12  ;;  %v12813_v60 = vld [vmem:[#allocation59_spill] sm:$0xff] }
 0x202   :  { %v178_v29 = vsel %vm172_vm0, %v12809_v44, %v12775_v61  ;;  %v2671_v61 = vmul.f32 %v7643_v54, %v6899_v43  ;;  %v7752_v30 = vadd.f32 %v7313_v27, %v2651_v0  ;;  %v2652_v50 = vadd.f32 %v2628_v20, %v2275_v51  ;;  %v12814_v44 = vld [vmem:[#allocation56_spill] sm:$0xff] }
 0x203   :  { %v7727_v8 = vpop.permute.xlu1 %2331  ;;  %v7729_v28 = vpop.permute.xlu0 %2329  ;;  %v2653_v35 = vadd.f32 %v2629_v22, %v2276_v23  ;;  %v78_v43 = vmul.f32 %v7182_v37, %v12773_v21  ;;  %v852_v55 = vsel %vm846_vm2, %v12813_v60, %v12785_v25  ;;  %v1998_v51 = vmul.f32 %v12738_v1, %v7673_v39  ;;  %v12815_v21 = vld [vmem:[#allocation65_spill] sm:$0xff] }
 0x204   :  { %12811 = vst [vmem:[#allocation50_spill] sm:$0xff] %v7752_v30  ;;  %v519_v37 = vsel %vm509_vm1, %v12783_v45, %v12814_v44  ;;  %v1189_v13 = vsel %vm1183_vm3, %v12815_v21, %v12788_v10  ;;  %v12362_v25 = vmax.f32 %v7752_v30, 0.0 }
 0x205   :  { %2032 = vrot.lane.b32.xlu0 %v2001_v7, %s6176_s22  ;;  %2034 = vrot.lane.b32.xlu1 %v2002_v19, %s6176_s22  ;;  %v201_v19 = vadd.f32 %v178_v29, %v74_v17  ;;  %v206_v17 = vadd.f32 %v12812_v12, %v79_v16  ;;  %v7781_v29 = vadd.f32 %v7313_v27, %v2652_v50  ;;  %v12818_v16 = vld [vmem:[#allocation62_spill] sm:$0xff] }
 0x206   :  { %v7784_v20 = vadd.f32 %v7313_v27, %v2653_v35  ;;  %v856_v10 = vsel %vm846_vm2, %v12791_v46, %v12818_v16  ;;  %v12821_v46 = vld [vmem:[#allocation87_spill] sm:$0xff] }
 0x207   :  { %v7754_v52 = vpop.permute.xlu1 %2319  ;;  %v7756_v7 = vpop.permute.xlu0 %2323  ;;  %v538_v0 = vadd.f32 %v515_v34, %v201_v19  ;;  %12816 = vst [vmem:[#allocation54_spill] sm:$0xff] %v7781_v29  ;;  %v543_v45 = vadd.f32 %v12814_v44, %v206_v17  ;;  %v1526_v34 = vsel %vm1520_vm4, %v12819_v40, %v12794_v47  ;;  %v12360_v47 = vmax.f32 %v7781_v29, 0.0  ;;  %v12866_v29 = vld [vmem:[#allocation46_spill] sm:$0xff] }
 0x208   :  { %12817 = vst [vmem:[#allocation58_spill] sm:$0xff] %v7784_v20  ;;  %v12357_v60 = vmax.f32 %v7784_v20, 0.0 }
 0x209   :  { %2710 = vrot.lane.b32.xlu0 %v2670_v41, %s6178_s27  ;;  %2712 = vrot.lane.b32.xlu1 %v2671_v61, %s6178_s27  ;;  %v205_v41 = vadd.f32 %v182_v62, %v78_v43  ;;  %v875_v61 = vadd.f32 %v852_v55, %v538_v0  ;;  %v880_v35 = vadd.f32 %v12818_v16, %v543_v45  ;;  %v12820_v43 = vld [vmem:[#allocation72_spill] sm:$0xff]  ;;  %v12824_v16 = vld [vmem:[#allocation94_spill] sm:$0xff] }
 0x20a   :  { %v1193_v12 = vsel %vm1183_vm3, %v12795_v56, %v12820_v43  ;;  %v1872_v62 = vsel %vm1865_vm5, %v12821_v46, %v12797_v15  ;;  %v12823_v15 = vld [vmem:[#allocation100_spill] sm:$0xff]  ;;  %v2253_v46 = vsel %vm2242_vm6, %v12808_v11, %v7207_v63 }
 0x20b   :  { %v7786_v22 = vpop.permute.xlu1 %2702  ;;  %v7788_v23 = vpop.permute.xlu0 %2321  ;;  %v542_v50 = vadd.f32 %v519_v37, %v205_v41  ;;  %v1212_v19 = vadd.f32 %v1189_v13, %v875_v61  ;;  %v1217_v0 = vadd.f32 %v12820_v43, %v880_v35  ;;  %v12822_v37 = vld [vmem:[#allocation81_spill] sm:$0xff]  ;;  %v2249_v21 = vsel %vm2242_vm6, %v12823_v15, %v12803_v48 }
 0x20c   :  { %v1530_v56 = vsel %vm1520_vm4, %v12801_v31, %v12822_v37  ;;  %v2003_v13 = vmul.f32 %v7084_v14, %v7673_v39  ;;  %v2004_v31 = vmul.f32 %v7346_v5, %v7673_v39  ;;  %v7834_v61 = vstv %s7774_s16  ;;  %v12825_v35 = vld [vmem:[#allocation93_spill] sm:$0xff] }
 0x20d   :  { %2026 = vrot.lane.b32.xlu0 %v1998_v51, %s6176_s22  ;;  %2990 = vrot.lane.b32.xlu1 %v12362_v25, %s6171_s18  ;;  %v879_v17 = vadd.f32 %v856_v10, %v542_v50  ;;  %v1549_v44 = vadd.f32 %v1526_v34, %v1212_v19  ;;  %v1554_v48 = vadd.f32 %v12822_v37, %v1217_v0 }
 0x20e   :  { %v1876_v10 = vsel %vm1865_vm5, %v12806_v36, %v12824_v16  ;;  %v1877_v19 = vsel %vm1865_vm5, %v12824_v16, %v12825_v35  ;;  %v2376_v36 = vmul.f32 %v7098_v9, %v7834_v61  ;;  %v2254_v0 = vsel %vm2242_vm6, %v7207_v63, %v7205_v2 }
 0x20f   :  { %v7810_v55 = vpop.permute.xlu1 %2706  ;;  %v7812_v51 = vpop.permute.xlu0 %2704  ;;  %v1216_v41 = vadd.f32 %v1193_v12, %v879_v17  ;;  %v1896_v45 = vadd.f32 %v1872_v62, %v1549_v44  ;;  %v2626_v12 = vsel %vm2619_vm7, %v7299_v18, %v7239_v58  ;;  %v2377_v62 = vmul.f32 %v7091_v3, %v7834_v61 }
 0x210   :  { %v1901_v58 = vadd.f32 %v1877_v19, %v1554_v48  ;;  %v2631_v15 = vsel %vm2619_vm7, %v7386_v32, %v7384_v38  ;;  %v2378_v2 = vmul.f32 %v7117_v33, %v7834_v61  ;;  %v2379_v63 = vmul.f32 %v7134_v53, %v7834_v61  ;;  %v12831_v53 = vld [vmem:[#allocation19_spill] sm:$0xff] }
 0x211   :  { %2992 = vrot.lane.b32.xlu0 %v12360_v47, %s6171_s18  ;;  %2994 = vrot.lane.b32.xlu1 %v12357_v60, %s6171_s18  ;;  %v1553_v50 = vadd.f32 %v1530_v56, %v1216_v41  ;;  %v2273_v43 = vadd.f32 %v2249_v21, %v1896_v45  ;;  %v2630_v56 = vsel %vm2619_vm7, %v7271_v4, %v7386_v32  ;;  %v7873_v21 = vstv %s7818_s19  ;;  %v12829_v41 = vld [vmem:[#allocation18_spill] sm:$0xff]  ;;  %v12854_v47 = vld [vmem:[#allocation101_spill] sm:$0xff] }
 0x212   :  { %v83_v4 = vmul.f32 %v7098_v9, %v7873_v21  ;;  %v257_v9 = vsel %vm172_vm0, %v12831_v53, %v12829_v41  ;;  %v84_v35 = vmul.f32 %v7091_v3, %v7873_v21  ;;  %v85_v19 = vmul.f32 %v7117_v33, %v7873_v21  ;;  %v12834_v3 = vld [vmem:[#allocation67_spill] sm:$0xff] }
 0x213   :  { %v7840_v40 = vpop.permute.xlu1 %2700  ;;  %v7842_v34 = vpop.permute.xlu0 %2708  ;;  %v1900_v17 = vadd.f32 %v1876_v10, %v1553_v50  ;;  %v2650_v18 = vadd.f32 %v2626_v12, %v2273_v43  ;;  %v82_v50 = vmul.f32 %v12738_v1, %v7873_v21  ;;  %v12832_v43 = vld [vmem:[#allocation20_spill] sm:$0xff] }
 0x215   :  { %2036 = vrot.lane.b32.xlu0 %v2003_v13, %s6176_s22  ;;  %2038 = vrot.lane.b32.xlu1 %v2004_v31, %s6176_s22  ;;  %v2277_v37 = vadd.f32 %v2253_v46, %v1900_v17  ;;  %v2278_v13 = vadd.f32 %v2254_v0, %v1901_v58  ;;  %v12828_v31 = vld [vmem:[#allocation21_spill] sm:$0xff]  ;;  %v7887_v32 = vadd.f32 %v7313_v27, %v2650_v18  ;;  %v12833_v46 = vld [vmem:[#allocation23_spill] sm:$0xff]  ;;  %v12835_v0 = vld [vmem:[#allocation68_spill] sm:$0xff] }
 0x216   :  { %v258_v38 = vsel %vm172_vm0, %v12829_v41, %v12828_v31  ;;  %v259_v12 = vsel %vm172_vm0, %v12828_v31, %v12832_v43  ;;  %v595_v33 = vsel %vm509_vm1, %v12835_v0, %v12834_v3  ;;  %v12836_v58 = vld [vmem:[#allocation70_spill] sm:$0xff]  ;;  %v279_v41 = vadd.f32 %v257_v9, %v82_v50 }
 0x217   :  { %v7862_v44 = vpop.permute.xlu1 %2698  ;;  %v7864_v11 = vpop.permute.xlu0 %2696  ;;  %12830 = vst [vmem:[#allocation64_spill] sm:$0xff] %v7887_v32  ;;  %v2654_v45 = vadd.f32 %v2630_v56, %v2277_v37  ;;  %v2655_v48 = vadd.f32 %v2631_v15, %v2278_v13  ;;  %v280_v17 = vadd.f32 %v258_v38, %v83_v4  ;;  %v596_v18 = vsel %vm509_vm1, %v12834_v3, %v12836_v58  ;;  %v12837_v37 = vld [vmem:[#allocation69_spill] sm:$0xff]  ;;  %v12838_v15 = vld [vmem:[#allocation75_spill] sm:$0xff] }
 0x218   :  { %12826 = vst [vmem:[#allocation55_spill] sm:$0xff] %v7862_v44  ;;  %12827 = vst [vmem:[#allocation57_spill] sm:$0xff] %v7864_v11  ;;  %v597_v56 = vsel %vm509_vm1, %v12836_v58, %v12837_v37  ;;  %v594_v13 = vsel %vm509_vm1, %v12838_v15, %v12835_v0  ;;  %v281_v38 = vadd.f32 %v259_v12, %v84_v35  ;;  %v12842_v3 = vld [vmem:[#allocation77_spill] sm:$0xff]  ;;  %v12843_v15 = vld [vmem:[#allocation79_spill] sm:$0xff] }
 0x219   :  { %2405 = vrot.lane.b32.xlu0 %v2376_v36, %s6177_s25  ;;  %2407 = vrot.lane.b32.xlu1 %v2377_v62, %s6177_s25  ;;  %v260_v36 = vsel %vm172_vm0, %v12832_v43, %v12833_v46  ;;  %v2375_v62 = vmul.f32 %v12738_v1, %v7834_v61  ;;  %v12358_v1 = vmax.f32 %v7887_v32, 0.0  ;;  %v12841_v43 = vld [vmem:[#allocation80_spill] sm:$0xff]  ;;  %v617_v0 = vadd.f32 %v595_v33, %v280_v17  ;;  %v12844_v35 = vld [vmem:[#allocation82_spill] sm:$0xff] }
 0x21a   :  { %v282_v53 = vadd.f32 %v260_v36, %v85_v19  ;;  %v932_v58 = vsel %vm846_vm2, %v12842_v3, %v12841_v43  ;;  %v616_v50 = vadd.f32 %v594_v13, %v279_v41  ;;  %v934_v19 = vsel %vm846_vm2, %v12843_v15, %v12844_v35  ;;  %v12849_v13 = vld [vmem:[#allocation90_spill] sm:$0xff] }
 0x21b   :  { %v7889_v16 = vpop.permute.xlu1 %2980  ;;  %v7891_v10 = vpop.permute.xlu0 %2978  ;;  %v954_v9 = vadd.f32 %v932_v58, %v617_v0  ;;  %v12851_v58 = vld [vmem:[#allocation91_spill] sm:$0xff] }
 0x21d   :  { %2409 = vrot.lane.b32.xlu0 %v2378_v2, %s6177_s25  ;;  %2411 = vrot.lane.b32.xlu1 %v2379_v63, %s6177_s25  ;;  %v7928_v2 = vadd.f32 %v7313_v27, %v2654_v45  ;;  %v7931_v63 = vadd.f32 %v7313_v27, %v2655_v48  ;;  %v933_v45 = vsel %vm846_vm2, %v12841_v43, %v12843_v15 }
 0x21e   :  { %v618_v27 = vadd.f32 %v596_v18, %v281_v38  ;;  %v619_v48 = vadd.f32 %v597_v56, %v282_v53  ;;  %v12848_v56 = vld [vmem:[#allocation89_spill] sm:$0xff]  ;;  %v12850_v38 = vld [vmem:[#allocation92_spill] sm:$0xff]  ;;  %v2381_v15 = vmul.f32 %v7346_v5, %v7834_v61 }
 0x21f   :  { %12839 = vst [vmem:[#allocation61_spill] sm:$0xff] %v7928_v2  ;;  %12840 = vst [vmem:[#allocation60_spill] sm:$0xff] %v7931_v63  ;;  %v7933_v4 = vpop.permute.xlu0 %2982  ;;  %v7935_v31 = vpop.permute.xlu1 %2976  ;;  %v12359_v12 = vmax.f32 %v7928_v2, 0.0  ;;  %v12361_v36 = vmax.f32 %v7931_v63, 0.0  ;;  %v1269_v41 = vsel %vm1183_vm3, %v12849_v13, %v12848_v56  ;;  %v1270_v53 = vsel %vm1183_vm3, %v12848_v56, %v12850_v38  ;;  %v12861_v2 = vld [vmem:[#allocation30_spill] sm:$0xff] }
 0x220   :  { %v955_v43 = vadd.f32 %v933_v45, %v618_v27  ;;  %v1271_v0 = vsel %vm1183_vm3, %v12850_v38, %v12851_v58  ;;  %v956_v45 = vadd.f32 %v934_v19, %v619_v48  ;;  %v12852_v27 = vld [vmem:[#allocation103_spill] sm:$0xff]  ;;  %v7982_v38 = vstv %s7921_s21 }
 0x221   :  { %2988 = vrot.lane.b32.xlu0 %v12358_v1, %s6171_s18  ;;  %2403 = vrot.lane.b32.xlu1 %v2375_v62, %s6177_s25  ;;  %v12847_v62 = vld [vmem:[#allocation88_spill] sm:$0xff]  ;;  %v1291_v1 = vadd.f32 %v1269_v41, %v954_v9  ;;  %v1607_v19 = vsel %vm1520_vm4, %v12852_v27, %v7171_v6  ;;  %v1961_v9 = vsel %vm1865_vm5, %v7330_v59, %v7328_v42  ;;  %v12857_v41 = vld [vmem:[#allocation34_spill] sm:$0xff] }
 0x222   :  { %v931_v18 = vsel %vm846_vm2, %v12847_v62, %v12842_v3  ;;  %v2380_v3 = vmul.f32 %v7084_v14, %v7834_v61  ;;  %v12853_v62 = vld [vmem:[#allocation104_spill] sm:$0xff]  ;;  %v1293_v48 = vadd.f32 %v1271_v0, %v956_v45  ;;  %v12858_v45 = vld [vmem:[#allocation35_spill] sm:$0xff] }
 0x223   :  { %v7952_v17 = vpop.permute.xlu0 %2984  ;;  %v7954_v33 = vpop.permute.xlu1 %2986  ;;  %v1606_v56 = vsel %vm1520_vm4, %v12853_v62, %v12852_v27  ;;  %v953_v60 = vadd.f32 %v931_v18, %v616_v50  ;;  %v1608_v50 = vsel %vm1520_vm4, %v7171_v6, %v7169_v24  ;;  %v8014_v6 = vld [vmem:[%s12215_s0 + $0x10] sm:$0xff]  ;;  %v1962_v27 = vsel %vm1865_vm5, %v7328_v42, %v12858_v45  ;;  %v8040_v42 = vld [vmem:[%s12215_s0 + $0x18] sm:$0xff] }
 0x224   :  { %12845 = vst [vmem:[#allocation63_spill] sm:$0xff] %v7952_v17  ;;  %12846 = vst [vmem:[#allocation74_spill] sm:$0xff] %v7954_v33  ;;  %v12870_v33 = vld [vmem:[#allocation107_spill] sm:$0xff] }
 0x225   :  { %2996 = vrot.lane.b32.xlu0 %v12359_v12, %s6171_s18  ;;  %2998 = vrot.lane.b32.xlu1 %v12361_v36, %s6171_s18  ;;  %v1292_v12 = vadd.f32 %v1270_v53, %v955_v43  ;;  %v1268_v36 = vsel %vm1183_vm3, %v12854_v47, %v12849_v13  ;;  %v1628_v47 = vadd.f32 %v1606_v56, %v1291_v1  ;;  %v8007_v43 = vld [vmem:[%s12215_s0 + $0x8] sm:$0xff] }
 0x226   :  { %v2753_v18 = vmul.f32 %v8007_v43, %v7982_v38  ;;  %v2754_v1 = vmul.f32 %v8014_v6, %v7982_v38  ;;  %v1290_v13 = vadd.f32 %v1268_v36, %v953_v60  ;;  %v2338_v53 = vsel %vm2242_vm6, %v12857_v41, %v7418_v49  ;;  %v12862_v36 = vld [vmem:[#allocation43_spill] sm:$0xff] }
 0x227   :  { %v7989_v14 = vpop.permute.xlu0 %592  ;;  %v7991_v25 = vpop.permute.xlu1 %319  ;;  %v1629_v0 = vadd.f32 %v1607_v19, %v1292_v12  ;;  %v1605_v60 = vsel %vm1520_vm4, %v12861_v2, %v12853_v62  ;;  %v1963_v20 = vsel %vm1865_vm5, %v12858_v45, %v12862_v36  ;;  %v12863_v12 = vld [vmem:[#allocation49_spill] sm:$0xff]  ;;  %v3741_v17 = vld [vmem:[%s12218_s3 + $0x108] sm:$0xff] }
 0x228   :  { %12855 = vst [vmem:[#allocation71_spill] sm:$0xff] %v7989_v14  ;;  %12856 = vst [vmem:[#allocation66_spill] sm:$0xff] %v7991_v25  ;;  %v12869_v25 = vld [vmem:[#allocation36_spill] sm:$0xff] }
 0x229   :  { %2413 = vrot.lane.b32.xlu0 %v2380_v3, %s6177_s25  ;;  %2415 = vrot.lane.b32.xlu1 %v2381_v15, %s6177_s25  ;;  %v1630_v3 = vadd.f32 %v1608_v50, %v1293_v48  ;;  %v1985_v15 = vadd.f32 %v1961_v9, %v1628_v47  ;;  %v12864_v48 = vld [vmem:[#allocation105_spill] sm:$0xff]  ;;  %v2755_v50 = vmul.f32 %v8040_v42, %v7982_v38  ;;  %v8052_v47 = vld [vmem:[%s12215_s0 + $0x20] sm:$0xff] }
 0x22a   :  { %v2715_v19 = vsel %vm2619_vm7, %v12864_v48, %v12863_v12  ;;  %v12865_v9 = vld [vmem:[#allocation41_spill] sm:$0xff]  ;;  %v2756_v45 = vmul.f32 %v8052_v47, %v7982_v38  ;;  %v1986_v32 = vadd.f32 %v1962_v27, %v1629_v0  ;;  %v2716_v0 = vsel %vm2619_vm7, %v12863_v12, %v12870_v33  ;;  %v12871_v27 = vld [vmem:[#allocation106_spill] sm:$0xff] }
 0x22b   :  { %v8024_v56 = vpop.permute.xlu0 %321  ;;  %v8026_v63 = vpop.permute.xlu1 %323  ;;  %v2339_v2 = vsel %vm2242_vm6, %v7418_v49, %v12865_v9  ;;  %v2362_v62 = vadd.f32 %v2338_v53, %v1985_v15  ;;  %v2340_v30 = vsel %vm2242_vm6, %v12865_v9, %v12866_v29  ;;  %v1987_v49 = vadd.f32 %v1963_v20, %v1630_v3  ;;  %v8080_v3 = vld [vmem:[%s12215_s0] sm:$0xff] }
 0x22c   :  { %12859 = vst [vmem:[#allocation83_spill] sm:$0xff] %v8024_v56  ;;  %12860 = vst [vmem:[#allocation84_spill] sm:$0xff] %v8026_v63  ;;  %v1627_v63 = vadd.f32 %v1605_v60, %v1290_v13  ;;  %v8060_v53 = vstv %s7987_s23  ;;  %v1960_v56 = vsel %vm1865_vm5, %v12869_v25, %v7330_v59  ;;  %v2363_v14 = vadd.f32 %v2339_v2, %v1986_v32  ;;  %v8087_v25 = vld [vmem:[%s12215_s0 + $0x28] sm:$0xff]  ;;  %v12872_v32 = vld [vmem:[#allocation40_spill] sm:$0xff]  ;;  %s5171_s23 = sld [smem:[#allocation3 + $0x23]] }
 0x22d   :  { %2782 = vrot.lane.b32.xlu0 %v2753_v18, %s6178_s27  ;;  %2784 = vrot.lane.b32.xlu1 %v2754_v1, %s6178_s27  ;;  %v2739_v18 = vadd.f32 %v2715_v19, %v2362_v62  ;;  %v2717_v20 = vsel %vm2619_vm7, %v12870_v33, %v12871_v27  ;;  %v2364_v13 = vadd.f32 %v2340_v30, %v1987_v49  ;;  %v12876_v62 = vld [vmem:[#allocation109_spill] sm:$0xff] }
 0x22e   :  { %v2752_v59 = vmul.f32 %v8080_v3, %v7982_v38  ;;  %v2757_v30 = vmul.f32 %v8087_v25, %v7982_v38  ;;  %v2337_v33 = vsel %vm2242_vm6, %v12872_v32, %v12857_v41  ;;  %v1984_v60 = vadd.f32 %v1960_v56, %v1627_v63  ;;  %v8141_v32 = vld [vmem:[%s12215_s0 + $0x40] sm:$0xff] }
 0x22f   :  { %v8062_v15 = vpop.permute.xlu0 %325  ;;  %v8064_v1 = vpop.permute.xlu1 %929  ;;  %v8095_v12 = vadd.f32 %v8060_v53, %v2739_v18  ;;  %v2740_v19 = vadd.f32 %v2716_v0, %v2363_v14  ;;  %v2758_v63 = vmul.f32 %v7346_v5, %v7982_v38 }
 0x230   :  { %12867 = vst [vmem:[#allocation73_spill] sm:$0xff] %v8062_v15  ;;  %12868 = vst [vmem:[#allocation76_spill] sm:$0xff] %v8064_v1  ;;  %v2361_v49 = vadd.f32 %v2337_v33, %v1984_v60  ;;  %v12884_v33 = vld [vmem:[#allocation47_spill] sm:$0xff] }
 0x231   :  { %2786 = vrot.lane.b32.xlu0 %v2755_v50, %s6178_s27  ;;  %2788 = vrot.lane.b32.xlu1 %v2756_v45, %s6178_s27  ;;  %12873 = vst [vmem:[#allocation95_spill] sm:$0xff] %v8095_v12  ;;  %v2741_v50 = vadd.f32 %v2717_v20, %v2364_v13  ;;  %v2714_v45 = vsel %vm2619_vm7, %v12876_v62, %v12864_v48  ;;  %v12377_v41 = vmax.f32 %v8095_v12, 0.0 }
 0x232   :  { %v8110_v14 = vadd.f32 %v8060_v53, %v2740_v19  ;;  %v2738_v18 = vadd.f32 %v2714_v45, %v2361_v49  ;;  %v300_v60 = vmul.f32 %v8141_v32, %v12884_v33  ;;  %v8157_v45 = vld [vmem:[%s12215_s0 + $0x48] sm:$0xff] }
 0x233   :  { %v8097_v9 = vpop.permute.xlu0 %317  ;;  %v8099_v2 = vpop.permute.xlu1 %327  ;;  %v8113_v56 = vadd.f32 %v8060_v53, %v2741_v50  ;;  %v301_v49 = vmul.f32 %v8157_v45, %v12884_v33 }
 0x234   :  { %12874 = vst [vmem:[#allocation96_spill] sm:$0xff] %v8097_v9  ;;  %12875 = vst [vmem:[#allocation86_spill] sm:$0xff] %v8099_v2  ;;  %v12376_v5 = vmax.f32 %v8110_v14, 0.0  ;;  %v8126_v13 = vadd.f32 %v8060_v53, %v2738_v18  ;;  %v12966_v9 = vld [vmem:[#allocation26_spill] sm:$0xff] }
 0x235   :  { %2780 = vrot.lane.b32.xlu0 %v2752_v59, %s6178_s27  ;;  %2790 = vrot.lane.b32.xlu1 %v2757_v30, %s6178_s27  ;;  %12877 = vst [vmem:[#allocation85_spill] sm:$0xff] %v8110_v14  ;;  %12878 = vst [vmem:[#allocation98_spill] sm:$0xff] %v8113_v56  ;;  %v12374_v20 = vmax.f32 %v8113_v56, 0.0  ;;  %v12891_v14 = vld [vmem:[#allocation102_spill] sm:$0xff] }
 0x236   :  { %12881 = vst [vmem:[#allocation53_spill] sm:$0xff] %v8126_v13  ;;  %v12375_v19 = vmax.f32 %v8126_v13, 0.0  ;;  %v637_v12 = vmul.f32 %v8141_v32, %v12891_v14 }
 0x237   :  { %v8115_v0 = vpop.permute.xlu0 %656  ;;  %v8117_v48 = vpop.permute.xlu1 %658 }
 0x238   :  { %12879 = vst [vmem:[#allocation97_spill] sm:$0xff] %v8115_v0  ;;  %12880 = vst [vmem:[#allocation13_spill] sm:$0xff] %v8117_v48  ;;  %v3709_v48 = vld [vmem:[%s12218_s3 + $0x8] sm:$0xff] }
 0x239   :  { %2792 = vrot.lane.b32.xlu0 %v2758_v63, %s6178_s27  ;;  %3160 = vrot.lane.b32.xlu1 %v12377_v41, %s6171_s18  ;;  %v8164_v63 = vld [vmem:[%s12215_s0 + $0x50] sm:$0xff]  ;;  %v8184_v41 = vld [vmem:[%s12215_s0 + $0x38] sm:$0xff] }
 0x23a   :  { %v302_v18 = vmul.f32 %v8164_v63, %v12884_v33  ;;  %v299_v56 = vmul.f32 %v8184_v41, %v12884_v33 }
 0x23b   :  { %v8128_v59 = vpop.permute.xlu0 %660  ;;  %v8130_v30 = vpop.permute.xlu1 %662 }
 0x23c   :  { %12882 = vst [vmem:[#allocation16_spill] sm:$0xff] %v8128_v59  ;;  %12883 = vst [vmem:[#allocation59_spill] sm:$0xff] %v8130_v30 }
 0x23d   :  { %3162 = vrot.lane.b32.xlu0 %v12376_v5, %s6171_s18  ;;  %3164 = vrot.lane.b32.xlu1 %v12374_v20, %s6171_s18 }
 0x23f   :  { %v8146_v50 = vpop.permute.xlu0 %1266  ;;  %v8148_v62 = vpop.permute.xlu1 %654 }
 0x240   :  { %12885 = vst [vmem:[#allocation56_spill] sm:$0xff] %v8146_v50  ;;  %12886 = vst [vmem:[#allocation65_spill] sm:$0xff] %v8148_v62 }
 0x241   :  { %3158 = vrot.lane.b32.xlu0 %v12375_v19, %s6171_s18  ;;  %331 = vrot.lane.b32.xlu1 %v300_v60, %s6171_s18  ;;  %v8177_v60 = vld [vmem:[%s12215_s0 + $0x58] sm:$0xff] }
 0x242   :  { %v303_v5 = vmul.f32 %v8177_v60, %v12884_v33 }
 0x243   :  { %v8168_v20 = vpop.permute.xlu0 %664  ;;  %v8170_v19 = vpop.permute.xlu1 %993 }
 0x244   :  { %12887 = vst [vmem:[#allocation62_spill] sm:$0xff] %v8168_v20  ;;  %12888 = vst [vmem:[#allocation78_spill] sm:$0xff] %v8170_v19 }
 0x245   :  { %333 = vrot.lane.b32.xlu0 %v301_v49, %s6171_s18  ;;  %335 = vrot.lane.b32.xlu1 %v302_v18, %s6171_s18  ;;  %v304_v18 = vmul.f32 %v7429_v26, %v12884_v33 }
 0x247   :  { %v8188_v13 = vpop.permute.xlu0 %995  ;;  %v8190_v49 = vpop.permute.xlu1 %997 }
 0x248   :  { %12889 = vst [vmem:[#allocation72_spill] sm:$0xff] %v8188_v13  ;;  %12890 = vst [vmem:[#allocation87_spill] sm:$0xff] %v8190_v49  ;;  %v638_v49 = vmul.f32 %v8157_v45, %v12891_v14 }
 0x249   :  { %337 = vrot.lane.b32.xlu0 %v303_v5, %s6171_s18  ;;  %329 = vrot.lane.b32.xlu1 %v299_v56, %s6171_s18  ;;  %v639_v56 = vmul.f32 %v8164_v63, %v12891_v14 }
 0x24b   :  { %v8198_v19 = vpop.permute.xlu0 %999  ;;  %v8200_v20 = vpop.permute.xlu1 %1603 }
 0x24c   :  { %12892 = vst [vmem:[#allocation81_spill] sm:$0xff] %v8198_v19  ;;  %12893 = vst [vmem:[#allocation100_spill] sm:$0xff] %v8200_v20  ;;  %v640_v20 = vmul.f32 %v8177_v60, %v12891_v14 }
 0x24d   :  { %339 = vrot.lane.b32.xlu0 %v304_v18, %s6171_s18  ;;  %668 = vrot.lane.b32.xlu1 %v637_v12, %s6172_s13  ;;  %v636_v12 = vmul.f32 %v8184_v41, %v12891_v14 }
 0x24f   :  { %v8208_v5 = vpop.permute.xlu0 %991  ;;  %v8210_v33 = vpop.permute.xlu1 %1001 }
 0x250   :  { %12894 = vst [vmem:[#allocation94_spill] sm:$0xff] %v8208_v5  ;;  %12895 = vst [vmem:[#allocation93_spill] sm:$0xff] %v8210_v33  ;;  %v641_v33 = vmul.f32 %v7429_v26, %v12891_v14 }
 0x251   :  { %670 = vrot.lane.b32.xlu0 %v638_v49, %s6172_s13  ;;  %672 = vrot.lane.b32.xlu1 %v639_v56, %s6172_s13  ;;  %v12898_v49 = vld [vmem:[#allocation31_spill] sm:$0xff] }
 0x252   :  { %v974_v56 = vmul.f32 %v8141_v32, %v12898_v49 }
 0x253   :  { %v8218_v18 = vpop.permute.xlu0 %1330  ;;  %v8220_v19 = vpop.permute.xlu1 %1332 }
 0x254   :  { %12896 = vst [vmem:[#allocation21_spill] sm:$0xff] %v8218_v18  ;;  %12897 = vst [vmem:[#allocation18_spill] sm:$0xff] %v8220_v19 }
 0x255   :  { %674 = vrot.lane.b32.xlu0 %v640_v20, %s6172_s13  ;;  %666 = vrot.lane.b32.xlu1 %v636_v12, %s6172_s13  ;;  %v975_v20 = vmul.f32 %v8157_v45, %v12898_v49  ;;  %v976_v12 = vmul.f32 %v8164_v63, %v12898_v49 }
 0x257   :  { %v8228_v5 = vpop.permute.xlu0 %1334  ;;  %v8230_v13 = vpop.permute.xlu1 %1336 }
 0x258   :  { %12899 = vst [vmem:[#allocation19_spill] sm:$0xff] %v8228_v5  ;;  %12900 = vst [vmem:[#allocation20_spill] sm:$0xff] %v8230_v13  ;;  %v977_v13 = vmul.f32 %v8177_v60, %v12898_v49 }
 0x259   :  { %676 = vrot.lane.b32.xlu0 %v641_v33, %s6172_s13  ;;  %1005 = vrot.lane.b32.xlu1 %v974_v56, %s6173_s15  ;;  %v973_v33 = vmul.f32 %v8184_v41, %v12898_v49  ;;  %v8248_v56 = vstv %s5143_s8  ;;  %s8863_s8 = sld [smem:[#allocation3 + $0x22]] }
 0x25a   :  { %12903 = vst [vmem:[#allocation68_spill] sm:$0xff] %v8248_v56 }
 0x25b   :  { %v8238_v18 = vpop.permute.xlu0 %1956  ;;  %v8240_v14 = vpop.permute.xlu1 %1958 }
 0x25c   :  { %12901 = vst [vmem:[#allocation23_spill] sm:$0xff] %v8238_v18  ;;  %12902 = vst [vmem:[#allocation67_spill] sm:$0xff] %v8240_v14 }
 0x25d   :  { %1007 = vrot.lane.b32.xlu0 %v975_v20, %s6173_s15  ;;  %1009 = vrot.lane.b32.xlu1 %v976_v12, %s6173_s15  ;;  %v378_v20 = vmul.f32 %v8007_v43, %v8248_v56  ;;  %v379_v12 = vmul.f32 %v8014_v6, %v8248_v56 }
 0x25f   :  { %v8250_v5 = vpop.permute.xlu0 %1328  ;;  %v8252_v19 = vpop.permute.xlu1 %1338 }
 0x260   :  { %12904 = vst [vmem:[#allocation70_spill] sm:$0xff] %v8250_v5  ;;  %12905 = vst [vmem:[#allocation69_spill] sm:$0xff] %v8252_v19  ;;  %v380_v19 = vmul.f32 %v8040_v42, %v8248_v56 }
 0x261   :  { %1011 = vrot.lane.b32.xlu0 %v977_v13, %s6173_s15  ;;  %1003 = vrot.lane.b32.xlu1 %v973_v33, %s6173_s15  ;;  %v381_v13 = vmul.f32 %v8052_v47, %v8248_v56 }
 0x263   :  { %v8260_v14 = vpop.permute.xlu0 %1667  ;;  %v8262_v18 = vpop.permute.xlu1 %1669 }
 0x264   :  { %12906 = vst [vmem:[#allocation75_spill] sm:$0xff] %v8260_v14  ;;  %12907 = vst [vmem:[#allocation80_spill] sm:$0xff] %v8262_v18  ;;  %v978_v14 = vmul.f32 %v7429_v26, %v12898_v49 }
 0x265   :  { %403 = vrot.lane.b32.xlu0 %v378_v20, %s6171_s18  ;;  %405 = vrot.lane.b32.xlu1 %v379_v12, %s6171_s18  ;;  %v12910_v20 = vld [vmem:[#allocation121_spill] sm:$0xff] }
 0x266   :  { %v1311_v12 = vmul.f32 %v8141_v32, %v12910_v20 }
 0x267   :  { %v8270_v33 = vpop.permute.xlu0 %1671  ;;  %v8272_v5 = vpop.permute.xlu1 %1673 }
 0x268   :  { %12908 = vst [vmem:[#allocation77_spill] sm:$0xff] %v8270_v33  ;;  %12909 = vst [vmem:[#allocation79_spill] sm:$0xff] %v8272_v5 }
 0x269   :  { %407 = vrot.lane.b32.xlu0 %v380_v19, %s6171_s18  ;;  %409 = vrot.lane.b32.xlu1 %v381_v13, %s6171_s18  ;;  %v1312_v19 = vmul.f32 %v8157_v45, %v12910_v20  ;;  %v1313_v13 = vmul.f32 %v8164_v63, %v12910_v20 }
 0x26b   :  { %v8280_v18 = vpop.permute.xlu0 %2333  ;;  %v8282_v62 = vpop.permute.xlu1 %2335 }
 0x26c   :  { %12911 = vst [vmem:[#allocation82_spill] sm:$0xff] %v8280_v18  ;;  %12912 = vst [vmem:[#allocation88_spill] sm:$0xff] %v8282_v62  ;;  %v1314_v62 = vmul.f32 %v8177_v60, %v12910_v20 }
 0x26d   :  { %1013 = vrot.lane.b32.xlu0 %v978_v14, %s6173_s15  ;;  %1342 = vrot.lane.b32.xlu1 %v1311_v12, %s6174_s17  ;;  %v377_v14 = vmul.f32 %v8080_v3, %v8248_v56  ;;  %v8300_v12 = vstv %s5147_s9 }
 0x26e   :  { %12915 = vst [vmem:[#allocation92_spill] sm:$0xff] %v8300_v12 }
 0x26f   :  { %v8290_v5 = vpop.permute.xlu0 %1665  ;;  %v8292_v49 = vpop.permute.xlu1 %1675 }
 0x270   :  { %12913 = vst [vmem:[#allocation89_spill] sm:$0xff] %v8290_v5  ;;  %12914 = vst [vmem:[#allocation90_spill] sm:$0xff] %v8292_v49 }
 0x271   :  { %1344 = vrot.lane.b32.xlu0 %v1312_v19, %s6174_s17  ;;  %1346 = vrot.lane.b32.xlu1 %v1313_v13, %s6174_s17  ;;  %v1310_v19 = vmul.f32 %v8184_v41, %v12910_v20  ;;  %v715_v13 = vmul.f32 %v8007_v43, %v8300_v12 }
 0x273   :  { %v8302_v18 = vpop.permute.xlu0 %2028  ;;  %v8304_v33 = vpop.permute.xlu1 %2030 }
 0x274   :  { %12916 = vst [vmem:[#allocation91_spill] sm:$0xff] %v8302_v18  ;;  %12917 = vst [vmem:[#allocation103_spill] sm:$0xff] %v8304_v33  ;;  %v716_v18 = vmul.f32 %v8014_v6, %v8300_v12 }
 0x275   :  { %1348 = vrot.lane.b32.xlu0 %v1314_v62, %s6174_s17  ;;  %401 = vrot.lane.b32.xlu1 %v377_v14, %s6171_s18  ;;  %v717_v62 = vmul.f32 %v8040_v42, %v8300_v12 }
 0x277   :  { %v8312_v49 = vpop.permute.xlu0 %2032  ;;  %v8314_v5 = vpop.permute.xlu1 %2034 }
 0x278   :  { %12918 = vst [vmem:[#allocation104_spill] sm:$0xff] %v8312_v49  ;;  %12919 = vst [vmem:[#allocation101_spill] sm:$0xff] %v8314_v5  ;;  %v718_v5 = vmul.f32 %v8052_v47, %v8300_v12 }
 0x279   :  { %1340 = vrot.lane.b32.xlu0 %v1310_v19, %s6174_s17  ;;  %740 = vrot.lane.b32.xlu1 %v715_v13, %s6172_s13  ;;  %v1315_v19 = vmul.f32 %v7429_v26, %v12910_v20 }
 0x27b   :  { %v8322_v14 = vpop.permute.xlu0 %2710  ;;  %v8324_v33 = vpop.permute.xlu1 %2712 }
 0x27c   :  { %12920 = vst [vmem:[#allocation34_spill] sm:$0xff] %v8322_v14  ;;  %12921 = vst [vmem:[#allocation35_spill] sm:$0xff] %v8324_v33  ;;  %v12924_v14 = vld [vmem:[#allocation128_spill] sm:$0xff] }
 0x27d   :  { %742 = vrot.lane.b32.xlu0 %v716_v18, %s6172_s13  ;;  %744 = vrot.lane.b32.xlu1 %v717_v62, %s6172_s13  ;;  %v1648_v33 = vmul.f32 %v8141_v32, %v12924_v14  ;;  %v1649_v18 = vmul.f32 %v8157_v45, %v12924_v14  ;;  %v1650_v26 = vmul.f32 %v8164_v63, %v12924_v14 }
 0x27f   :  { %v8332_v13 = vpop.permute.xlu0 %2026  ;;  %v8334_v49 = vpop.permute.xlu1 %2990 }
 0x280   :  { %12922 = vst [vmem:[#allocation30_spill] sm:$0xff] %v8332_v13  ;;  %12923 = vst [vmem:[#allocation43_spill] sm:$0xff] %v8334_v49  ;;  %v714_v13 = vmul.f32 %v8080_v3, %v8300_v12 }
 0x281   :  { %746 = vrot.lane.b32.xlu0 %v718_v5, %s6172_s13  ;;  %1350 = vrot.lane.b32.xlu1 %v1315_v19, %s6174_s17  ;;  %v1651_v5 = vmul.f32 %v8177_v60, %v12924_v14 }
 0x283   :  { %v8342_v62 = vpop.permute.xlu0 %2992  ;;  %v8344_v50 = vpop.permute.xlu1 %2994 }
 0x284   :  { %12925 = vst [vmem:[#allocation49_spill] sm:$0xff] %v8342_v62  ;;  %12926 = vst [vmem:[#allocation105_spill] sm:$0xff] %v8344_v50 }
 0x285   :  { %1679 = vrot.lane.b32.xlu0 %v1648_v33, %s6175_s20  ;;  %1681 = vrot.lane.b32.xlu1 %v1649_v18, %s6175_s20  ;;  %v1647_v33 = vmul.f32 %v8184_v41, %v12924_v14  ;;  %v8362_v18 = vstv %s5151_s1 }
 0x286   :  { %12929 = vst [vmem:[#allocation36_spill] sm:$0xff] %v8362_v18 }
 0x287   :  { %v8352_v20 = vpop.permute.xlu0 %2036  ;;  %v8354_v19 = vpop.permute.xlu1 %2038 }
 0x288   :  { %12927 = vst [vmem:[#allocation41_spill] sm:$0xff] %v8352_v20  ;;  %12928 = vst [vmem:[#allocation46_spill] sm:$0xff] %v8354_v19 }
 0x289   :  { %1683 = vrot.lane.b32.xlu0 %v1650_v26, %s6175_s20  ;;  %1685 = vrot.lane.b32.xlu1 %v1651_v5, %s6175_s20  ;;  %v1052_v26 = vmul.f32 %v8007_v43, %v8362_v18  ;;  %v1053_v5 = vmul.f32 %v8014_v6, %v8362_v18 }
 0x28b   :  { %v8364_v30 = vpop.permute.xlu0 %2405  ;;  %v8366_v59 = vpop.permute.xlu1 %2407 }
 0x28c   :  { %12930 = vst [vmem:[#allocation107_spill] sm:$0xff] %v8364_v30  ;;  %12931 = vst [vmem:[#allocation40_spill] sm:$0xff] %v8366_v59  ;;  %v1054_v30 = vmul.f32 %v8040_v42, %v8362_v18 }
 0x28d   :  { %738 = vrot.lane.b32.xlu0 %v714_v13, %s6172_s13  ;;  %1677 = vrot.lane.b32.xlu1 %v1647_v33, %s6175_s20  ;;  %v1055_v13 = vmul.f32 %v8052_v47, %v8362_v18 }
 0x28f   :  { %v8374_v19 = vpop.permute.xlu0 %2409  ;;  %v8376_v20 = vpop.permute.xlu1 %2411 }
 0x290   :  { %12932 = vst [vmem:[#allocation109_spill] sm:$0xff] %v8374_v19  ;;  %12933 = vst [vmem:[#allocation47_spill] sm:$0xff] %v8376_v20  ;;  %v2006_v20 = vmul.f32 %v8141_v32, %v7673_v39 }
 0x291   :  { %1077 = vrot.lane.b32.xlu0 %v1052_v26, %s6173_s15  ;;  %1079 = vrot.lane.b32.xlu1 %v1053_v5, %s6173_s15  ;;  %v8393_v26 = vld [vmem:[%s12215_s0 + $0x60] sm:$0xff] }
 0x292   :  { %v1652_v5 = vmul.f32 %v8393_v26, %v12924_v14 }
 0x293   :  { %v8384_v33 = vpop.permute.xlu0 %2988  ;;  %v8386_v59 = vpop.permute.xlu1 %2403 }
 0x294   :  { %12934 = vst [vmem:[#allocation102_spill] sm:$0xff] %v8384_v33  ;;  %12935 = vst [vmem:[#allocation31_spill] sm:$0xff] %v8386_v59 }
 0x295   :  { %1081 = vrot.lane.b32.xlu0 %v1054_v30, %s6173_s15  ;;  %1083 = vrot.lane.b32.xlu1 %v1055_v13, %s6173_s15  ;;  %v2007_v30 = vmul.f32 %v8157_v45, %v7673_v39  ;;  %v2008_v13 = vmul.f32 %v8164_v63, %v7673_v39 }
 0x297   :  { %v8399_v19 = vpop.permute.xlu0 %2996  ;;  %v8401_v33 = vpop.permute.xlu1 %2998 }
 0x298   :  { %12936 = vst [vmem:[#allocation121_spill] sm:$0xff] %v8399_v19  ;;  %12937 = vst [vmem:[#allocation128_spill] sm:$0xff] %v8401_v33  ;;  %v2009_v33 = vmul.f32 %v8177_v60, %v7673_v39 }
 0x299   :  { %1687 = vrot.lane.b32.xlu0 %v1652_v5, %s6175_s20  ;;  %2042 = vrot.lane.b32.xlu1 %v2006_v20, %s6176_s22  ;;  %v1051_v20 = vmul.f32 %v8080_v3, %v8362_v18  ;;  %v8419_v5 = vstv %s5155_s11 }
 0x29a   :  { %12940 = vst [vmem:[#allocation135_spill] sm:$0xff] %v8419_v5 }
 0x29b   :  { %v8409_v59 = vpop.permute.xlu0 %2413  ;;  %v8411_v14 = vpop.permute.xlu1 %2415 }
 0x29c   :  { %12938 = vst [vmem:[#allocation133_spill] sm:$0xff] %v8409_v59  ;;  %12939 = vst [vmem:[#allocation134_spill] sm:$0xff] %v8411_v14 }
 0x29d   :  { %2044 = vrot.lane.b32.xlu0 %v2007_v30, %s6176_s22  ;;  %2046 = vrot.lane.b32.xlu1 %v2008_v13, %s6176_s22  ;;  %v2005_v30 = vmul.f32 %v8184_v41, %v7673_v39  ;;  %v1389_v13 = vmul.f32 %v8007_v43, %v8419_v5 }
 0x29f   :  { %v8421_v19 = vpop.permute.xlu0 %2782  ;;  %v8423_v0 = vpop.permute.xlu1 %2784 }
 0x2a0   :  { %12941 = vst [vmem:[#allocation136_spill] sm:$0xff] %v8421_v19  ;;  %12942 = vst [vmem:[#allocation137_spill] sm:$0xff] %v8423_v0  ;;  %v1390_v19 = vmul.f32 %v8014_v6, %v8419_v5 }
 0x2a1   :  { %2048 = vrot.lane.b32.xlu0 %v2009_v33, %s6176_s22  ;;  %1075 = vrot.lane.b32.xlu1 %v1051_v20, %s6173_s15  ;;  %v1391_v33 = vmul.f32 %v8040_v42, %v8419_v5 }
 0x2a3   :  { %v8431_v14 = vpop.permute.xlu0 %2786  ;;  %v8433_v59 = vpop.permute.xlu1 %2788 }
 0x2a4   :  { %12943 = vst [vmem:[#allocation138_spill] sm:$0xff] %v8431_v14  ;;  %12944 = vst [vmem:[#allocation139_spill] sm:$0xff] %v8433_v59  ;;  %v1392_v59 = vmul.f32 %v8052_v47, %v8419_v5 }
 0x2a5   :  { %2040 = vrot.lane.b32.xlu0 %v2005_v30, %s6176_s22  ;;  %1414 = vrot.lane.b32.xlu1 %v1389_v13, %s6174_s17  ;;  %v2010_v30 = vmul.f32 %v8393_v26, %v7673_v39 }
 0x2a7   :  { %v8441_v20 = vpop.permute.xlu0 %2780  ;;  %v8443_v0 = vpop.permute.xlu1 %2790 }
 0x2a8   :  { %12945 = vst [vmem:[#allocation140_spill] sm:$0xff] %v8441_v20  ;;  %12946 = vst [vmem:[#allocation141_spill] sm:$0xff] %v8443_v0  ;;  %v2011_v0 = vmul.f32 %v7643_v54, %v7673_v39 }
 0x2a9   :  { %1416 = vrot.lane.b32.xlu0 %v1390_v19, %s6174_s17  ;;  %1418 = vrot.lane.b32.xlu1 %v1391_v33, %s6174_s17  ;;  %v2383_v19 = vmul.f32 %v8141_v32, %v7834_v61 }
 0x2ab   :  { %v8451_v13 = vpop.permute.xlu0 %2792  ;;  %v8453_v14 = vpop.permute.xlu1 %3160 }
 0x2ac   :  { %12947 = vst [vmem:[#allocation142_spill] sm:$0xff] %v8451_v13  ;;  %12948 = vst [vmem:[#allocation143_spill] sm:$0xff] %v8453_v14 }
 0x2ad   :  { %1420 = vrot.lane.b32.xlu0 %v1392_v59, %s6174_s17  ;;  %2050 = vrot.lane.b32.xlu1 %v2010_v30, %s6176_s22  ;;  %v2384_v59 = vmul.f32 %v8157_v45, %v7834_v61  ;;  %v2385_v30 = vmul.f32 %v8164_v63, %v7834_v61 }
 0x2af   :  { %v8461_v33 = vpop.permute.xlu0 %3162  ;;  %v8463_v20 = vpop.permute.xlu1 %3164 }
 0x2b0   :  { %12949 = vst [vmem:[#allocation144_spill] sm:$0xff] %v8461_v33  ;;  %12950 = vst [vmem:[#allocation145_spill] sm:$0xff] %v8463_v20  ;;  %v2386_v20 = vmul.f32 %v8177_v60, %v7834_v61 }
 0x2b1   :  { %2052 = vrot.lane.b32.xlu0 %v2011_v0, %s6176_s22  ;;  %2419 = vrot.lane.b32.xlu1 %v2383_v19, %s6177_s25  ;;  %v1388_v0 = vmul.f32 %v8080_v3, %v8419_v5  ;;  %v8481_v19 = vstv %s5159_s12  ;;  %s9859_s12 = sld [smem:[#allocation6 + $0x2]] }
 0x2b2   :  { %12953 = vst [vmem:[#allocation148_spill] sm:$0xff] %v8481_v19 }
 0x2b3   :  { %v8471_v14 = vpop.permute.xlu0 %3158  ;;  %v8473_v39 = vpop.permute.xlu1 %331 }
 0x2b4   :  { %12951 = vst [vmem:[#allocation146_spill] sm:$0xff] %v8471_v14  ;;  %12952 = vst [vmem:[#allocation147_spill] sm:$0xff] %v8473_v39 }
 0x2b5   :  { %2421 = vrot.lane.b32.xlu0 %v2384_v59, %s6177_s25  ;;  %2423 = vrot.lane.b32.xlu1 %v2385_v30, %s6177_s25  ;;  %v2382_v59 = vmul.f32 %v8184_v41, %v7834_v61  ;;  %v1726_v30 = vmul.f32 %v8007_v43, %v8481_v19 }
 0x2b7   :  { %v8483_v33 = vpop.permute.xlu0 %333  ;;  %v8485_v13 = vpop.permute.xlu1 %335 }
 0x2b8   :  { %12954 = vst [vmem:[#allocation149_spill] sm:$0xff] %v8483_v33  ;;  %12955 = vst [vmem:[#allocation150_spill] sm:$0xff] %v8485_v13  ;;  %v3724_v33 = vld [vmem:[%s12218_s3 + $0x80] sm:$0xff] }
 0x2b9   :  { %2425 = vrot.lane.b32.xlu0 %v2386_v20, %s6177_s25  ;;  %1412 = vrot.lane.b32.xlu1 %v1388_v0, %s6174_s17  ;;  %v3725_v20 = vld [vmem:[%s12218_s3 + $0x88] sm:$0xff]  ;;  %v1727_v0 = vmul.f32 %v8014_v6, %v8481_v19 }
 0x2ba   :  { %v5652_v13 = vpack.c.bf16 %v3725_v20, %v3724_v33  ;;  %v3727_v33 = vld [vmem:[%s12218_s3 + $0x98] sm:$0xff] }
 0x2bb   :  { %v8493_v39 = vpop.permute.xlu0 %337  ;;  %v8495_v14 = vpop.permute.xlu1 %329  ;;  %v3711_v20 = vld [vmem:[%s12218_s3 + $0x18] sm:$0xff] }
 0x2bc   :  { %12956 = vst [vmem:[#allocation151_spill] sm:$0xff] %v8493_v39  ;;  %12957 = vst [vmem:[#allocation152_spill] sm:$0xff] %v8495_v14  ;;  %v1728_v39 = vmul.f32 %v8040_v42, %v8481_v19  ;;  %v3708_v14 = vld [vmem:[%s12218_s3] sm:$0xff]  ;;  %5653 = vmatprep.subr.bf16.mxu0 %v5652_v13 }
 0x2bd   :  { %2417 = vrot.lane.b32.xlu0 %v2382_v59, %s6177_s25  ;;  %1751 = vrot.lane.b32.xlu1 %v1726_v30, %s6175_s20  ;;  %v5654_v50 = vpack.c.bf16 %v3709_v48, %v3708_v14  ;;  %v3726_v30 = vld [vmem:[%s12218_s3 + $0x90] sm:$0xff]  ;;  %v1729_v48 = vmul.f32 %v8052_v47, %v8481_v19  ;;  %v2387_v14 = vmul.f32 %v8393_v26, %v7834_v61 }
 0x2be   :  { %v5656_v13 = vpack.c.bf16 %v3727_v33, %v3726_v30  ;;  %v3729_v30 = vld [vmem:[%s12218_s3 + $0xa8] sm:$0xff]  ;;  %v2388_v33 = vmul.f32 %v7643_v54, %v7834_v61  ;;  %v89_v54 = vmul.f32 %v8141_v32, %v7873_v21 }
 0x2bf   :  { %v8515_v2 = vpop.permute.xlu0 %339  ;;  %v8517_v59 = vpop.permute.xlu1 %668  ;;  %5655 = vmatpush3.bf16.msra.mxu0 %v5654_v50  ;;  %v3710_v50 = vld [vmem:[%s12218_s3 + $0x10] sm:$0xff]  ;;  %v12964_v61 = vld [vmem:[#allocation27_spill] sm:$0xff] }
 0x2c0   :  { %12958 = vst [vmem:[#allocation153_spill] sm:$0xff] %v8515_v2  ;;  %12959 = vst [vmem:[#allocation154_spill] sm:$0xff] %v8517_v59  ;;  %v5658_v59 = vpack.c.bf16 %v3711_v20, %v3710_v50  ;;  %5657 = vmatprep.subr.bf16.mxu0 %v5656_v13  ;;  %v2760_v50 = vmul.f32 %v8141_v32, %v7982_v38  ;;  %v3713_v20 = vld [vmem:[%s12218_s3 + $0x28] sm:$0xff]  ;;  %v2761_v32 = vmul.f32 %v8157_v45, %v7982_v38 }
 0x2c1   :  { %1753 = vrot.lane.b32.xlu0 %v1727_v0, %s6175_s20  ;;  %1755 = vrot.lane.b32.xlu1 %v1728_v39, %s6175_s20  ;;  %v3728_v39 = vld [vmem:[%s12218_s3 + $0xa0] sm:$0xff]  ;;  %v264_v1 = vsel %vm172_vm0, %v12964_v61, %v12966_v9 }
 0x2c2   :  { %v5660_v13 = vpack.c.bf16 %v3729_v30, %v3728_v39  ;;  %v12965_v39 = vld [vmem:[#allocation24_spill] sm:$0xff] }
 0x2c3   :  { %v8537_v2 = vpop.permute.xlu0 %670  ;;  %v8539_v0 = vpop.permute.xlu1 %672  ;;  %5659 = vmatpush3.bf16.msra.mxu0 %v5658_v59  ;;  %v3712_v59 = vld [vmem:[%s12218_s3 + $0x20] sm:$0xff]  ;;  %v263_v30 = vsel %vm172_vm0, %v12965_v39, %v12964_v61 }
 0x2c4   :  { %12960 = vst [vmem:[#allocation155_spill] sm:$0xff] %v8537_v2  ;;  %12961 = vst [vmem:[#allocation156_spill] sm:$0xff] %v8539_v0  ;;  %5661 = vmatprep.subr.bf16.mxu0 %v5660_v13  ;;  %v3730_v2 = vld [vmem:[%s12218_s3 + $0xb0] sm:$0xff]  ;;  %v2762_v13 = vmul.f32 %v8164_v63, %v7982_v38  ;;  %v12972_v61 = vld [vmem:[#allocation110_spill] sm:$0xff] }
 0x2c5   :  { %1757 = vrot.lane.b32.xlu0 %v1729_v48, %s6175_s20  ;;  %2427 = vrot.lane.b32.xlu1 %v2387_v14, %s6177_s25  ;;  %v5662_v48 = vpack.c.bf16 %v3713_v20, %v3712_v59  ;;  %v3731_v59 = vld [vmem:[%s12218_s3 + $0xb8] sm:$0xff] }
 0x2c6   :  { %v5664_v20 = vpack.c.bf16 %v3731_v59, %v3730_v2  ;;  %v12967_v2 = vld [vmem:[#allocation29_spill] sm:$0xff] }
 0x2c7   :  { %v8561_v0 = vpop.permute.xlu0 %674  ;;  %v8563_v14 = vpop.permute.xlu1 %666  ;;  %5663 = vmatpush3.bf16.msra.mxu0 %v5662_v48  ;;  %v3714_v48 = vld [vmem:[%s12218_s3 + $0x30] sm:$0xff]  ;;  %v265_v59 = vsel %vm172_vm0, %v12966_v9, %v12967_v2  ;;  %v3732_v9 = vld [vmem:[%s12218_s3 + $0xc0] sm:$0xff] }
 0x2c8   :  { %12962 = vst [vmem:[#allocation157_spill] sm:$0xff] %v8561_v0  ;;  %12963 = vst [vmem:[#allocation158_spill] sm:$0xff] %v8563_v14  ;;  %v3715_v14 = vld [vmem:[%s12218_s3 + $0x38] sm:$0xff]  ;;  %5665 = vmatprep.subr.bf16.mxu0 %v5664_v20  ;;  %v3733_v20 = vld [vmem:[%s12218_s3 + $0xc8] sm:$0xff] }
 0x2c9   :  { %2429 = vrot.lane.b32.xlu0 %v2388_v33, %s6177_s25  ;;  %2796 = vrot.lane.b32.xlu1 %v2760_v50, %s6178_s27  ;;  %v90_v33 = vmul.f32 %v8157_v45, %v7873_v21  ;;  %v91_v50 = vmul.f32 %v8164_v63, %v7873_v21  ;;  %v5666_v0 = vpack.c.bf16 %v3715_v14, %v3714_v48  ;;  %v12970_v14 = vld [vmem:[#allocation111_spill] sm:$0xff]  ;;  %v12971_v48 = vld [vmem:[#allocation108_spill] sm:$0xff] }
 0x2ca   :  { %v8604_v45 = vmul.f32 %v8184_v41, %v7873_v21  ;;  %v286_v63 = vadd.f32 %v263_v30, %v89_v54  ;;  %v600_v62 = vsel %vm509_vm1, %v12971_v48, %v12970_v14  ;;  %v601_v5 = vsel %vm509_vm1, %v12970_v14, %v12972_v61 }
 0x2cb   :  { %v8598_v15 = vpop.permute.xlu0 %676  ;;  %v8600_v49 = vpop.permute.xlu1 %1005  ;;  %5667 = vmatpush3.bf16.msra.mxu0 %v5666_v0  ;;  %v2763_v54 = vmul.f32 %v8177_v60, %v7982_v38  ;;  %v1725_v30 = vmul.f32 %v8080_v3, %v8481_v19  ;;  %v5668_v14 = vpack.c.bf16 %v3733_v20, %v3732_v9  ;;  %v3716_v0 = vld [vmem:[%s12218_s3 + $0x40] sm:$0xff]  ;;  %v288_v2 = vadd.f32 %v265_v59, %v91_v50  ;;  %v3757_v9 = vld [vmem:[%s12218_s3 + $0x188] sm:$0xff]  ;;  %v12973_v19 = vld [vmem:[#allocation113_spill] sm:$0xff] }
 0x2cc   :  { %12968 = vst [vmem:[#allocation27_spill] sm:$0xff] %v8598_v15  ;;  %12969 = vst [vmem:[#allocation24_spill] sm:$0xff] %v8600_v49  ;;  %v3717_v49 = vld [vmem:[%s12218_s3 + $0x48] sm:$0xff]  ;;  %v287_v15 = vadd.f32 %v264_v1, %v90_v33  ;;  %v3756_v60 = vld [vmem:[%s12218_s3 + $0x180] sm:$0xff]  ;;  %v602_v1 = vsel %vm509_vm1, %v12972_v61, %v12973_v19  ;;  %v623_v44 = vadd.f32 %v600_v62, %v286_v63 }
 0x2cd   :  { %2798 = vrot.lane.b32.xlu0 %v2761_v32, %s6178_s27  ;;  %2800 = vrot.lane.b32.xlu1 %v2762_v13, %s6178_s27  ;;  %v8631_v32 = vstv %s8559_s28  ;;  %v5670_v13 = vpack.c.bf16 %v3717_v49, %v3716_v0  ;;  %v3740_v20 = vld [vmem:[%s12218_s3 + $0x100] sm:$0xff]  ;;  %v12974_v33 = vld [vmem:[#allocation117_spill] sm:$0xff]  ;;  %v12976_v59 = vld [vmem:[#allocation116_spill] sm:$0xff]  ;;  %v5684_v56 = vpack.c.bf16 %v3757_v9, %v3756_v60 }
 0x2ce   :  { %v12975_v50 = vld [vmem:[#allocation114_spill] sm:$0xff]  ;;  %v938_v0 = vsel %vm846_vm2, %v12974_v33, %v12976_v59  ;;  %5669 = vmatprep.subr.bf16.mxu0 %v5668_v14  ;;  %v624_v61 = vadd.f32 %v601_v5, %v287_v15  ;;  %v12979_v19 = vld [vmem:[#allocation119_spill] sm:$0xff]  ;;  %v5686_v11 = vpack.c.bf16 %v3741_v17, %v3740_v20  ;;  %v3735_v14 = vld [vmem:[%s12218_s3 + $0xd8] sm:$0xff]  ;;  %v2759_v15 = vmul.f32 %v8184_v41, %v7982_v38 }
 0x2cf   :  { %v937_v49 = vsel %vm846_vm2, %v12975_v50, %v12974_v33  ;;  %v8651_v18 = vpop.permute.xlu0 %1007  ;;  %v8653_v12 = vpop.permute.xlu1 %1009  ;;  %v939_v27 = vsel %vm846_vm2, %v12976_v59, %v12979_v19  ;;  %5671 = vmatpush3.bf16.msra.mxu0 %v5670_v13  ;;  %v3734_v33 = vld [vmem:[%s12218_s3 + $0xd0] sm:$0xff]  ;;  %v2093_v62 = vmul.f32 %v8007_v43, %v8631_v32  ;;  %v3719_v63 = vld [vmem:[%s12218_s3 + $0x58] sm:$0xff]  ;;  %v625_v13 = vadd.f32 %v602_v1, %v288_v2  ;;  %v12980_v20 = vld [vmem:[#allocation123_spill] sm:$0xff] }
 0x2d0   :  { %12977 = vst [vmem:[#allocation26_spill] sm:$0xff] %v8651_v18  ;;  %12978 = vst [vmem:[#allocation111_spill] sm:$0xff] %v8653_v12  ;;  %v5672_v5 = vpack.c.bf16 %v3735_v14, %v3734_v33  ;;  %v3718_v17 = vld [vmem:[%s12218_s3 + $0x50] sm:$0xff]  ;;  %v960_v60 = vadd.f32 %v937_v49, %v623_v44  ;;  %5685 = vmatprep.subr.bf16.mxu1 %v5684_v56  ;;  %v3759_v43 = vld [vmem:[%s12218_s3 + $0x198] sm:$0xff] }
 0x2d1   :  { %2802 = vrot.lane.b32.xlu0 %v2763_v54, %s6178_s27  ;;  %1749 = vrot.lane.b32.xlu1 %v1725_v30, %s6175_s20  ;;  %v961_v54 = vadd.f32 %v938_v0, %v624_v61  ;;  %v5674_v30 = vpack.c.bf16 %v3719_v63, %v3718_v17  ;;  %v3758_v41 = vld [vmem:[%s12218_s3 + $0x190] sm:$0xff]  ;;  %v12981_v59 = vld [vmem:[#allocation39_spill] sm:$0xff]  ;;  %v12982_v44 = vld [vmem:[#allocation122_spill] sm:$0xff]  ;;  %v962_v33 = vadd.f32 %v939_v27, %v625_v13 }
 0x2d2   :  { %v3742_v9 = vld [vmem:[%s12218_s3 + $0x110] sm:$0xff]  ;;  %v1274_v2 = vsel %vm1183_vm3, %v12981_v59, %v12980_v20  ;;  %v1275_v56 = vsel %vm1183_vm3, %v12980_v20, %v12982_v44  ;;  %5687 = vmatpush3.bf16.msra.mxu1 %v5686_v11  ;;  %5673 = vmatprep.subr.bf16.mxu0 %v5672_v5  ;;  %v5688_v0 = vpack.c.bf16 %v3759_v43, %v3758_v41  ;;  %v3743_v61 = vld [vmem:[%s12218_s3 + $0x118] sm:$0xff]  ;;  %v12987_v12 = vld [vmem:[#allocation126_spill] sm:$0xff] }
 0x2d3   :  { %v8694_v1 = vpop.permute.xlu0 %1011  ;;  %v8696_v49 = vpop.permute.xlu1 %1003  ;;  %v12985_v14 = vld [vmem:[#allocation125_spill] sm:$0xff]  ;;  %5675 = vmatpush3.bf16.msra.mxu0 %v5674_v30  ;;  %v3736_v11 = vld [vmem:[%s12218_s3 + $0xe0] sm:$0xff]  ;;  %v3737_v5 = vld [vmem:[%s12218_s3 + $0xe8] sm:$0xff]  ;;  %v2094_v27 = vmul.f32 %v8014_v6, %v8631_v32  ;;  %v2095_v13 = vmul.f32 %v8040_v42, %v8631_v32 }
 0x2d4   :  { %12983 = vst [vmem:[#allocation108_spill] sm:$0xff] %v8694_v1  ;;  %12984 = vst [vmem:[#allocation110_spill] sm:$0xff] %v8696_v49  ;;  %v1276_v17 = vsel %vm1183_vm3, %v12982_v44, %v12985_v14  ;;  %v12986_v63 = vld [vmem:[#allocation33_spill] sm:$0xff]  ;;  %v5690_v1 = vpack.c.bf16 %v3743_v61, %v3742_v9  ;;  %v5676_v30 = vpack.c.bf16 %v3737_v5, %v3736_v11  ;;  %v3720_v41 = vld [vmem:[%s12218_s3 + $0x60] sm:$0xff]  ;;  %5689 = vmatprep.subr.bf16.mxu1 %v5688_v0 }
 0x2d5   :  { %v1611_v20 = vsel %vm1520_vm4, %v12987_v12, %v12986_v63  ;;  %2794 = vrot.lane.b32.xlu0 %v2759_v15, %s6178_s27  ;;  %2122 = vrot.lane.b32.xlu1 %v2093_v62, %s6176_s22  ;;  %v3721_v43 = vld [vmem:[%s12218_s3 + $0x68] sm:$0xff]  ;;  %v12988_v9 = vld [vmem:[#allocation25_spill] sm:$0xff]  ;;  %v1297_v62 = vadd.f32 %v1274_v2, %v960_v60  ;;  %v1298_v44 = vadd.f32 %v1275_v56, %v961_v54  ;;  %v3760_v42 = vld [vmem:[%s12218_s3 + $0x1a0] sm:$0xff] }
 0x2d6   :  { %v8728_v15 = vsel %vm172_vm0, %v12988_v9, %v12965_v39  ;;  %v5678_v6 = vpack.c.bf16 %v3721_v43, %v3720_v41  ;;  %v3761_v61 = vld [vmem:[%s12218_s3 + $0x1a8] sm:$0xff]  ;;  %v3744_v11 = vld [vmem:[%s12218_s3 + $0x120] sm:$0xff]  ;;  %v1299_v5 = vadd.f32 %v1276_v17, %v962_v33  ;;  %v12989_v49 = vld [vmem:[#allocation52_spill] sm:$0xff]  ;;  %5691 = vmatpush3.bf16.msra.mxu1 %v5690_v1  ;;  %5677 = vmatprep.subr.bf16.mxu0 %v5676_v30 }
 0x2d7   :  { %v1612_v39 = vsel %vm1520_vm4, %v12986_v63, %v12989_v49  ;;  %v8742_v60 = vpop.permute.xlu0 %403  ;;  %v8744_v54 = vpop.permute.xlu1 %405  ;;  %v5692_v2 = vpack.c.bf16 %v3761_v61, %v3760_v42  ;;  %v3745_v56 = vld [vmem:[%s12218_s3 + $0x128] sm:$0xff]  ;;  %v1634_v0 = vadd.f32 %v1611_v20, %v1297_v62  ;;  %v12992_v41 = vld [vmem:[#allocation130_spill] sm:$0xff]  ;;  %v3738_v1 = vld [vmem:[%s12218_s3 + $0xf0] sm:$0xff]  ;;  %v2764_v20 = vmul.f32 %v8393_v26, %v7982_v38 }
 0x2d8   :  { %12990 = vst [vmem:[#allocation117_spill] sm:$0xff] %v8742_v60  ;;  %12991 = vst [vmem:[#allocation114_spill] sm:$0xff] %v8744_v54  ;;  %v1613_v33 = vsel %vm1520_vm4, %v12989_v49, %v12992_v41  ;;  %v12993_v17 = vld [vmem:[#allocation15_spill] sm:$0xff]  ;;  %5679 = vmatpush3.bf16.msra.mxu0 %v5678_v6  ;;  %v5694_v9 = vpack.c.bf16 %v3745_v56, %v3744_v11  ;;  %v3739_v30 = vld [vmem:[%s12218_s3 + $0xf8] sm:$0xff]  ;;  %v2096_v49 = vmul.f32 %v8052_v47, %v8631_v32 }
 0x2d9   :  { %v12994_v43 = vld [vmem:[#allocation131_spill] sm:$0xff]  ;;  %2124 = vrot.lane.b32.xlu0 %v2094_v27, %s6176_s22  ;;  %2126 = vrot.lane.b32.xlu1 %v2095_v13, %s6176_s22  ;;  %v5680_v62 = vpack.c.bf16 %v3739_v30, %v3738_v1  ;;  %v3722_v6 = vld [vmem:[%s12218_s3 + $0x70] sm:$0xff]  ;;  %v3723_v42 = vld [vmem:[%s12218_s3 + $0x78] sm:$0xff]  ;;  %v1635_v61 = vadd.f32 %v1612_v39, %v1298_v44  ;;  %v1636_v41 = vadd.f32 %v1613_v33, %v1299_v5 }
 0x2da   :  { %v1967_v63 = vsel %vm1865_vm5, %v12994_v43, %v12993_v17  ;;  %v12995_v11 = vld [vmem:[#allocation99_spill] sm:$0xff]  ;;  %v12996_v13 = vld [vmem:[#allocation48_spill] sm:$0xff]  ;;  %5693 = vmatprep.subr.bf16.mxu1 %v5692_v2  ;;  %v5682_v60 = vpack.c.bf16 %v3723_v42, %v3722_v6  ;;  %v3763_v30 = vld [vmem:[%s12218_s3 + $0x1b8] sm:$0xff] }
 0x2db   :  { %v1968_v27 = vsel %vm1865_vm5, %v12993_v17, %v12995_v11  ;;  %v2344_v56 = vsel %vm2242_vm6, %v12996_v13, %v7703_v57  ;;  %v3762_v1 = vld [vmem:[%s12218_s3 + $0x1b0] sm:$0xff]  ;;  %v1991_v39 = vadd.f32 %v1967_v63, %v1634_v0  ;;  %v12997_v17 = vld [vmem:[#allocation14_spill] sm:$0xff]  ;;  %v8791_v18 = vpop.permute.xlu0 %407  ;;  %v8793_v2 = vpop.permute.xlu1 %409  ;;  %5695 = vmatpush3.bf16.msra.mxu1 %v5694_v9  ;;  %5681 = vmatprep.subr.bf16.mxu0 %v5680_v62  ;;  %v3747_v42 = vld [vmem:[%s12218_s3 + $0x138] sm:$0xff] }
 0x2dc   :  { %v3746_v44 = vld [vmem:[%s12218_s3 + $0x130] sm:$0xff]  ;;  %v1969_v54 = vsel %vm1865_vm5, %v12995_v11, %v12997_v17  ;;  %12998 = vst [vmem:[#allocation116_spill] sm:$0xff] %v8791_v18  ;;  %12999 = vst [vmem:[#allocation119_spill] sm:$0xff] %v8793_v2  ;;  %v5696_v6 = vpack.c.bf16 %v3763_v30, %v3762_v1  ;;  %v2721_v0 = vsel %vm2619_vm7, %v7786_v22, %v7812_v51  ;;  %5683 = vmatpush3.bf16.msra.mxu0 %v5682_v60  ;;  %v6092_v5 = vld [vmem:[%s12215_s0 + $0x68] sm:$0xff] }
 0x2dd   :  { %v3001_v63 = vsel %vm172_vm0, %v7891_v10, %v7889_v16  ;;  %v5698_v11 = vpack.c.bf16 %v3747_v42, %v3746_v44  ;;  %v2368_v18 = vadd.f32 %v2344_v56, %v1991_v39  ;;  %v2345_v9 = vsel %vm2242_vm6, %v7703_v57, %v7729_v28  ;;  %2128 = vrot.lane.b32.xlu0 %v2096_v49, %s6176_s22  ;;  %v3764_v60 = vld [vmem:[%s12218_s3 + $0x1c0] sm:$0xff]  ;;  %v3765_v62 = vld [vmem:[%s12218_s3 + $0x1c8] sm:$0xff] }
 0x2de   :  { %2804 = vrot.lane.b32.xlu1 %v2764_v20, %s6178_s27  ;;  %v2765_v33 = vmul.f32 %v6092_v5, %v7982_v38  ;;  %v1992_v56 = vadd.f32 %v1968_v27, %v1635_v61  ;;  %v1993_v57 = vadd.f32 %v1969_v54, %v1636_v41  ;;  %v2346_v49 = vsel %vm2242_vm6, %v7729_v28, %v7727_v8  ;;  %v3748_v38 = vld [vmem:[%s12218_s3 + $0x140] sm:$0xff]  ;;  %v3749_v1 = vld [vmem:[%s12218_s3 + $0x148] sm:$0xff]  ;;  %v13000_v54 = vld [vmem:[#allocation32_spill] sm:$0xff] }
 0x2df   :  { %5697 = vmatprep.subr.bf16.mxu1 %v5696_v6  ;;  %v5700_v20 = vpack.c.bf16 %v3765_v62, %v3764_v60  ;;  %v2722_v30 = vsel %vm2619_vm7, %v7812_v51, %v7810_v55  ;;  %v2745_v61 = vadd.f32 %v2721_v0, %v2368_v18  ;;  %v13001_v41 = vmax.f32 %v13000_v54, 0.0  ;;  %v8835_v28 = vpop.permute.xlu0 %1013  ;;  %v8837_v44 = vpop.permute.xlu1 %1342  ;;  %v3751_v60 = vld [vmem:[%s12218_s3 + $0x158] sm:$0xff] }
 0x2e0   :  { %13002 = vst [vmem:[#allocation123_spill] sm:$0xff] %v8835_v28  ;;  %13003 = vst [vmem:[#allocation39_spill] sm:$0xff] %v8837_v44  ;;  %5699 = vmatpush3.bf16.msra.mxu1 %v5698_v11  ;;  %v5702_v39 = vpack.c.bf16 %v3749_v1, %v3748_v38  ;;  %v87_v6 = vmul.f32 %v8087_v25, %v7873_v21  ;;  %v2369_v42 = vadd.f32 %v2345_v9, %v1992_v56  ;;  %v3766_v25 = vld [vmem:[%s12218_s3 + $0x1d0] sm:$0xff]  ;;  %v13010_v38 = vld [vmem:[#allocation22_spill] sm:$0xff] }
 0x2e1   :  { %v8833_v27 = vmax.f32 %v13001_v41, %v3001_v63  ;;  %v2723_v5 = vsel %vm2619_vm7, %v7810_v55, %v7842_v34  ;;  %v3002_v51 = vsel %vm172_vm0, %v7889_v16, %v7933_v4  ;;  %5701 = vmatprep.subr.bf16.mxu1 %v5700_v20  ;;  %v2370_v18 = vadd.f32 %v2346_v49, %v1993_v57  ;;  %v3767_v55 = vld [vmem:[%s12218_s3 + $0x1d8] sm:$0xff]  ;;  %v13004_v63 = vld [vmem:[#allocation112_spill] sm:$0xff]  ;;  %v13139_v28 = vld [vmem:[#allocation94_spill] sm:$0xff] }
 0x2e2   :  { %2806 = vrot.lane.b32.xlu0 %v2765_v33, %s6178_s27  ;;  %v2092_v0 = vmul.f32 %v8080_v3, %v8631_v32  ;;  %v285_v16 = vadd.f32 %v8728_v15, %v8604_v45  ;;  %v599_v11 = vsel %vm509_vm1, %v13004_v63, %v12971_v48  ;;  %v2746_v9 = vadd.f32 %v2722_v30, %v2369_v42  ;;  %v3750_v3 = vld [vmem:[%s12218_s3 + $0x150] sm:$0xff]  ;;  %v13006_v15 = vld [vmem:[#allocation42_spill] sm:$0xff] }
 0x2e3   :  { %3048 = vrot.lane.b32.xlu1 %v8833_v27, %s6173_s15  ;;  %v5704_v33 = vpack.c.bf16 %v3767_v55, %v3766_v25  ;;  %v8872_v62 = vadd.f32 %v8060_v53, %v2745_v61  ;;  %v2747_v45 = vadd.f32 %v2723_v5, %v2370_v18  ;;  %v13007_v56 = vmax.f32 %v13006_v15, 0.0  ;;  %v8878_v48 = vpop.permute.xlu0 %1344  ;;  %v8880_v49 = vpop.permute.xlu1 %1346  ;;  %v13011_v42 = vld [vmem:[#allocation118_spill] sm:$0xff]  ;;  %v13020_v15 = vld [vmem:[#allocation120_spill] sm:$0xff] }
 0x2e4   :  { %13008 = vst [vmem:[#allocation125_spill] sm:$0xff] %v8878_v48  ;;  %13009 = vst [vmem:[#allocation33_spill] sm:$0xff] %v8880_v49  ;;  %5703 = vmatpush3.bf16.msra.mxu1 %v5702_v39  ;;  %v5706_v20 = vpack.c.bf16 %v3751_v60, %v3750_v3  ;;  %v284_v1 = vadd.f32 %v13010_v38, %v87_v6  ;;  %v86_v30 = vmul.f32 %v8052_v47, %v7873_v21  ;;  %v3768_v47 = vld [vmem:[%s12218_s3 + $0x1e0] sm:$0xff]  ;;  %v13013_v6 = vld [vmem:[#allocation124_spill] sm:$0xff] }
 0x2e5   :  { %13005 = vst [vmem:[#allocation122_spill] sm:$0xff] %v8872_v62  ;;  %v8876_v57 = vmax.f32 %v13007_v56, %v3002_v51  ;;  %v3000_v61 = vsel %vm172_vm0, %v7935_v31, %v7891_v10  ;;  %5705 = vmatprep.subr.bf16.mxu1 %v5704_v33  ;;  %v261_v54 = vsel %vm172_vm0, %v12833_v46, %v13010_v38  ;;  %v3769_v10 = vld [vmem:[%s12218_s3 + $0x1e8] sm:$0xff]  ;;  %v3752_v18 = vld [vmem:[%s12218_s3 + $0x160] sm:$0xff]  ;;  %v12467_v25 = vmax.f32 %v8872_v62, 0.0  ;;  %v13021_v56 = vld [vmem:[#allocation129_spill] sm:$0xff] }
 0x2e6   :  { %v622_v41 = vadd.f32 %v599_v11, %v285_v16  ;;  %v936_v39 = vsel %vm846_vm2, %v13011_v42, %v12975_v50  ;;  %v13012_v31 = vld [vmem:[#allocation115_spill] sm:$0xff]  ;;  %v1273_v50 = vsel %vm1183_vm3, %v13013_v6, %v12981_v59  ;;  %v8910_v5 = vadd.f32 %v8060_v53, %v2746_v9  ;;  %v13016_v55 = vld [vmem:[#allocation38_spill] sm:$0xff]  ;;  %v13022_v42 = vld [vmem:[#allocation12_spill] sm:$0xff] }
 0x2e7   :  { %3050 = vrot.lane.b32.xlu0 %v8876_v57, %s6173_s15  ;;  %2120 = vrot.lane.b32.xlu1 %v2092_v0, %s6176_s22  ;;  %v598_v46 = vsel %vm509_vm1, %v12837_v37, %v13012_v31  ;;  %v5708_v51 = vpack.c.bf16 %v3769_v10, %v3768_v47  ;;  %v3753_v0 = vld [vmem:[%s12218_s3 + $0x168] sm:$0xff]  ;;  %v8920_v37 = vadd.f32 %v8060_v53, %v2747_v45  ;;  %v13017_v16 = vmax.f32 %v13016_v55, 0.0  ;;  %v8926_v63 = vpop.permute.xlu0 %1348  ;;  %v8928_v11 = vpop.permute.xlu1 %401 }
 0x2e8   :  { %13014 = vst [vmem:[#allocation126_spill] sm:$0xff] %v8910_v5  ;;  %13018 = vst [vmem:[#allocation52_spill] sm:$0xff] %v8926_v63  ;;  %5707 = vmatpush3.bf16.msra.mxu1 %v5706_v20  ;;  %v5710_v9 = vpack.c.bf16 %v3753_v0, %v3752_v18  ;;  %v283_v33 = vadd.f32 %v261_v54, %v86_v30  ;;  %v959_v3 = vadd.f32 %v936_v39, %v622_v41  ;;  %v3770_v20 = vld [vmem:[%s12218_s3 + $0x1f0] sm:$0xff]  ;;  %v3755_v41 = vld [vmem:[%s12218_s3 + $0x178] sm:$0xff] }
 0x2e9   :  { %13015 = vst [vmem:[#allocation25_spill] sm:$0xff] %v8920_v37  ;;  %v8924_v59 = vmax.f32 %v13017_v16, %v3000_v61  ;;  %13019 = vst [vmem:[#allocation15_spill] sm:$0xff] %v8928_v11  ;;  %5709 = vmatprep.subr.bf16.mxu1 %v5708_v51  ;;  %v621_v60 = vadd.f32 %v13012_v31, %v284_v1  ;;  %v935_v45 = vsel %vm846_vm2, %v12844_v35, %v13020_v15  ;;  %v3771_v1 = vld [vmem:[%s12218_s3 + $0x1f8] sm:$0xff]  ;;  %v3754_v54 = vld [vmem:[%s12218_s3 + $0x170] sm:$0xff] }
 0x2ea   :  { %v1610_v38 = vsel %vm1520_vm4, %v13021_v56, %v12987_v12  ;;  %v620_v35 = vadd.f32 %v598_v46, %v283_v33  ;;  %v1296_v30 = vadd.f32 %v1273_v50, %v959_v3  ;;  %v8949_v61 = vstv %s8863_s8  ;;  %v13025_v18 = vld [vmem:[#allocation127_spill] sm:$0xff]  ;;  %v13026_v33 = vld [vmem:[#allocation132_spill] sm:$0xff] }
 0x2eb   :  { %3046 = vrot.lane.b32.xlu0 %v8924_v59, %s6173_s15  ;;  %3172 = vrot.lane.b32.xlu1 %v12467_v25, %s6171_s18  ;;  %v5712_v12 = vpack.c.bf16 %v3771_v1, %v3770_v20  ;;  %v1966_v39 = vsel %vm1865_vm5, %v13022_v42, %v12994_v43  ;;  %v12466_v47 = vmax.f32 %v8910_v5, 0.0  ;;  %v12462_v10 = vmax.f32 %v8920_v37, 0.0  ;;  %v8962_v31 = vpop.permute.xlu0 %1340  ;;  %v8964_v46 = vpop.permute.xlu1 %740  ;;  %v8982_v16 = vld [vmem:[%s12215_s0 + $0x8] sm:$0xff]  ;;  %v9171_v25 = vld [vmem:[%s12215_s0 + $0x38] sm:$0xff] }
 0x2ec   :  { %13023 = vst [vmem:[#allocation131_spill] sm:$0xff] %v8962_v31  ;;  %13024 = vst [vmem:[#allocation99_spill] sm:$0xff] %v8964_v46  ;;  %5711 = vmatpush3.bf16.msra.mxu1 %v5710_v9  ;;  %v5714_v6 = vpack.c.bf16 %v3755_v41, %v3754_v54  ;;  %v957_v50 = vadd.f32 %v935_v45, %v620_v35  ;;  %v958_v51 = vadd.f32 %v13020_v15, %v621_v60  ;;  %v13029_v1 = vld [vmem:[#allocation51_spill] sm:$0xff]  ;;  %v13111_v31 = vld [vmem:[#allocation76_spill] sm:$0xff] }
 0x2ed   :  { %v1272_v0 = vsel %vm1183_vm3, %v12851_v58, %v13025_v18  ;;  %v1633_v55 = vadd.f32 %v1610_v38, %v1296_v30  ;;  %5713 = vmatprep.subr.bf16.mxu1 %v5712_v12  ;;  %v2343_v43 = vsel %vm2242_vm6, %v7756_v7, %v12996_v13  ;;  %v2470_v58 = vmul.f32 %v8982_v16, %v8949_v61  ;;  %v8989_v7 = vld [vmem:[%s12215_s0 + $0x10] sm:$0xff]  ;;  %v13030_v30 = vld [vmem:[#allocation17_spill] sm:$0xff] }
 0x2ee   :  { %v2471_v13 = vmul.f32 %v8989_v7, %v8949_v61  ;;  %v1295_v9 = vadd.f32 %v13025_v18, %v958_v51  ;;  %v1609_v3 = vsel %vm1520_vm4, %v7169_v24, %v13026_v33  ;;  %v1294_v15 = vadd.f32 %v1272_v0, %v957_v50 }
 0x2ef   :  { %3174 = vrot.lane.b32.xlu0 %v12466_v47, %s6171_s18  ;;  %3176 = vrot.lane.b32.xlu1 %v12462_v10, %s6171_s18  ;;  %v1990_v60 = vadd.f32 %v1966_v39, %v1633_v55  ;;  %v2720_v45 = vsel %vm2619_vm7, %v7840_v40, %v7786_v22  ;;  %v9000_v56 = vpop.permute.xlu0 %742  ;;  %v9002_v38 = vpop.permute.xlu1 %744  ;;  %v1964_v35 = vsel %vm1865_vm5, %v12862_v36, %v13029_v1  ;;  %v9016_v22 = vld [vmem:[%s12215_s0 + $0x18] sm:$0xff]  ;;  %v9023_v36 = vld [vmem:[%s12215_s0 + $0x20] sm:$0xff] }
 0x2f0   :  { %13027 = vst [vmem:[#allocation48_spill] sm:$0xff] %v9000_v56  ;;  %13028 = vst [vmem:[#allocation14_spill] sm:$0xff] %v9002_v38  ;;  %5715 = vmatpush3.bf16.msra.mxu1 %v5714_v6  ;;  %v1632_v20 = vadd.f32 %v13026_v33, %v1295_v9  ;;  %v1965_v24 = vsel %vm1865_vm5, %v13029_v1, %v13030_v30  ;;  %v1631_v54 = vadd.f32 %v1609_v3, %v1294_v15  ;;  %v13033_v55 = vld [vmem:[#allocation57_spill] sm:$0xff] }
 0x2f1   :  { %v2367_v12 = vadd.f32 %v2343_v43, %v1990_v60  ;;  %v2472_v40 = vmul.f32 %v9016_v22, %v8949_v61  ;;  %v2473_v41 = vmul.f32 %v9023_v36, %v8949_v61  ;;  %v2341_v42 = vsel %vm2242_vm6, %v12866_v29, %v7754_v52  ;;  %v13034_v43 = vld [vmem:[#allocation106_spill] sm:$0xff]  ;;  %v13036_v29 = vld [vmem:[#allocation63_spill] sm:$0xff]  ;;  %v13039_v1 = vld [vmem:[#allocation45_spill] sm:$0xff] }
 0x2f2   :  { %v2342_v39 = vsel %vm2242_vm6, %v7754_v52, %v7788_v23  ;;  %v1988_v50 = vadd.f32 %v1964_v35, %v1631_v54  ;;  %v1989_v51 = vadd.f32 %v1965_v24, %v1632_v20  ;;  %v3003_v33 = vsel %vm172_vm0, %v7933_v4, %v13036_v29  ;;  %v13037_v52 = vld [vmem:[#allocation74_spill] sm:$0xff]  ;;  %v13041_v4 = vld [vmem:[#allocation37_spill] sm:$0xff] }
 0x2f3   :  { %2499 = vrot.lane.b32.xlu0 %v2470_v58, %s6177_s25  ;;  %2501 = vrot.lane.b32.xlu1 %v2471_v13, %s6177_s25  ;;  %v2744_v6 = vadd.f32 %v2720_v45, %v2367_v12  ;;  %v9033_v18 = vpop.permute.xlu0 %746  ;;  %v9035_v0 = vpop.permute.xlu1 %1350  ;;  %v2718_v58 = vsel %vm2619_vm7, %v13034_v43, %v13033_v55  ;;  %v13035_v13 = vld [vmem:[#allocation55_spill] sm:$0xff]  ;;  %v3004_v23 = vsel %vm172_vm0, %v13036_v29, %v13037_v52  ;;  %v13040_v35 = vmax.f32 %v13039_v1, 0.0 }
 0x2f4   :  { %13031 = vst [vmem:[#allocation32_spill] sm:$0xff] %v9033_v18  ;;  %13032 = vst [vmem:[#allocation112_spill] sm:$0xff] %v9035_v0  ;;  %v2719_v9 = vsel %vm2619_vm7, %v13033_v55, %v13035_v13  ;;  %v2365_v3 = vadd.f32 %v2341_v42, %v1988_v50  ;;  %v2366_v60 = vadd.f32 %v2342_v39, %v1989_v51  ;;  %v13042_v24 = vmax.f32 %v13041_v4, 0.0 }
 0x2f5   :  { %v9052_v15 = vadd.f32 %v8060_v53, %v2744_v6  ;;  %v9056_v30 = vmax.f32 %v13040_v35, %v3003_v33  ;;  %v9092_v43 = vstv %s5171_s23  ;;  %s9451_s23 = sld [smem:[#allocation3 + $0x1b]] }
 0x2f6   :  { %v2742_v45 = vadd.f32 %v2718_v58, %v2365_v3  ;;  %v2743_v20 = vadd.f32 %v2719_v9, %v2366_v60  ;;  %v9060_v12 = vmax.f32 %v13042_v24, %v3004_v23  ;;  %v2847_v33 = vmul.f32 %v8982_v16, %v9092_v43  ;;  %v9131_v24 = vld [vmem:[%s12215_s0 + $0x40] sm:$0xff] }
 0x2f7   :  { %2503 = vrot.lane.b32.xlu0 %v2472_v40, %s6177_s25  ;;  %2505 = vrot.lane.b32.xlu1 %v2473_v41, %s6177_s25  ;;  %13038 = vst [vmem:[#allocation42_spill] sm:$0xff] %v9052_v15  ;;  %v9062_v54 = vpop.permute.xlu0 %1679  ;;  %v9064_v42 = vpop.permute.xlu1 %1681  ;;  %v9073_v40 = vld [vmem:[%s12215_s0] sm:$0xff]  ;;  %v12465_v39 = vmax.f32 %v9052_v15, 0.0  ;;  %v2848_v23 = vmul.f32 %v8989_v7, %v9092_v43 }
 0x2f8   :  { %13043 = vst [vmem:[#allocation22_spill] sm:$0xff] %v9060_v12  ;;  %13044 = vst [vmem:[#allocation118_spill] sm:$0xff] %v9062_v54  ;;  %v2469_v41 = vmul.f32 %v9073_v40, %v8949_v61  ;;  %v9079_v6 = vadd.f32 %v8060_v53, %v2742_v45  ;;  %v9082_v50 = vadd.f32 %v8060_v53, %v2743_v20  ;;  %v13106_v54 = vld [vmem:[#allocation43_spill] sm:$0xff] }
 0x2f9   :  { %13045 = vst [vmem:[#allocation115_spill] sm:$0xff] %v9064_v42  ;;  %v2849_v45 = vmul.f32 %v9016_v22, %v9092_v43  ;;  %v2850_v20 = vmul.f32 %v9023_v36, %v9092_v43  ;;  %v2846_v4 = vmul.f32 %v9073_v40, %v9092_v43 }
 0x2fa   :  { %13046 = vst [vmem:[#allocation124_spill] sm:$0xff] %v9079_v6  ;;  %13047 = vst [vmem:[#allocation38_spill] sm:$0xff] %v9082_v50  ;;  %v12464_v58 = vmax.f32 %v9079_v6, 0.0  ;;  %v12463_v13 = vmax.f32 %v9082_v50, 0.0  ;;  %v13063_v6 = vld [vmem:[#allocation92_spill] sm:$0xff] }
 0x2fb   :  { %3052 = vrot.lane.b32.xlu0 %v9056_v30, %s6173_s15  ;;  %3054 = vrot.lane.b32.xlu1 %v9060_v12, %s6173_s15  ;;  %v9084_v51 = vpop.permute.xlu0 %1683  ;;  %v9086_v55 = vpop.permute.xlu1 %1685  ;;  %v721_v15 = vmul.f32 %v9131_v24, %v13063_v6 }
 0x2fc   :  { %13048 = vst [vmem:[#allocation120_spill] sm:$0xff] %v9084_v51  ;;  %13049 = vst [vmem:[#allocation129_spill] sm:$0xff] %v9086_v55  ;;  %v13105_v51 = vld [vmem:[#allocation49_spill] sm:$0xff] }
 0x2fd   :  { %v3006_v42 = vsel %vm172_vm0, %v13106_v54, %v13105_v51 }
 0x2ff   :  { %3170 = vrot.lane.b32.xlu0 %v12465_v39, %s6171_s18  ;;  %2497 = vrot.lane.b32.xlu1 %v2469_v41, %s6177_s25  ;;  %v9096_v9 = vpop.permute.xlu0 %738  ;;  %v9098_v29 = vpop.permute.xlu1 %1677  ;;  %v13056_v41 = vld [vmem:[#allocation68_spill] sm:$0xff] }
 0x300   :  { %13050 = vst [vmem:[#allocation12_spill] sm:$0xff] %v9096_v9  ;;  %13051 = vst [vmem:[#allocation127_spill] sm:$0xff] %v9098_v29  ;;  %v383_v12 = vmul.f32 %v9171_v25, %v13056_v41  ;;  %v13103_v29 = vld [vmem:[#allocation84_spill] sm:$0xff] }
 0x303   :  { %3166 = vrot.lane.b32.xlu0 %v12464_v58, %s6171_s18  ;;  %3168 = vrot.lane.b32.xlu1 %v12463_v13, %s6171_s18  ;;  %v9110_v3 = vpop.permute.xlu0 %1077  ;;  %v9112_v60 = vpop.permute.xlu1 %1079  ;;  %v9151_v13 = vld [vmem:[%s12215_s0 + $0x50] sm:$0xff] }
 0x304   :  { %13052 = vst [vmem:[#allocation132_spill] sm:$0xff] %v9110_v3  ;;  %13053 = vst [vmem:[#allocation51_spill] sm:$0xff] %v9112_v60  ;;  %v386_v58 = vmul.f32 %v9151_v13, %v13056_v41  ;;  %v13102_v3 = vld [vmem:[#allocation66_spill] sm:$0xff] }
 0x307   :  { %2876 = vrot.lane.b32.xlu0 %v2847_v33, %s6178_s27  ;;  %2878 = vrot.lane.b32.xlu1 %v2848_v23, %s6178_s27  ;;  %v9120_v1 = vpop.permute.xlu0 %1081  ;;  %v9122_v35 = vpop.permute.xlu1 %1083  ;;  %v384_v33 = vmul.f32 %v9131_v24, %v13056_v41 }
 0x308   :  { %13054 = vst [vmem:[#allocation17_spill] sm:$0xff] %v9120_v1  ;;  %13055 = vst [vmem:[#allocation57_spill] sm:$0xff] %v9122_v35  ;;  %v13100_v1 = vld [vmem:[#allocation113_spill] sm:$0xff] }
 0x30b   :  { %2880 = vrot.lane.b32.xlu0 %v2849_v45, %s6178_s27  ;;  %2882 = vrot.lane.b32.xlu1 %v2850_v20, %s6178_s27  ;;  %v9135_v23 = vpop.permute.xlu0 %1687  ;;  %v9137_v10 = vpop.permute.xlu1 %2042  ;;  %v9144_v45 = vld [vmem:[%s12215_s0 + $0x48] sm:$0xff] }
 0x30c   :  { %13057 = vst [vmem:[#allocation106_spill] sm:$0xff] %v9135_v23  ;;  %13058 = vst [vmem:[#allocation55_spill] sm:$0xff] %v9137_v10  ;;  %v385_v20 = vmul.f32 %v9144_v45, %v13056_v41  ;;  %v2102_v10 = vmul.f32 %v9151_v13, %v8631_v32 }
 0x30f   :  { %2874 = vrot.lane.b32.xlu0 %v2846_v4, %s6178_s27  ;;  %415 = vrot.lane.b32.xlu1 %v384_v33, %s6171_s18  ;;  %v9155_v39 = vpop.permute.xlu0 %2044  ;;  %v9157_v4 = vpop.permute.xlu1 %2046  ;;  %v9164_v33 = vld [vmem:[%s12215_s0 + $0x58] sm:$0xff] }
 0x310   :  { %13059 = vst [vmem:[#allocation63_spill] sm:$0xff] %v9155_v39  ;;  %13060 = vst [vmem:[#allocation74_spill] sm:$0xff] %v9157_v4  ;;  %v387_v47 = vmul.f32 %v9164_v33, %v13056_v41 }
 0x313   :  { %417 = vrot.lane.b32.xlu0 %v385_v20, %s6171_s18  ;;  %419 = vrot.lane.b32.xlu1 %v386_v58, %s6171_s18  ;;  %v9175_v37 = vpop.permute.xlu0 %2048  ;;  %v9177_v20 = vpop.permute.xlu1 %1075  ;;  %v9184_v58 = vld [vmem:[%s12215_s0 + $0x28] sm:$0xff] }
 0x314   :  { %13061 = vst [vmem:[#allocation45_spill] sm:$0xff] %v9175_v37  ;;  %13062 = vst [vmem:[#allocation37_spill] sm:$0xff] %v9177_v20  ;;  %v382_v50 = vmul.f32 %v9184_v58, %v13056_v41 }
 0x317   :  { %421 = vrot.lane.b32.xlu0 %v387_v47, %s6171_s18  ;;  %413 = vrot.lane.b32.xlu1 %v383_v12, %s6171_s18  ;;  %v9190_v5 = vpop.permute.xlu0 %2040  ;;  %v9192_v62 = vpop.permute.xlu1 %1414  ;;  %v722_v47 = vmul.f32 %v9144_v45, %v13063_v6  ;;  %v723_v12 = vmul.f32 %v9151_v13, %v13063_v6 }
 0x318   :  { %13064 = vst [vmem:[#allocation68_spill] sm:$0xff] %v9190_v5  ;;  %13065 = vst [vmem:[#allocation92_spill] sm:$0xff] %v9192_v62  ;;  %v724_v62 = vmul.f32 %v9164_v33, %v13063_v6 }
 0x31b   :  { %411 = vrot.lane.b32.xlu0 %v382_v50, %s6171_s18  ;;  %752 = vrot.lane.b32.xlu1 %v721_v15, %s6172_s13  ;;  %v9200_v20 = vpop.permute.xlu0 %1416  ;;  %v9202_v37 = vpop.permute.xlu1 %1418  ;;  %v720_v15 = vmul.f32 %v9171_v25, %v13063_v6 }
 0x31c   :  { %13066 = vst [vmem:[#allocation159_spill] sm:$0xff] %v9200_v20  ;;  %13067 = vst [vmem:[#allocation160_spill] sm:$0xff] %v9202_v37  ;;  %v719_v37 = vmul.f32 %v9184_v58, %v13063_v6 }
 0x31f   :  { %754 = vrot.lane.b32.xlu0 %v722_v47, %s6172_s13  ;;  %756 = vrot.lane.b32.xlu1 %v723_v12, %s6172_s13  ;;  %v9210_v50 = vpop.permute.xlu0 %1420  ;;  %v9212_v5 = vpop.permute.xlu1 %2050  ;;  %v13070_v47 = vld [vmem:[#allocation36_spill] sm:$0xff] }
 0x320   :  { %13068 = vst [vmem:[#allocation161_spill] sm:$0xff] %v9210_v50  ;;  %13069 = vst [vmem:[#allocation162_spill] sm:$0xff] %v9212_v5  ;;  %v1058_v12 = vmul.f32 %v9131_v24, %v13070_v47  ;;  %v1059_v5 = vmul.f32 %v9144_v45, %v13070_v47 }
 0x323   :  { %758 = vrot.lane.b32.xlu0 %v724_v62, %s6172_s13  ;;  %750 = vrot.lane.b32.xlu1 %v720_v15, %s6172_s13  ;;  %v9220_v20 = vpop.permute.xlu0 %2052  ;;  %v9222_v23 = vpop.permute.xlu1 %2419  ;;  %v1060_v62 = vmul.f32 %v9151_v13, %v13070_v47 }
 0x324   :  { %13071 = vst [vmem:[#allocation36_spill] sm:$0xff] %v9220_v20  ;;  %13072 = vst [vmem:[#allocation163_spill] sm:$0xff] %v9222_v23  ;;  %v1061_v20 = vmul.f32 %v9164_v33, %v13070_v47 }
 0x327   :  { %748 = vrot.lane.b32.xlu0 %v719_v37, %s6172_s13  ;;  %1089 = vrot.lane.b32.xlu1 %v1058_v12, %s6173_s15  ;;  %v9230_v15 = vpop.permute.xlu0 %2421  ;;  %v9232_v50 = vpop.permute.xlu1 %2423  ;;  %v1057_v37 = vmul.f32 %v9171_v25, %v13070_v47 }
 0x328   :  { %13073 = vst [vmem:[#allocation164_spill] sm:$0xff] %v9230_v15  ;;  %13074 = vst [vmem:[#allocation165_spill] sm:$0xff] %v9232_v50  ;;  %v388_v50 = vmul.f32 %v8393_v26, %v13056_v41 }
 0x32b   :  { %1091 = vrot.lane.b32.xlu0 %v1059_v5, %s6173_s15  ;;  %1093 = vrot.lane.b32.xlu1 %v1060_v62, %s6173_s15  ;;  %v9240_v12 = vpop.permute.xlu0 %2425  ;;  %v9242_v23 = vpop.permute.xlu1 %1412  ;;  %v1056_v5 = vmul.f32 %v9184_v58, %v13070_v47 }
 0x32c   :  { %13075 = vst [vmem:[#allocation166_spill] sm:$0xff] %v9240_v12  ;;  %13076 = vst [vmem:[#allocation167_spill] sm:$0xff] %v9242_v23  ;;  %v13079_v12 = vld [vmem:[#allocation135_spill] sm:$0xff] }
 0x32d   :  { %v1395_v23 = vmul.f32 %v9131_v24, %v13079_v12 }
 0x32f   :  { %1095 = vrot.lane.b32.xlu0 %v1061_v20, %s6173_s15  ;;  %1087 = vrot.lane.b32.xlu1 %v1057_v37, %s6173_s15  ;;  %v9250_v62 = vpop.permute.xlu0 %2417  ;;  %v9252_v15 = vpop.permute.xlu1 %1751  ;;  %v1396_v20 = vmul.f32 %v9144_v45, %v13079_v12 }
 0x330   :  { %13077 = vst [vmem:[#allocation168_spill] sm:$0xff] %v9250_v62  ;;  %13078 = vst [vmem:[#allocation169_spill] sm:$0xff] %v9252_v15  ;;  %v1397_v15 = vmul.f32 %v9151_v13, %v13079_v12 }
 0x333   :  { %423 = vrot.lane.b32.xlu0 %v388_v50, %s6171_s18  ;;  %1085 = vrot.lane.b32.xlu1 %v1056_v5, %s6173_s15  ;;  %v9260_v37 = vpop.permute.xlu0 %1753  ;;  %v9262_v41 = vpop.permute.xlu1 %1755  ;;  %v1398_v50 = vmul.f32 %v9164_v33, %v13079_v12 }
 0x334   :  { %13080 = vst [vmem:[#allocation135_spill] sm:$0xff] %v9260_v37  ;;  %13081 = vst [vmem:[#allocation170_spill] sm:$0xff] %v9262_v41  ;;  %v1394_v41 = vmul.f32 %v9171_v25, %v13079_v12 }
 0x337   :  { %1426 = vrot.lane.b32.xlu0 %v1395_v23, %s6174_s17  ;;  %1428 = vrot.lane.b32.xlu1 %v1396_v20, %s6174_s17  ;;  %v9270_v5 = vpop.permute.xlu0 %1757  ;;  %v9272_v62 = vpop.permute.xlu1 %2427  ;;  %v725_v23 = vmul.f32 %v8393_v26, %v13063_v6 }
 0x338   :  { %13082 = vst [vmem:[#allocation171_spill] sm:$0xff] %v9270_v5  ;;  %13083 = vst [vmem:[#allocation172_spill] sm:$0xff] %v9272_v62  ;;  %v1393_v5 = vmul.f32 %v9184_v58, %v13079_v12 }
 0x33b   :  { %1430 = vrot.lane.b32.xlu0 %v1397_v15, %s6174_s17  ;;  %1432 = vrot.lane.b32.xlu1 %v1398_v50, %s6174_s17  ;;  %v9280_v20 = vpop.permute.xlu0 %2429  ;;  %v9282_v37 = vpop.permute.xlu1 %2796  ;;  %v13086_v15 = vld [vmem:[#allocation148_spill] sm:$0xff] }
 0x33c   :  { %13084 = vst [vmem:[#allocation173_spill] sm:$0xff] %v9280_v20  ;;  %13085 = vst [vmem:[#allocation174_spill] sm:$0xff] %v9282_v37  ;;  %v1732_v50 = vmul.f32 %v9131_v24, %v13086_v15  ;;  %v1733_v26 = vmul.f32 %v9144_v45, %v13086_v15  ;;  %v1734_v6 = vmul.f32 %v9151_v13, %v13086_v15  ;;  %v13095_v37 = vld [vmem:[#allocation28_spill] sm:$0xff] }
 0x33d   :  { %v1735_v20 = vmul.f32 %v9164_v33, %v13086_v15 }
 0x33f   :  { %1424 = vrot.lane.b32.xlu0 %v1394_v41, %s6174_s17  ;;  %760 = vrot.lane.b32.xlu1 %v725_v23, %s6172_s13  ;;  %v9290_v62 = vpop.permute.xlu0 %2798  ;;  %v9292_v4 = vpop.permute.xlu1 %2800  ;;  %s5138_s13 = sld [smem:[#allocation3 + $0x12]] }
 0x340   :  { %13087 = vst [vmem:[#allocation148_spill] sm:$0xff] %v9290_v62  ;;  %13088 = vst [vmem:[#allocation175_spill] sm:$0xff] %v9292_v4 }
 0x343   :  { %1422 = vrot.lane.b32.xlu0 %v1393_v5, %s6174_s17  ;;  %1763 = vrot.lane.b32.xlu1 %v1732_v50, %s6175_s20  ;;  %v9300_v41 = vpop.permute.xlu0 %2802  ;;  %v9302_v23 = vpop.permute.xlu1 %1749  ;;  %v1731_v5 = vmul.f32 %v9171_v25, %v13086_v15 }
 0x344   :  { %13089 = vst [vmem:[#allocation176_spill] sm:$0xff] %v9300_v41  ;;  %13090 = vst [vmem:[#allocation177_spill] sm:$0xff] %v9302_v23  ;;  %v1730_v23 = vmul.f32 %v9184_v58, %v13086_v15 }
 0x345   :  { %v9342_v62 = vstv %s5138_s13 }
 0x346   :  { %v101_v55 = vmul.f32 %v9184_v58, %v9342_v62 }
 0x347   :  { %1765 = vrot.lane.b32.xlu0 %v1733_v26, %s6175_s20  ;;  %1767 = vrot.lane.b32.xlu1 %v1734_v6, %s6175_s20  ;;  %v9310_v50 = vpop.permute.xlu0 %2794  ;;  %v9312_v4 = vpop.permute.xlu1 %2122  ;;  %v9319_v26 = vld [vmem:[%s12215_s0 + $0x60] sm:$0xff] }
 0x348   :  { %13091 = vst [vmem:[#allocation178_spill] sm:$0xff] %v9310_v50  ;;  %13092 = vst [vmem:[#allocation179_spill] sm:$0xff] %v9312_v4  ;;  %v1062_v6 = vmul.f32 %v9319_v26, %v13070_v47  ;;  %v93_v47 = vmul.f32 %v9319_v26, %v7873_v21  ;;  %v92_v4 = vmul.f32 %v9164_v33, %v7873_v21 }
 0x349   :  { %v2103_v21 = vmul.f32 %v9164_v33, %v8631_v32 }
 0x34a   :  { %v290_v39 = vadd.f32 %v13095_v37, %v93_v47  ;;  %v96_v47 = vmul.f32 %v9073_v40, %v9342_v62 }
 0x34b   :  { %1769 = vrot.lane.b32.xlu0 %v1735_v20, %s6175_s20  ;;  %1761 = vrot.lane.b32.xlu1 %v1731_v5, %s6175_s20  ;;  %v9325_v41 = vpop.permute.xlu0 %2124  ;;  %v9327_v50 = vpop.permute.xlu1 %2126  ;;  %v2100_v20 = vmul.f32 %v9131_v24, %v8631_v32  ;;  %v2101_v5 = vmul.f32 %v9144_v45, %v8631_v32 }
 0x34c   :  { %13093 = vst [vmem:[#allocation180_spill] sm:$0xff] %v9325_v41  ;;  %13094 = vst [vmem:[#allocation181_spill] sm:$0xff] %v9327_v50  ;;  %v13096_v41 = vld [vmem:[#allocation29_spill] sm:$0xff] }
 0x34d   :  { %v266_v50 = vsel %vm172_vm0, %v13096_v41, %v13095_v37  ;;  %v97_v41 = vmul.f32 %v8982_v16, %v9342_v62 }
 0x34e   :  { %v289_v35 = vadd.f32 %v266_v50, %v92_v4  ;;  %v99_v4 = vmul.f32 %v9016_v22, %v9342_v62 }
 0x34f   :  { %1097 = vrot.lane.b32.xlu0 %v1062_v6, %s6173_s15  ;;  %1759 = vrot.lane.b32.xlu1 %v1730_v23, %s6175_s20  ;;  %v9344_v6 = vpop.permute.xlu0 %2128 }
 0x350   :  { %13097 = vst [vmem:[#allocation28_spill] sm:$0xff] %v9344_v6  ;;  %v9346_v23 = vpop.permute.xlu1 %2804  ;;  %v98_v6 = vmul.f32 %v8989_v7, %v9342_v62 }
 0x351   :  { %13098 = vst [vmem:[#allocation29_spill] sm:$0xff] %v9346_v23  ;;  %v13099_v23 = vld [vmem:[#allocation71_spill] sm:$0xff] }
 0x352   :  { %v627_v38 = vadd.f32 %v13099_v23, %v290_v39 }
 0x353   :  { %2136 = vrot.lane.b32.xlu0 %v2100_v20, %s6176_s22  ;;  %2138 = vrot.lane.b32.xlu1 %v2101_v5, %s6176_s22  ;;  %v603_v20 = vsel %vm509_vm1, %v13100_v1, %v13099_v23  ;;  %v13101_v5 = vld [vmem:[#allocation83_spill] sm:$0xff]  ;;  %v100_v1 = vmul.f32 %v9023_v36, %v9342_v62  ;;  %v2099_v36 = vmul.f32 %v9171_v25, %v8631_v32  ;;  %v13119_v23 = vld [vmem:[#allocation13_spill] sm:$0xff] }
 0x354   :  { %v342_v60 = vsel %vm172_vm0, %v13102_v3, %v13101_v5  ;;  %v343_v9 = vsel %vm172_vm0, %v13101_v5, %v13103_v29  ;;  %v9370_v37 = vpop.permute.xlu0 %2806  ;;  %v13107_v5 = vld [vmem:[#allocation44_spill] sm:$0xff]  ;;  %v626_v40 = vadd.f32 %v603_v20, %v289_v35 }
 0x355   :  { %13104 = vst [vmem:[#allocation71_spill] sm:$0xff] %v9370_v37  ;;  %v3049_v50 = vpop.permute.xlu1 %3048  ;;  %v13108_v0 = vmax.f32 %v13107_v5, 0.0  ;;  %v13110_v37 = vld [vmem:[#allocation73_spill] sm:$0xff]  ;;  %v364_v46 = vadd.f32 %v342_v60, %v97_v41  ;;  %v365_v56 = vadd.f32 %v343_v9, %v98_v6  ;;  %v13113_v5 = vld [vmem:[#allocation86_spill] sm:$0xff]  ;;  %v964_v60 = vadd.f32 %v13111_v31, %v627_v38 }
 0x356   :  { %v344_v18 = vsel %vm172_vm0, %v13103_v29, %v13110_v37  ;;  %v13120_v41 = vld [vmem:[#allocation97_spill] sm:$0xff] }
 0x357   :  { %v9384_v22 = vmax.f32 %v13108_v0, %v13037_v52  ;;  %2140 = vrot.lane.b32.xlu0 %v2102_v10, %s6176_s22  ;;  %2142 = vrot.lane.b32.xlu1 %v2103_v21, %s6176_s22  ;;  %v940_v0 = vsel %vm846_vm2, %v12979_v19, %v13111_v31  ;;  %v13112_v52 = vld [vmem:[#allocation96_spill] sm:$0xff]  ;;  %v345_v10 = vsel %vm172_vm0, %v13110_v37, %v13113_v5  ;;  %v13114_v21 = vld [vmem:[#allocation50_spill] sm:$0xff]  ;;  %v13118_v19 = vld [vmem:[#allocation105_spill] sm:$0xff] }
 0x358   :  { %v341_v29 = vsel %vm172_vm0, %v13112_v52, %v13102_v3  ;;  %v13115_v11 = vmax.f32 %v13114_v21, 0.0  ;;  %v366_v9 = vadd.f32 %v344_v18, %v99_v4  ;;  %v3007_v6 = vsel %vm172_vm0, %v13105_v51, %v13118_v19  ;;  %v13121_v4 = vld [vmem:[#allocation16_spill] sm:$0xff]  ;;  %v13122_v52 = vld [vmem:[#allocation59_spill] sm:$0xff] }
 0x359   :  { %13109 = vst [vmem:[#allocation113_spill] sm:$0xff] %v9384_v22  ;;  %v9407_v35 = vpop.permute.xlu0 %3050  ;;  %v9409_v39 = vpop.permute.xlu1 %2120  ;;  %v679_v20 = vsel %vm509_vm1, %v13120_v41, %v13119_v23  ;;  %v1399_v31 = vmul.f32 %v9319_v26, %v13079_v12  ;;  %v963_v38 = vadd.f32 %v940_v0, %v626_v40  ;;  %v363_v18 = vadd.f32 %v341_v29, %v96_v47 }
 0x35a   :  { %v9405_v63 = vmax.f32 %v13115_v11, %v3006_v42  ;;  %13117 = vst [vmem:[#allocation66_spill] sm:$0xff] %v9409_v39  ;;  %v3071_v3 = vsel %vm846_vm2, %v3049_v50, %v9407_v35  ;;  %v367_v42 = vadd.f32 %v345_v10, %v100_v1  ;;  %v368_v51 = vadd.f32 %v13113_v5, %v101_v55  ;;  %v9463_v10 = vld [vmem:[%s12215_s0 + $0x30] sm:$0xff]  ;;  %v13138_v39 = vld [vmem:[#allocation130_spill] sm:$0xff] }
 0x35b   :  { %v3093_v11 = vmax.f32 %v8833_v27, %v3071_v3  ;;  %2134 = vrot.lane.b32.xlu0 %v2099_v36, %s6176_s22  ;;  %v680_v37 = vsel %vm509_vm1, %v13119_v23, %v13121_v4  ;;  %v681_v27 = vsel %vm509_vm1, %v13121_v4, %v13122_v52  ;;  %v13123_v36 = vld [vmem:[#allocation54_spill] sm:$0xff]  ;;  %v9439_v12 = vmul.f32 %v9131_v24, %v9342_v62  ;;  %v13129_v4 = vld [vmem:[#allocation65_spill] sm:$0xff] }
 0x35c   :  { %13116 = vst [vmem:[#allocation83_spill] sm:$0xff] %v9405_v63  ;;  %3060 = vrot.lane.b32.xlu1 %v9405_v63, %s6173_s15  ;;  %v13124_v21 = vmax.f32 %v13123_v36, 0.0  ;;  %v701_v55 = vadd.f32 %v679_v20, %v364_v46  ;;  %v9445_v40 = vmul.f32 %v9144_v45, %v9342_v62  ;;  %v9449_v0 = vmul.f32 %v9151_v13, %v9342_v62  ;;  %v13137_v63 = vld [vmem:[#allocation100_spill] sm:$0xff] }
 0x35d   :  { %v3047_v47 = vpop.permute.xlu0 %3046  ;;  %v9441_v1 = vpop.permute.xlu1 %3172  ;;  %4163 = vmatprep.mubr.f32.mxu0 %v3093_v11  ;;  %v2097_v46 = vmul.f32 %v9184_v58, %v8631_v32  ;;  %v702_v23 = vadd.f32 %v680_v37, %v365_v56  ;;  %v9473_v20 = vmul.f32 %v9164_v33, %v9342_v62  ;;  %v13128_v11 = vld [vmem:[#allocation56_spill] sm:$0xff]  ;;  %v678_v36 = vsel %vm509_vm1, %v13129_v4, %v13120_v41  ;;  %v13135_v41 = vld [vmem:[#allocation87_spill] sm:$0xff] }
 0x35e   :  { %v9435_v3 = vmax.f32 %v13124_v21, %v3007_v6  ;;  %13126 = vst [vmem:[#allocation49_spill] sm:$0xff] %v9441_v1  ;;  %v3070_v29 = vsel %vm846_vm2, %v3047_v47, %v3049_v50  ;;  %v2098_v6 = vmul.f32 %v9463_v10, %v8631_v32  ;;  %v703_v50 = vadd.f32 %v681_v27, %v366_v9  ;;  %v13130_v21 = vld [vmem:[#allocation62_spill] sm:$0xff] }
 0x35f   :  { %v3092_v5 = vmax.f32 %v8924_v59, %v3070_v29  ;;  %v9469_v59 = vmul.f32 %v9171_v25, %v9342_v62  ;;  %13127 = vst [vmem:[#allocation43_spill] sm:$0xff] %v9473_v20  ;;  %v682_v56 = vsel %vm509_vm1, %v13122_v52, %v13130_v21  ;;  %v9486_v9 = vmul.f32 %v9319_v26, %v9342_v62  ;;  %v13134_v29 = vld [vmem:[#allocation78_spill] sm:$0xff]  ;;  %v13136_v52 = vld [vmem:[#allocation81_spill] sm:$0xff] }
 0x360   :  { %13125 = vst [vmem:[#allocation84_spill] sm:$0xff] %v9435_v3  ;;  %3062 = vrot.lane.b32.xlu0 %v9435_v3, %s6173_s15  ;;  %1434 = vrot.lane.b32.xlu1 %v1399_v31, %s6174_s17  ;;  %v1277_v31 = vsel %vm1183_vm3, %v12985_v14, %v13128_v11  ;;  %v1301_v47 = vadd.f32 %v13128_v11, %v964_v60  ;;  %v13133_v14 = vld [vmem:[#allocation72_spill] sm:$0xff]  ;;  %v13140_v20 = vld [vmem:[#allocation93_spill] sm:$0xff] }
 0x361   :  { %v9488_v37 = vpop.permute.xlu0 %3174  ;;  %v9490_v27 = vpop.permute.xlu1 %3176  ;;  %4164 = vmatmul.mubr.f32.vlgmr.msra.gmra.mrb[0].mxu0 %v3092_v5  ;;  %v1016_v3 = vsel %vm846_vm2, %v13134_v29, %v13133_v14  ;;  %v1017_v4 = vsel %vm846_vm2, %v13133_v14, %v13135_v41  ;;  %v1018_v62 = vsel %vm846_vm2, %v13135_v41, %v13136_v52  ;;  %v1614_v1 = vsel %vm1520_vm4, %v13138_v39, %v13137_v63 }
 0x362   :  { %13131 = vst [vmem:[#allocation44_spill] sm:$0xff] %v9488_v37  ;;  %13132 = vst [vmem:[#allocation73_spill] sm:$0xff] %v9490_v27  ;;  %v2477_v60 = vmul.f32 %v9131_v24, %v8949_v61  ;;  %v2478_v5 = vmul.f32 %v9144_v45, %v8949_v61  ;;  %v1300_v11 = vadd.f32 %v1277_v31, %v963_v38 }
 0x363   :  { %v700_v14 = vadd.f32 %v678_v36, %v363_v18  ;;  %v704_v27 = vadd.f32 %v682_v56, %v367_v42  ;;  %v705_v41 = vadd.f32 %v13130_v21, %v368_v51  ;;  %v1038_v37 = vadd.f32 %v1016_v3, %v701_v55  ;;  %v13141_v42 = vld [vmem:[#allocation18_spill] sm:$0xff]  ;;  %v13142_v51 = vld [vmem:[#allocation21_spill] sm:$0xff]  ;;  %v3789_v55 = vld [vmem:[%s12218_s3 + $0x288] sm:$0xff] }
 0x364   :  { %2130 = vrot.lane.b32.xlu0 %v2097_v46, %s6176_s22  ;;  %2132 = vrot.lane.b32.xlu1 %v2098_v6, %s6176_s22  ;;  %v1039_v49 = vadd.f32 %v1017_v4, %v702_v23  ;;  %v1040_v44 = vadd.f32 %v1018_v62, %v703_v50  ;;  %v1638_v39 = vadd.f32 %v13137_v63, %v1301_v47  ;;  %v9524_v18 = vstv %s9451_s23  ;;  %v13143_v50 = vld [vmem:[#allocation19_spill] sm:$0xff]  ;;  %v13144_v36 = vld [vmem:[#allocation20_spill] sm:$0xff]  ;;  %v3772_v47 = vld [vmem:[%s12218_s3 + $0x200] sm:$0xff] }
 0x365   :  { %v9513_v46 = vpop.permute.xlu0 %2499  ;;  %v9515_v6 = vpop.permute.xlu1 %2501  ;;  %v1637_v48 = vadd.f32 %v1614_v1, %v1300_v11  ;;  %v1015_v2 = vsel %vm846_vm2, %v13139_v28, %v13134_v29  ;;  %v1019_v38 = vsel %vm846_vm2, %v13136_v52, %v13140_v20  ;;  %v1353_v3 = vsel %vm1183_vm3, %v13142_v51, %v13141_v42  ;;  %v3788_v1 = vld [vmem:[%s12218_s3 + $0x280] sm:$0xff]  ;;  %v3773_v29 = vld [vmem:[%s12218_s3 + $0x208] sm:$0xff] }
 0x366   :  { %v2479_v63 = vmul.f32 %v9151_v13, %v8949_v61  ;;  %v2480_v28 = vmul.f32 %v9164_v33, %v8949_v61  ;;  %v1042_v23 = vadd.f32 %v13140_v20, %v705_v41  ;;  %v1354_v31 = vsel %vm1183_vm3, %v13141_v42, %v13143_v50  ;;  %v13145_v52 = vld [vmem:[#allocation23_spill] sm:$0xff] }
 0x367   :  { %v1355_v21 = vsel %vm1183_vm3, %v13143_v50, %v13144_v36  ;;  %v5716_v56 = vpack.c.bf16 %v3789_v55, %v3788_v1  ;;  %v1037_v4 = vadd.f32 %v1015_v2, %v700_v14  ;;  %v1970_v20 = vsel %vm1865_vm5, %v12997_v17, %v13145_v52  ;;  %v13146_v62 = vld [vmem:[#allocation67_spill] sm:$0xff]  ;;  %v13148_v55 = vld [vmem:[#allocation102_spill] sm:$0xff] }
 0x368   :  { %2513 = vrot.lane.b32.xlu0 %v2477_v60, %s6177_s25  ;;  %2515 = vrot.lane.b32.xlu1 %v2478_v5, %s6177_s25  ;;  %v1971_v60 = vsel %vm1865_vm5, %v13145_v52, %v13146_v62  ;;  %v5718_v41 = vpack.c.bf16 %v3773_v29, %v3772_v47  ;;  %v9564_v42 = vadd.f32 %v1019_v38, %v704_v27 }
 0x369   :  { %v9560_v5 = vpop.permute.xlu0 %2503  ;;  %v9562_v11 = vpop.permute.xlu1 %2505  ;;  %v9566_v1 = vadd.f32 %v1353_v3, %v1038_v37  ;;  %v3005_v2 = vsel %vm172_vm0, %v13148_v55, %v13106_v54  ;;  %v9573_v17 = vmul.f32 %v8982_v16, %v9524_v18  ;;  %5717 = vmatprep.subr.bf16.mxu0 %v5716_v56  ;;  %v9575_v14 = vadd.f32 %v1354_v31, %v1039_v49  ;;  %v3790_v54 = vld [vmem:[%s12218_s3 + $0x290] sm:$0xff]  ;;  %v3791_v16 = vld [vmem:[%s12218_s3 + $0x298] sm:$0xff]  ;;  %v3820_v55 = vld [vmem:[%s12218_s3 + $0x380] sm:$0xff] }
 0x36a   :  { %13147 = vst [vmem:[#allocation76_spill] sm:$0xff] %v9562_v11  ;;  %v9577_v50 = vadd.f32 %v1355_v21, %v1040_v44  ;;  %v2476_v37 = vmul.f32 %v9171_v25, %v8949_v61  ;;  %v9589_v27 = vadd.f32 %v1970_v20, %v1637_v48  ;;  %v9591_v49 = vadd.f32 %v1971_v60, %v1638_v39  ;;  %v3774_v3 = vld [vmem:[%s12218_s3 + $0x210] sm:$0xff]  ;;  %v13150_v39 = vld [vmem:[#allocation69_spill] sm:$0xff] }
 0x36b   :  { %v9595_v44 = vmul.f32 %v8989_v7, %v9524_v18  ;;  %5719 = vmatpush3.bf16.msra.mxu0 %v5718_v41  ;;  %v5720_v38 = vpack.c.bf16 %v3791_v16, %v3790_v54  ;;  %v1356_v31 = vsel %vm1183_vm3, %v13144_v36, %v13150_v39  ;;  %v13151_v7 = vld [vmem:[#allocation64_spill] sm:$0xff]  ;;  %v13154_v20 = vld [vmem:[#allocation121_spill] sm:$0xff]  ;;  %v3793_v16 = vld [vmem:[%s12218_s3 + $0x2a8] sm:$0xff] }
 0x36c   :  { %2517 = vrot.lane.b32.xlu0 %v2479_v63, %s6177_s25  ;;  %2519 = vrot.lane.b32.xlu1 %v2480_v28, %s6177_s25  ;;  %v3775_v63 = vld [vmem:[%s12218_s3 + $0x218] sm:$0xff]  ;;  %v13149_v28 = vld [vmem:[#allocation70_spill] sm:$0xff]  ;;  %v13152_v21 = vmax.f32 %v13151_v7, 0.0  ;;  %v3008_v62 = vsel %vm172_vm0, %v13118_v19, %v13154_v20  ;;  %v13155_v60 = vld [vmem:[#allocation128_spill] sm:$0xff] }
 0x36d   :  { %v1352_v48 = vsel %vm1183_vm3, %v13149_v28, %v13142_v51  ;;  %v3053_v47 = vpop.permute.xlu0 %3052  ;;  %v9613_v29 = vpop.permute.xlu1 %3054  ;;  %v5722_v52 = vpack.c.bf16 %v3775_v63, %v3774_v3  ;;  %v3009_v51 = vsel %vm172_vm0, %v13154_v20, %v13155_v60  ;;  %5721 = vmatprep.subr.bf16.mxu0 %v5720_v38  ;;  %v13157_v63 = vld [vmem:[#allocation75_spill] sm:$0xff]  ;;  %v3776_v7 = vld [vmem:[%s12218_s3 + $0x220] sm:$0xff] }
 0x36e   :  { %v9611_v56 = vmax.f32 %v13152_v21, %v3005_v2  ;;  %13153 = vst [vmem:[#allocation96_spill] sm:$0xff] %v9613_v29  ;;  %v3072_v41 = vsel %vm846_vm2, %v9407_v35, %v3053_v47  ;;  %v3073_v36 = vsel %vm846_vm2, %v3053_v47, %v9613_v29  ;;  %v3821_v2 = vld [vmem:[%s12218_s3 + $0x388] sm:$0xff]  ;;  %v3792_v35 = vld [vmem:[%s12218_s3 + $0x2a0] sm:$0xff]  ;;  %v9642_v3 = vadd.f32 %v1352_v48, %v1037_v4  ;;  %v13161_v47 = vld [vmem:[#allocation61_spill] sm:$0xff] }
 0x36f   :  { %v3094_v19 = vmax.f32 %v8876_v57, %v3072_v41  ;;  %v3095_v54 = vmax.f32 %v9056_v30, %v3073_v36  ;;  %v5748_v38 = vpack.c.bf16 %v3821_v2, %v3820_v55  ;;  %v9645_v57 = vadd.f32 %v13150_v39, %v1042_v23  ;;  %v13156_v30 = vld [vmem:[#allocation80_spill] sm:$0xff]  ;;  %5723 = vmatpush3.bf16.msra.mxu0 %v5722_v52  ;;  %v3777_v21 = vld [vmem:[%s12218_s3 + $0x228] sm:$0xff]  ;;  %v3804_v4 = vld [vmem:[%s12218_s3 + $0x300] sm:$0xff] }
 0x370   :  { %3058 = vrot.lane.b32.xlu0 %v9611_v56, %s6173_s15  ;;  %2511 = vrot.lane.b32.xlu1 %v2476_v37, %s6177_s25  ;;  %v1690_v28 = vsel %vm1520_vm4, %v13157_v63, %v13156_v30  ;;  %v5724_v37 = vpack.c.bf16 %v3793_v16, %v3792_v35  ;;  %v13158_v23 = vld [vmem:[#allocation58_spill] sm:$0xff]  ;;  %v13162_v20 = vmax.f32 %v13161_v47, 0.0  ;;  %v5726_v55 = vpack.c.bf16 %v3777_v21, %v3776_v7  ;;  %v3805_v2 = vld [vmem:[%s12218_s3 + $0x308] sm:$0xff]  ;;  %v13164_v35 = vld [vmem:[#allocation77_spill] sm:$0xff] }
 0x371   :  { %v13159_v48 = vmax.f32 %v13158_v23, 0.0  ;;  %v9667_v41 = vpop.permute.xlu0 %3170  ;;  %v9669_v36 = vpop.permute.xlu1 %2497  ;;  %4238 = vmatprep.mubr.f32.mxu1 %v3095_v54  ;;  %5749 = vmatprep.subr.bf16.mxu1 %v5748_v38  ;;  %v13165_v16 = vld [vmem:[#allocation82_spill] sm:$0xff]  ;;  %v5750_v23 = vpack.c.bf16 %v3805_v2, %v3804_v4  ;;  %v3822_v54 = vld [vmem:[%s12218_s3 + $0x390] sm:$0xff]  ;;  %v3823_v38 = vld [vmem:[%s12218_s3 + $0x398] sm:$0xff]  ;;  %v9701_v21 = vadd.f32 %v1356_v31, %v9564_v42  ;;  %v9704_v4 = vadd.f32 %v1690_v28, %v9566_v1 }
 0x372   :  { %v9665_v52 = vmax.f32 %v13162_v20, %v3009_v51  ;;  %v2347_v51 = vsel %vm2242_vm6, %v7727_v8, %v13165_v16  ;;  %4239 = vmatmul.mubr.f32.vlgmr.msra.gmra.mrb[0].mxu1 %v3094_v19  ;;  %5725 = vmatprep.subr.bf16.mxu0 %v5724_v37  ;;  %v1736_v8 = vmul.f32 %v9319_v26, %v13086_v15  ;;  %v3795_v37 = vld [vmem:[%s12218_s3 + $0x2b8] sm:$0xff]  ;;  %v3806_v20 = vld [vmem:[%s12218_s3 + $0x310] sm:$0xff]  ;;  %v13166_v1 = vld [vmem:[#allocation79_spill] sm:$0xff] }
 0x373   :  { %v9661_v39 = vmax.f32 %v13159_v48, %v3008_v62  ;;  %v1691_v62 = vsel %vm1520_vm4, %v13156_v30, %v13164_v35  ;;  %v2474_v19 = vmul.f32 %v9184_v58, %v8949_v61  ;;  %v3794_v30 = vld [vmem:[%s12218_s3 + $0x2b0] sm:$0xff]  ;;  %v5752_v7 = vpack.c.bf16 %v3823_v38, %v3822_v54  ;;  %5727 = vmatpush3.bf16.msra.mxu0 %v5726_v55  ;;  %v3779_v47 = vld [vmem:[%s12218_s3 + $0x238] sm:$0xff] }
 0x374   :  { %13163 = vst [vmem:[#allocation50_spill] sm:$0xff] %v9665_v52  ;;  %3066 = vrot.lane.b32.xlu1 %v9665_v52, %s6173_s15  ;;  %v5728_v15 = vpack.c.bf16 %v3795_v37, %v3794_v30  ;;  %v3778_v48 = vld [vmem:[%s12218_s3 + $0x230] sm:$0xff]  ;;  %5751 = vmatpush3.bf16.msra.mxu1 %v5750_v23  ;;  %v9716_v42 = vadd.f32 %v1691_v62, %v9575_v14  ;;  %v3807_v38 = vld [vmem:[%s12218_s3 + $0x318] sm:$0xff]  ;;  %v13168_v62 = vld [vmem:[#allocation34_spill] sm:$0xff] }
 0x375   :  { %13160 = vst [vmem:[#allocation86_spill] sm:$0xff] %v9661_v39  ;;  %3064 = vrot.lane.b32.xlu0 %v9661_v39, %s6173_s15  ;;  %v1692_v31 = vsel %vm1520_vm4, %v13164_v35, %v13166_v1  ;;  %v13167_v28 = vld [vmem:[#allocation88_spill] sm:$0xff]  ;;  %v9724_v2 = vpop.permute.xlu0 %3166  ;;  %v9726_v54 = vpop.permute.xlu1 %3168  ;;  %v5730_v23 = vpack.c.bf16 %v3779_v47, %v3778_v48  ;;  %5753 = vmatprep.subr.bf16.mxu1 %v5752_v7  ;;  %v13169_v30 = vld [vmem:[#allocation35_spill] sm:$0xff]  ;;  %v3824_v7 = vld [vmem:[%s12218_s3 + $0x3a0] sm:$0xff] }
 0x376   :  { %v2348_v55 = vsel %vm2242_vm6, %v13165_v16, %v13167_v28  ;;  %v2371_v14 = vadd.f32 %v2347_v51, %v9589_v27  ;;  %v2724_v35 = vsel %vm2619_vm7, %v7842_v34, %v13168_v62  ;;  %v2725_v16 = vsel %vm2619_vm7, %v13168_v62, %v13169_v30  ;;  %5729 = vmatprep.subr.bf16.mxu0 %v5728_v15  ;;  %v3825_v48 = vld [vmem:[%s12218_s3 + $0x3a8] sm:$0xff]  ;;  %v3796_v51 = vld [vmem:[%s12218_s3 + $0x2c0] sm:$0xff] }
 0x377   :  { %v5754_v37 = vpack.c.bf16 %v3807_v38, %v3806_v20  ;;  %v2475_v34 = vmul.f32 %v9463_v10, %v8949_v61  ;;  %v2854_v27 = vmul.f32 %v9131_v24, %v9092_v43  ;;  %v3797_v15 = vld [vmem:[%s12218_s3 + $0x2c8] sm:$0xff]  ;;  %v5756_v47 = vpack.c.bf16 %v3825_v48, %v3824_v7  ;;  %5731 = vmatpush3.bf16.msra.mxu0 %v5730_v23  ;;  %v3780_v24 = vld [vmem:[%s12218_s3 + $0x240] sm:$0xff] }
 0x378   :  { %2507 = vrot.lane.b32.xlu1 %v2474_v19, %s6177_s25  ;;  %v2372_v20 = vadd.f32 %v2348_v55, %v9591_v49  ;;  %v5732_v28 = vpack.c.bf16 %v3797_v15, %v3796_v51  ;;  %v3781_v38 = vld [vmem:[%s12218_s3 + $0x248] sm:$0xff]  ;;  %v3808_v62 = vld [vmem:[%s12218_s3 + $0x320] sm:$0xff]  ;;  %v2748_v7 = vadd.f32 %v2724_v35, %v2371_v14  ;;  %v3826_v35 = vld [vmem:[%s12218_s3 + $0x3b0] sm:$0xff] }
 0x379   :  { %1771 = vrot.lane.b32.xlu0 %v1736_v8, %s6175_s20  ;;  %v13170_v8 = vld [vmem:[#allocation89_spill] sm:$0xff]  ;;  %5755 = vmatpush3.bf16.msra.mxu1 %v5754_v37  ;;  %v13171_v49 = vld [vmem:[#allocation90_spill] sm:$0xff]  ;;  %v13173_v23 = vld [vmem:[#allocation91_spill] sm:$0xff]  ;;  %v9775_v48 = vpop.permute.xlu0 %2876  ;;  %v9777_v51 = vpop.permute.xlu1 %2878  ;;  %v5734_v15 = vpack.c.bf16 %v3781_v38, %v3780_v24  ;;  %v2855_v24 = vmul.f32 %v9144_v45, %v9092_v43 }
 0x37a   :  { %v1689_v19 = vsel %vm1520_vm4, %v13170_v8, %v13157_v63  ;;  %v1693_v55 = vsel %vm1520_vm4, %v13166_v1, %v13171_v49  ;;  %v13172_v63 = vld [vmem:[#allocation103_spill] sm:$0xff]  ;;  %5757 = vmatprep.subr.bf16.mxu1 %v5756_v47  ;;  %v13174_v8 = vld [vmem:[#allocation104_spill] sm:$0xff]  ;;  %v13175_v1 = vld [vmem:[#allocation101_spill] sm:$0xff]  ;;  %v2749_v39 = vadd.f32 %v2725_v16, %v2372_v20  ;;  %5733 = vmatprep.subr.bf16.mxu0 %v5732_v28 }
 0x37b   :  { %v2055_v30 = vsel %vm1865_vm5, %v13173_v23, %v13172_v63  ;;  %v3809_v37 = vld [vmem:[%s12218_s3 + $0x328] sm:$0xff]  ;;  %v2056_v52 = vsel %vm1865_vm5, %v13172_v63, %v13174_v8  ;;  %v2057_v29 = vsel %vm1865_vm5, %v13174_v8, %v13175_v1  ;;  %v3827_v47 = vld [vmem:[%s12218_s3 + $0x3b8] sm:$0xff]  ;;  %v2856_v16 = vmul.f32 %v9151_v13, %v9092_v43  ;;  %v3798_v20 = vld [vmem:[%s12218_s3 + $0x2d0] sm:$0xff]  ;;  %5735 = vmatpush3.bf16.msra.mxu0 %v5734_v15 }
 0x37c   :  { %v5758_v14 = vpack.c.bf16 %v3809_v37, %v3808_v62  ;;  %2890 = vrot.lane.b32.xlu1 %v2854_v27, %s6178_s27  ;;  %v3799_v28 = vld [vmem:[%s12218_s3 + $0x2d8] sm:$0xff]  ;;  %v5760_v38 = vpack.c.bf16 %v3827_v47, %v3826_v35  ;;  %v1714_v62 = vadd.f32 %v1692_v31, %v9577_v50  ;;  %v3782_v13 = vld [vmem:[%s12218_s3 + $0x250] sm:$0xff]  ;;  %v1711_v50 = vadd.f32 %v1689_v19, %v9642_v3  ;;  %v3828_v19 = vld [vmem:[%s12218_s3 + $0x3c0] sm:$0xff] }
 0x37d   :  { %2509 = vrot.lane.b32.xlu0 %v2475_v34, %s6177_s25  ;;  %v1716_v34 = vadd.f32 %v13171_v49, %v9645_v57  ;;  %v5736_v27 = vpack.c.bf16 %v3799_v28, %v3798_v20  ;;  %v3783_v45 = vld [vmem:[%s12218_s3 + $0x258] sm:$0xff]  ;;  %v3810_v63 = vld [vmem:[%s12218_s3 + $0x330] sm:$0xff]  ;;  %v1715_v31 = vadd.f32 %v1693_v55, %v9701_v21  ;;  %v9821_v57 = vadd.f32 %v8060_v53, %v2748_v7  ;;  %v9823_v49 = vpop.permute.xlu0 %2880  ;;  %v9825_v15 = vpop.permute.xlu1 %2882  ;;  %v3829_v55 = vld [vmem:[%s12218_s3 + $0x3c8] sm:$0xff] }
 0x37e   :  { %5759 = vmatpush3.bf16.msra.mxu1 %v5758_v14  ;;  %13177 = vst [vmem:[#allocation13_spill] sm:$0xff] %v9825_v15  ;;  %v5738_v37 = vpack.c.bf16 %v3783_v45, %v3782_v13  ;;  %v3811_v8 = vld [vmem:[%s12218_s3 + $0x338] sm:$0xff]  ;;  %v2079_v14 = vadd.f32 %v2055_v30, %v9704_v4  ;;  %v2080_v35 = vadd.f32 %v2056_v52, %v9716_v42  ;;  %v13179_v47 = vld [vmem:[#allocation30_spill] sm:$0xff]  ;;  %v3785_v30 = vld [vmem:[%s12218_s3 + $0x268] sm:$0xff] }
 0x37f   :  { %13176 = vst [vmem:[#allocation105_spill] sm:$0xff] %v9821_v57  ;;  %5761 = vmatprep.subr.bf16.mxu1 %v5760_v38  ;;  %v9832_v3 = vadd.f32 %v2057_v29, %v1714_v62  ;;  %5737 = vmatprep.subr.bf16.mxu0 %v5736_v27  ;;  %v5762_v21 = vpack.c.bf16 %v3811_v8, %v3810_v63  ;;  %v3800_v52 = vld [vmem:[%s12218_s3 + $0x2e0] sm:$0xff]  ;;  %v13182_v38 = vld [vmem:[#allocation40_spill] sm:$0xff]  ;;  %v13183_v62 = vld [vmem:[#allocation107_spill] sm:$0xff] }
 0x380   :  { %v9841_v7 = vadd.f32 %v8060_v53, %v2749_v39  ;;  %v2054_v4 = vsel %vm1865_vm5, %v13179_v47, %v13173_v23  ;;  %2894 = vrot.lane.b32.xlu1 %v2856_v16, %s6178_s27  ;;  %v2857_v29 = vmul.f32 %v9164_v33, %v9092_v43  ;;  %v3801_v53 = vld [vmem:[%s12218_s3 + $0x2e8] sm:$0xff]  ;;  %v13180_v39 = vld [vmem:[#allocation41_spill] sm:$0xff]  ;;  %5739 = vmatpush3.bf16.msra.mxu0 %v5738_v37  ;;  %v3784_v33 = vld [vmem:[%s12218_s3 + $0x260] sm:$0xff] }
 0x381   :  { %2892 = vrot.lane.b32.xlu0 %v2855_v24, %s6178_s27  ;;  %v2058_v42 = vsel %vm1865_vm5, %v13175_v1, %v13180_v39  ;;  %v5740_v23 = vpack.c.bf16 %v3801_v53, %v3800_v52  ;;  %v5764_v24 = vpack.c.bf16 %v3829_v55, %v3828_v19  ;;  %v3812_v16 = vld [vmem:[%s12218_s3 + $0x340] sm:$0xff]  ;;  %v12531_v1 = vmax.f32 %v9821_v57, 0.0  ;;  %v9877_v13 = vpop.permute.xlu0 %2874  ;;  %v9879_v45 = vpop.permute.xlu1 %415  ;;  %v3813_v37 = vld [vmem:[%s12218_s3 + $0x348] sm:$0xff]  ;;  %v3830_v47 = vld [vmem:[%s12218_s3 + $0x3d0] sm:$0xff] }
 0x382   :  { %13178 = vst [vmem:[#allocation97_spill] sm:$0xff] %v9841_v7  ;;  %5763 = vmatpush3.bf16.msra.mxu1 %v5762_v21  ;;  %v13181_v20 = vld [vmem:[#allocation46_spill] sm:$0xff]  ;;  %v2432_v27 = vsel %vm2242_vm6, %v13183_v62, %v13182_v38  ;;  %13184 = vst [vmem:[#allocation16_spill] sm:$0xff] %v9879_v45  ;;  %v5742_v63 = vpack.c.bf16 %v3785_v30, %v3784_v33  ;;  %v2078_v8 = vadd.f32 %v2054_v4, %v1711_v50  ;;  %v13185_v21 = vld [vmem:[#allocation109_spill] sm:$0xff] }
 0x383   :  { %v2059_v28 = vsel %vm1865_vm5, %v13180_v39, %v13181_v20  ;;  %v2433_v19 = vsel %vm2242_vm6, %v13182_v38, %v13185_v21  ;;  %5741 = vmatprep.subr.bf16.mxu0 %v5740_v23  ;;  %5765 = vmatprep.subr.bf16.mxu1 %v5764_v24  ;;  %v5766_v55 = vpack.c.bf16 %v3813_v37, %v3812_v16  ;;  %v3831_v52 = vld [vmem:[%s12218_s3 + $0x3d8] sm:$0xff]  ;;  %v3802_v4 = vld [vmem:[%s12218_s3 + $0x2f0] sm:$0xff]  ;;  %v13186_v20 = vld [vmem:[#allocation47_spill] sm:$0xff] }
 0x384   :  { %v2082_v53 = vadd.f32 %v2058_v42, %v1715_v31  ;;  %3178 = vrot.lane.b32.xlu1 %v12531_v1, %s6171_s18  ;;  %v2853_v50 = vmul.f32 %v9171_v25, %v9092_v43  ;;  %v3803_v39 = vld [vmem:[%s12218_s3 + $0x2f8] sm:$0xff]  ;;  %v5768_v23 = vpack.c.bf16 %v3831_v52, %v3830_v47  ;;  %v12532_v31 = vmax.f32 %v9841_v7, 0.0  ;;  %5743 = vmatpush3.bf16.msra.mxu0 %v5742_v63  ;;  %v3786_v30 = vld [vmem:[%s12218_s3 + $0x270] sm:$0xff]  ;;  %v13195_v1 = vld [vmem:[#allocation139_spill] sm:$0xff] }
 0x385   :  { %2896 = vrot.lane.b32.xlu0 %v2857_v29, %s6178_s27  ;;  %v2083_v42 = vadd.f32 %v2059_v28, %v1716_v34  ;;  %v2456_v29 = vadd.f32 %v2432_v27, %v2079_v14  ;;  %v5744_v33 = vpack.c.bf16 %v3803_v39, %v3802_v4  ;;  %v3787_v25 = vld [vmem:[%s12218_s3 + $0x278] sm:$0xff]  ;;  %v3814_v24 = vld [vmem:[%s12218_s3 + $0x350] sm:$0xff]  ;;  %v2457_v16 = vadd.f32 %v2433_v19, %v2080_v35  ;;  %v13187_v14 = vld [vmem:[#allocation31_spill] sm:$0xff]  ;;  %v9921_v38 = vpop.permute.xlu0 %417  ;;  %v9923_v27 = vpop.permute.xlu1 %419 }
 0x386   :  { %5767 = vmatpush3.bf16.msra.mxu1 %v5766_v55  ;;  %v2434_v34 = vsel %vm2242_vm6, %v13185_v21, %v13186_v20  ;;  %v2431_v28 = vsel %vm2242_vm6, %v13187_v14, %v13183_v62  ;;  %13188 = vst [vmem:[#allocation59_spill] sm:$0xff] %v9921_v38  ;;  %13189 = vst [vmem:[#allocation54_spill] sm:$0xff] %v9923_v27  ;;  %v5746_v63 = vpack.c.bf16 %v3787_v25, %v3786_v30  ;;  %v3815_v37 = vld [vmem:[%s12218_s3 + $0x358] sm:$0xff]  ;;  %v13191_v19 = vld [vmem:[#allocation134_spill] sm:$0xff] }
 0x387   :  { %5769 = vmatprep.subr.bf16.mxu1 %v5768_v23  ;;  %v13190_v55 = vld [vmem:[#allocation133_spill] sm:$0xff]  ;;  %v13193_v47 = vld [vmem:[#allocation136_spill] sm:$0xff]  ;;  %5745 = vmatprep.subr.bf16.mxu0 %v5744_v33  ;;  %v5770_v4 = vpack.c.bf16 %v3815_v37, %v3814_v24  ;;  %v3832_v39 = vld [vmem:[%s12218_s3 + $0x3e0] sm:$0xff]  ;;  %v2104_v33 = vmul.f32 %v9319_v26, %v8631_v32  ;;  %v2458_v37 = vadd.f32 %v2434_v34, %v9832_v3 }
 0x388   :  { %v2435_v35 = vsel %vm2242_vm6, %v13186_v20, %v13190_v55  ;;  %v2436_v21 = vsel %vm2242_vm6, %v13190_v55, %v13191_v19  ;;  %v13192_v62 = vld [vmem:[#allocation137_spill] sm:$0xff]  ;;  %v3833_v23 = vld [vmem:[%s12218_s3 + $0x3e8] sm:$0xff]  ;;  %v13194_v30 = vld [vmem:[#allocation138_spill] sm:$0xff]  ;;  %2888 = vrot.lane.b32.xlu1 %v2853_v50, %s6178_s27  ;;  %v2455_v55 = vadd.f32 %v2431_v28, %v2078_v8  ;;  %v9960_v19 = vstv %s9859_s12  ;;  %5747 = vmatpush3.bf16.msra.mxu0 %v5746_v63 }
 0x389   :  { %v2809_v52 = vsel %vm2619_vm7, %v13193_v47, %v13192_v62  ;;  %v2810_v25 = vsel %vm2619_vm7, %v13192_v62, %v13194_v30  ;;  %3180 = vrot.lane.b32.xlu0 %v12532_v31, %s6171_s18  ;;  %v5772_v24 = vpack.c.bf16 %v3833_v23, %v3832_v39  ;;  %v3816_v20 = vld [vmem:[%s12218_s3 + $0x360] sm:$0xff]  ;;  %v3817_v14 = vld [vmem:[%s12218_s3 + $0x368] sm:$0xff]  ;;  %v2459_v62 = vadd.f32 %v2435_v35, %v2082_v53  ;;  %v13196_v23 = vld [vmem:[#allocation140_spill] sm:$0xff]  ;;  %v9971_v3 = vpop.permute.xlu0 %421  ;;  %v9973_v8 = vpop.permute.xlu1 %413 }
 0x38a   :  { %5771 = vmatpush3.bf16.msra.mxu1 %v5770_v4  ;;  %v5774_v50 = vpack.c.bf16 %v3817_v14, %v3816_v20  ;;  %v2811_v39 = vsel %vm2619_vm7, %v13194_v30, %v13195_v1  ;;  %v2808_v31 = vsel %vm2619_vm7, %v13196_v23, %v13193_v47  ;;  %v13197_v57 = vld [vmem:[#allocation141_spill] sm:$0xff]  ;;  %13198 = vst [vmem:[#allocation56_spill] sm:$0xff] %v9973_v8  ;;  %v13199_v63 = vld [vmem:[#allocation142_spill] sm:$0xff]  ;;  %v3834_v47 = vld [vmem:[%s12218_s3 + $0x3f0] sm:$0xff] }
 0x38b   :  { %v2812_v7 = vsel %vm2619_vm7, %v13195_v1, %v13197_v57  ;;  %5773 = vmatprep.subr.bf16.mxu1 %v5772_v24  ;;  %v2460_v34 = vadd.f32 %v2436_v21, %v2083_v42  ;;  %v2833_v28 = vadd.f32 %v2809_v52, %v2456_v29  ;;  %v2834_v53 = vadd.f32 %v2810_v25, %v2457_v16  ;;  %v3835_v1 = vld [vmem:[%s12218_s3 + $0x3f8] sm:$0xff]  ;;  %v9990_v42 = vld [vmem:[%s12215_s0 + $0x68] sm:$0xff]  ;;  %v3818_v21 = vld [vmem:[%s12218_s3 + $0x370] sm:$0xff] }
 0x38c   :  { %v2813_v35 = vsel %vm2619_vm7, %v13197_v57, %v13199_v63  ;;  %2144 = vrot.lane.b32.xlu1 %v2104_v33, %s6176_s22  ;;  %v2105_v57 = vmul.f32 %v9990_v42, %v8631_v32  ;;  %v2851_v29 = vmul.f32 %v9184_v58, %v9092_v43  ;;  %v5776_v16 = vpack.c.bf16 %v3835_v1, %v3834_v47  ;;  %v3819_v52 = vld [vmem:[%s12218_s3 + $0x378] sm:$0xff]  ;;  %v13200_v24 = vld [vmem:[#allocation60_spill] sm:$0xff]  ;;  %v13210_v47 = vld [vmem:[#allocation146_spill] sm:$0xff] }
 0x38d   :  { %3056 = vrot.lane.b32.xlu0 %v9384_v22, %s6173_s15  ;;  %v2835_v4 = vadd.f32 %v2811_v39, %v2458_v37  ;;  %v2832_v30 = vadd.f32 %v2808_v31, %v2455_v55  ;;  %v2836_v25 = vadd.f32 %v2812_v7, %v2459_v62  ;;  %v5778_v33 = vpack.c.bf16 %v3819_v52, %v3818_v21  ;;  %v6107_v14 = vld [vmem:[%s12215_s0 + $0x18] sm:$0xff]  ;;  %v6108_v31 = vld [vmem:[%s12215_s0] sm:$0xff]  ;;  %v10019_v37 = vpop.permute.xlu0 %411  ;;  %v10021_v55 = vpop.permute.xlu1 %752  ;;  %v13207_v62 = vld [vmem:[#allocation144_spill] sm:$0xff] }
 0x38e   :  { %5775 = vmatpush3.bf16.msra.mxu1 %v5774_v50  ;;  %v13201_v32 = vmax.f32 %v13200_v24, 0.0  ;;  %v2837_v58 = vadd.f32 %v2813_v35, %v2460_v34  ;;  %v10011_v23 = vmul.f32 %v6107_v14, %v9524_v18  ;;  %v10017_v7 = vmul.f32 %v6108_v31, %v9524_v18  ;;  %13203 = vst [vmem:[#allocation62_spill] sm:$0xff] %v10019_v37  ;;  %v13208_v39 = vld [vmem:[#allocation143_spill] sm:$0xff]  ;;  %v13209_v63 = vld [vmem:[#allocation145_spill] sm:$0xff]  ;;  %v13216_v14 = vld [vmem:[#allocation150_spill] sm:$0xff] }
 0x38f   :  { %13204 = vst [vmem:[#allocation72_spill] sm:$0xff] %v10021_v55  ;;  %5777 = vmatprep.subr.bf16.mxu1 %v5776_v16  ;;  %v10027_v50 = vadd.f32 %v9960_v19, %v2834_v53  ;;  %v3183_v34 = vsel %vm172_vm0, %v13208_v39, %v13207_v62  ;;  %v3184_v35 = vsel %vm172_vm0, %v13207_v62, %v13209_v63  ;;  %v13211_v21 = vld [vmem:[#allocation149_spill] sm:$0xff]  ;;  %v13212_v16 = vld [vmem:[#allocation147_spill] sm:$0xff]  ;;  %v13237_v8 = vld [vmem:[#allocation158_spill] sm:$0xff] }
 0x390   :  { %v10005_v20 = vmax.f32 %v13201_v32, %v13155_v60  ;;  %v10024_v60 = vadd.f32 %v9960_v19, %v2833_v28  ;;  %v3182_v1 = vsel %vm172_vm0, %v13210_v47, %v13208_v39  ;;  %v347_v28 = vsel %vm172_vm0, %v13212_v16, %v13211_v21  ;;  %2884 = vrot.lane.b32.xlu1 %v2851_v29, %s6178_s27  ;;  %v13218_v29 = vld [vmem:[#allocation95_spill] sm:$0xff]  ;;  %v13222_v39 = vld [vmem:[#allocation152_spill] sm:$0xff]  ;;  %v13228_v55 = vld [vmem:[#allocation53_spill] sm:$0xff] }
 0x391   :  { %13206 = vst [vmem:[#allocation87_spill] sm:$0xff] %v10027_v50  ;;  %2146 = vrot.lane.b32.xlu0 %v2105_v57, %s6176_s22  ;;  %v2852_v53 = vmul.f32 %v9463_v10, %v9092_v43  ;;  %v10046_v52 = vadd.f32 %v9960_v19, %v2835_v4  ;;  %v10049_v24 = vadd.f32 %v9960_v19, %v2832_v30  ;;  %v13219_v62 = vmax.f32 %v13218_v29, 0.0  ;;  %v13221_v4 = vld [vmem:[#allocation151_spill] sm:$0xff]  ;;  %v10070_v47 = vpop.permute.xlu0 %754  ;;  %v10072_v22 = vpop.permute.xlu1 %756  ;;  %v13231_v37 = vld [vmem:[#allocation153_spill] sm:$0xff] }
 0x392   :  { %13202 = vst [vmem:[#allocation65_spill] sm:$0xff] %v10005_v20  ;;  %13205 = vst [vmem:[#allocation78_spill] sm:$0xff] %v10024_v60  ;;  %v10052_v32 = vadd.f32 %v9960_v19, %v2836_v25  ;;  %v348_v31 = vsel %vm172_vm0, %v13211_v21, %v13216_v14  ;;  %5779 = vmatpush3.bf16.msra.mxu1 %v5778_v33  ;;  %v10058_v57 = vadd.f32 %v9960_v19, %v2837_v58  ;;  %v13225_v33 = vld [vmem:[#allocation85_spill] sm:$0xff] }
 0x393   :  { %13213 = vst [vmem:[#allocation81_spill] sm:$0xff] %v10046_v52  ;;  %13214 = vst [vmem:[#allocation100_spill] sm:$0xff] %v10049_v24  ;;  %v10062_v10 = vmax.f32 %v13219_v62, %v3183_v34  ;;  %v349_v30 = vsel %vm172_vm0, %v13216_v14, %v13221_v4  ;;  %v346_v25 = vsel %vm172_vm0, %v13222_v39, %v13212_v16  ;;  %v13226_v21 = vmax.f32 %v13225_v33, 0.0  ;;  %v13236_v16 = vld [vmem:[#allocation157_spill] sm:$0xff] }
 0x394   :  { %13215 = vst [vmem:[#allocation130_spill] sm:$0xff] %v10052_v32  ;;  %13217 = vst [vmem:[#allocation94_spill] sm:$0xff] %v10058_v57  ;;  %v13229_v29 = vmax.f32 %v13228_v55, 0.0  ;;  %v370_v62 = vadd.f32 %v347_v28, %v9439_v12  ;;  %v350_v14 = vsel %vm172_vm0, %v13221_v4, %v13231_v37  ;;  %v371_v39 = vadd.f32 %v348_v31, %v9445_v40  ;;  %v3852_v55 = vld [vmem:[%s12218_s3 + $0x480] sm:$0xff]  ;;  %v3853_v40 = vld [vmem:[%s12218_s3 + $0x488] sm:$0xff] }
 0x395   :  { %13220 = vst [vmem:[#allocation93_spill] sm:$0xff] %v10062_v10  ;;  %13223 = vst [vmem:[#allocation18_spill] sm:$0xff] %v10070_v47  ;;  %v10076_v58 = vmax.f32 %v13226_v21, %v3184_v35  ;;  %v13232_v47 = vld [vmem:[#allocation155_spill] sm:$0xff]  ;;  %2886 = vrot.lane.b32.xlu0 %v2852_v53, %s6178_s27  ;;  %3230 = vrot.lane.b32.xlu1 %v10062_v10, %s6173_s15  ;;  %v2481_v12 = vmul.f32 %v9319_v26, %v8949_v61  ;;  %v13235_v21 = vld [vmem:[#allocation156_spill] sm:$0xff] }
 0x396   :  { %13224 = vst [vmem:[#allocation21_spill] sm:$0xff] %v10072_v22  ;;  %v10080_v34 = vmax.f32 %v13229_v29, %v3182_v1  ;;  %v13233_v22 = vld [vmem:[#allocation154_spill] sm:$0xff]  ;;  %v372_v35 = vadd.f32 %v349_v30, %v9449_v0  ;;  %v369_v1 = vadd.f32 %v346_v25, %v9469_v59  ;;  %v374_v28 = vadd.f32 %v13231_v37, %v9486_v9  ;;  %v13234_v31 = vld [vmem:[#allocation43_spill] sm:$0xff]  ;;  %v10116_v30 = vpop.permute.xlu0 %758  ;;  %v10118_v59 = vpop.permute.xlu1 %750  ;;  %v13247_v27 = vld [vmem:[#allocation117_spill] sm:$0xff] }
 0x397   :  { %13227 = vst [vmem:[#allocation19_spill] sm:$0xff] %v10076_v58  ;;  %v684_v33 = vsel %vm509_vm1, %v13233_v22, %v13232_v47  ;;  %v5780_v53 = vpack.c.bf16 %v3853_v40, %v3852_v55  ;;  %v373_v4 = vadd.f32 %v350_v14, %v13234_v31  ;;  %v685_v29 = vsel %vm509_vm1, %v13232_v47, %v13235_v21  ;;  %v13240_v37 = vld [vmem:[#allocation27_spill] sm:$0xff]  ;;  %v13241_v14 = vld [vmem:[#allocation26_spill] sm:$0xff]  ;;  %v13242_v55 = vld [vmem:[#allocation24_spill] sm:$0xff] }
 0x398   :  { %13230 = vst [vmem:[#allocation20_spill] sm:$0xff] %v10080_v34  ;;  %v686_v10 = vsel %vm509_vm1, %v13235_v21, %v13236_v16  ;;  %v683_v0 = vsel %vm509_vm1, %v13237_v8, %v13233_v22  ;;  %13238 = vst [vmem:[#allocation23_spill] sm:$0xff] %v10116_v30  ;;  %v707_v9 = vadd.f32 %v684_v33, %v370_v62  ;;  %v13243_v40 = vld [vmem:[#allocation111_spill] sm:$0xff]  ;;  %v13244_v8 = vld [vmem:[#allocation108_spill] sm:$0xff] }
 0x399   :  { %13239 = vst [vmem:[#allocation67_spill] sm:$0xff] %v10118_v59  ;;  %v687_v25 = vsel %vm509_vm1, %v13236_v16, %v13240_v37  ;;  %v1021_v47 = vsel %vm846_vm2, %v13242_v55, %v13241_v14  ;;  %v1022_v31 = vsel %vm846_vm2, %v13241_v14, %v13243_v40  ;;  %5781 = vmatprep.subr.bf16.mxu0 %v5780_v53  ;;  %v13245_v62 = vld [vmem:[#allocation110_spill] sm:$0xff] }
 0x39a   :  { %v1023_v21 = vsel %vm846_vm2, %v13243_v40, %v13244_v8  ;;  %v1020_v33 = vsel %vm846_vm2, %v13245_v62, %v13242_v55  ;;  %3232 = vrot.lane.b32.xlu0 %v10076_v58, %s6173_s15  ;;  %2521 = vrot.lane.b32.xlu1 %v2481_v12, %s6177_s25  ;;  %v2482_v16 = vmul.f32 %v9990_v42, %v8949_v61  ;;  %v13246_v22 = vld [vmem:[#allocation114_spill] sm:$0xff]  ;;  %v13248_v55 = vld [vmem:[#allocation116_spill] sm:$0xff]  ;;  %v10148_v58 = vpop.permute.xlu0 %748  ;;  %v10150_v12 = vpop.permute.xlu1 %1089 }
 0x39b   :  { %v708_v14 = vadd.f32 %v685_v29, %v371_v39  ;;  %v709_v53 = vadd.f32 %v686_v10, %v372_v35  ;;  %v706_v59 = vadd.f32 %v683_v0, %v369_v1  ;;  %v426_v45 = vsel %vm172_vm0, %v13247_v27, %v13246_v22  ;;  %13249 = vst [vmem:[#allocation102_spill] sm:$0xff] %v10150_v12  ;;  %v13250_v35 = vld [vmem:[#allocation119_spill] sm:$0xff] }
 0x39c   :  { %v710_v40 = vadd.f32 %v687_v25, %v373_v4  ;;  %v711_v38 = vadd.f32 %v13240_v37, %v374_v28  ;;  %v1044_v30 = vadd.f32 %v1021_v47, %v707_v9  ;;  %v427_v62 = vsel %vm172_vm0, %v13246_v22, %v13248_v55  ;;  %v13251_v29 = vld [vmem:[#allocation123_spill] sm:$0xff]  ;;  %v13252_v9 = vld [vmem:[#allocation125_spill] sm:$0xff] }
 0x39d   :  { %v1045_v61 = vadd.f32 %v1022_v31, %v708_v14  ;;  %v1046_v39 = vadd.f32 %v1023_v21, %v709_v53  ;;  %v1043_v10 = vadd.f32 %v1020_v33, %v706_v59  ;;  %v428_v1 = vsel %vm172_vm0, %v13248_v55, %v13250_v35  ;;  %v13253_v37 = vld [vmem:[#allocation39_spill] sm:$0xff]  ;;  %v13254_v47 = vld [vmem:[#allocation33_spill] sm:$0xff]  ;;  %v13258_v14 = vld [vmem:[#allocation48_spill] sm:$0xff] }
 0x39e   :  { %v448_v28 = vadd.f32 %v426_v45, %v9573_v17  ;;  %v1024_v0 = vsel %vm846_vm2, %v13244_v8, %v13251_v29  ;;  %v1358_v25 = vsel %vm1183_vm3, %v13253_v37, %v13252_v9  ;;  %2523 = vrot.lane.b32.xlu0 %v2482_v16, %s6177_s25  ;;  %3228 = vrot.lane.b32.xlu1 %v10080_v34, %s6173_s15  ;;  %v13255_v17 = vld [vmem:[#allocation52_spill] sm:$0xff]  ;;  %v13256_v22 = vld [vmem:[#allocation15_spill] sm:$0xff]  ;;  %v13260_v55 = vld [vmem:[#allocation14_spill] sm:$0xff] }
 0x39f   :  { %v449_v59 = vadd.f32 %v427_v62, %v9595_v44  ;;  %v1359_v31 = vsel %vm1183_vm3, %v13252_v9, %v13254_v47  ;;  %v1360_v45 = vsel %vm1183_vm3, %v13254_v47, %v13255_v17  ;;  %v425_v8 = vsel %vm172_vm0, %v13256_v22, %v13247_v27  ;;  %v13257_v33 = vld [vmem:[#allocation131_spill] sm:$0xff]  ;;  %v10186_v9 = vpop.permute.xlu0 %1091  ;;  %v10188_v47 = vpop.permute.xlu1 %1093 }
 0x3a0   :  { %v450_v21 = vadd.f32 %v428_v1, %v10011_v23  ;;  %v1357_v16 = vsel %vm1183_vm3, %v13257_v33, %v13253_v37  ;;  %v13259_v44 = vld [vmem:[#allocation99_spill] sm:$0xff]  ;;  %v764_v62 = vsel %vm509_vm1, %v13258_v14, %v13260_v55  ;;  %13261 = vst [vmem:[#allocation70_spill] sm:$0xff] %v10186_v9  ;;  %13262 = vst [vmem:[#allocation69_spill] sm:$0xff] %v10188_v47  ;;  %v13263_v1 = vld [vmem:[#allocation32_spill] sm:$0xff]  ;;  %v12548_v22 = vmax.f32 %v10049_v24, 0.0 }
 0x3a1   :  { %v763_v53 = vsel %vm509_vm1, %v13259_v44, %v13258_v14  ;;  %v1047_v4 = vadd.f32 %v1024_v0, %v710_v40  ;;  %v1048_v27 = vadd.f32 %v13251_v29, %v711_v38  ;;  %v1381_v23 = vadd.f32 %v1358_v25, %v1044_v30  ;;  %v13266_v0 = vld [vmem:[#allocation112_spill] sm:$0xff] }
 0x3a2   :  { %v765_v37 = vsel %vm509_vm1, %v13260_v55, %v13263_v1  ;;  %v1382_v33 = vadd.f32 %v1359_v31, %v1045_v61  ;;  %v1383_v34 = vadd.f32 %v1360_v45, %v1046_v39  ;;  %v447_v12 = vadd.f32 %v425_v8, %v10017_v7  ;;  %v13267_v39 = vld [vmem:[#allocation115_spill] sm:$0xff]  ;;  %v13268_v7 = vld [vmem:[#allocation118_spill] sm:$0xff]  ;;  %v13269_v45 = vld [vmem:[#allocation120_spill] sm:$0xff] }
 0x3a3   :  { %v13264_v14 = vmax.f32 %v10024_v60, 0.0  ;;  %v13265_v40 = vmax.f32 %v10027_v50, 0.0  ;;  %v1380_v38 = vadd.f32 %v1357_v16, %v1043_v10  ;;  %v785_v30 = vadd.f32 %v763_v53, %v448_v28  ;;  %v10214_v10 = vpop.permute.xlu1 %1087  ;;  %v13271_v28 = vld [vmem:[#allocation129_spill] sm:$0xff]  ;;  %v13273_v16 = vld [vmem:[#allocation127_spill] sm:$0xff] }
 0x3a4   :  { %v786_v29 = vadd.f32 %v764_v62, %v449_v59  ;;  %v1361_v25 = vsel %vm1183_vm3, %v13255_v17, %v13266_v0  ;;  %v787_v55 = vadd.f32 %v765_v37, %v450_v21  ;;  %v1385_v61 = vadd.f32 %v13266_v0, %v1048_v27  ;;  %13270 = vst [vmem:[#allocation64_spill] sm:$0xff] %v10214_v10  ;;  %v13272_v17 = vld [vmem:[#allocation12_spill] sm:$0xff]  ;;  %v13274_v62 = vld [vmem:[#allocation51_spill] sm:$0xff]  ;;  %v13276_v0 = vld [vmem:[#allocation17_spill] sm:$0xff] }
 0x3a5   :  { %3340 = vrot.lane.b32.xlu0 %v13264_v14, %s6171_s18  ;;  %3342 = vrot.lane.b32.xlu1 %v13265_v40, %s6171_s18  ;;  %v1695_v31 = vsel %vm1520_vm4, %v13268_v7, %v13267_v39  ;;  %v1696_v8 = vsel %vm1520_vm4, %v13267_v39, %v13269_v45  ;;  %v10212_v14 = vpop.permute.xlu0 %1095  ;;  %v1697_v59 = vsel %vm1520_vm4, %v13269_v45, %v13271_v28  ;;  %v13275_v27 = vld [vmem:[#allocation132_spill] sm:$0xff]  ;;  %v13277_v45 = vmax.f32 %v10046_v52, 0.0  ;;  %v13278_v40 = vld [vmem:[#allocation57_spill] sm:$0xff]  ;;  %v13279_v60 = vld [vmem:[#allocation63_spill] sm:$0xff] }
 0x3a6   :  { %v762_v21 = vsel %vm509_vm1, %v13272_v17, %v13259_v44  ;;  %v1694_v53 = vsel %vm1520_vm4, %v13273_v16, %v13268_v7  ;;  %v1100_v37 = vsel %vm846_vm2, %v13275_v27, %v13274_v62  ;;  %v1101_v39 = vsel %vm846_vm2, %v13274_v62, %v13276_v0  ;;  %v3884_v17 = vld [vmem:[%s12218_s3 + $0x580] sm:$0xff]  ;;  %v3885_v16 = vld [vmem:[%s12218_s3 + $0x588] sm:$0xff] }
 0x3a7   :  { %v2858_v44 = vmul.f32 %v9319_v26, %v9092_v43  ;;  %v2859_v7 = vmul.f32 %v9990_v42, %v9092_v43  ;;  %v1384_v62 = vadd.f32 %v1361_v25, %v1047_v4  ;;  %v5812_v52 = vpack.c.bf16 %v3885_v16, %v3884_v17  ;;  %v13280_v43 = vld [vmem:[#allocation55_spill] sm:$0xff]  ;;  %v10256_v47 = vpop.permute.xlu1 %1085 }
 0x3a8   :  { %v1719_v24 = vadd.f32 %v1696_v8, %v1382_v33  ;;  %v1720_v26 = vadd.f32 %v1697_v59, %v1383_v34  ;;  %v784_v50 = vadd.f32 %v762_v21, %v447_v12  ;;  %v2061_v42 = vsel %vm1865_vm5, %v13280_v43, %v13279_v60  ;;  %v13282_v12 = vld [vmem:[#allocation106_spill] sm:$0xff]  ;;  %v13283_v8 = vld [vmem:[#allocation164_spill] sm:$0xff]  ;;  %v13284_v59 = vld [vmem:[#allocation163_spill] sm:$0xff] }
 0x3a9   :  { %3344 = vrot.lane.b32.xlu0 %v13277_v45, %s6171_s18  ;;  %3338 = vrot.lane.b32.xlu1 %v12548_v22, %s6171_s18  ;;  %v1718_v45 = vadd.f32 %v1695_v31, %v1381_v23  ;;  %v1102_v22 = vsel %vm846_vm2, %v13276_v0, %v13278_v40  ;;  %v10254_v10 = vpop.permute.xlu0 %423  ;;  %v1717_v9 = vadd.f32 %v1694_v53, %v1380_v38  ;;  %v13281_v23 = vld [vmem:[#allocation74_spill] sm:$0xff]  ;;  %v12555_v33 = vmax.f32 %v10058_v57, 0.0 }
 0x3aa   :  { %v1122_v1 = vadd.f32 %v1100_v37, %v785_v30  ;;  %v1123_v4 = vadd.f32 %v1101_v39, %v786_v29  ;;  %v2062_v25 = vsel %vm1865_vm5, %v13279_v60, %v13281_v23  ;;  %5813 = vmatprep.subr.bf16.mxu1 %v5812_v52  ;;  %v1124_v34 = vadd.f32 %v1102_v22, %v787_v55  ;;  %v13285_v30 = vld [vmem:[#allocation45_spill] sm:$0xff]  ;;  %v13288_v37 = vld [vmem:[#allocation68_spill] sm:$0xff] }
 0x3ab   :  { %v1698_v31 = vsel %vm1520_vm4, %v13271_v28, %v13282_v12  ;;  %v2438_v21 = vsel %vm2242_vm6, %v13284_v59, %v13283_v8  ;;  %v2085_v38 = vadd.f32 %v2061_v42, %v1718_v45  ;;  %v2063_v60 = vsel %vm1865_vm5, %v13281_v23, %v13285_v30  ;;  %v13286_v52 = vld [vmem:[#allocation37_spill] sm:$0xff]  ;;  %v13289_v39 = vld [vmem:[#allocation148_spill] sm:$0xff]  ;;  %v10288_v16 = vpop.permute.xlu1 %1428  ;;  %v13291_v42 = vld [vmem:[#allocation175_spill] sm:$0xff] }
 0x3ac   :  { %v1099_v22 = vsel %vm846_vm2, %v13286_v52, %v13275_v27  ;;  %v13287_v29 = vld [vmem:[#allocation165_spill] sm:$0xff]  ;;  %v1722_v28 = vadd.f32 %v13282_v12, %v1385_v61  ;;  %v2086_v53 = vadd.f32 %v2062_v25, %v1719_v24  ;;  %v2060_v0 = vsel %vm1865_vm5, %v13288_v37, %v13280_v43  ;;  %v13292_v61 = vld [vmem:[#allocation44_spill] sm:$0xff]  ;;  %v13297_v37 = vld [vmem:[#allocation166_spill] sm:$0xff] }
 0x3ad   :  { %2898 = vrot.lane.b32.xlu0 %v2858_v44, %s6178_s27  ;;  %2900 = vrot.lane.b32.xlu1 %v2859_v7, %s6178_s27  ;;  %v2439_v55 = vsel %vm2242_vm6, %v13283_v8, %v13287_v29  ;;  %v13290_v44 = vld [vmem:[#allocation174_spill] sm:$0xff]  ;;  %v10286_v17 = vpop.permute.xlu0 %1426  ;;  %v1721_v27 = vadd.f32 %v1698_v31, %v1384_v62  ;;  %v2462_v45 = vadd.f32 %v2438_v21, %v2085_v38  ;;  %v13293_v24 = vld [vmem:[#allocation49_spill] sm:$0xff]  ;;  %v13294_v52 = vmax.f32 %v10052_v32, 0.0  ;;  %v13295_v31 = vld [vmem:[#allocation159_spill] sm:$0xff]  ;;  %s10405_s27 = sld [smem:[#allocation6 + $0x3]] }
 0x3ae   :  { %v2815_v7 = vsel %vm2619_vm7, %v13290_v44, %v13289_v39  ;;  %v2816_v23 = vsel %vm2619_vm7, %v13289_v39, %v13291_v42  ;;  %v3188_v25 = vsel %vm172_vm0, %v13293_v24, %v13292_v61  ;;  %v2087_v12 = vadd.f32 %v2063_v60, %v1720_v26  ;;  %v13296_v21 = vld [vmem:[#allocation92_spill] sm:$0xff]  ;;  %v13303_v32 = vld [vmem:[#allocation161_spill] sm:$0xff] }
 0x3af   :  { %v1121_v43 = vadd.f32 %v1099_v22, %v784_v50  ;;  %v2463_v8 = vadd.f32 %v2439_v55, %v2086_v53  ;;  %v2084_v62 = vadd.f32 %v2060_v0, %v1717_v9  ;;  %v1437_v38 = vsel %vm1183_vm3, %v13296_v21, %v13295_v31  ;;  %v13298_v50 = vld [vmem:[#allocation160_spill] sm:$0xff]  ;;  %v10320_v57 = vpop.permute.xlu1 %1432 }
 0x3b0   :  { %v2440_v39 = vsel %vm2242_vm6, %v13287_v29, %v13297_v37  ;;  %v2839_v26 = vadd.f32 %v2815_v7, %v2462_v45  ;;  %v1438_v60 = vsel %vm1183_vm3, %v13295_v31, %v13298_v50  ;;  %v13299_v22 = vld [vmem:[#allocation168_spill] sm:$0xff]  ;;  %v1439_v29 = vsel %vm1183_vm3, %v13298_v50, %v13303_v32  ;;  %v13305_v31 = vld [vmem:[#allocation73_spill] sm:$0xff] }
 0x3b1   :  { %3346 = vrot.lane.b32.xlu0 %v13294_v52, %s6171_s18  ;;  %3348 = vrot.lane.b32.xlu1 %v12555_v33, %s6171_s18  ;;  %v2437_v55 = vsel %vm2242_vm6, %v13299_v22, %v13284_v59  ;;  %v2840_v53 = vadd.f32 %v2816_v23, %v2463_v8  ;;  %v13300_v52 = vld [vmem:[#allocation122_spill] sm:$0xff]  ;;  %v10318_v33 = vpop.permute.xlu0 %1430  ;;  %v13304_v7 = vld [vmem:[#allocation176_spill] sm:$0xff]  ;;  %v3189_v59 = vsel %vm172_vm0, %v13292_v61, %v13305_v31 }
 0x3b2   :  { %v13301_v9 = vmax.f32 %v13300_v52, 0.0  ;;  %v2817_v45 = vsel %vm2619_vm7, %v13291_v42, %v13304_v7  ;;  %v3187_v23 = vsel %vm172_vm0, %v9667_v41, %v13293_v24  ;;  %v13307_v22 = vld [vmem:[#allocation36_spill] sm:$0xff]  ;;  %v2464_v52 = vadd.f32 %v2440_v39, %v2087_v12  ;;  %v13309_v41 = vld [vmem:[#allocation178_spill] sm:$0xff] }
 0x3b3   :  { %v1459_v42 = vadd.f32 %v1437_v38, %v1122_v1  ;;  %v2461_v61 = vadd.f32 %v2437_v55, %v2084_v62  ;;  %v10351_v24 = vadd.f32 %v9960_v19, %v2840_v53  ;;  %v13311_v12 = vld [vmem:[#allocation126_spill] sm:$0xff]  ;;  %v10363_v62 = vpop.permute.xlu1 %760  ;;  %v1460_v38 = vadd.f32 %v1438_v60, %v1123_v4  ;;  %v13321_v4 = vld [vmem:[#allocation135_spill] sm:$0xff] }
 0x3b4   :  { %v10316_v0 = vmax.f32 %v13301_v9, %v3188_v25  ;;  %v13306_v25 = vld [vmem:[#allocation162_spill] sm:$0xff]  ;;  %v10345_v9 = vadd.f32 %v9960_v19, %v2839_v26  ;;  %v13312_v39 = vmax.f32 %v13311_v12, 0.0  ;;  %13317 = vst [vmem:[#allocation61_spill] sm:$0xff] %v10363_v62  ;;  %v1461_v26 = vadd.f32 %v1439_v29, %v1124_v34  ;;  %v13322_v34 = vld [vmem:[#allocation169_spill] sm:$0xff] }
 0x3b5   :  { %v2064_v8 = vsel %vm1865_vm5, %v13285_v30, %v13306_v25  ;;  %v2065_v50 = vsel %vm1865_vm5, %v13306_v25, %v13307_v22  ;;  %3068 = vrot.lane.b32.xlu0 %v10005_v20, %s6173_s15  ;;  %v2814_v30 = vsel %vm2619_vm7, %v13309_v41, %v13290_v44  ;;  %13310 = vst [vmem:[#allocation80_spill] sm:$0xff] %v10351_v24  ;;  %v13314_v20 = vld [vmem:[#allocation42_spill] sm:$0xff]  ;;  %v10361_v1 = vpop.permute.xlu0 %1424  ;;  %v13318_v41 = vld [vmem:[#allocation172_spill] sm:$0xff] }
 0x3b6   :  { %13302 = vst [vmem:[#allocation121_spill] sm:$0xff] %v10316_v0  ;;  %3242 = vrot.lane.b32.xlu1 %v10316_v0, %s6173_s15  ;;  %13308 = vst [vmem:[#allocation128_spill] sm:$0xff] %v10345_v9  ;;  %v2841_v25 = vadd.f32 %v2817_v45, %v2464_v52  ;;  %v10355_v22 = vmax.f32 %v13312_v39, %v3189_v59  ;;  %v13315_v32 = vmax.f32 %v13314_v20, 0.0  ;;  %v13319_v45 = vld [vmem:[#allocation173_spill] sm:$0xff]  ;;  %v13320_v20 = vld [vmem:[#allocation167_spill] sm:$0xff]  ;;  %v12560_v60 = vmax.f32 %v10345_v9, 0.0 }
 0x3b7   :  { %v2088_v55 = vadd.f32 %v2064_v8, %v1721_v27  ;;  %v2089_v44 = vadd.f32 %v2065_v50, %v1722_v28  ;;  %v2441_v53 = vsel %vm2242_vm6, %v13297_v37, %v13318_v41  ;;  %v2442_v59 = vsel %vm2242_vm6, %v13318_v41, %v13319_v45  ;;  %v13323_v27 = vld [vmem:[#allocation170_spill] sm:$0xff]  ;;  %v13325_v8 = vld [vmem:[#allocation29_spill] sm:$0xff]  ;;  %v10397_v12 = vpop.permute.xlu1 %1763  ;;  %v13327_v45 = vld [vmem:[#allocation180_spill] sm:$0xff] }
 0x3b8   :  { %13313 = vst [vmem:[#allocation75_spill] sm:$0xff] %v10355_v22  ;;  %v10359_v0 = vmax.f32 %v13315_v32, %v3187_v23  ;;  %v2838_v52 = vadd.f32 %v2814_v30, %v2461_v61  ;;  %v1436_v32 = vsel %vm1183_vm3, %v13320_v20, %v13296_v21  ;;  %v1774_v28 = vsel %vm1520_vm4, %v13322_v34, %v13321_v4  ;;  %v13326_v21 = vld [vmem:[#allocation71_spill] sm:$0xff] }
 0x3b9   :  { %3244 = vrot.lane.b32.xlu0 %v10355_v22, %s6173_s15  ;;  %v1775_v37 = vsel %vm1520_vm4, %v13321_v4, %v13323_v27  ;;  %v10387_v23 = vadd.f32 %v9960_v19, %v2841_v25  ;;  %v2818_v50 = vsel %vm2619_vm7, %v13304_v7, %v13325_v8  ;;  %v2819_v61 = vsel %vm2619_vm7, %v13325_v8, %v13326_v21  ;;  %v10395_v30 = vpop.permute.xlu0 %1422  ;;  %v13328_v20 = vld [vmem:[#allocation179_spill] sm:$0xff] }
 0x3ba   :  { %13316 = vst [vmem:[#allocation58_spill] sm:$0xff] %v10359_v0  ;;  %3240 = vrot.lane.b32.xlu1 %v10359_v0, %s6173_s15  ;;  %v2465_v39 = vadd.f32 %v2441_v53, %v2088_v55  ;;  %v2466_v41 = vadd.f32 %v2442_v59, %v2089_v44  ;;  %v2149_v4 = vsel %vm1865_vm5, %v13328_v20, %v13327_v45  ;;  %v13330_v55 = vmax.f32 %v10351_v24, 0.0  ;;  %v13331_v44 = vld [vmem:[#allocation171_spill] sm:$0xff]  ;;  %v13335_v24 = vld [vmem:[#allocation181_spill] sm:$0xff] }
 0x3bb   :  { %13324 = vst [vmem:[#allocation77_spill] sm:$0xff] %v10387_v23  ;;  %v3185_v25 = vsel %vm172_vm0, %v13209_v63, %v9724_v2  ;;  %v1458_v7 = vadd.f32 %v1436_v32, %v1121_v43  ;;  %v1796_v29 = vadd.f32 %v1774_v28, %v1459_v42  ;;  %v10408_v8 = vadd.f32 %v9960_v19, %v2838_v52  ;;  %v13332_v28 = vld [vmem:[#allocation98_spill] sm:$0xff] }
 0x3bc   :  { %v1776_v53 = vsel %vm1520_vm4, %v13323_v27, %v13331_v44  ;;  %v2842_v63 = vadd.f32 %v2818_v50, %v2465_v39  ;;  %v2843_v59 = vadd.f32 %v2819_v61, %v2466_v41  ;;  %v2526_v43 = vsel %vm2242_vm6, %v9513_v46, %v9515_v6  ;;  %v13336_v50 = vld [vmem:[#allocation28_spill] sm:$0xff]  ;;  %v13337_v39 = vld [vmem:[#allocation177_spill] sm:$0xff] }
 0x3bd   :  { %13329 = vst [vmem:[#allocation82_spill] sm:$0xff] %v10408_v8  ;;  %3352 = vrot.lane.b32.xlu0 %v12560_v60, %s6171_s18  ;;  %v1797_v42 = vadd.f32 %v1775_v37, %v1460_v38  ;;  %v12569_v52 = vmax.f32 %v10387_v23, 0.0  ;;  %v2173_v32 = vadd.f32 %v2149_v4, %v1796_v29  ;;  %v13333_v21 = vmax.f32 %v13332_v28, 0.0  ;;  %v10427_v22 = vpop.permute.xlu0 %1765  ;;  %v13367_v23 = vld [vmem:[#allocation16_spill] sm:$0xff] }
 0x3be   :  { %3354 = vrot.lane.b32.xlu1 %v13330_v55, %s6171_s18  ;;  %v10429_v55 = vpop.permute.xlu1 %1767  ;;  %v2150_v27 = vsel %vm1865_vm5, %v13327_v45, %v13335_v24  ;;  %v2151_v61 = vsel %vm1865_vm5, %v13335_v24, %v13336_v50  ;;  %v3186_v38 = vsel %vm172_vm0, %v9724_v2, %v9726_v54  ;;  %v2903_v37 = vsel %vm2619_vm7, %v9775_v48, %v9777_v51 }
 0x3bf   :  { %v10425_v60 = vmax.f32 %v13333_v21, %v3185_v25  ;;  %v1798_v29 = vadd.f32 %v1776_v53, %v1461_v26  ;;  %v1773_v41 = vsel %vm1520_vm4, %v13337_v39, %v13322_v34  ;;  %v12570_v45 = vmax.f32 %v10408_v8, 0.0  ;;  %v6113_v8 = vld [vmem:[%s12215_s0 + $0x38] sm:$0xff] }
 0x3c0   :  { %v2550_v4 = vadd.f32 %v2526_v43, %v2173_v32  ;;  %v10453_v2 = vadd.f32 %v9960_v19, %v2842_v63  ;;  %v10456_v24 = vadd.f32 %v9960_v19, %v2843_v59  ;;  %v2527_v26 = vsel %vm2242_vm6, %v9515_v6, %v9560_v5  ;;  %v13340_v43 = vld [vmem:[#allocation124_spill] sm:$0xff]  ;;  %v13343_v19 = vld [vmem:[#allocation66_spill] sm:$0xff] }
 0x3c1   :  { %13334 = vst [vmem:[#allocation79_spill] sm:$0xff] %v10425_v60  ;;  %3356 = vrot.lane.b32.xlu0 %v12569_v52, %s6171_s18  ;;  %v2528_v34 = vsel %vm2242_vm6, %v9560_v5, %v9562_v11  ;;  %v2174_v25 = vadd.f32 %v2150_v27, %v1797_v42  ;;  %v2175_v53 = vadd.f32 %v2151_v61, %v1798_v29  ;;  %v13341_v32 = vmax.f32 %v13340_v43, 0.0  ;;  %v10468_v63 = vpop.permute.xlu0 %1769 }
 0x3c2   :  { %3234 = vrot.lane.b32.xlu1 %v10425_v60, %s6173_s15  ;;  %13338 = vst [vmem:[#allocation88_spill] sm:$0xff] %v10453_v2  ;;  %13339 = vst [vmem:[#allocation34_spill] sm:$0xff] %v10456_v24  ;;  %v2927_v21 = vadd.f32 %v2903_v37, %v2550_v4  ;;  %v10470_v39 = vpop.permute.xlu1 %1761  ;;  %v2148_v59 = vsel %vm1865_vm5, %v13343_v19, %v13328_v20  ;;  %v10476_v6 = vstv %s10405_s27  ;;  %v12568_v20 = vmax.f32 %v10453_v2, 0.0  ;;  %v13366_v2 = vld [vmem:[#allocation59_spill] sm:$0xff]  ;;  %v6114_v60 = vld [vmem:[%s12215_s0 + $0x20] sm:$0xff] }
 0x3c3   :  { %v10466_v28 = vmax.f32 %v13341_v32, %v3186_v38  ;;  %13344 = vst [vmem:[#allocation89_spill] sm:$0xff] %v10476_v6  ;;  %v2904_v5 = vsel %vm2619_vm7, %v9777_v51, %v9823_v49  ;;  %v2905_v42 = vsel %vm2619_vm7, %v9823_v49, %v9825_v15  ;;  %v1795_v27 = vadd.f32 %v1773_v41, %v1458_v7  ;;  %v6115_v15 = vld [vmem:[%s12215_s0 + $0x28] sm:$0xff] }
 0x3c4   :  { %v2551_v61 = vadd.f32 %v2527_v26, %v2174_v25  ;;  %v2552_v38 = vadd.f32 %v2528_v34, %v2175_v53  ;;  %v12564_v37 = vmax.f32 %v10456_v24, 0.0  ;;  %v2525_v51 = vsel %vm2242_vm6, %v9669_v36, %v9513_v46  ;;  %v13348_v46 = vld [vmem:[#allocation38_spill] sm:$0xff] }
 0x3c5   :  { %13342 = vst [vmem:[#allocation35_spill] sm:$0xff] %v10466_v28  ;;  %3236 = vrot.lane.b32.xlu0 %v10466_v28, %s6173_s15  ;;  %v2172_v29 = vadd.f32 %v2148_v59, %v1795_v27  ;;  %v10495_v49 = vadd.f32 %v10476_v6, %v2927_v21  ;;  %v10497_v4 = vpop.permute.xlu0 %1097  ;;  %v2902_v34 = vsel %vm2619_vm7, %v9877_v13, %v9775_v48  ;;  %v13349_v36 = vmax.f32 %v13348_v46, 0.0 }
 0x3c6   :  { %3350 = vrot.lane.b32.xlu1 %v12570_v45, %s6171_s18  ;;  %v2928_v7 = vadd.f32 %v2904_v5, %v2551_v61  ;;  %v2929_v41 = vadd.f32 %v2905_v42, %v2552_v38  ;;  %13346 = vst [vmem:[#allocation103_spill] sm:$0xff] %v10497_v4  ;;  %v10499_v26 = vpop.permute.xlu1 %1759 }
 0x3c7   :  { %13345 = vst [vmem:[#allocation90_spill] sm:$0xff] %v10495_v49  ;;  %13347 = vst [vmem:[#allocation91_spill] sm:$0xff] %v10499_v26  ;;  %v2549_v25 = vadd.f32 %v2525_v51, %v2172_v29  ;;  %v10513_v53 = vmax.f32 %v13349_v36, %v9726_v54  ;;  %v12567_v43 = vmax.f32 %v10495_v49, 0.0 }
 0x3c8   :  { %v10517_v32 = vadd.f32 %v10476_v6, %v2928_v7  ;;  %v10520_v48 = vadd.f32 %v10476_v6, %v2929_v41 }
 0x3c9   :  { %3358 = vrot.lane.b32.xlu0 %v12568_v20, %s6171_s18  ;;  %13350 = vst [vmem:[#allocation104_spill] sm:$0xff] %v10513_v53  ;;  %v2926_v13 = vadd.f32 %v2902_v34, %v2549_v25  ;;  %v10522_v21 = vpop.permute.xlu0 %2136  ;;  %v13355_v34 = vld [vmem:[#allocation83_spill] sm:$0xff] }
 0x3ca   :  { %3360 = vrot.lane.b32.xlu1 %v12564_v37, %s6171_s18  ;;  %13351 = vst [vmem:[#allocation101_spill] sm:$0xff] %v10517_v32  ;;  %13352 = vst [vmem:[#allocation30_spill] sm:$0xff] %v10520_v48  ;;  %v10524_v19 = vpop.permute.xlu1 %2138  ;;  %v12566_v54 = vmax.f32 %v10517_v32, 0.0  ;;  %v12563_v59 = vmax.f32 %v10520_v48, 0.0  ;;  %v13360_v48 = vld [vmem:[#allocation84_spill] sm:$0xff] }
 0x3cb   :  { %v10534_v5 = vadd.f32 %v10476_v6, %v2926_v13 }
 0x3cd   :  { %3238 = vrot.lane.b32.xlu0 %v10513_v53, %s6173_s15  ;;  %13353 = vst [vmem:[#allocation41_spill] sm:$0xff] %v10534_v5  ;;  %v10536_v42 = vpop.permute.xlu0 %2140  ;;  %v12565_v61 = vmax.f32 %v10534_v5, 0.0  ;;  %v13361_v5 = vld [vmem:[#allocation86_spill] sm:$0xff] }
 0x3ce   :  { %3520 = vrot.lane.b32.xlu1 %v12567_v43, %s6171_s18  ;;  %v10538_v27 = vpop.permute.xlu1 %2142 }
 0x3d1   :  { %3522 = vrot.lane.b32.xlu0 %v12566_v54, %s6171_s18  ;;  %v10547_v38 = vpop.permute.xlu0 %2134 }
 0x3d2   :  { %3524 = vrot.lane.b32.xlu1 %v12563_v59, %s6171_s18  ;;  %v3061_v51 = vpop.permute.xlu1 %3060 }
 0x3d5   :  { %3518 = vrot.lane.b32.xlu0 %v12565_v61, %s6171_s18  ;;  %v3063_v29 = vpop.permute.xlu0 %3062 }
 0x3d6   :  { %v10552_v7 = vpop.permute.xlu1 %1434  ;;  %v3076_v41 = vsel %vm846_vm2, %v3061_v51, %v3063_v29 }
 0x3d7   :  { %13354 = vst [vmem:[#allocation46_spill] sm:$0xff] %v10552_v7  ;;  %v3099_v25 = vmax.f32 %v13355_v34, %v3076_v41 }
 0x3d9   :  { %v10556_v46 = vpop.permute.xlu0 %2130  ;;  %4168 = vmatprep.mubr.f32.mxu0 %v3099_v25 }
 0x3da   :  { %13356 = vst [vmem:[#allocation40_spill] sm:$0xff] %v10556_v46  ;;  %v2133_v36 = vpop.permute.xlu1 %2132 }
 0x3db   :  { %v10560_v13 = vsel %vm1865_vm5, %v10556_v46, %v2133_v36 }
 0x3dc   :  { %13357 = vst [vmem:[#allocation107_spill] sm:$0xff] %v10560_v13  ;;  %v115_v13 = vmul.f32 %v6115_v15, %v9524_v18  ;;  %v13369_v15 = vld [vmem:[#allocation25_spill] sm:$0xff] }
 0x3dd   :  { %v10562_v59 = vpop.permute.xlu0 %2513 }
 0x3de   :  { %v10564_v37 = vpop.permute.xlu1 %2515 }
 0x3e1   :  { %v10566_v61 = vpop.permute.xlu0 %2517 }
 0x3e2   :  { %v10568_v54 = vpop.permute.xlu1 %2519 }
 0x3e5   :  { %v3059_v43 = vpop.permute.xlu0 %3058 }
 0x3e6   :  { %v10570_v20 = vpop.permute.xlu1 %2511  ;;  %v3075_v41 = vsel %vm846_vm2, %v3059_v43, %v3061_v51  ;;  %v6109_v51 = vld [vmem:[%s12215_s0 + $0x58] sm:$0xff] }
 0x3e7   :  { %13358 = vst [vmem:[#allocation109_spill] sm:$0xff] %v10570_v20  ;;  %v3098_v34 = vmax.f32 %v9611_v56, %v3075_v41  ;;  %v13380_v20 = vld [vmem:[#allocation21_spill] sm:$0xff] }
 0x3e9   :  { %v3065_v25 = vpop.permute.xlu0 %3064  ;;  %4169 = vmatmul.mubr.f32.gmra.mrb[2].mxu0 %v3098_v34 }
 0x3ea   :  { %v10574_v52 = vpop.permute.xlu1 %3066  ;;  %v3077_v36 = vsel %vm846_vm2, %v3063_v29, %v3065_v25  ;;  %v120_v29 = vmul.f32 %v6109_v51, %v9524_v18  ;;  %v13365_v51 = vld [vmem:[#allocation23_spill] sm:$0xff] }
 0x3eb   :  { %13359 = vst [vmem:[#allocation47_spill] sm:$0xff] %v10574_v52  ;;  %v3078_v45 = vsel %vm846_vm2, %v3065_v25, %v10574_v52  ;;  %v3100_v24 = vmax.f32 %v13360_v48, %v3077_v36  ;;  %v6112_v25 = vld [vmem:[%s12215_s0 + $0x50] sm:$0xff]  ;;  %v771_v53 = vsel %vm509_vm1, %v13365_v51, %v10363_v62 }
 0x3ec   :  { %v3101_v32 = vmax.f32 %v13361_v5, %v3078_v45  ;;  %v434_v45 = vsel %vm172_vm0, %v9971_v3, %v10254_v10  ;;  %v6111_v5 = vld [vmem:[%s12215_s0 + $0x48] sm:$0xff]  ;;  %v119_v36 = vmul.f32 %v6112_v25, %v9524_v18  ;;  %v114_v25 = vmul.f32 %v6114_v60, %v9524_v18 }
 0x3ed   :  { %v10581_v49 = vpop.permute.xlu0 %1771  ;;  %v118_v34 = vmul.f32 %v6111_v5, %v9524_v18  ;;  %v116_v5 = vmul.f32 %v6113_v8, %v9524_v18  ;;  %v457_v9 = vadd.f32 %v434_v45, %v120_v29  ;;  %v6116_v8 = vld [vmem:[%s12215_s0 + $0x60] sm:$0xff]  ;;  %v1108_v60 = vsel %vm846_vm2, %v10212_v14, %v10497_v4 }
 0x3ee   :  { %13362 = vst [vmem:[#allocation31_spill] sm:$0xff] %v10581_v49  ;;  %v10583_v28 = vpop.permute.xlu1 %2507  ;;  %4243 = vmatprep.mubr.f32.mxu1 %v3101_v32  ;;  %v13368_v45 = vld [vmem:[#allocation54_spill] sm:$0xff] }
 0x3ef   :  { %13363 = vst [vmem:[#allocation133_spill] sm:$0xff] %v10583_v28  ;;  %4244 = vmatmul.mubr.f32.gmra.mrb[2].mxu1 %v3100_v24  ;;  %v6110_v24 = vld [vmem:[%s12215_s0 + $0x40] sm:$0xff]  ;;  %v432_v62 = vsel %vm172_vm0, %v13366_v2, %v13368_v45  ;;  %v794_v11 = vadd.f32 %v771_v53, %v457_v9  ;;  %v13370_v28 = vmax.f32 %v13369_v15, 0.0 }
 0x3f0   :  { %v117_v32 = vmul.f32 %v6110_v24, %v9524_v18  ;;  %v431_v24 = vsel %vm172_vm0, %v13367_v23, %v13366_v2  ;;  %v13373_v9 = vld [vmem:[#allocation62_spill] sm:$0xff] }
 0x3f1   :  { %v10585_v56 = vpop.permute.xlu0 %2509  ;;  %v13374_v53 = vld [vmem:[#allocation18_spill] sm:$0xff] }
 0x3f2   :  { %13364 = vst [vmem:[#allocation134_spill] sm:$0xff] %v10585_v56  ;;  %v10587_v43 = vpop.permute.xlu1 %2890  ;;  %v10636_v56 = vmul.f32 %v6116_v8, %v9524_v18  ;;  %v454_v46 = vadd.f32 %v431_v24, %v117_v32  ;;  %v433_v18 = vsel %vm172_vm0, %v13368_v45, %v9971_v3  ;;  %v1445_v8 = vsel %vm1183_vm3, %v10320_v57, %v10552_v7  ;;  %v13377_v7 = vld [vmem:[#allocation97_spill] sm:$0xff] }
 0x3f3   :  { %v1131_v24 = vadd.f32 %v1108_v60, %v794_v11  ;;  %v455_v45 = vadd.f32 %v432_v62, %v118_v34  ;;  %v456_v6 = vadd.f32 %v433_v18, %v119_v36  ;;  %v769_v11 = vsel %vm509_vm1, %v13374_v53, %v13380_v20  ;;  %v13386_v18 = vld [vmem:[#allocation96_spill] sm:$0xff] }
 0x3f5   :  { %v10593_v41 = vpop.permute.xlu0 %2892  ;;  %v1468_v60 = vadd.f32 %v1445_v8, %v1131_v24  ;;  %v13388_v24 = vld [vmem:[#allocation32_spill] sm:$0xff] }
 0x3f6   :  { %v10595_v48 = vpop.permute.xlu1 %2894 }
 0x3f9   :  { %v10626_v0 = vpop.permute.xlu0 %2896 }
 0x3fa   :  { %v3179_v52 = vpop.permute.xlu1 %3178 }
 0x3fb   :  { %v3190_v29 = vsel %vm172_vm0, %v13305_v31, %v3179_v52  ;;  %v13372_v31 = vld [vmem:[#allocation56_spill] sm:$0xff] }
 0x3fc   :  { %v10648_v50 = vmax.f32 %v13370_v28, %v3190_v29  ;;  %v430_v2 = vsel %vm172_vm0, %v13372_v31, %v13367_v23  ;;  %v429_v28 = vsel %vm172_vm0, %v13250_v35, %v13373_v9  ;;  %v13375_v29 = vld [vmem:[#allocation72_spill] sm:$0xff]  ;;  %v1782_v23 = vsel %vm1520_vm4, %v10468_v63, %v10581_v49 }
 0x3fd   :  { %v768_v32 = vsel %vm509_vm1, %v13375_v29, %v13374_v53  ;;  %v3181_v15 = vpop.permute.xlu0 %3180  ;;  %v13378_v35 = vmax.f32 %v13377_v7, 0.0  ;;  %v453_v62 = vadd.f32 %v430_v2, %v116_v5  ;;  %v451_v34 = vadd.f32 %v429_v28, %v114_v25  ;;  %v10693_v7 = vld [vmem:[%s12218_s3 + $0x408] sm:$0xff]  ;;  %v10710_v25 = vld [vmem:[%s12218_s3 + $0x490] sm:$0xff]  ;;  %v13387_v2 = vld [vmem:[#allocation113_spill] sm:$0xff] }
 0x3fe   :  { %13371 = vst [vmem:[#allocation137_spill] sm:$0xff] %v10648_v50  ;;  %3246 = vrot.lane.b32.xlu1 %v10648_v50, %s6173_s15  ;;  %v10667_v3 = vpop.permute.xlu1 %2888  ;;  %v3191_v31 = vsel %vm172_vm0, %v3179_v52, %v3181_v15  ;;  %v13381_v50 = vld [vmem:[#allocation105_spill] sm:$0xff]  ;;  %v452_v49 = vadd.f32 %v13373_v9, %v115_v13  ;;  %v791_v26 = vadd.f32 %v768_v32, %v454_v46  ;;  %v10688_v52 = vld [vmem:[%s12218_s3 + $0x400] sm:$0xff]  ;;  %v10728_v53 = vld [vmem:[%s12218_s3 + $0x410] sm:$0xff] }
 0x3ff   :  { %13376 = vst [vmem:[#allocation136_spill] sm:$0xff] %v10667_v3  ;;  %v10675_v4 = vmax.f32 %v13378_v35, %v3181_v15  ;;  %v13382_v44 = vmax.f32 %v13381_v50, 0.0  ;;  %v13384_v50 = vld [vmem:[#allocation67_spill] sm:$0xff]  ;;  %v1805_v13 = vadd.f32 %v1782_v23, %v1468_v60  ;;  %v10738_v32 = vld [vmem:[%s12218_s3 + $0x4a0] sm:$0xff]  ;;  %v766_v15 = vsel %vm509_vm1, %v13388_v24, %v10148_v58  ;;  %v13394_v24 = vld [vmem:[#allocation69_spill] sm:$0xff] }
 0x400   :  { %v767_v36 = vsel %vm509_vm1, %v13384_v50, %v13375_v29  ;;  %v10733_v29 = vld [vmem:[%s12218_s3 + $0x418] sm:$0xff]  ;;  %v10757_v60 = vld [vmem:[%s12218_s3 + $0x420] sm:$0xff]  ;;  %v10762_v50 = vld [vmem:[%s12218_s3 + $0x428] sm:$0xff] }
 0x401   :  { %13379 = vst [vmem:[#allocation138_spill] sm:$0xff] %v10675_v4  ;;  %v10682_v3 = vmax.f32 %v13382_v44, %v3191_v31  ;;  %v770_v44 = vsel %vm509_vm1, %v13380_v20, %v13365_v51  ;;  %v3057_v46 = vpop.permute.xlu0 %3056  ;;  %v10715_v20 = vld [vmem:[%s12218_s3 + $0x498] sm:$0xff]  ;;  %v792_v51 = vadd.f32 %v769_v11, %v455_v45  ;;  %v13389_v45 = vld [vmem:[#allocation22_spill] sm:$0xff]  ;;  %v10752_v11 = vld [vmem:[%s12218_s3 + $0x4a8] sm:$0xff] }
 0x402   :  { %3250 = vrot.lane.b32.xlu1 %v10675_v4, %s6173_s15  ;;  %v10705_v5 = vpop.permute.xlu1 %2144  ;;  %v10719_v8 = vsel %vm846_vm2, %v13386_v18, %v3057_v46  ;;  %v3097_v9 = vmax.f32 %v13387_v2, %v3057_v46  ;;  %13390 = vst [vmem:[#allocation141_spill] sm:$0xff] %v10757_v60  ;;  %13391 = vst [vmem:[#allocation142_spill] sm:$0xff] %v10762_v50  ;;  %v790_v46 = vadd.f32 %v767_v36, %v453_v62  ;;  %v13392_v18 = vld [vmem:[#allocation70_spill] sm:$0xff]  ;;  %v10774_v23 = vld [vmem:[%s12218_s3 + $0x4b0] sm:$0xff]  ;;  %v12599_v36 = vmov 0.0  }
 0x403   :  { %13383 = vst [vmem:[#allocation139_spill] sm:$0xff] %v10682_v3  ;;  %3248 = vrot.lane.b32.xlu0 %v10682_v3, %s6173_s15  ;;  %13385 = vst [vmem:[#allocation140_spill] sm:$0xff] %v10705_v5  ;;  %v2158_v28 = vsel %vm1865_vm5, %v10538_v27, %v10705_v5  ;;  %v13393_v2 = vld [vmem:[#allocation102_spill] sm:$0xff]  ;;  %v1106_v35 = vsel %vm846_vm2, %v13392_v18, %v13394_v24  ;;  %v13396_v62 = vld [vmem:[#allocation64_spill] sm:$0xff]  ;;  %v1442_v3 = vsel %vm1183_vm3, %v10286_v17, %v10288_v16 }
 0x404   :  { %v10745_v31 = vadd.f32 %v2158_v28, %v1805_v13  ;;  %v793_v13 = vadd.f32 %v770_v44, %v456_v6  ;;  %v1105_v28 = vsel %vm846_vm2, %v13393_v2, %v13392_v18  ;;  %3110 = vst.msk [vmem:[#allocation2 + $0x28] sm:$0xff] %vm3109_vm8, %v3097_v9  ;;  %13395 = vst [vmem:[#allocation60_spill] sm:$0xff] %v10774_v23  ;;  %v10815_v5 = vld [vmem:[%s12218_s3 + $0x500] sm:$0xff]  ;;  %v10836_v4 = vld [vmem:[%s12218_s3 + $0x4c8] sm:$0xff] }
 0x405   :  { %v1107_v6 = vsel %vm846_vm2, %v13394_v24, %v10212_v14  ;;  %v1104_v44 = vsel %vm846_vm2, %v13396_v62, %v13393_v2  ;;  %3118 = vst.msk [vmem:[#allocation2 + $0x28] sm:$0xff] %vm3117_vm9, %v12599_v36  ;;  %v10784_v18 = vpop.permute.xlu0 %2146  ;;  %v10795_v14 = vld [vmem:[%s12218_s3 + $0x4b8] sm:$0xff]  ;;  %v10800_v2 = vld [vmem:[%s12218_s3 + $0x430] sm:$0xff]  ;;  %v788_v62 = vadd.f32 %v766_v15, %v451_v34  ;;  %v789_v36 = vadd.f32 %v10148_v58, %v452_v49  ;;  %v10825_v58 = vld [vmem:[%s12218_s3 + $0x4c0] sm:$0xff] }
 0x406   :  { %13397 = vst [vmem:[#allocation144_spill] sm:$0xff] %v10784_v18  ;;  %v10786_v9 = vpop.permute.xlu1 %2884  ;;  %13399 = vst [vmem:[#allocation145_spill] sm:$0xff] %v10795_v14  ;;  %v10805_v24 = vld [vmem:[%s12218_s3 + $0x438] sm:$0xff]  ;;  %v10820_v18 = vld [vmem:[%s12218_s3 + $0x508] sm:$0xff]  ;;  %v1128_v49 = vadd.f32 %v1105_v28, %v791_v26  ;;  %v1129_v34 = vadd.f32 %v1106_v35, %v792_v51  ;;  %v1103_v15 = vsel %vm846_vm2, %v13278_v40, %v10256_v47 }
 0x407   :  { %13398 = vst [vmem:[#allocation143_spill] sm:$0xff] %v10786_v9  ;;  %13400 = vst [vmem:[#allocation146_spill] sm:$0xff] %v10800_v2  ;;  %v10841_v9 = vld [vmem:[%s12218_s3 + $0x440] sm:$0xff]  ;;  %v10846_v26 = vld [vmem:[%s12218_s3 + $0x448] sm:$0xff]  ;;  %v1130_v40 = vadd.f32 %v1107_v6, %v793_v13  ;;  %v1127_v51 = vadd.f32 %v1104_v44, %v790_v46  ;;  %v10869_v46 = vadd.f32 %v10254_v10, %v10636_v56 }
 0x408   :  { %13401 = vst [vmem:[#allocation149_spill] sm:$0xff] %v10805_v24  ;;  %13402 = vst [vmem:[#allocation147_spill] sm:$0xff] %v10815_v5  ;;  %v10853_v28 = vld [vmem:[%s12218_s3 + $0x590] sm:$0xff]  ;;  %v10858_v60 = vld [vmem:[%s12218_s3 + $0x598] sm:$0xff]  ;;  %v1443_v6 = vsel %vm1183_vm3, %v10288_v16, %v10318_v33  ;;  %v1779_v44 = vsel %vm1520_vm4, %v10397_v12, %v10427_v22  ;;  %v10896_v56 = vadd.f32 %v1103_v15, %v788_v62 }
 0x409   :  { %v10865_v13 = vld [vmem:[%s12218_s3 + $0x510] sm:$0xff]  ;;  %13403 = vst [vmem:[#allocation150_spill] sm:$0xff] %v10869_v46  ;;  %v10877_v35 = vpop.permute.xlu0 %2886  ;;  %v10884_v24 = vld [vmem:[%s12218_s3 + $0x518] sm:$0xff]  ;;  %v1465_v2 = vadd.f32 %v1442_v3, %v1128_v49  ;;  %v1444_v46 = vsel %vm1183_vm3, %v10318_v33, %v10320_v57  ;;  %v2155_v23 = vsel %vm1865_vm5, %v10522_v21, %v10524_v19  ;;  %v5816_v14 = vpack.c.bf16 %v10858_v60, %v10853_v28 }
 0x40a   :  { %13404 = vst [vmem:[#allocation95_spill] sm:$0xff] %v10877_v35  ;;  %v3231_v50 = vpop.permute.xlu1 %3230  ;;  %v10889_v10 = vld [vmem:[%s12218_s3 + $0x4d0] sm:$0xff]  ;;  %v10894_v16 = vld [vmem:[%s12218_s3 + $0x4d8] sm:$0xff]  ;;  %v1126_v35 = vadd.f32 %v10256_v47, %v789_v36  ;;  %v1466_v15 = vadd.f32 %v1443_v6, %v1129_v34  ;;  %v1467_v33 = vadd.f32 %v1444_v46, %v1130_v40  ;;  %v1441_v49 = vsel %vm1183_vm3, %v10361_v1, %v10286_v17 }
 0x40b   :  { %v1802_v47 = vadd.f32 %v1779_v44, %v1465_v2  ;;  %v1780_v5 = vsel %vm1520_vm4, %v10427_v22, %v10429_v55  ;;  %v1781_v2 = vsel %vm1520_vm4, %v10429_v55, %v10468_v63  ;;  %v10931_v40 = vld [vmem:[%s12218_s3 + $0x450] sm:$0xff]  ;;  %v10936_v17 = vld [vmem:[%s12218_s3 + $0x458] sm:$0xff]  ;;  %v2532_v1 = vsel %vm2242_vm6, %v10562_v59, %v10564_v37 }
 0x40c   :  { %v3665_v3 = vld [vmem:[#allocation2 + $0x28] sm:$0xff]  ;;  %v13405_v46 = vmax.f32 %v13389_v45, %v10719_v8  ;;  %v2156_v44 = vsel %vm1865_vm5, %v10524_v19, %v10536_v42  ;;  %v13407_v62 = vpack.c.bf16 %v10693_v7, %v10688_v52  ;;  %v1803_v36 = vadd.f32 %v1780_v5, %v1466_v15  ;;  %v13428_v60 = vld [vmem:[#allocation40_spill] sm:$0xff] }
 0x40d   :  { %v10924_v34 = vpop.permute.xlu0 %3232  ;;  %4313 = vmatprep.mubr.f32.mxu0 %v3665_v3  ;;  %v2179_v22 = vadd.f32 %v2155_v23, %v1802_v47  ;;  %v2157_v23 = vsel %vm1865_vm5, %v10536_v42, %v10538_v27  ;;  %v13406_v47 = vld [vmem:[#allocation93_spill] sm:$0xff]  ;;  %v1804_v8 = vadd.f32 %v1781_v2, %v1467_v33  ;;  %v2909_v45 = vsel %vm2619_vm7, %v10587_v43, %v10593_v41  ;;  %v13409_v2 = vld [vmem:[#allocation20_spill] sm:$0xff] }
 0x40e   :  { %v10926_v6 = vpop.permute.xlu1 %2521  ;;  %v3253_v55 = vsel %vm846_vm2, %v3231_v50, %v10924_v34  ;;  %4314 = vmatmul.mubr.f32.vlgmr.msra.gmra.mrb[4].mxu0 %v13405_v46  ;;  %v13408_v19 = vpack.c.bf16 %v10715_v20, %v10710_v25  ;;  %v5802_v42 = vpack.c.bf16 %v10936_v17, %v10931_v40  ;;  %v1464_v27 = vadd.f32 %v1441_v49, %v1127_v51  ;;  %v10981_v25 = vld [vmem:[%s12218_s3 + $0x5a0] sm:$0xff]  ;;  %v10986_v20 = vld [vmem:[%s12218_s3 + $0x5a8] sm:$0xff] }
 0x40f   :  { %v2535_v63 = vsel %vm2242_vm6, %v10568_v54, %v10926_v6  ;;  %v3275_v3 = vmax.f32 %v13406_v47, %v3253_v55  ;;  %5783 = vmatpush3.bf16.msra.mxu0 %v13407_v62  ;;  %v2556_v52 = vadd.f32 %v2532_v1, %v2179_v22  ;;  %v2533_v7 = vsel %vm2242_vm6, %v10564_v37, %v10566_v61  ;;  %v13415_v47 = vld [vmem:[#allocation109_spill] sm:$0xff] }
 0x410   :  { %v10957_v57 = vadd.f32 %v2535_v63, %v10745_v31  ;;  %5785 = vmatprep.subr.bf16.mxu0 %v13408_v19  ;;  %v1778_v31 = vsel %vm1520_vm4, %v10470_v39, %v10397_v12  ;;  %v2180_v12 = vadd.f32 %v2156_v44, %v1803_v36  ;;  %v2181_v39 = vadd.f32 %v2157_v23, %v1804_v8  ;;  %v11027_v44 = vld [vmem:[%s12218_s3 + $0x520] sm:$0xff]  ;;  %v11032_v23 = vld [vmem:[%s12218_s3 + $0x528] sm:$0xff] }
 0x411   :  { %v10976_v5 = vpop.permute.xlu0 %2523  ;;  %4388 = vmatprep.mubr.f32.mxu1 %v3275_v3  ;;  %v2534_v37 = vsel %vm2242_vm6, %v10566_v61, %v10568_v54  ;;  %v2154_v15 = vsel %vm1865_vm5, %v10547_v38, %v10522_v21  ;;  %v2933_v33 = vadd.f32 %v2909_v45, %v2556_v52  ;;  %v2910_v49 = vsel %vm2619_vm7, %v10593_v41, %v10595_v48  ;;  %v11013_v38 = vld [vmem:[%s12218_s3 + $0x4e0] sm:$0xff]  ;;  %v13412_v41 = vld [vmem:[#allocation161_spill] sm:$0xff]  ;;  %v13416_v19 = vld [vmem:[#allocation147_spill] sm:$0xff] }
 0x412   :  { %v3229_v62 = vpop.permute.xlu1 %3228  ;;  %v13410_v36 = vpack.c.bf16 %v10733_v29, %v10728_v53  ;;  %v1801_v1 = vadd.f32 %v1778_v31, %v1464_v27  ;;  %v2557_v55 = vadd.f32 %v2533_v7, %v2180_v12  ;;  %v2911_v54 = vsel %vm2619_vm7, %v10595_v48, %v10626_v0  ;;  %v13414_v48 = vld [vmem:[#allocation171_spill] sm:$0xff]  ;;  %v11050_v31 = vld [vmem:[%s12218_s3 + $0x5b0] sm:$0xff]  ;;  %v11055_v52 = vld [vmem:[%s12218_s3 + $0x5b8] sm:$0xff] }
 0x413   :  { %v3252_v51 = vsel %vm846_vm2, %v3229_v62, %v3231_v50  ;;  %v13411_v21 = vpack.c.bf16 %v10752_v11, %v10738_v32  ;;  %v5820_v61 = vpack.c.bf16 %v10986_v20, %v10981_v25  ;;  %v1440_v53 = vsel %vm1183_vm3, %v13412_v41, %v10395_v30  ;;  %v13413_v50 = vld [vmem:[#allocation91_spill] sm:$0xff]  ;;  %v13418_v7 = vld [vmem:[#allocation89_spill] sm:$0xff]  ;;  %v13419_v25 = vld [vmem:[#allocation78_spill] sm:$0xff] }
 0x414   :  { %v3274_v22 = vmax.f32 %v13409_v2, %v3252_v51  ;;  %5787 = vmatpush3.bf16.msra.mxu0 %v13410_v36  ;;  %v1463_v29 = vadd.f32 %v10395_v30, %v1126_v35  ;;  %v1777_v63 = vsel %vm1520_vm4, %v13414_v48, %v13413_v50  ;;  %v2558_v32 = vadd.f32 %v2534_v37, %v2181_v39  ;;  %v11037_v30 = vld [vmem:[%s12218_s3 + $0x4e8] sm:$0xff]  ;;  %v13422_v39 = vld [vmem:[#allocation141_spill] sm:$0xff]  ;;  %v13426_v2 = vld [vmem:[#allocation60_spill] sm:$0xff] }
 0x415   :  { %5789 = vmatprep.subr.bf16.mxu0 %v13411_v21  ;;  %v2178_v35 = vadd.f32 %v2154_v15, %v1801_v1  ;;  %v2531_v3 = vsel %vm2242_vm6, %v13415_v47, %v10562_v59  ;;  %v2934_v8 = vadd.f32 %v2910_v49, %v2557_v55  ;;  %v13417_v27 = vpack.c.bf16 %v10820_v18, %v13416_v19  ;;  %v13421_v18 = vld [vmem:[#allocation142_spill] sm:$0xff]  ;;  %v13424_v15 = vld [vmem:[#allocation136_spill] sm:$0xff]  ;;  %v13425_v49 = vld [vmem:[#allocation145_spill] sm:$0xff] }
 0x416   :  { %4389 = vmatmul.mubr.f32.vlgmr.msra.gmra.mrb[4].mxu1 %v3274_v22  ;;  %v11058_v59 = vadd.f32 %v13418_v7, %v2933_v33  ;;  %v2935_v62 = vadd.f32 %v2911_v54, %v2558_v32  ;;  %v13420_v20 = vmax.f32 %v13419_v25, 0.0  ;;  %v13423_v37 = vpack.c.bf16 %v13421_v18, %v13422_v39  ;;  %v11094_v41 = vld [vmem:[%s12218_s3 + $0x530] sm:$0xff]  ;;  %v13430_v48 = vld [vmem:[#allocation133_spill] sm:$0xff] }
 0x417   :  { %v11022_v11 = vpop.permute.xlu0 %3340  ;;  %v3343_v46 = vpop.permute.xlu1 %3342  ;;  %5815 = vmatpush3.bf16.msra.mxu1 %v13417_v27  ;;  %v1462_v51 = vadd.f32 %v1440_v53, %v10896_v56  ;;  %v2908_v33 = vsel %vm2619_vm7, %v13424_v15, %v10587_v43  ;;  %v13427_v22 = vpack.c.bf16 %v13425_v49, %v13426_v2  ;;  %v5822_v36 = vpack.c.bf16 %v11032_v23, %v11027_v44  ;;  %v11099_v53 = vld [vmem:[%s12218_s3 + $0x460] sm:$0xff]  ;;  %v13431_v32 = vld [vmem:[#allocation76_spill] sm:$0xff]  ;;  %v13439_v18 = vld [vmem:[#allocation61_spill] sm:$0xff] }
 0x418   :  { %v3363_v45 = vsel %vm172_vm0, %v11022_v11, %v3343_v46  ;;  %5791 = vmatpush3.bf16.msra.mxu0 %v13423_v37  ;;  %5817 = vmatprep.subr.bf16.mxu1 %v5816_v14  ;;  %v5804_v1 = vpack.c.bf16 %v11037_v30, %v11013_v38  ;;  %v1800_v55 = vadd.f32 %v13413_v50, %v1463_v29  ;;  %v13429_v14 = vld [vmem:[#allocation28_spill] sm:$0xff]  ;;  %v11104_v29 = vld [vmem:[%s12218_s3 + $0x468] sm:$0xff]  ;;  %v3916_v38 = vld [vmem:[%s12218_s3 + $0x680] sm:$0xff] }
 0x419   :  { %v11062_v12 = vmax.f32 %v13420_v20, %v3363_v45  ;;  %5793 = vmatprep.subr.bf16.mxu0 %v13427_v22  ;;  %v2152_v28 = vsel %vm1865_vm5, %v13429_v14, %v13428_v60  ;;  %v2555_v56 = vadd.f32 %v2531_v3, %v2178_v35  ;;  %v5824_v21 = vpack.c.bf16 %v11055_v52, %v11050_v31  ;;  %v3875_v3 = vld [vmem:[%s12218_s3 + $0x538] sm:$0xff]  ;;  %v13436_v52 = vld [vmem:[#allocation146_spill] sm:$0xff]  ;;  %v11154_v49 = vld [vmem:[%s12218_s3 + $0x4f0] sm:$0xff] }
 0x41a   :  { %v1799_v50 = vadd.f32 %v1777_v63, %v1462_v51  ;;  %v2529_v44 = vsel %vm2242_vm6, %v13431_v32, %v13430_v48  ;;  %v11110_v23 = vadd.f32 %v13418_v7, %v2934_v8  ;;  %v13432_v47 = vpack.c.bf16 %v10884_v24, %v10865_v13  ;;  %v11123_v63 = vld [vmem:[%s12218_s3 + $0x5c0] sm:$0xff]  ;;  %v11128_v8 = vld [vmem:[%s12218_s3 + $0x5c8] sm:$0xff]  ;;  %v13435_v31 = vld [vmem:[#allocation149_spill] sm:$0xff] }
 0x41b   :  { %v11085_v54 = vpop.permute.xlu0 %3344  ;;  %3410 = vrot.lane.b32.xlu0 %v11062_v12, %s6173_s15  ;;  %v3339_v43 = vpop.permute.xlu1 %3338  ;;  %v11132_v45 = vadd.f32 %v13418_v7, %v2935_v62  ;;  %v2932_v24 = vadd.f32 %v2908_v33, %v2555_v56  ;;  %v13433_v13 = vld [vmem:[#allocation87_spill] sm:$0xff]  ;;  %v13437_v25 = vpack.c.bf16 %v13435_v31, %v13436_v52  ;;  %v13438_v20 = vld [vmem:[#allocation150_spill] sm:$0xff]  ;;  %v13441_v62 = vpack.c.bf16 %v10836_v4, %v10825_v58 }
 0x41c   :  { %v3364_v35 = vsel %vm172_vm0, %v3343_v46, %v11085_v54  ;;  %5819 = vmatpush3.bf16.msra.mxu1 %v13432_v47  ;;  %v3501_v46 = vmax.f32 %v11058_v59, 0.0  ;;  %v13434_v19 = vmax.f32 %v13433_v13, 0.0  ;;  %v795_v39 = vadd.f32 %v13439_v18, %v13438_v20  ;;  %v13440_v51 = vld [vmem:[#allocation134_spill] sm:$0xff]  ;;  %v13442_v2 = vld [vmem:[#allocation107_spill] sm:$0xff]  ;;  %v11210_v20 = vld [vmem:[%s12218_s3 + $0x550] sm:$0xff] }
 0x41d   :  { %5795 = vmatpush3.bf16.msra.mxu0 %v13437_v25  ;;  %5821 = vmatprep.subr.bf16.mxu1 %v5820_v61  ;;  %v2176_v37 = vadd.f32 %v2152_v28, %v1799_v50  ;;  %v2530_v15 = vsel %vm2242_vm6, %v13430_v48, %v13440_v51  ;;  %v5806_v33 = vpack.c.bf16 %v11104_v29, %v11099_v53  ;;  %v11159_v61 = vld [vmem:[%s12218_s3 + $0x4f8] sm:$0xff]  ;;  %v11173_v28 = vld [vmem:[%s12218_s3 + $0x470] sm:$0xff]  ;;  %v13443_v56 = vld [vmem:[#allocation103_spill] sm:$0xff]  ;;  %v3503_v31 = vmax.f32 %v11132_v45, 0.0 }
 0x41e   :  { %v11136_v27 = vmax.f32 %v13434_v19, %v3364_v35  ;;  %5797 = vmatprep.subr.bf16.mxu0 %v13441_v62  ;;  %v2177_v22 = vadd.f32 %v13442_v2, %v1800_v55  ;;  %v5826_v58 = vpack.c.bf16 %v3875_v3, %v11094_v41  ;;  %v5828_v14 = vpack.c.bf16 %v11128_v8, %v11123_v63  ;;  %v11178_v55 = vld [vmem:[%s12218_s3 + $0x478] sm:$0xff]  ;;  %v13444_v32 = vld [vmem:[#allocation143_spill] sm:$0xff]  ;;  %v3876_v63 = vld [vmem:[%s12218_s3 + $0x540] sm:$0xff] }
 0x41f   :  { %v2899_v60 = vpop.permute.xlu0 %2898  ;;  %3532 = vrot.lane.b32.xlu0 %v3501_v46, %s6171_s18  ;;  %v2901_v4 = vpop.permute.xlu1 %2900  ;;  %v1132_v50 = vadd.f32 %v13443_v56, %v795_v39  ;;  %v2553_v48 = vadd.f32 %v2529_v44, %v2176_v37  ;;  %v13445_v35 = vld [vmem:[#allocation13_spill] sm:$0xff]  ;;  %v13446_v47 = vld [vmem:[#allocation95_spill] sm:$0xff]  ;;  %v3894_v44 = vld [vmem:[%s12218_s3 + $0x5d0] sm:$0xff]  ;;  %v3502_v19 = vmax.f32 %v11110_v23, 0.0  ;;  %v11199_v52 = vadd.f32 %v13418_v7, %v2932_v24 }
 0x420   :  { %3412 = vrot.lane.b32.xlu1 %v11136_v27, %s6173_s15  ;;  %v2906_v41 = vsel %vm2619_vm7, %v13445_v35, %v13444_v32  ;;  %v2907_v3 = vsel %vm2619_vm7, %v13444_v32, %v13446_v47  ;;  %5823 = vmatpush3.bf16.msra.mxu1 %v5822_v36  ;;  %v3877_v8 = vld [vmem:[%s12218_s3 + $0x548] sm:$0xff]  ;;  %v2554_v13 = vadd.f32 %v2530_v15, %v2177_v22  ;;  %v3895_v25 = vld [vmem:[%s12218_s3 + $0x5d8] sm:$0xff]  ;;  %v13448_v24 = vld [vmem:[#allocation46_spill] sm:$0xff] }
 0x421   :  { %v13447_v36 = vpack.c.bf16 %v10846_v26, %v10841_v9  ;;  %5825 = vmatprep.subr.bf16.mxu1 %v5824_v21  ;;  %v11215_v18 = vld [vmem:[%s12218_s3 + $0x558] sm:$0xff]  ;;  %v1469_v39 = vadd.f32 %v13448_v24, %v1132_v50  ;;  %v3362_v9 = vsel %vm172_vm0, %v3339_v43, %v11022_v11  ;;  %v13449_v26 = vpack.c.bf16 %v10894_v16, %v10889_v10  ;;  %v13450_v51 = vld [vmem:[#allocation144_spill] sm:$0xff]  ;;  %v3896_v16 = vld [vmem:[%s12218_s3 + $0x5e0] sm:$0xff] }
 0x422   :  { %v5808_v21 = vpack.c.bf16 %v11159_v61, %v11154_v49  ;;  %v5810_v37 = vpack.c.bf16 %v11178_v55, %v11173_v28  ;;  %v13451_v15 = vld [vmem:[#allocation140_spill] sm:$0xff]  ;;  %v2930_v2 = vadd.f32 %v2906_v41, %v2553_v48  ;;  %v2931_v22 = vadd.f32 %v2907_v3, %v2554_v13  ;;  %v3897_v11 = vld [vmem:[%s12218_s3 + $0x5e8] sm:$0xff]  ;;  %v3948_v28 = vld [vmem:[%s12218_s3 + $0x780] sm:$0xff] }
 0x423   :  { %5799 = vmatpush3.bf16.msra.mxu0 %v13447_v36  ;;  %v2159_v62 = vsel %vm1865_vm5, %v13451_v15, %v13450_v51  ;;  %v3347_v56 = vpop.permute.xlu0 %3346  ;;  %3536 = vrot.lane.b32.xlu0 %v3503_v31, %s6171_s18  ;;  %v11236_v10 = vpop.permute.xlu1 %3348  ;;  %v13452_v43 = vld [vmem:[#allocation31_spill] sm:$0xff]  ;;  %v5830_v61 = vpack.c.bf16 %v3877_v8, %v3876_v63  ;;  %v5832_v50 = vpack.c.bf16 %v3895_v25, %v3894_v44  ;;  %v3500_v32 = vmax.f32 %v11199_v52, 0.0  ;;  %v13453_v41 = vld [vmem:[#allocation100_spill] sm:$0xff]  ;;  %v3880_v36 = vld [vmem:[%s12218_s3 + $0x560] sm:$0xff] }
 0x424   :  { %5801 = vmatprep.subr.bf16.mxu0 %v13449_v26  ;;  %3534 = vrot.lane.b32.xlu1 %v3502_v19, %s6171_s18  ;;  %v1806_v49 = vadd.f32 %v13452_v43, %v1469_v39  ;;  %v5834_v48 = vpack.c.bf16 %v11215_v18, %v11210_v20  ;;  %v2536_v35 = vsel %vm2242_vm6, %v10926_v6, %v10976_v5  ;;  %v13454_v47 = vmax.f32 %v13453_v41, 0.0  ;;  %v3917_v30 = vld [vmem:[%s12218_s3 + $0x688] sm:$0xff]  ;;  %v13457_v20 = vld [vmem:[#allocation81_spill] sm:$0xff]  ;;  %v13459_v39 = vld [vmem:[#allocation130_spill] sm:$0xff] }
 0x425   :  { %5827 = vmatpush3.bf16.msra.mxu1 %v5826_v58  ;;  %v2912_v13 = vsel %vm2619_vm7, %v10626_v0, %v2899_v60  ;;  %v3365_v63 = vsel %vm172_vm0, %v11085_v54, %v3347_v56  ;;  %v3366_v8 = vsel %vm172_vm0, %v3347_v56, %v11236_v10  ;;  %v5836_v6 = vpack.c.bf16 %v3897_v11, %v3896_v16  ;;  %v3881_v25 = vld [vmem:[%s12218_s3 + $0x568] sm:$0xff]  ;;  %v13461_v26 = vld [vmem:[#allocation50_spill] sm:$0xff]  ;;  %v3898_v15 = vld [vmem:[%s12218_s3 + $0x5f0] sm:$0xff] }
 0x426   :  { %v11253_v3 = vmax.f32 %v13454_v47, %v3362_v9  ;;  %5829 = vmatprep.subr.bf16.mxu1 %v5828_v14  ;;  %v2183_v58 = vadd.f32 %v2159_v62, %v1806_v49  ;;  %v11268_v5 = vadd.f32 %v13418_v7, %v2930_v2  ;;  %v11271_v0 = vadd.f32 %v13418_v7, %v2931_v22  ;;  %v13456_v14 = vld [vmem:[#allocation65_spill] sm:$0xff]  ;;  %v13464_v41 = vld [vmem:[#allocation58_spill] sm:$0xff]  ;;  %v3949_v55 = vld [vmem:[%s12218_s3 + $0x788] sm:$0xff] }
 0x427   :  { %5803 = vmatpush3.bf16.msra.mxu0 %v5802_v42  ;;  %v2913_v40 = vsel %vm2619_vm7, %v2899_v60, %v2901_v4  ;;  %v3069_v17 = vpop.permute.xlu0 %3068  ;;  %3530 = vrot.lane.b32.xlu0 %v3500_v32, %s6171_s18  ;;  %v2936_v54 = vadd.f32 %v2912_v13, %v10957_v57  ;;  %v13455_v60 = vld [vmem:[#allocation47_spill] sm:$0xff]  ;;  %v13458_v18 = vmax.f32 %v13457_v20, 0.0  ;;  %v13460_v57 = vmax.f32 %v13459_v39, 0.0  ;;  %v3899_v62 = vld [vmem:[%s12218_s3 + $0x5f8] sm:$0xff]  ;;  %v3900_v39 = vld [vmem:[%s12218_s3 + $0x600] sm:$0xff] }
 0x428   :  { %5805 = vmatprep.subr.bf16.mxu0 %v5804_v1  ;;  %3408 = vrot.lane.b32.xlu1 %v11253_v3, %s6173_s15  ;;  %v3243_v42 = vpop.permute.xlu1 %3242  ;;  %v2560_v1 = vadd.f32 %v2536_v35, %v2183_v58  ;;  %v3079_v4 = vsel %vm846_vm2, %v13455_v60, %v3069_v17  ;;  %v3103_v44 = vmax.f32 %v13456_v14, %v3069_v17  ;;  %v13462_v56 = vmov 0.0   ;;  %v3883_v58 = vld [vmem:[%s12218_s3 + $0x578] sm:$0xff]  ;;  %v13465_v60 = vld [vmem:[#allocation128_spill] sm:$0xff]  ;;  %v13469_v20 = vld [vmem:[#allocation19_spill] sm:$0xff] }
 0x429   :  { %5831 = vmatpush3.bf16.msra.mxu1 %v5830_v61  ;;  %v11297_v24 = vmax.f32 %v13458_v18, %v3365_v63  ;;  %v11301_v9 = vmax.f32 %v13460_v57, %v3366_v8  ;;  %v3102_v51 = vmax.f32 %v13461_v26, %v3079_v4  ;;  %v5844_v22 = vpack.c.bf16 %v3917_v30, %v3916_v38  ;;  %v3983_v59 = vld [vmem:[%s12218_s3 + $0x898] sm:$0xff]  ;;  %v3997_v52 = vld [vmem:[%s12218_s3 + $0x908] sm:$0xff] }
 0x42a   :  { %5833 = vmatprep.subr.bf16.mxu1 %v5832_v50  ;;  %v2937_v2 = vadd.f32 %v2913_v40, %v2560_v1  ;;  %3116 = vst.msk [vmem:[#allocation2 + $0xe8] sm:$0xff] %vm3109_vm8, %v3103_v44  ;;  %v5838_v29 = vpack.c.bf16 %v3881_v25, %v3880_v36  ;;  %v5840_v43 = vpack.c.bf16 %v3899_v62, %v3898_v15  ;;  %v3499_v49 = vmax.f32 %v11271_v0, 0.0  ;;  %v13463_v50 = vld [vmem:[#allocation121_spill] sm:$0xff]  ;;  %v13467_v44 = vld [vmem:[#allocation80_spill] sm:$0xff] }
 0x42b   :  { %5807 = vmatpush3.bf16.msra.mxu0 %v5806_v33  ;;  %3119 = vst.msk [vmem:[#allocation2 + $0xe8] sm:$0xff] %vm3117_vm9, %v13462_v56  ;;  %v11316_v16 = vpop.permute.xlu0 %3244  ;;  %3416 = vrot.lane.b32.xlu0 %v11301_v9, %s6173_s15  ;;  %v3498_v33 = vmax.f32 %v11268_v5, 0.0  ;;  %v11328_v61 = vadd.f32 %v13418_v7, %v2936_v54  ;;  %v13466_v4 = vmax.f32 %v13465_v60, 0.0  ;;  %v13468_v36 = vmax.f32 %v13467_v44, 0.0  ;;  %v3919_v15 = vld [vmem:[%s12218_s3 + $0x698] sm:$0xff]  ;;  %v3988_v5 = vld [vmem:[%s12218_s3 + $0x8c0] sm:$0xff] }
 0x42c   :  { %5809 = vmatprep.subr.bf16.mxu0 %v5808_v21  ;;  %3414 = vrot.lane.b32.xlu1 %v11297_v24, %s6173_s15  ;;  %v3241_v53 = vpop.permute.xlu1 %3240  ;;  %v3258_v11 = vsel %vm846_vm2, %v3243_v42, %v11316_v16  ;;  %v11336_v13 = vadd.f32 %v13418_v7, %v2937_v2  ;;  %v3991_v0 = vld [vmem:[%s12218_s3 + $0x8d8] sm:$0xff] }
 0x42d   :  { %v3257_v21 = vsel %vm846_vm2, %v3241_v53, %v3243_v42  ;;  %5835 = vmatpush3.bf16.msra.mxu1 %v5834_v48  ;;  %v3281_v35 = vmax.f32 %v13463_v50, %v3258_v11  ;;  %v3882_v48 = vld [vmem:[%s12218_s3 + $0x570] sm:$0xff]  ;;  %v5876_v42 = vpack.c.bf16 %v3949_v55, %v3948_v28 }
 0x42e   :  { %v3280_v47 = vmax.f32 %v13464_v41, %v3257_v21  ;;  %5837 = vmatprep.subr.bf16.mxu1 %v5836_v6  ;;  %v5842_v8 = vpack.c.bf16 %v3883_v58, %v3882_v48  ;;  %v3505_v6 = vmax.f32 %v11336_v13, 0.0  ;;  %v3902_v41 = vld [vmem:[%s12218_s3 + $0x610] sm:$0xff]  ;;  %v4004_v13 = vld [vmem:[%s12218_s3 + $0x940] sm:$0xff] }
 0x42f   :  { %5811 = vmatpush3.bf16.msra.mxu0 %v5810_v37  ;;  %v3353_v63 = vpop.permute.xlu0 %3352  ;;  %3528 = vrot.lane.b32.xlu0 %v3499_v49, %s6171_s18  ;;  %v3504_v37 = vmax.f32 %v11328_v61, 0.0 }
 0x430   :  { %5845 = vmatprep.subr.bf16.mxu0 %v5844_v22  ;;  %3526 = vrot.lane.b32.xlu1 %v3498_v33, %s6171_s18  ;;  %v3355_v7 = vpop.permute.xlu1 %3354  ;;  %v13470_v22 = vld [vmem:[#allocation79_spill] sm:$0xff] }
 0x431   :  { %4393 = vmatprep.mubr.f32.mxu1 %v3281_v35  ;;  %5839 = vmatpush3.bf16.msra.mxu1 %v5838_v29  ;;  %v3368_v40 = vsel %vm172_vm0, %v3353_v63, %v3355_v7  ;;  %v13471_v29 = vld [vmem:[#allocation82_spill] sm:$0xff] }
 0x432   :  { %4394 = vmatmul.mubr.f32.gmra.mrb[6].mxu1 %v3280_v47  ;;  %5841 = vmatprep.subr.bf16.mxu1 %v5840_v43  ;;  %v3689_v17 = vld [vmem:[#allocation2 + $0xe8] sm:$0xff]  ;;  %v11370_v14 = vmax.f32 %v13466_v4, %v3368_v40  ;;  %v13472_v11 = vmax.f32 %v13471_v29, 0.0  ;;  %v3903_v47 = vld [vmem:[%s12218_s3 + $0x618] sm:$0xff] }
 0x433   :  { %v3357_v38 = vpop.permute.xlu0 %3356  ;;  %4318 = vmatprep.mubr.f32.mxu0 %v3689_v17  ;;  %3540 = vrot.lane.b32.xlu0 %v3505_v6, %s6171_s18  ;;  %v13473_v40 = vld [vmem:[#allocation77_spill] sm:$0xff]  ;;  %v5850_v4 = vpack.c.bf16 %v3903_v47, %v3902_v41  ;;  %v3924_v41 = vld [vmem:[%s12218_s3 + $0x6c0] sm:$0xff]  ;;  %v3925_v47 = vld [vmem:[%s12218_s3 + $0x6c8] sm:$0xff] }
 0x434   :  { %3538 = vrot.lane.b32.xlu1 %v3504_v37, %s6171_s18  ;;  %v3235_v30 = vpop.permute.xlu1 %3234  ;;  %v3369_v1 = vsel %vm172_vm0, %v3355_v7, %v3357_v38  ;;  %4319 = vmatmul.mubr.f32.gmra.mrb[6].mxu0 %v3102_v51  ;;  %v3918_v51 = vld [vmem:[%s12218_s3 + $0x690] sm:$0xff]  ;;  %v5211_v50 = vpop.f32.mrb[0].mxu0  ;;  %v3921_v7 = vld [vmem:[%s12218_s3 + $0x6a8] sm:$0xff]  ;;  %v13474_v17 = vmax.f32 %v13473_v40, 0.0 }
 0x435   :  { %v3254_v54 = vsel %vm846_vm2, %v10924_v34, %v3235_v30  ;;  %v11374_v25 = vmax.f32 %v13468_v36, %v3369_v1  ;;  %5843 = vmatpush3.bf16.msra.mxu1 %v5842_v8  ;;  %v3901_v34 = vld [vmem:[%s12218_s3 + $0x608] sm:$0xff]  ;;  %v5848_v35 = vpack.c.bf16 %v3919_v15, %v3918_v51  ;;  %v5212_v8 = vpop.f32.mrb[1].mxu0  ;;  %v13477_v51 = vld [vmem:[#allocation104_spill] sm:$0xff] }
 0x436   :  { %v3276_v18 = vmax.f32 %v13469_v20, %v3254_v54  ;;  %5877 = vmatprep.subr.bf16.mxu1 %v5876_v42  ;;  %v5846_v43 = vpack.c.bf16 %v3901_v34, %v3900_v39  ;;  %v11427_v60 = vadd.f32 %v5212_v8, %v5211_v50  ;;  %v3905_v36 = vld [vmem:[%s12218_s3 + $0x628] sm:$0xff]  ;;  %v3922_v39 = vld [vmem:[%s12218_s3 + $0x6b0] sm:$0xff]  ;;  %v3923_v34 = vld [vmem:[%s12218_s3 + $0x6b8] sm:$0xff] }
 0x437   :  { %v3237_v57 = vpop.permute.xlu0 %3236  ;;  %3424 = vrot.lane.b32.xlu0 %v11374_v25, %s6173_s15  ;;  %v3906_v50 = vld [vmem:[%s12218_s3 + $0x630] sm:$0xff]  ;;  %v13483_v8 = vld [vmem:[#allocation101_spill] sm:$0xff] }
 0x438   :  { %3422 = vrot.lane.b32.xlu1 %v11370_v14, %s6173_s15  ;;  %v3351_v26 = vpop.permute.xlu1 %3350  ;;  %v3255_v62 = vsel %vm846_vm2, %v3235_v30, %v3237_v57  ;;  %v13475_v30 = vld [vmem:[#allocation88_spill] sm:$0xff]  ;;  %v13484_v40 = vmax.f32 %v13483_v8, 0.0 }
 0x439   :  { %v3367_v2 = vsel %vm172_vm0, %v3351_v26, %v3353_v63  ;;  %v3277_v53 = vmax.f32 %v13470_v22, %v3255_v62  ;;  %v3920_v63 = vld [vmem:[%s12218_s3 + $0x6a0] sm:$0xff]  ;;  %v13476_v1 = vmax.f32 %v13475_v30, 0.0  ;;  %v3910_v8 = vld [vmem:[%s12218_s3 + $0x650] sm:$0xff] }
 0x43a   :  { %v11398_v21 = vmax.f32 %v13472_v11, %v3367_v2  ;;  %v5852_v44 = vpack.c.bf16 %v3921_v7, %v3920_v63  ;;  %v13478_v62 = vld [vmem:[#allocation94_spill] sm:$0xff] }
 0x43b   :  { %v3359_v48 = vpop.permute.xlu0 %3358  ;;  %4463 = vmatprep.mubr.f32.mxu0 %v3277_v53  ;;  %v13479_v2 = vmax.f32 %v13478_v62, 0.0  ;;  %v13480_v53 = vld [vmem:[#allocation35_spill] sm:$0xff]  ;;  %v13481_v7 = vld [vmem:[#allocation90_spill] sm:$0xff] }
 0x43c   :  { %3420 = vrot.lane.b32.xlu1 %v11398_v21, %s6173_s15  ;;  %v11408_v58 = vpop.permute.xlu1 %3360  ;;  %v3370_v28 = vsel %vm172_vm0, %v3357_v38, %v3359_v48  ;;  %4464 = vmatmul.mubr.f32.vlgmr.msra.gmra.mrb[8].mxu0 %v3276_v18  ;;  %v3904_v38 = vld [vmem:[%s12218_s3 + $0x620] sm:$0xff] }
 0x43d   :  { %v3371_v55 = vsel %vm172_vm0, %v3359_v48, %v11408_v58  ;;  %v11421_v42 = vmax.f32 %v13474_v17, %v3370_v28  ;;  %5847 = vmatpush3.bf16.msra.mxu0 %v5846_v43  ;;  %v11450_v22 = vmax.f32 %v13479_v2, %v11236_v10  ;;  %v5854_v11 = vpack.c.bf16 %v3905_v36, %v3904_v38  ;;  %v3932_v30 = vld [vmem:[%s12218_s3 + $0x700] sm:$0xff]  ;;  %v3951_v38 = vld [vmem:[%s12218_s3 + $0x798] sm:$0xff] }
 0x43e   :  { %v11425_v54 = vmax.f32 %v13476_v1, %v3371_v55  ;;  %5849 = vmatprep.subr.bf16.mxu0 %v5848_v35  ;;  %v5856_v43 = vpack.c.bf16 %v3923_v34, %v3922_v39  ;;  %v13482_v28 = vmax.f32 %v13481_v7, 0.0  ;;  %v3933_v1 = vld [vmem:[%s12218_s3 + $0x708] sm:$0xff]  ;;  %v5860_v36 = vpack.c.bf16 %v3925_v47, %v3924_v41  ;;  %v13485_v2 = vld [vmem:[#allocation41_spill] sm:$0xff] }
 0x43f   :  { %v3239_v20 = vpop.permute.xlu0 %3238  ;;  %3426 = vrot.lane.b32.xlu0 %v11421_v42, %s6173_s15  ;;  %v3909_v39 = vld [vmem:[%s12218_s3 + $0x648] sm:$0xff] }
 0x440   :  { %3428 = vrot.lane.b32.xlu1 %v11425_v54, %s6173_s15  ;;  %v3521_v18 = vpop.permute.xlu1 %3520  ;;  %v3256_v26 = vsel %vm846_vm2, %v3237_v57, %v3239_v20  ;;  %v3279_v15 = vmax.f32 %v13477_v51, %v3239_v20  ;;  %v3907_v57 = vld [vmem:[%s12218_s3 + $0x638] sm:$0xff]  ;;  %v3908_v20 = vld [vmem:[%s12218_s3 + $0x640] sm:$0xff] }
 0x441   :  { %v3278_v29 = vmax.f32 %v13480_v53, %v3256_v26  ;;  %5851 = vmatpush3.bf16.msra.mxu0 %v5850_v4  ;;  %v3950_v4 = vld [vmem:[%s12218_s3 + $0x790] sm:$0xff]  ;;  %v3927_v51 = vld [vmem:[%s12218_s3 + $0x6d8] sm:$0xff]  ;;  %v13486_v53 = vmax.f32 %v13485_v2, 0.0  ;;  %v5862_v41 = vpack.c.bf16 %v3909_v39, %v3908_v20  ;;  %v3936_v39 = vld [vmem:[%s12218_s3 + $0x720] sm:$0xff] }
 0x442   :  { %3291 = vst.msk [vmem:[#allocation2 + $0x58] sm:$0xff] %vm3109_vm8, %v3279_v15  ;;  %5853 = vmatprep.subr.bf16.mxu0 %v5852_v44  ;;  %v5858_v44 = vpack.c.bf16 %v3907_v57, %v3906_v50  ;;  %v3926_v26 = vld [vmem:[%s12218_s3 + $0x6d0] sm:$0xff]  ;;  %v11514_v15 = vld [vmem:[%s12219_s4] ss:$0 sm:$0xff]  ;;  %v3935_v57 = vld [vmem:[%s12218_s3 + $0x718] sm:$0xff]  ;;  %v5880_v7 = vpack.c.bf16 %v3951_v38, %v3950_v4 }
 0x443   :  { %3298 = vst.msk [vmem:[#allocation2 + $0x58] sm:$0xff] %vm3117_vm9, %v13462_v56  ;;  %v3523_v10 = vpop.permute.xlu0 %3522  ;;  %3418 = vrot.lane.b32.xlu0 %v11450_v22, %s6173_s15  ;;  %v3934_v50 = vld [vmem:[%s12218_s3 + $0x710] sm:$0xff]  ;;  %v3929_v4 = vld [vmem:[%s12218_s3 + $0x6e8] sm:$0xff] }
 0x444   :  { %v11464_v35 = vpop.permute.xlu1 %3524  ;;  %v3543_v48 = vsel %vm172_vm0, %v3521_v18, %v3523_v10  ;;  %v5882_v38 = vpack.c.bf16 %v3935_v57, %v3934_v50  ;;  %v3913_v2 = vld [vmem:[%s12218_s3 + $0x668] sm:$0xff]  ;;  %v3930_v50 = vld [vmem:[%s12218_s3 + $0x6f0] sm:$0xff]  ;;  %v3931_v57 = vld [vmem:[%s12218_s3 + $0x6f8] sm:$0xff] }
 0x445   :  { %v3544_v63 = vsel %vm172_vm0, %v3523_v10, %v11464_v35  ;;  %v11477_v55 = vmax.f32 %v13482_v28, %v3543_v48  ;;  %5855 = vmatpush3.bf16.msra.mxu0 %v5854_v11  ;;  %v3952_v10 = vld [vmem:[%s12218_s3 + $0x7a0] sm:$0xff]  ;;  %v5864_v28 = vpack.c.bf16 %v3927_v51, %v3926_v26 }
 0x446   :  { %v11481_v17 = vmax.f32 %v13484_v40, %v3544_v63  ;;  %5857 = vmatprep.subr.bf16.mxu0 %v5856_v43  ;;  %v5878_v43 = vpack.c.bf16 %v3933_v1, %v3932_v30  ;;  %v3911_v40 = vld [vmem:[%s12218_s3 + $0x658] sm:$0xff]  ;;  %v5249_v30 = vpop.f32.mrb[0].mxu1  ;;  %v3928_v1 = vld [vmem:[%s12218_s3 + $0x6e0] sm:$0xff] }
 0x447   :  { %v3519_v34 = vpop.permute.xlu0 %3518  ;;  %3590 = vrot.lane.b32.xlu1 %v11477_v55, %s6173_s15  ;;  %v5866_v26 = vpack.c.bf16 %v3911_v40, %v3910_v8  ;;  %v3914_v8 = vld [vmem:[%s12218_s3 + $0x670] sm:$0xff]  ;;  %v3915_v40 = vld [vmem:[%s12218_s3 + $0x678] sm:$0xff] }
 0x448   :  { %3592 = vrot.lane.b32.xlu0 %v11481_v17, %s6173_s15  ;;  %v3542_v62 = vsel %vm172_vm0, %v3519_v34, %v3521_v18  ;;  %v13487_v18 = vld [vmem:[#allocation34_spill] sm:$0xff]  ;;  %v3937_v34 = vld [vmem:[%s12218_s3 + $0x728] sm:$0xff] }
 0x449   :  { %v11519_v11 = vmax.f32 %v13486_v53, %v3542_v62  ;;  %5859 = vmatpush3.bf16.msra.mxu0 %v5858_v44  ;;  %v13488_v47 = vmax.f32 %v13487_v18, 0.0  ;;  %v5250_v44 = vpop.f32.mrb[1].mxu1  ;;  %v3912_v62 = vld [vmem:[%s12218_s3 + $0x660] sm:$0xff]  ;;  %v3939_v18 = vld [vmem:[%s12218_s3 + $0x738] sm:$0xff] }
 0x44a   :  { %v3671_v63 = vld [vmem:[#allocation2 + $0x58] sm:$0xff]  ;;  %5861 = vmatprep.subr.bf16.mxu0 %v5860_v36  ;;  %v4166_v36 = vadd.f32 %v11427_v60, %v11514_v15  ;;  %v5251_v20 = vadd.f32 %v5250_v44, %v5249_v30  ;;  %v5868_v60 = vpack.c.bf16 %v3929_v4, %v3928_v1  ;;  %v3957_v30 = vld [vmem:[%s12218_s3 + $0x7c8] sm:$0xff]  ;;  %v5874_v44 = vpack.c.bf16 %v3915_v40, %v3914_v8  ;;  %v4012_v40 = vld [vmem:[%s12218_s3 + $0x980] sm:$0xff] }
 0x44b   :  { %v11533_v48 = vmax.f32 %v13488_v47, %v11408_v58  ;;  %4538 = vmatprep.mubr.f32.mxu1 %v3671_v63  ;;  %3588 = vrot.lane.b32.xlu1 %v11519_v11, %s6173_s15  ;;  %v3953_v58 = vld [vmem:[%s12218_s3 + $0x7a8] sm:$0xff]  ;;  %v5870_v47 = vpack.c.bf16 %v3913_v2, %v3912_v62  ;;  %v3943_v62 = vld [vmem:[%s12218_s3 + $0x758] sm:$0xff]  ;;  %v3960_v2 = vld [vmem:[%s12218_s3 + $0x7e0] sm:$0xff] }
 0x44c   :  { %4539 = vmatmul.mubr.f32.vlgmr.msra.gmra.mrb[8].mxu1 %v3278_v29  ;;  %v5884_v51 = vpack.c.bf16 %v3953_v58, %v3952_v10  ;;  %v3954_v29 = vld [vmem:[%s12218_s3 + $0x7b0] sm:$0xff]  ;;  %v11571_v53 = vadd.f32 %v5251_v20, %v4166_v36  ;;  %v5886_v10 = vpack.c.bf16 %v3937_v34, %v3936_v39  ;;  %v3980_v58 = vld [vmem:[%s12218_s3 + $0x880] sm:$0xff]  ;;  %v3981_v1 = vld [vmem:[%s12218_s3 + $0x888] sm:$0xff] }
 0x44d   :  { %3430 = vrot.lane.b32.xlu0 %v11533_v48, %s6173_s15  ;;  %5879 = vmatpush3.bf16.msra.mxu1 %v5878_v43  ;;  %v3955_v43 = vld [vmem:[%s12218_s3 + $0x7b8] sm:$0xff]  ;;  %v3940_v36 = vld [vmem:[%s12218_s3 + $0x740] sm:$0xff]  ;;  %v3941_v20 = vld [vmem:[%s12218_s3 + $0x748] sm:$0xff]  ;;  %v5908_v39 = vpack.c.bf16 %v3981_v1, %v3980_v58 }
 0x44e   :  { %5863 = vmatpush3.bf16.msra.mxu0 %v5862_v41  ;;  %5881 = vmatprep.subr.bf16.mxu1 %v5880_v7  ;;  %v3938_v41 = vld [vmem:[%s12218_s3 + $0x730] sm:$0xff]  ;;  %v5888_v63 = vpack.c.bf16 %v3955_v43, %v3954_v29  ;;  %v3956_v7 = vld [vmem:[%s12218_s3 + $0x7c0] sm:$0xff]  ;;  %v3961_v43 = vld [vmem:[%s12218_s3 + $0x7e8] sm:$0xff] }
 0x44f   :  { %5865 = vmatprep.subr.bf16.mxu0 %v5864_v28  ;;  %v5872_v28 = vpack.c.bf16 %v3931_v57, %v3930_v50  ;;  %v5890_v4 = vpack.c.bf16 %v3939_v18, %v3938_v41  ;;  %v3958_v34 = vld [vmem:[%s12218_s3 + $0x7d0] sm:$0xff]  ;;  %v5900_v57 = vpack.c.bf16 %v3961_v43, %v3960_v2  ;;  %v3945_v41 = vld [vmem:[%s12218_s3 + $0x768] sm:$0xff]  ;;  %v3947_v8 = vld [vmem:[%s12218_s3 + $0x778] sm:$0xff] }
 0x450   :  { %v3962_v18 = vld [vmem:[%s12218_s3 + $0x7f0] sm:$0xff]  ;;  %v13492_v2 = vld [vmem:[#allocation139_spill] sm:$0xff] }
 0x451   :  { %5883 = vmatpush3.bf16.msra.mxu1 %v5882_v38  ;;  %v5892_v38 = vpack.c.bf16 %v3957_v30, %v3956_v7  ;;  %v4013_v30 = vld [vmem:[%s12218_s3 + $0x988] sm:$0xff] }
 0x452   :  { %5867 = vmatpush3.bf16.msra.mxu0 %v5866_v26  ;;  %5885 = vmatprep.subr.bf16.mxu1 %v5884_v51  ;;  %v3959_v26 = vld [vmem:[%s12218_s3 + $0x7d8] sm:$0xff]  ;;  %v5894_v51 = vpack.c.bf16 %v3941_v20, %v3940_v36  ;;  %v5940_v1 = vpack.c.bf16 %v4013_v30, %v4012_v40  ;;  %v3965_v30 = vld [vmem:[%s12218_s3 + $0x808] sm:$0xff] }
 0x453   :  { %5869 = vmatprep.subr.bf16.mxu0 %v5868_v60  ;;  %v5896_v29 = vpack.c.bf16 %v3959_v26, %v3958_v34  ;;  %v3942_v60 = vld [vmem:[%s12218_s3 + $0x750] sm:$0xff] }
 0x454   :  { %v5898_v50 = vpack.c.bf16 %v3943_v62, %v3942_v60  ;;  %v13491_v60 = vld [vmem:[#allocation137_spill] sm:$0xff] }
 0x455   :  { %5887 = vmatpush3.bf16.msra.mxu1 %v5886_v10  ;;  %v3944_v10 = vld [vmem:[%s12218_s3 + $0x760] sm:$0xff] }
 0x456   :  { %5871 = vmatpush3.bf16.msra.mxu0 %v5870_v47  ;;  %5889 = vmatprep.subr.bf16.mxu1 %v5888_v63  ;;  %v3963_v47 = vld [vmem:[%s12218_s3 + $0x7f8] sm:$0xff]  ;;  %v5902_v63 = vpack.c.bf16 %v3945_v41, %v3944_v10 }
 0x457   :  { %5873 = vmatprep.subr.bf16.mxu0 %v5872_v28  ;;  %v5904_v7 = vpack.c.bf16 %v3963_v47, %v3962_v18  ;;  %v3946_v28 = vld [vmem:[%s12218_s3 + $0x770] sm:$0xff] }
 0x458   :  { %v5906_v58 = vpack.c.bf16 %v3947_v8, %v3946_v28 }
 0x459   :  { %5891 = vmatpush3.bf16.msra.mxu1 %v5890_v4 }
 0x45a   :  { %5875 = vmatpush3.bf16.msra.mxu0 %v5874_v44  ;;  %5893 = vmatprep.subr.bf16.mxu1 %v5892_v38  ;;  %v13489_v38 = vld [vmem:[#allocation75_spill] sm:$0xff] }
 0x45b   :  { %5909 = vmatprep.subr.bf16.mxu0 %v5908_v39 }
 0x45d   :  { %5895 = vmatpush3.bf16.msra.mxu1 %v5894_v51  ;;  %v13490_v51 = vld [vmem:[#allocation138_spill] sm:$0xff] }
 0x45e   :  { %5897 = vmatprep.subr.bf16.mxu1 %v5896_v29 }
 0x461   :  { %5899 = vmatpush3.bf16.msra.mxu1 %v5898_v50 }
 0x462   :  { %5901 = vmatprep.subr.bf16.mxu1 %v5900_v57 }
 0x465   :  { %5903 = vmatpush3.bf16.msra.mxu1 %v5902_v63 }
 0x466   :  { %5905 = vmatprep.subr.bf16.mxu1 %v5904_v7 }
 0x469   :  { %5907 = vmatpush3.bf16.msra.mxu1 %v5906_v58  ;;  %v3982_v58 = vld [vmem:[%s12218_s3 + $0x890] sm:$0xff] }
 0x46a   :  { %5941 = vmatprep.subr.bf16.mxu1 %v5940_v1 }
 0x470   :  { %v3247_v4 = vpop.permute.xlu1 %3246 }
 0x471   :  { %v3259_v44 = vsel %vm846_vm2, %v11316_v16, %v3247_v4 }
 0x472   :  { %v3282_v36 = vmax.f32 %v13489_v38, %v3259_v44 }
 0x474   :  { %v3251_v39 = vpop.permute.xlu1 %3250 }
 0x475   :  { %v3249_v20 = vpop.permute.xlu0 %3248  ;;  %v3285_v29 = vmax.f32 %v13490_v51, %v3251_v39 }
 0x476   :  { %v3260_v34 = vsel %vm846_vm2, %v3247_v4, %v3249_v20  ;;  %v3261_v26 = vsel %vm846_vm2, %v3249_v20, %v3251_v39  ;;  %v3966_v20 = vld [vmem:[%s12218_s3 + $0x810] sm:$0xff]  ;;  %v3967_v39 = vld [vmem:[%s12218_s3 + $0x818] sm:$0xff] }
 0x477   :  { %v3283_v62 = vmax.f32 %v13491_v60, %v3260_v34  ;;  %v3284_v43 = vmax.f32 %v13492_v2, %v3261_v26  ;;  %3297 = vst.msk [vmem:[#allocation2 + $0x118] sm:$0xff] %vm3109_vm8, %v3285_v29  ;;  %v3996_v34 = vld [vmem:[%s12218_s3 + $0x900] sm:$0xff]  ;;  %v4014_v29 = vld [vmem:[%s12218_s3 + $0x990] sm:$0xff]  ;;  %v4015_v60 = vld [vmem:[%s12218_s3 + $0x998] sm:$0xff] }
 0x478   :  { %3299 = vst.msk [vmem:[#allocation2 + $0x118] sm:$0xff] %vm3117_vm9, %v13462_v56 }
 0x479   :  { %4468 = vmatprep.mubr.f32.mxu0 %v3283_v62 }
 0x47a   :  { %4469 = vmatmul.mubr.f32.gmra.mrb[10].mxu0 %v3282_v36  ;;  %v5912_v36 = vpack.c.bf16 %v3983_v59, %v3982_v58  ;;  %v4016_v59 = vld [vmem:[%s12218_s3 + $0x9a0] sm:$0xff] }
 0x47f   :  { %v3695_v16 = vld [vmem:[#allocation2 + $0x118] sm:$0xff] }
 0x480   :  { %4543 = vmatprep.mubr.f32.mxu1 %v3695_v16  ;;  %v3998_v16 = vld [vmem:[%s12218_s3 + $0x910] sm:$0xff] }
 0x481   :  { %4544 = vmatmul.mubr.f32.gmra.mrb[10].mxu1 %v3284_v43  ;;  %v5914_v43 = vpack.c.bf16 %v3967_v39, %v3966_v20 }
 0x48d   :  { %v3411_v50 = vpop.permute.xlu0 %3410 }
 0x491   :  { %v3533_v57 = vpop.permute.xlu0 %3532 }
 0x492   :  { %v3413_v10 = vpop.permute.xlu1 %3412 }
 0x493   :  { %v3433_v41 = vsel %vm846_vm2, %v3411_v50, %v3413_v10 }
 0x494   :  { %v3455_v18 = vmax.f32 %v11062_v12, %v3433_v41  ;;  %v3964_v12 = vld [vmem:[%s12218_s3 + $0x800] sm:$0xff] }
 0x495   :  { %v11667_v47 = vpop.permute.xlu0 %3536  ;;  %v5910_v4 = vpack.c.bf16 %v3965_v30, %v3964_v12  ;;  %v3986_v12 = vld [vmem:[%s12218_s3 + $0x8b0] sm:$0xff] }
 0x496   :  { %v3535_v63 = vpop.permute.xlu1 %3534  ;;  %4613 = vmatprep.mubr.f32.mxu0 %v3455_v18  ;;  %v5942_v18 = vpack.c.bf16 %v3997_v52, %v3996_v34  ;;  %v3970_v34 = vld [vmem:[%s12218_s3 + $0x830] sm:$0xff]  ;;  %v3971_v52 = vld [vmem:[%s12218_s3 + $0x838] sm:$0xff] }
 0x497   :  { %v3548_v7 = vsel %vm172_vm0, %v3533_v57, %v3535_v63  ;;  %v3549_v28 = vsel %vm172_vm0, %v3535_v63, %v11667_v47  ;;  %v3968_v63 = vld [vmem:[%s12218_s3 + $0x820] sm:$0xff] }
 0x498   :  { %v11674_v8 = vmax.f32 %v3501_v46, %v3548_v7  ;;  %v11678_v40 = vmax.f32 %v3502_v19, %v3549_v28  ;;  %v3969_v7 = vld [vmem:[%s12218_s3 + $0x828] sm:$0xff]  ;;  %v5944_v28 = vpack.c.bf16 %v4015_v60, %v4014_v29  ;;  %v4018_v29 = vld [vmem:[%s12218_s3 + $0x9b0] sm:$0xff]  ;;  %v4019_v60 = vld [vmem:[%s12218_s3 + $0x9b8] sm:$0xff] }
 0x499   :  { %v3531_v46 = vpop.permute.xlu0 %3530  ;;  %v5952_v45 = vpack.c.bf16 %v4019_v60, %v4018_v29  ;;  %v3977_v29 = vld [vmem:[%s12218_s3 + $0x868] sm:$0xff]  ;;  %v4007_v60 = vld [vmem:[%s12218_s3 + $0x958] sm:$0xff] }
 0x49a   :  { %3604 = vrot.lane.b32.xlu0 %v11678_v40, %s6173_s15  ;;  %3602 = vrot.lane.b32.xlu1 %v11674_v8, %s6173_s15  ;;  %v3409_v23 = vpop.permute.xlu1 %3408  ;;  %v3547_v19 = vsel %vm172_vm0, %v3531_v46, %v3533_v57  ;;  %v4017_v46 = vld [vmem:[%s12218_s3 + $0x9a8] sm:$0xff] }
 0x49b   :  { %v3432_v1 = vsel %vm846_vm2, %v3409_v23, %v3411_v50  ;;  %v11700_v44 = vmax.f32 %v3500_v32, %v3547_v19  ;;  %v3984_v32 = vld [vmem:[%s12218_s3 + $0x8a0] sm:$0xff]  ;;  %v3999_v50 = vld [vmem:[%s12218_s3 + $0x918] sm:$0xff] }
 0x49c   :  { %v3454_v38 = vmax.f32 %v11253_v3, %v3432_v1  ;;  %v3985_v3 = vld [vmem:[%s12218_s3 + $0x8a8] sm:$0xff]  ;;  %v5946_v58 = vpack.c.bf16 %v3999_v50, %v3998_v16  ;;  %v5918_v1 = vpack.c.bf16 %v3969_v7, %v3968_v63  ;;  %v3972_v50 = vld [vmem:[%s12218_s3 + $0x840] sm:$0xff]  ;;  %v3990_v7 = vld [vmem:[%s12218_s3 + $0x8d0] sm:$0xff] }
 0x49d   :  { %v11721_v26 = vpop.permute.xlu0 %3416  ;;  %v3973_v63 = vld [vmem:[%s12218_s3 + $0x848] sm:$0xff] }
 0x49e   :  { %3600 = vrot.lane.b32.xlu1 %v11700_v44, %s6173_s15  ;;  %v3415_v51 = vpop.permute.xlu1 %3414  ;;  %4614 = vmatmul.mubr.f32.vlgmr.msra.gmra.mrb[12].mxu0 %v3454_v38  ;;  %v13493_v38 = vld [vmem:[#allocation30_spill] sm:$0xff] }
 0x49f   :  { %v3434_v62 = vsel %vm846_vm2, %v3413_v10, %v3415_v51  ;;  %v3435_v2 = vsel %vm846_vm2, %v3415_v51, %v11721_v26  ;;  %5911 = vmatpush3.bf16.msra.mxu0 %v5910_v4  ;;  %v5916_v10 = vpack.c.bf16 %v3985_v3, %v3984_v32  ;;  %v4000_v4 = vld [vmem:[%s12218_s3 + $0x920] sm:$0xff]  ;;  %v4001_v32 = vld [vmem:[%s12218_s3 + $0x928] sm:$0xff]  ;;  %v5948_v3 = vpack.c.bf16 %v4017_v46, %v4016_v59 }
 0x4a0   :  { %v3456_v57 = vmax.f32 %v11136_v27, %v3434_v62  ;;  %v3457_v41 = vmax.f32 %v11297_v24, %v3435_v2  ;;  %5913 = vmatprep.subr.bf16.mxu0 %v5912_v36  ;;  %v3987_v27 = vld [vmem:[%s12218_s3 + $0x8b8] sm:$0xff]  ;;  %v13494_v36 = vmax.f32 %v13493_v38, 0.0  ;;  %v5950_v16 = vpack.c.bf16 %v4001_v32, %v4000_v4  ;;  %v3992_v4 = vld [vmem:[%s12218_s3 + $0x8e0] sm:$0xff]  ;;  %v3993_v38 = vld [vmem:[%s12218_s3 + $0x8e8] sm:$0xff] }
 0x4a1   :  { %v3529_v24 = vpop.permute.xlu0 %3528  ;;  %v4006_v32 = vld [vmem:[%s12218_s3 + $0x950] sm:$0xff] }
 0x4a2   :  { %v3527_v30 = vpop.permute.xlu1 %3526  ;;  %4688 = vmatprep.mubr.f32.mxu1 %v3457_v41  ;;  %v4003_v41 = vld [vmem:[%s12218_s3 + $0x938] sm:$0xff] }
 0x4a3   :  { %v3545_v23 = vsel %vm172_vm0, %v11464_v35, %v3527_v30  ;;  %v3546_v19 = vsel %vm172_vm0, %v3527_v30, %v3529_v24  ;;  %5915 = vmatpush3.bf16.msra.mxu0 %v5914_v43  ;;  %4689 = vmatmul.mubr.f32.vlgmr.msra.gmra.mrb[12].mxu1 %v3456_v57  ;;  %v5920_v35 = vpack.c.bf16 %v3987_v27, %v3986_v12  ;;  %v4002_v57 = vld [vmem:[%s12218_s3 + $0x930] sm:$0xff]  ;;  %v4021_v12 = vld [vmem:[%s12218_s3 + $0x9c8] sm:$0xff] }
 0x4a4   :  { %v11768_v20 = vmax.f32 %v13494_v36, %v3545_v23  ;;  %v11772_v39 = vmax.f32 %v3498_v33, %v3546_v19  ;;  %5943 = vmatpush3.bf16.msra.mxu1 %v5942_v18  ;;  %5917 = vmatprep.subr.bf16.mxu0 %v5916_v10  ;;  %v3989_v33 = vld [vmem:[%s12218_s3 + $0x8c8] sm:$0xff]  ;;  %v5922_v43 = vpack.c.bf16 %v3971_v52, %v3970_v34  ;;  %v3974_v19 = vld [vmem:[%s12218_s3 + $0x850] sm:$0xff] }
 0x4a5   :  { %5945 = vmatprep.subr.bf16.mxu1 %v5944_v28  ;;  %v3541_v62 = vpop.permute.xlu0 %3540  ;;  %v11812_v18 = vmax.f32 %v3499_v49, %v3529_v24  ;;  %v5924_v10 = vpack.c.bf16 %v3989_v33, %v3988_v5  ;;  %v4020_v28 = vld [vmem:[%s12218_s3 + $0x9c0] sm:$0xff]  ;;  %v5926_v24 = vpack.c.bf16 %v3973_v63, %v3972_v50  ;;  %v5954_v30 = vpack.c.bf16 %v4003_v41, %v4002_v57  ;;  %v4022_v36 = vld [vmem:[%s12218_s3 + $0x9d0] sm:$0xff]  ;;  %v4025_v57 = vld [vmem:[%s12218_s3 + $0x9e8] sm:$0xff] }
 0x4a6   :  { %3596 = vrot.lane.b32.xlu1 %v11772_v39, %s6173_s15  ;;  %3594 = vrot.lane.b32.xlu0 %v11768_v20, %s6173_s15  ;;  %v3539_v51 = vpop.permute.xlu1 %3538  ;;  %v11840_v59 = vmax.f32 %v3505_v6, %v3541_v62  ;;  %v4005_v6 = vld [vmem:[%s12218_s3 + $0x948] sm:$0xff]  ;;  %v5932_v33 = vpack.c.bf16 %v3993_v38, %v3992_v4  ;;  %v4024_v50 = vld [vmem:[%s12218_s3 + $0x9e0] sm:$0xff] }
 0x4a7   :  { %v3550_v2 = vsel %vm172_vm0, %v11667_v47, %v3539_v51  ;;  %5919 = vmatpush3.bf16.msra.mxu0 %v5918_v1  ;;  %v3551_v49 = vsel %vm172_vm0, %v3539_v51, %v3541_v62  ;;  %v3975_v1 = vld [vmem:[%s12218_s3 + $0x858] sm:$0xff]  ;;  %v5958_v5 = vpack.c.bf16 %v4005_v6, %v4004_v13  ;;  %v3976_v51 = vld [vmem:[%s12218_s3 + $0x860] sm:$0xff] }
 0x4a8   :  { %v11816_v47 = vmax.f32 %v3503_v31, %v3550_v2  ;;  %5947 = vmatpush3.bf16.msra.mxu1 %v5946_v58  ;;  %5921 = vmatprep.subr.bf16.mxu0 %v5920_v35  ;;  %v5928_v58 = vpack.c.bf16 %v3991_v0, %v3990_v7  ;;  %v11844_v46 = vmax.f32 %v3504_v37, %v3551_v49  ;;  %v4023_v35 = vld [vmem:[%s12218_s3 + $0x9d8] sm:$0xff] }
 0x4a9   :  { %5949 = vmatprep.subr.bf16.mxu1 %v5948_v3  ;;  %v3425_v27 = vpop.permute.xlu0 %3424  ;;  %v5956_v37 = vpack.c.bf16 %v4021_v12, %v4020_v28  ;;  %v5930_v52 = vpack.c.bf16 %v3975_v1, %v3974_v19  ;;  %v5960_v62 = vpack.c.bf16 %v4023_v35, %v4022_v36  ;;  %v3995_v2 = vld [vmem:[%s12218_s3 + $0x8f8] sm:$0xff]  ;;  %v5934_v63 = vpack.c.bf16 %v3977_v29, %v3976_v51  ;;  %v4008_v12 = vld [vmem:[%s12218_s3 + $0x960] sm:$0xff]  ;;  %v4077_v36 = vld [vmem:[%s12218_s3 + $0xb88] sm:$0xff] }
 0x4aa   :  { %3598 = vrot.lane.b32.xlu0 %v11812_v18, %s6173_s15  ;;  %3606 = vrot.lane.b32.xlu1 %v11816_v47, %s6173_s15  ;;  %v3423_v31 = vpop.permute.xlu1 %3422  ;;  %v5962_v7 = vpack.c.bf16 %v4007_v60, %v4006_v32  ;;  %v3979_v28 = vld [vmem:[%s12218_s3 + $0x878] sm:$0xff]  ;;  %v4028_v32 = vld [vmem:[%s12218_s3 + $0xa00] sm:$0xff] }
 0x4ab   :  { %5923 = vmatpush3.bf16.msra.mxu0 %v5922_v43  ;;  %v3438_v23 = vsel %vm846_vm2, %v3423_v31, %v3425_v27  ;;  %v4061_v51 = vld [vmem:[%s12218_s3 + $0xb08] sm:$0xff]  ;;  %v4047_v60 = vld [vmem:[%s12218_s3 + $0xa98] sm:$0xff] }
 0x4ac   :  { %5951 = vmatpush3.bf16.msra.mxu1 %v5950_v16  ;;  %5925 = vmatprep.subr.bf16.mxu0 %v5924_v10  ;;  %v3461_v61 = vmax.f32 %v11370_v14, %v3438_v23  ;;  %v4027_v23 = vld [vmem:[%s12218_s3 + $0x9f8] sm:$0xff] }
 0x4ad   :  { %5953 = vmatprep.subr.bf16.mxu1 %v5952_v45 }
 0x4ae   :  { %3608 = vrot.lane.b32.xlu0 %v11844_v46, %s6173_s15  ;;  %3610 = vrot.lane.b32.xlu1 %v11840_v59, %s6173_s15  ;;  %v3421_v14 = vpop.permute.xlu1 %3420 }
 0x4af   :  { %v3437_v34 = vsel %vm846_vm2, %v3421_v14, %v3423_v31  ;;  %4618 = vmatprep.mubr.f32.mxu0 %v3461_v61  ;;  %5927 = vmatpush3.bf16.msra.mxu0 %v5926_v24  ;;  %v3978_v31 = vld [vmem:[%s12218_s3 + $0x870] sm:$0xff]  ;;  %v4045_v24 = vld [vmem:[%s12218_s3 + $0xa88] sm:$0xff]  ;;  %v4076_v14 = vld [vmem:[%s12218_s3 + $0xb80] sm:$0xff] }
 0x4b0   :  { %v3460_v3 = vmax.f32 %v11398_v21, %v3437_v34  ;;  %5955 = vmatpush3.bf16.msra.mxu1 %v5954_v30  ;;  %5929 = vmatprep.subr.bf16.mxu0 %v5928_v58  ;;  %v3994_v21 = vld [vmem:[%s12218_s3 + $0x8f0] sm:$0xff]  ;;  %v5938_v13 = vpack.c.bf16 %v3979_v28, %v3978_v31 }
 0x4b1   :  { %5957 = vmatprep.subr.bf16.mxu1 %v5956_v37  ;;  %v3427_v43 = vpop.permute.xlu0 %3426  ;;  %v5936_v45 = vpack.c.bf16 %v3995_v2, %v3994_v21  ;;  %v4026_v58 = vld [vmem:[%s12218_s3 + $0x9f0] sm:$0xff]  ;;  %v4079_v21 = vld [vmem:[%s12218_s3 + $0xb98] sm:$0xff] }
 0x4b2   :  { %v11896_v16 = vpop.permute.xlu1 %3428  ;;  %4619 = vmatmul.mubr.f32.gmra.mrb[14].mxu0 %v3460_v3  ;;  %v3439_v41 = vsel %vm846_vm2, %v3425_v27, %v3427_v43  ;;  %v5964_v27 = vpack.c.bf16 %v4025_v57, %v4024_v50  ;;  %v5968_v4 = vpack.c.bf16 %v4027_v23, %v4026_v58  ;;  %v4029_v3 = vld [vmem:[%s12218_s3 + $0xa08] sm:$0xff] }
 0x4b3   :  { %v3440_v10 = vsel %vm846_vm2, %v3427_v43, %v11896_v16  ;;  %5931 = vmatpush3.bf16.msra.mxu0 %v5930_v52  ;;  %v3462_v0 = vmax.f32 %v11374_v25, %v3439_v41  ;;  %v4009_v25 = vld [vmem:[%s12218_s3 + $0x968] sm:$0xff]  ;;  %v5974_v57 = vpack.c.bf16 %v4029_v3, %v4028_v32  ;;  %v4035_v3 = vld [vmem:[%s12218_s3 + $0xa38] sm:$0xff] }
 0x4b4   :  { %v3463_v49 = vmax.f32 %v11421_v42, %v3440_v10  ;;  %5959 = vmatpush3.bf16.msra.mxu1 %v5958_v5  ;;  %5933 = vmatprep.subr.bf16.mxu0 %v5932_v33  ;;  %v4044_v42 = vld [vmem:[%s12218_s3 + $0xa80] sm:$0xff]  ;;  %v5966_v37 = vpack.c.bf16 %v4009_v25, %v4008_v12  ;;  %v4046_v5 = vld [vmem:[%s12218_s3 + $0xa90] sm:$0xff]  ;;  %v6004_v33 = vpack.c.bf16 %v4077_v36, %v4076_v14  ;;  %v4063_v25 = vld [vmem:[%s12218_s3 + $0xb18] sm:$0xff] }
 0x4b5   :  { %5961 = vmatprep.subr.bf16.mxu1 %v5960_v62  ;;  %v3419_v30 = vpop.permute.xlu0 %3418  ;;  %v5972_v6 = vpack.c.bf16 %v4045_v24, %v4044_v42  ;;  %v4078_v62 = vld [vmem:[%s12218_s3 + $0xb90] sm:$0xff]  ;;  %v5976_v28 = vpack.c.bf16 %v4047_v60, %v4046_v5  ;;  %v4080_v42 = vld [vmem:[%s12218_s3 + $0xba0] sm:$0xff]  ;;  %v4081_v24 = vld [vmem:[%s12218_s3 + $0xba8] sm:$0xff] }
 0x4b6   :  { %4693 = vmatprep.mubr.f32.mxu1 %v3463_v49  ;;  %v11935_v19 = vsel %vm846_vm2, %v11721_v26, %v3419_v30  ;;  %v3459_v1 = vmax.f32 %v11450_v22, %v3419_v30  ;;  %v4010_v26 = vld [vmem:[%s12218_s3 + $0x970] sm:$0xff]  ;;  %v4011_v22 = vld [vmem:[%s12218_s3 + $0x978] sm:$0xff]  ;;  %v6008_v12 = vpack.c.bf16 %v4079_v21, %v4078_v62  ;;  %v4084_v60 = vld [vmem:[%s12218_s3 + $0xbc0] sm:$0xff] }
 0x4b7   :  { %5935 = vmatpush3.bf16.msra.mxu0 %v5934_v63  ;;  %4694 = vmatmul.mubr.f32.gmra.mrb[14].mxu1 %v3462_v0  ;;  %v3458_v61 = vmax.f32 %v11301_v9, %v11935_v19  ;;  %v5970_v52 = vpack.c.bf16 %v4011_v22, %v4010_v26  ;;  %v4030_v0 = vld [vmem:[%s12218_s3 + $0xa10] sm:$0xff]  ;;  %v4031_v49 = vld [vmem:[%s12218_s3 + $0xa18] sm:$0xff]  ;;  %v4033_v22 = vld [vmem:[%s12218_s3 + $0xa28] sm:$0xff] }
 0x4b8   :  { %5963 = vmatpush3.bf16.msra.mxu1 %v5962_v7  ;;  %5937 = vmatprep.subr.bf16.mxu0 %v5936_v45  ;;  %3471 = vst.msk [vmem:[#allocation2 + $0x88] sm:$0xff] %vm3109_vm8, %v3459_v1  ;;  %v5978_v58 = vpack.c.bf16 %v4031_v49, %v4030_v0  ;;  %v4083_v14 = vld [vmem:[%s12218_s3 + $0xbb8] sm:$0xff]  ;;  %v4050_v36 = vld [vmem:[%s12218_s3 + $0xab0] sm:$0xff]  ;;  %v4085_v62 = vld [vmem:[%s12218_s3 + $0xbc8] sm:$0xff] }
 0x4b9   :  { %5965 = vmatprep.subr.bf16.mxu1 %v5964_v27  ;;  %3478 = vst.msk [vmem:[#allocation2 + $0x88] sm:$0xff] %vm3117_vm9, %v13462_v56  ;;  %v3591_v38 = vpop.permute.xlu1 %3590  ;;  %v4062_v27 = vld [vmem:[%s12218_s3 + $0xb10] sm:$0xff]  ;;  %v4052_v21 = vld [vmem:[%s12218_s3 + $0xac0] sm:$0xff]  ;;  %v4037_v0 = vld [vmem:[%s12218_s3 + $0xa48] sm:$0xff] }
 0x4ba   :  { %v11949_v9 = vpop.permute.xlu0 %3592  ;;  %v6010_v23 = vpack.c.bf16 %v4063_v25, %v4062_v27  ;;  %v4086_v49 = vld [vmem:[%s12218_s3 + $0xbd0] sm:$0xff]  ;;  %v4071_v25 = vld [vmem:[%s12218_s3 + $0xb58] sm:$0xff] }
 0x4bb   :  { %v3613_v35 = vsel %vm846_vm2, %v3591_v38, %v11949_v9  ;;  %5939 = vmatpush3.bf16.msra.mxu0 %v5938_v13  ;;  %v4032_v13 = vld [vmem:[%s12218_s3 + $0xa20] sm:$0xff]  ;;  %v4070_v27 = vld [vmem:[%s12218_s3 + $0xb50] sm:$0xff] }
 0x4bc   :  { %v3635_v34 = vmax.f32 %v11477_v55, %v3613_v35  ;;  %5967 = vmatpush3.bf16.msra.mxu1 %v5966_v37  ;;  %5973 = vmatprep.subr.bf16.mxu0 %v5972_v6  ;;  %v4060_v55 = vld [vmem:[%s12218_s3 + $0xb00] sm:$0xff]  ;;  %v5214_v50 = vpop.f32.mrb[2].mxu0  ;;  %v6012_v37 = vpack.c.bf16 %v4081_v24, %v4080_v42  ;;  %v5982_v32 = vpack.c.bf16 %v4033_v22, %v4032_v13  ;;  %v4039_v42 = vld [vmem:[%s12218_s3 + $0xa58] sm:$0xff]  ;;  %v4090_v22 = vld [vmem:[%s12218_s3 + $0xbf0] sm:$0xff] }
 0x4bd   :  { %5969 = vmatprep.subr.bf16.mxu1 %v5968_v4  ;;  %v3589_v29 = vpop.permute.xlu1 %3588  ;;  %v5215_v7 = vpop.f32.mrb[3].mxu0  ;;  %v6006_v45 = vpack.c.bf16 %v4061_v51, %v4060_v55  ;;  %v4064_v6 = vld [vmem:[%s12218_s3 + $0xb20] sm:$0xff]  ;;  %v4067_v55 = vld [vmem:[%s12218_s3 + $0xb38] sm:$0xff] }
 0x4be   :  { %4838 = vmatprep.mubr.f32.mxu1 %v3635_v34  ;;  %v3612_v43 = vsel %vm846_vm2, %v3589_v29, %v3591_v38  ;;  %v4082_v38 = vld [vmem:[%s12218_s3 + $0xbb0] sm:$0xff]  ;;  %v4088_v24 = vld [vmem:[%s12218_s3 + $0xbe0] sm:$0xff] }
 0x4bf   :  { %v3431_v2 = vpop.permute.xlu0 %3430  ;;  %v3634_v63 = vmax.f32 %v11519_v11, %v3612_v43  ;;  %v5216_v11 = vadd.f32 %v5215_v7, %v5214_v50  ;;  %v4034_v34 = vld [vmem:[%s12218_s3 + $0xa30] sm:$0xff]  ;;  %v6016_v5 = vpack.c.bf16 %v4083_v14, %v4082_v38  ;;  %v4040_v13 = vld [vmem:[%s12218_s3 + $0xa60] sm:$0xff]  ;;  %v4091_v38 = vld [vmem:[%s12218_s3 + $0xbf8] sm:$0xff] }
 0x4c0   :  { %v11987_v41 = vsel %vm846_vm2, %v11896_v16, %v3431_v2  ;;  %v3465_v10 = vmax.f32 %v11533_v48, %v3431_v2  ;;  %5971 = vmatpush3.bf16.msra.mxu1 %v5970_v52  ;;  %v4048_v16 = vld [vmem:[%s12218_s3 + $0xaa0] sm:$0xff]  ;;  %v3677_v31 = vld [vmem:[#allocation2 + $0x88] sm:$0xff]  ;;  %v5986_v50 = vpack.c.bf16 %v4035_v3, %v4034_v34  ;;  %v4058_v14 = vld [vmem:[%s12218_s3 + $0xaf0] sm:$0xff] }
 0x4c1   :  { %v3464_v48 = vmax.f32 %v11425_v54, %v11987_v41  ;;  %6005 = vmatprep.subr.bf16.mxu1 %v6004_v33  ;;  %4763 = vmatprep.mubr.f32.mxu0 %v3677_v31  ;;  %v4049_v54 = vld [vmem:[%s12218_s3 + $0xaa8] sm:$0xff]  ;;  %v4171_v4 = vadd.f32 %v5216_v11, %v11514_v15  ;;  %v4051_v15 = vld [vmem:[%s12218_s3 + $0xab8] sm:$0xff]  ;;  %v4066_v33 = vld [vmem:[%s12218_s3 + $0xb30] sm:$0xff]  ;;  %v6020_v41 = vpack.c.bf16 %v4085_v62, %v4084_v60 }
 0x4c2   :  { %3477 = vst.msk [vmem:[#allocation2 + $0x148] sm:$0xff] %vm3109_vm8, %v3465_v10  ;;  %4764 = vmatmul.mubr.f32.vlgmr.msra.gmra.mrb[16].mxu0 %v3458_v61  ;;  %v5252_v30 = vpop.f32.mrb[2].mxu1  ;;  %v5980_v1 = vpack.c.bf16 %v4049_v54, %v4048_v16  ;;  %v4065_v61 = vld [vmem:[%s12218_s3 + $0xb28] sm:$0xff]  ;;  %v5984_v29 = vpack.c.bf16 %v4051_v15, %v4050_v36  ;;  %v6018_v43 = vpack.c.bf16 %v4067_v55, %v4066_v33  ;;  %v4068_v10 = vld [vmem:[%s12218_s3 + $0xb40] sm:$0xff]  ;;  %v4054_v16 = vld [vmem:[%s12218_s3 + $0xad0] sm:$0xff] }
 0x4c3   :  { %3479 = vst.msk [vmem:[#allocation2 + $0x148] sm:$0xff] %vm3117_vm9, %v13462_v56  ;;  %4839 = vmatmul.mubr.f32.vlgmr.msra.gmra.mrb[16].mxu1 %v3634_v63  ;;  %5975 = vmatpush3.bf16.msra.mxu0 %v5974_v57  ;;  %v5253_v19 = vpop.f32.mrb[3].mxu1  ;;  %v6014_v52 = vpack.c.bf16 %v4065_v61, %v4064_v6  ;;  %v4053_v2 = vld [vmem:[%s12218_s3 + $0xac8] sm:$0xff]  ;;  %v4036_v57 = vld [vmem:[%s12218_s3 + $0xa40] sm:$0xff]  ;;  %v4059_v36 = vld [vmem:[%s12218_s3 + $0xaf8] sm:$0xff] }
 0x4c4   :  { %6007 = vmatpush3.bf16.msra.mxu1 %v6006_v45  ;;  %5977 = vmatprep.subr.bf16.mxu0 %v5976_v28  ;;  %v5254_v26 = vadd.f32 %v5253_v19, %v5252_v30  ;;  %v4069_v63 = vld [vmem:[%s12218_s3 + $0xb48] sm:$0xff]  ;;  %v5988_v7 = vpack.c.bf16 %v4053_v2, %v4052_v21  ;;  %v4087_v45 = vld [vmem:[%s12218_s3 + $0xbd8] sm:$0xff]  ;;  %v5990_v11 = vpack.c.bf16 %v4037_v0, %v4036_v57  ;;  %v4038_v28 = vld [vmem:[%s12218_s3 + $0xa50] sm:$0xff] }
 0x4c5   :  { %6009 = vmatprep.subr.bf16.mxu1 %v6008_v12  ;;  %v6022_v31 = vpack.c.bf16 %v4069_v63, %v4068_v10  ;;  %v6024_v12 = vpack.c.bf16 %v4087_v45, %v4086_v49  ;;  %v4089_v30 = vld [vmem:[%s12218_s3 + $0xbe8] sm:$0xff]  ;;  %v6026_v19 = vpack.c.bf16 %v4071_v25, %v4070_v27  ;;  %v4072_v6 = vld [vmem:[%s12218_s3 + $0xb60] sm:$0xff]  ;;  %v4075_v3 = vld [vmem:[%s12218_s3 + $0xb78] sm:$0xff] }
 0x4c6   :  { %v12045_v35 = vadd.f32 %v5254_v26, %v4171_v4  ;;  %v4073_v61 = vld [vmem:[%s12218_s3 + $0xb68] sm:$0xff]  ;;  %v4042_v33 = vld [vmem:[%s12218_s3 + $0xa70] sm:$0xff]  ;;  %v4043_v55 = vld [vmem:[%s12218_s3 + $0xa78] sm:$0xff] }
 0x4c7   :  { %5979 = vmatpush3.bf16.msra.mxu0 %v5978_v58  ;;  %v4056_v58 = vld [vmem:[%s12218_s3 + $0xae0] sm:$0xff]  ;;  %v4041_v26 = vld [vmem:[%s12218_s3 + $0xa68] sm:$0xff]  ;;  %v6030_v15 = vpack.c.bf16 %v4073_v61, %v4072_v6 }
 0x4c8   :  { %6011 = vmatpush3.bf16.msra.mxu1 %v6010_v23  ;;  %5981 = vmatprep.subr.bf16.mxu0 %v5980_v1  ;;  %v4057_v23 = vld [vmem:[%s12218_s3 + $0xae8] sm:$0xff]  ;;  %v5994_v1 = vpack.c.bf16 %v4039_v42, %v4038_v28  ;;  %v5998_v34 = vpack.c.bf16 %v4041_v26, %v4040_v13 }
 0x4c9   :  { %6013 = vmatprep.subr.bf16.mxu1 %v6012_v37  ;;  %v6028_v37 = vpack.c.bf16 %v4089_v30, %v4088_v24  ;;  %v5996_v4 = vpack.c.bf16 %v4057_v23, %v4056_v58 }
 0x4ca   :  { %v3701_v51 = vld [vmem:[#allocation2 + $0x148] sm:$0xff] }
 0x4cb   :  { %4768 = vmatprep.mubr.f32.mxu0 %v3701_v51  ;;  %5983 = vmatpush3.bf16.msra.mxu0 %v5982_v32  ;;  %v4074_v32 = vld [vmem:[%s12218_s3 + $0xb70] sm:$0xff] }
 0x4cc   :  { %4769 = vmatmul.mubr.f32.gmra.mrb[18].mxu0 %v3464_v48  ;;  %6015 = vmatpush3.bf16.msra.mxu1 %v6014_v52  ;;  %v4055_v48 = vld [vmem:[%s12218_s3 + $0xad8] sm:$0xff]  ;;  %v6032_v52 = vpack.c.bf16 %v4091_v38, %v4090_v22  ;;  %v6034_v51 = vpack.c.bf16 %v4075_v3, %v4074_v32 }
 0x4cd   :  { %6017 = vmatprep.subr.bf16.mxu1 %v6016_v5  ;;  %5985 = vmatprep.subr.bf16.mxu0 %v5984_v29  ;;  %v5992_v54 = vpack.c.bf16 %v4055_v48, %v4054_v16  ;;  %v6000_v5 = vpack.c.bf16 %v4059_v36, %v4058_v14  ;;  %v6002_v29 = vpack.c.bf16 %v4043_v55, %v4042_v33 }
 0x4cf   :  { %5987 = vmatpush3.bf16.msra.mxu0 %v5986_v50 }
 0x4d0   :  { %6019 = vmatpush3.bf16.msra.mxu1 %v6018_v43  ;;  %5989 = vmatprep.subr.bf16.mxu0 %v5988_v7 }
 0x4d1   :  { %6021 = vmatprep.subr.bf16.mxu1 %v6020_v41 }
 0x4d3   :  { %5991 = vmatpush3.bf16.msra.mxu0 %v5990_v11 }
 0x4d4   :  { %6023 = vmatpush3.bf16.msra.mxu1 %v6022_v31  ;;  %5993 = vmatprep.subr.bf16.mxu0 %v5992_v54 }
 0x4d5   :  { %6025 = vmatprep.subr.bf16.mxu1 %v6024_v12 }
 0x4d7   :  { %5995 = vmatpush3.bf16.msra.mxu0 %v5994_v1 }
 0x4d8   :  { %6027 = vmatpush3.bf16.msra.mxu1 %v6026_v19  ;;  %5997 = vmatprep.subr.bf16.mxu0 %v5996_v4 }
 0x4d9   :  { %6029 = vmatprep.subr.bf16.mxu1 %v6028_v37 }
 0x4db   :  { %5999 = vmatpush3.bf16.msra.mxu0 %v5998_v34 }
 0x4dc   :  { %6031 = vmatpush3.bf16.msra.mxu1 %v6030_v15  ;;  %6001 = vmatprep.subr.bf16.mxu0 %v6000_v5 }
 0x4dd   :  { %6033 = vmatprep.subr.bf16.mxu1 %v6032_v52 }
 0x4df   :  { %6003 = vmatpush3.bf16.msra.mxu0 %v6002_v29 }
 0x4e0   :  { %6035 = vmatpush3.bf16.msra.mxu1 %v6034_v51 }
 0x4e1   :  { %v5287_v60 = vpop.f32.mrb[4].mxu0 }
 0x4e2   :  { %v5288_v62 = vpop.f32.mrb[5].mxu0 }
 0x4e3   :  { %v5289_v21 = vadd.f32 %v5288_v62, %v5287_v60 }
 0x4e5   :  { %v4316_v2 = vadd.f32 %v5289_v21, %v11571_v53 }
 0x4e9   :  { %v5325_v43 = vpop.f32.mrb[4].mxu1 }
 0x4ea   :  { %v5326_v50 = vpop.f32.mrb[5].mxu1 }
 0x4eb   :  { %v5327_v57 = vadd.f32 %v5326_v50, %v5325_v43  ;;  %v5001_v50 = vld [vmem:[%s12220_s5] sm:$0xff] }
 0x4ed   :  { %v4391_v41 = vadd.f32 %v5327_v57, %v4316_v2  ;;  %v5002_v57 = vld [vmem:[%s12220_s5 + $0x8] sm:$0xff] }
 0x505   :  { %v5328_v10 = vpop.f32.mrb[6].mxu1 }
 0x506   :  { %v5329_v63 = vpop.f32.mrb[7].mxu1 }
 0x507   :  { %v5330_v7 = vadd.f32 %v5329_v63, %v5328_v10  ;;  %v5290_v0 = vpop.f32.mrb[6].mxu0  ;;  %v5003_v10 = vld [vmem:[%s12220_s5 + $0x10] sm:$0xff]  ;;  %v5004_v63 = vld [vmem:[%s12220_s5 + $0x18] sm:$0xff] }
 0x508   :  { %v5291_v49 = vpop.f32.mrb[7].mxu0 }
 0x509   :  { %v5292_v45 = vadd.f32 %v5291_v49, %v5290_v0 }
 0x50b   :  { %v4321_v16 = vadd.f32 %v5292_v45, %v12045_v35 }
 0x50c   :  { %v3605_v48 = vpop.permute.xlu0 %3604  ;;  %v3603_v31 = vpop.permute.xlu1 %3602 }
 0x50d   :  { %v3618_v11 = vsel %vm846_vm2, %v3603_v31, %v3605_v48  ;;  %v4396_v12 = vadd.f32 %v5330_v7, %v4321_v16  ;;  %v6040_v7 = vpack.c.bf16 %v5004_v63, %v5003_v10 }
 0x50e   :  { %v3641_v28 = vmax.f32 %v11674_v8, %v3618_v11 }
 0x50f   :  { %v5363_v27 = vpop.f32.mrb[8].mxu0 }
 0x510   :  { %v3601_v53 = vpop.permute.xlu1 %3600  ;;  %4843 = vmatprep.mubr.f32.mxu1 %v3641_v28  ;;  %v5364_v54 = vpop.f32.mrb[9].mxu0 }
 0x511   :  { %v3617_v25 = vsel %vm846_vm2, %v3601_v53, %v3603_v31  ;;  %v5365_v24 = vadd.f32 %v5364_v54, %v5363_v27 }
 0x512   :  { %v3640_v42 = vmax.f32 %v11700_v44, %v3617_v25 }
 0x513   :  { %v4466_v30 = vadd.f32 %v5365_v24, %v4391_v41  ;;  %v6036_v41 = vpack.c.bf16 %v5002_v57, %v5001_v50 }
 0x514   :  { %4844 = vmatmul.mubr.f32.gmra.mrb[18].mxu1 %v3640_v42 }
 0x515   :  { %6037 = vmatprep.subr.bf16.mxu0 %v6036_v41 }
 0x518   :  { %v3595_v58 = vpop.permute.xlu0 %3594  ;;  %v3597_v35 = vpop.permute.xlu1 %3596 }
 0x519   :  { %v3614_v23 = vsel %vm846_vm2, %v11949_v9, %v3595_v58  ;;  %v3615_v19 = vsel %vm846_vm2, %v3595_v58, %v3597_v35 }
 0x51a   :  { %v3636_v8 = vmax.f32 %v11481_v17, %v3614_v23  ;;  %v3637_v1 = vmax.f32 %v11768_v20, %v3615_v19 }
 0x51c   :  { %v3599_v13 = vpop.permute.xlu0 %3598  ;;  %v3607_v37 = vpop.permute.xlu1 %3606  ;;  %4913 = vmatprep.mubr.f32.mxu0 %v3637_v1 }
 0x51d   :  { %v3616_v6 = vsel %vm846_vm2, %v3597_v35, %v3599_v13  ;;  %v3639_v44 = vmax.f32 %v11812_v18, %v3599_v13  ;;  %v3619_v61 = vsel %vm846_vm2, %v3605_v48, %v3607_v37  ;;  %4914 = vmatmul.mubr.f32.vlgmr.msra.gmra.mrb[20].mxu0 %v3636_v8 }
 0x51e   :  { %v3638_v4 = vmax.f32 %v11772_v39, %v3616_v6  ;;  %v3642_v9 = vmax.f32 %v11678_v40, %v3619_v61  ;;  %6039 = vmatpush3.bf16.msra.mxu0 %v6036_v41 }
 0x51f   :  { %3651 = vst.msk [vmem:[#allocation2 + $0xb8] sm:$0xff] %vm3109_vm8, %v3639_v44  ;;  %v5401_v17 = vpop.f32.mrb[8].mxu1  ;;  %6041 = vmatprep.subr.bf16.mxu0 %v6040_v7 }
 0x520   :  { %3658 = vst.msk [vmem:[#allocation2 + $0xb8] sm:$0xff] %vm3117_vm9, %v13462_v56  ;;  %v3609_v20 = vpop.permute.xlu0 %3608  ;;  %v3611_v22 = vpop.permute.xlu1 %3610 }
 0x521   :  { %v3620_v26 = vsel %vm846_vm2, %v3607_v37, %v3609_v20  ;;  %v5402_v38 = vpop.f32.mrb[9].mxu1  ;;  %v3621_v14 = vsel %vm846_vm2, %v3609_v20, %v3611_v22  ;;  %v3645_v36 = vmax.f32 %v11840_v59, %v3611_v22 }
 0x522   :  { %v3643_v18 = vmax.f32 %v11816_v47, %v3620_v26  ;;  %v5403_v39 = vadd.f32 %v5402_v38, %v5401_v17  ;;  %v3644_v40 = vmax.f32 %v11844_v46, %v3621_v14  ;;  %6043 = vmatpush3.bf16.msra.mxu0 %v6040_v7 }
 0x523   :  { %3657 = vst.msk [vmem:[#allocation2 + $0x178] sm:$0xff] %vm3109_vm8, %v3645_v36 }
 0x524   :  { %v4541_v15 = vadd.f32 %v5403_v39, %v4466_v30  ;;  %4918 = vmatprep.mubr.f32.mxu0 %v3643_v18  ;;  %3659 = vst.msk [vmem:[#allocation2 + $0x178] sm:$0xff] %vm3117_vm9, %v13462_v56 }
 0x525   :  { %4919 = vmatmul.mubr.f32.gmra.mrb[22].mxu0 %v3642_v9 }
 0x527   :  { %v3683_v34 = vld [vmem:[#allocation2 + $0xb8] sm:$0xff] }
 0x528   :  { %4988 = vmatprep.mubr.f32.mxu1 %v3683_v34 }
 0x529   :  { %4989 = vmatmul.mubr.f32.vlgmr.msra.gmra.mrb[20].mxu1 %v3638_v4 }
 0x52b   :  { %v3707_v52 = vld [vmem:[#allocation2 + $0x178] sm:$0xff] }
 0x52c   :  { %4993 = vmatprep.mubr.f32.mxu1 %v3707_v52 }
 0x52d   :  { %4994 = vmatmul.mubr.f32.gmra.mrb[22].mxu1 %v3644_v40 }
 0x54d   :  { %v5366_v47 = vpop.f32.mrb[10].mxu0 }
 0x54e   :  { %v5367_v32 = vpop.f32.mrb[11].mxu0 }
 0x54f   :  { %v5368_v59 = vadd.f32 %v5367_v32, %v5366_v47  ;;  %v5176_v47 = vld [vmem:[%s12221_s6] ss:$0 sm:$0xff]  ;;  %s6180_s6 = smov [#allocation8]  }
 0x550   :  { %s5124_s20 = sshll.u32 %s6180_s6, 4  ;;  %s5125_s20 = int_to_ptr.vmem [resolvable:$true] %s5124_s20 }
 0x551   :  { %v4471_v3 = vadd.f32 %v5368_v59, %v4396_v12  ;;  %s6141_s0 = scalar_lea.vmem %s5125_s20, 256  ;;  %p6146_p11 = scmp.lt.s32.totalorder %s5125_s20, %s5125_s20 }
 0x552   :  { %p6142_p10 = scmp.ne.s32.totalorder %s5125_s20, %s6141_s0  ;;  %p6147_p12 = scmp.lt.s32.totalorder %s6141_s0, %s6141_s0 }
 0x554   :  { %v5404_v5 = vpop.f32.mrb[10].mxu1  ;;  %p6148_p13 = por %p6147_p12, %p6146_p11 }
 0x555   :  { %v5405_v46 = vpop.f32.mrb[11].mxu1 }
 0x556   :  { %v5406_v33 = vadd.f32 %v5405_v46, %v5404_v5  ;;  %p6149_p0 = pnand %p6148_p13, %p6142_p10 }
 0x558   :  { %v4546_v55 = vadd.f32 %v5406_v33, %v4471_v3 }
 0x571   :  { %v5439_v51 = vpop.f32.mrb[12].mxu0 }
 0x572   :  { %v5440_v29 = vpop.f32.mrb[13].mxu0 }
 0x573   :  { %v5441_v60 = vadd.f32 %v5440_v29, %v5439_v51 }
 0x575   :  { %v4616_v62 = vadd.f32 %v5441_v60, %v4541_v15 }
 0x576   :  { %v5477_v56 = vpop.f32.mrb[12].mxu1 }
 0x577   :  { %v5478_v21 = vpop.f32.mrb[13].mxu1 }
 0x578   :  { %v5479_v2 = vadd.f32 %v5478_v21, %v5477_v56 }
 0x57a   :  { %v4691_v43 = vadd.f32 %v5479_v2, %v4616_v62 }
 0x585   :  { %v5442_v0 = vpop.f32.mrb[14].mxu0 }
 0x586   :  { %v5443_v49 = vpop.f32.mrb[15].mxu0 }
 0x587   :  { %v5444_v45 = vadd.f32 %v5443_v49, %v5442_v0 }
 0x589   :  { %v4621_v16 = vadd.f32 %v5444_v45, %v4546_v55 }
 0x58a   :  { %v5480_v48 = vpop.f32.mrb[14].mxu1 }
 0x58b   :  { %v5481_v31 = vpop.f32.mrb[15].mxu1 }
 0x58c   :  { %v5482_v11 = vadd.f32 %v5481_v31, %v5480_v48 }
 0x58e   :  { %v4696_v28 = vadd.f32 %v5482_v11, %v4621_v16 }
 0x595   :  { %v5515_v12 = vpop.f32.mrb[16].mxu0 }
 0x596   :  { %v5553_v53 = vpop.f32.mrb[16].mxu1  ;;  %v5516_v27 = vpop.f32.mrb[17].mxu0 }
 0x597   :  { %v5554_v25 = vpop.f32.mrb[17].mxu1  ;;  %v5517_v54 = vadd.f32 %v5516_v27, %v5515_v12 }
 0x598   :  { %v5555_v42 = vadd.f32 %v5554_v25, %v5553_v53 }
 0x599   :  { %v4766_v24 = vadd.f32 %v5517_v54, %v4691_v43 }
 0x59b   :  { %v4841_v30 = vadd.f32 %v5555_v42, %v4766_v24 }
 0x59f   :  { %v5518_v58 = vpop.f32.mrb[18].mxu0 }
 0x5a0   :  { %v5519_v35 = vpop.f32.mrb[19].mxu0 }
 0x5a1   :  { %v5520_v23 = vadd.f32 %v5519_v35, %v5518_v58 }
 0x5a3   :  { %v4771_v19 = vadd.f32 %v5520_v23, %v4696_v28 }
 0x5e7   :  { %v5556_v8 = vpop.f32.mrb[18].mxu1 }
 0x5e8   :  { %v5557_v1 = vpop.f32.mrb[19].mxu1 }
 0x5e9   :  { %v5558_v13 = vadd.f32 %v5557_v1, %v5556_v8 }
 0x5eb   :  { %v4846_v37 = vadd.f32 %v5558_v13, %v4771_v19 }
 0x5f0   :  { %v5591_v6 = vpop.f32.mrb[20].mxu0 }
 0x5f1   :  { %v5592_v44 = vpop.f32.mrb[21].mxu0 }
 0x5f2   :  { %v5593_v61 = vadd.f32 %v5592_v44, %v5591_v6 }
 0x5f4   :  { %v4916_v4 = vadd.f32 %v5593_v61, %v4841_v30 }
 0x5f8   :  { %v5594_v9 = vpop.f32.mrb[22].mxu0 }
 0x5f9   :  { %v5595_v17 = vpop.f32.mrb[23].mxu0 }
 0x5fa   :  { %v5596_v20 = vadd.f32 %v5595_v17, %v5594_v9 }
 0x5fc   :  { %v5629_v26 = vpop.f32.mrb[20].mxu1  ;;  %v4921_v22 = vadd.f32 %v5596_v20, %v4846_v37 }
 0x5fd   :  { %v5630_v38 = vpop.f32.mrb[21].mxu1 }
 0x5fe   :  { %v5631_v18 = vadd.f32 %v5630_v38, %v5629_v26 }
 0x600   :  { %v4991_v14 = vadd.f32 %v5631_v18, %v4916_v4  ;;  %v5632_v36 = vpop.f32.mrb[22].mxu1 }
 0x601   :  { %v5633_v40 = vpop.f32.mrb[23].mxu1 }
 0x602   :  { %v4999_v39 = vmax.f32 %v4991_v14, 0.0  ;;  %v5634_v15 = vadd.f32 %v5633_v40, %v5632_v36 }
 0x604   :  { %5649 = vmatprep.mubr.msk.f32.mxu0 %vm5012_vm10, %v4999_v39  ;;  %v4996_v34 = vadd.f32 %v5634_v15, %v4921_v22 }
 0x606   :  { %v5000_v52 = vmax.f32 %v4996_v34, 0.0 }
 0x608   :  { %5650 = vmatmul.mubr.msk.f32.vlgmr.msra.gmra.mrb[24].mxu0 %vm5012_vm10, %v5000_v52 }
 0x6db   :  { %v5651_v32 = vpop.f32.mrb[24].mxu0 }
 0x6dc   :  { %v5091_v59 = vadd.f32 %v5651_v32, %v5176_v47  ;;  %v5085_v3 = vpop.f32.mrb[25].mxu0 }
 0x6dd   :  { %v5086_v5 = vadd.f32 %v5176_v47, %v5085_v3 }
 0x6de   :  { %v5098_v46 = vsel %vm5094_vm11, %v5091_v59, -inf }
 0x6df   :  { %5099 = vmax.xlane.f32.xlu1 %v5098_v46  ;;  %v5095_v33 = vsel %vm5094_vm11, %v5086_v5, -inf }
 0x6e0   :  { %5096 = vmax.xlane.f32.xlu0 %v5095_v33 }
 0x76c   :  { %v5100_v55 = vpop.xlane.xlu1 %5099 }
 0x76d   :  { %v5102_v51 = vsub.f32 %v5091_v59, %v5100_v55  ;;  %v5097_v29 = vpop.xlane.xlu0 %5096 }
 0x76e   :  { %v5101_v60 = vsub.f32 %v5086_v5, %v5097_v29 }
 0x76f   :  { %v5105_v62 = vmul.f32 1.442695, %v5102_v51 }
 0x770   :  { %v5103_v56 = vmul.f32 1.442695, %v5101_v60 }
 0x772   :  { %6058 = vpow2.f32 %v5103_v56 }
 0x773   :  { %6060 = vpow2.f32 %v5105_v62 }
 0x77c   :  { %v6059_v21 = vpop.eup %6058 }
 0x77d   :  { %v5107_v2 = vsel %vm5094_vm11, %v6059_v21, 0.0  ;;  %v6061_v43 = vpop.eup %6060 }
 0x77e   :  { %5108 = vadd.xlane.f32.xlu0 %v5107_v2  ;;  %v5110_v50 = vsel %vm5094_vm11, %v6061_v43, 0.0 }
 0x782   :  { %5111 = vadd.xlane.f32.xlu0 %v5110_v50 }
 0x80b   :  { %v5109_v57 = vpop.xlane.xlu0 %5108 }
 0x80c   :  { %6062 = vrcp.f32 %v5109_v57 }
 0x80f   :  { %v5112_v41 = vpop.xlane.xlu0 %5111 }
 0x810   :  { %6064 = vrcp.f32 %v5112_v41 }
 0x816   :  { %v6063_v10 = vpop.eup %6062 }
 0x817   :  { %v5115_v63 = vmul.f32 %v6063_v10, %v6059_v21 }
 0x819   :  { %5117 = vst.msk [vmem:[#allocation8] sm:$0xff] %vm5094_vm11, %v5115_v63 }
 0x81a   :  { %v6065_v7 = vpop.eup %6064 }
 0x81b   :  { %v5116_v0 = vmul.f32 %v6065_v7, %v6061_v43 }
 0x81d   :  { %5118 = vst.msk [vmem:[#allocation8 + $0x8] sm:$0xff] %vm5094_vm11, %v5116_v0 }
 0x81e   :  { %6152 = shalt.err (!%p6149_p0)
}
 0x81f   :  { %s6153_s25 = scalar_lea.hbm %s12222_s7, 256 }
 0x820   :  { %p6154_p1 = scmp.ne.s32.totalorder %s12222_s7, %s6153_s25  ;;  %p6157_p2 = scmp.lt.u32.totalorder %s6153_s25, %s12222_s7 }
 0x822   :  { %p6159_p3 = pnand %p6157_p2, %p6154_p1 }
 0x824   :  { %6162 = shalt.err (!%p6159_p3)
}
 0x825   :  { %s6181_s12 = smov 128   ;;  %s6182_s1 = smov 8  }
 0x826   :  { %5130 = dma.vmem_to_hbm [thread:$0]  %s5125_s20, 256, %s12222_s7, [#allocation4], %s6181_s12, %s6181_s12, %s6182_s1  }
 0x827   :  { %6167 = dma.done.wait [#allocation4], 256  }
 0x828   :  { %6168 = vsyncadd [#allocation4], 4294967040 }
 0x829   :  { %5134 = vsyncpa [#allocation4], 1 }
 0x82a   :  { %5135 = vsyncpa [#allocation5], 1 }
 0x82b   :  { %5136 = vsyncpa [#allocation7], 1 }

</bundles_post_ra>
